<compile_context>
chip_gen: v6e
topology: v6e:2x2x1
jax: 0.10.0
libtpu: 0.0.40
codegen_flags: <defaults>
</compile_context>

<pallas_src>
import jax
import jax.numpy as jnp
from jax.experimental import pallas as pl
from jax.experimental.pallas import tpu as pltpu

N_HIDDEN2 = 400    # n2 in the module (400 overrides 600)
N_HIDDEN3 = 250    # n3 (logical)
HP = 256           # padded hidden width used in-kernel
N_GAUSS = 10       # n_gaussian
N_GRID = 2100      # fac * 2100, fac = 1
Z_CHUNK = 128                              # one lane group per chunk
N_FULL_CHUNKS = N_GRID // Z_CHUNK          # 16
Z_REM = N_GRID - N_FULL_CHUNKS * Z_CHUNK   # 52 (masked tail chunk)
BN_EPS = 1e-5


def mdn_kernel(x_ref, w1_ref, b1_ref, w2_ref, b2_ref, wh_ref, bh_ref,
               bnfs_ref, bnfb_ref, whd_ref, bhd_ref, z_ref, prob_ref):
    f32 = jnp.float32
    bf16 = jnp.bfloat16

    def dense_relu(h, w, b):
        y = jnp.dot(h.astype(bf16), w, preferred_element_type=f32) + b
        return jnp.maximum(y, 0.0)

    # ---- MLP trunk (eval mode: Dropout=identity, BN folded into Linears) ----
    h = x_ref[...].astype(f32)
    h = dense_relu(h, w1_ref[...], b1_ref[...])          # zp + lin1
    h = dense_relu(h, w2_ref[...], b2_ref[...])          # lin2
    for i in range(13):                                  # lin3 (13 blocks)
        h = dense_relu(h, wh_ref[i], bh_ref[i])
    # lin4: BN(250) -> ReLU (preceded by a ReLU, so it stays an affine)
    h = jnp.maximum(h * bnfs_ref[...] + bnfb_ref[...], 0.0)

    # ---- MDN heads: single fused (HP, 30) matmul -> [logalpha | mu | logsig]
    head = (jnp.dot(h.astype(bf16), whd_ref[...], preferred_element_type=f32)
            + bhd_ref[...])
    la = head[:, 0:N_GAUSS]                          # (B, G)
    mu = head[:, N_GAUSS:2 * N_GAUSS]                # (B, G)
    logsig = head[:, 2 * N_GAUSS:3 * N_GAUSS]        # (B, G)

    # logalpha = logalpha - logsumexp(logalpha, 1)   (stable)
    la_max = jnp.max(la, axis=1, keepdims=True)
    la = la - (la_max +
               jnp.log(jnp.sum(jnp.exp(la - la_max), axis=1, keepdims=True)))

    # Per-gaussian constants hoisted out of the z loop:
    #   prob(z) ∝ sum_g exp(coef_g) * exp(-0.5/sig_g^2 * (z - mu_g)^2)
    # Subtracting the per-row max of coef keeps the weights in (0, 1] (no
    # overflow for tiny sigmas); the factor exp(cmax) cancels in the row
    # normalization below.  Only 10 exps per z element remain.
    coef = la - logsig                               # (B, G)
    cmax = jnp.max(coef, axis=1, keepdims=True)      # (B, 1)
    wg = jnp.exp(coef - cmax)                        # (B, G), in (0, 1]
    ag = -0.5 * jnp.exp(-2.0 * logsig)               # (B, G), = -0.5 / sig^2
    w_cols = [wg[:, g:g + 1] for g in range(N_GAUSS)]
    a_cols = [ag[:, g:g + 1] for g in range(N_GAUSS)]
    mu_cols = [mu[:, g:g + 1] for g in range(N_GAUSS)]

    # ---- grid evaluation, chunked over z to bound the vreg working set ----
    tb = prob_ref.shape[0]
    rowsum = jnp.zeros((tb, 1), f32)

    def chunk_prob(zc):                              # zc: (1, size)
        acc = w_cols[0] * jnp.exp(a_cols[0] * jnp.square(zc - mu_cols[0]))
        for g in range(1, N_GAUSS):
            acc = acc + w_cols[g] * jnp.exp(a_cols[g] * jnp.square(zc - mu_cols[g]))
        return acc                                   # (tb, size)

    chunk_bounds = [(c * Z_CHUNK, Z_CHUNK) for c in range(N_FULL_CHUNKS)]
    if Z_REM:
        chunk_bounds.append((N_FULL_CHUNKS * Z_CHUNK, Z_REM))

    # Pass 1: unnormalized probs stored per chunk, accumulate (tb, 1) row sum.
    for start, size in chunk_bounds:
        acc = chunk_prob(z_ref[:, start:start + size])
        rowsum = rowsum + jnp.sum(acc, axis=1, keepdims=True)
        prob_ref[:, start:start + size] = acc

    # Pass 2: normalize in place (cheap VMEM ld/mul/st per chunk).
    denom = rowsum + 1e-30                           # NaN-guard if all mass off-grid
    inv = pl.reciprocal(denom, approx=True)
    inv = inv * (2.0 - denom * inv)                  # one Newton step
    for start, size in chunk_bounds:
        prob_ref[:, start:start + size] = prob_ref[:, start:start + size] * inv


def _round_up(n, m):
    return ((n + m - 1) // m) * m


def mdn_forward(x, params, *, batch_block=256):
    B, F = x.shape
    if B > batch_block:
        TB = batch_block
    elif B > 16:
        # >=2 grid steps so both v7x TensorCores get a batch slice
        # (harmless on single-core v5e/v6e: just two pipelined steps).
        TB = _round_up(pl.cdiv(B, 2), 8)
    else:
        TB = B                                   # tiny batch: one exact block
    grid = (pl.cdiv(B, TB),)

    def bmap(i):
        return (i, 0)

    def full2(a):
        return pl.BlockSpec(a.shape, lambda i: (0, 0))

    def full3(a):
        return pl.BlockSpec(a.shape, lambda i: (0, 0, 0))

    inputs = (x, params["w1"], params["b1"], params["w2"], params["b2"],
              params["wh"], params["bh"], params["bnf_scale"],
              params["bnf_shift"], params["whead"], params["bhead"],
              params["z"])
    in_specs = [
        pl.BlockSpec((TB, F), bmap),
        full2(params["w1"]), full2(params["b1"]),
        full2(params["w2"]), full2(params["b2"]),
        full3(params["wh"]), full3(params["bh"]),
        full2(params["bnf_scale"]), full2(params["bnf_shift"]),
        full2(params["whead"]), full2(params["bhead"]),
        full2(params["z"]),
    ]
    return pl.pallas_call(
        mdn_kernel,
        out_shape=jax.ShapeDtypeStruct((B, N_GRID), jnp.float32),
        grid=grid,
        in_specs=in_specs,
        out_specs=pl.BlockSpec((TB, N_GRID), bmap),
        compiler_params=pltpu.CompilerParams(
            dimension_semantics=("parallel",),
            vmem_limit_bytes=32 * 1024 * 1024),
    )(*inputs)


def init_params(key, n_input):
    """Raw PyTorch-equivalent parameters (eval-mode BN stats at defaults)."""
    keys = iter(jax.random.split(key, 40))

    def lin(fan_in, fan_out):
        kw, kb = jax.random.split(next(keys))
        bound = 1.0 / (fan_in ** 0.5)
        w = jax.random.uniform(kw, (fan_in, fan_out), jnp.float32, -bound, bound)
        b = jax.random.uniform(kb, (1, fan_out), jnp.float32, -bound, bound)
        return w, b

    def bn(n):
        # PyTorch defaults: gamma=1, beta=0, running_mean=0, running_var=1
        return dict(gamma=jnp.ones((n,), jnp.float32),
                    beta=jnp.zeros((n,), jnp.float32),
                    mean=jnp.zeros((n,), jnp.float32),
                    var=jnp.ones((n,), jnp.float32))

    raw = {}
    raw["bn0"] = bn(n_input)
    raw["w1"], raw["b1"] = lin(n_input, N_HIDDEN2)
    raw["bn1"] = bn(N_HIDDEN2)
    raw["w2"], raw["b2"] = lin(N_HIDDEN2, N_HIDDEN3)
    raw["bnh"], raw["wh"], raw["bh"] = [], [], []
    for _ in range(13):
        raw["bnh"].append(bn(N_HIDDEN3))
        w, b = lin(N_HIDDEN3, N_HIDDEN3)
        raw["wh"].append(w)
        raw["bh"].append(b)
    raw["bnf"] = bn(N_HIDDEN3)
    raw["wa"], raw["ba"] = lin(N_HIDDEN3, N_GAUSS)
    raw["wm"], raw["bm"] = lin(N_HIDDEN3, N_GAUSS)
    raw["wv"], raw["bv"] = lin(N_HIDDEN3, N_GAUSS)
    return raw


def prepare_params(raw):
    """Fold eval-mode BNs into Linears, pad 250->256, fuse heads, cast bf16."""
    def bn_affine(p):
        s = p["gamma"] * jax.lax.rsqrt(p["var"] + BN_EPS)
        t = p["beta"] - p["mean"] * s
        return s, t

    def fold(bn_p, w, b):
        # BN(x) @ W + b == x @ (s[:,None]*W) + (b + t @ W)
        s, t = bn_affine(bn_p)
        return w * s[:, None], b + t[None, :] @ w

    def pad2(a, rows, cols, fill=0.0):
        out = jnp.full((rows, cols), fill, a.dtype)
        return out.at[:a.shape[0], :a.shape[1]].set(a)

    p = {}
    w1, b1 = fold(raw["bn0"], raw["w1"], raw["b1"])
    p["w1"], p["b1"] = w1.astype(jnp.bfloat16), b1                  # (F,400),(1,400)
    w2, b2 = fold(raw["bn1"], raw["w2"], raw["b2"])
    p["w2"] = pad2(w2, N_HIDDEN2, HP).astype(jnp.bfloat16)          # (400,256)
    p["b2"] = pad2(b2, 1, HP)                                       # (1,256)
    whs, bhs = [], []
    for i in range(13):
        w, b = fold(raw["bnh"][i], raw["wh"][i], raw["bh"][i])
        whs.append(pad2(w, HP, HP))
        bhs.append(pad2(b, 1, HP))
    p["wh"] = jnp.stack(whs).astype(jnp.bfloat16)                   # (13,256,256)
    p["bh"] = jnp.stack(bhs)                                        # (13,1,256)
    sf, tf = bn_affine(raw["bnf"])
    p["bnf_scale"] = pad2(sf.reshape(1, -1), 1, HP, fill=1.0)       # (1,256)
    p["bnf_shift"] = pad2(tf.reshape(1, -1), 1, HP, fill=0.0)       # (1,256)
    whead = jnp.concatenate([raw["wa"], raw["wm"], raw["wv"]], axis=1)   # (250,30)
    p["whead"] = pad2(whead, HP, 3 * N_GAUSS).astype(jnp.bfloat16)       # (256,30)
    p["bhead"] = jnp.concatenate([raw["ba"], raw["bm"], raw["bv"]], axis=1)
    # torch.linspace(0, 2.1, 2100) -- endpoint inclusive, same as jnp.linspace
    p["z"] = jnp.linspace(0.0, 2.1, N_GRID, dtype=jnp.float32).reshape(1, N_GRID)
    return p


def reference_forward(x, raw):
    """Pure-JAX f32 reference of MDNNetwork.forward (eval mode)."""
    def bn(p, h):
        return (h - p["mean"]) * jax.lax.rsqrt(p["var"] + BN_EPS) * p["gamma"] + p["beta"]

    h = bn(raw["bn0"], x)
    h = jax.nn.relu(h @ raw["w1"] + raw["b1"])
    h = bn(raw["bn1"], h)
    h = jax.nn.relu(h @ raw["w2"] + raw["b2"])
    for i in range(13):
        h = jax.nn.relu(bn(raw["bnh"][i], h) @ raw["wh"][i] + raw["bh"][i])
    h = jax.nn.relu(bn(raw["bnf"], h))
    la = h @ raw["wa"] + raw["ba"]
    la = la - jax.scipy.special.logsumexp(la, axis=1, keepdims=True)
    mu = h @ raw["wm"] + raw["bm"]
    logsig = h @ raw["wv"] + raw["bv"]
    z = jnp.linspace(0.0, 2.1, N_GRID, dtype=jnp.float32)
    lp = (la[:, None, :]
          - 0.5 * (z[None, :, None] - mu[:, None, :]) ** 2 / jnp.exp(logsig)[:, None, :] ** 2
          - logsig[:, None, :])
    lp = jax.scipy.special.logsumexp(lp, axis=2)
    prob = jnp.exp(lp)
    return prob / jnp.sum(prob, axis=1, keepdims=True)


if __name__ == "__main__":
    key = jax.random.PRNGKey(0)
    kx, kp = jax.random.split(key)
    B, NINPUT = 8, 16
    x = jax.random.normal(kx, (B, NINPUT), jnp.float32)
    raw = init_params(kp, NINPUT)
    params = prepare_params(raw)

    prob = jax.block_until_ready(mdn_forward(x, params))

    assert prob.shape == (B, N_GRID)
    assert bool(jnp.all(jnp.isfinite(prob)))
    assert bool(jnp.allclose(jnp.sum(prob, axis=1), 1.0, atol=1e-4))

    # Loose check against the f32 reference (kernel streams bf16 weights).
    ref = reference_forward(x, raw)
    max_err = float(jnp.max(jnp.abs(prob - ref)))
    assert max_err <= 5e-2 * float(jnp.max(ref)), max_err

    print("KERNEL_OK")
</pallas_src>

<mosaic_0001>
module attributes {stable_mosaic.version = 11 : i64} {
  func.func @mdn_kernel(%arg0: i32, %arg1: memref<8x16xf32, #tpu.memory_space<vmem>>, %arg2: memref<16x400xbf16, #tpu.memory_space<vmem>>, %arg3: memref<1x400xf32, #tpu.memory_space<vmem>>, %arg4: memref<400x256xbf16, #tpu.memory_space<vmem>>, %arg5: memref<1x256xf32, #tpu.memory_space<vmem>>, %arg6: memref<13x256x256xbf16, #tpu.memory_space<vmem>>, %arg7: memref<13x1x256xf32, #tpu.memory_space<vmem>>, %arg8: memref<1x256xf32, #tpu.memory_space<vmem>>, %arg9: memref<1x256xf32, #tpu.memory_space<vmem>>, %arg10: memref<256x30xbf16, #tpu.memory_space<vmem>>, %arg11: memref<1x30xf32, #tpu.memory_space<vmem>>, %arg12: memref<1x2100xf32, #tpu.memory_space<vmem>>, %arg13: memref<8x2100xf32, #tpu.memory_space<vmem>>) attributes {dimension_semantics = [#tpu.dimension_semantics<parallel>], iteration_bounds = array<i64: 1>, scalar_prefetch = 0 : i64, scratch_operands = 0 : i64, tpu.core_type = #tpu.core_type<tc>, window_params = [{transform_indices = @transform_0, window_bounds = array<i64: 8, 16>}, {pipeline_mode = #tpu.pipeline_mode<synchronous>, transform_indices = @transform_1, window_bounds = array<i64: 16, 400>}, {pipeline_mode = #tpu.pipeline_mode<synchronous>, transform_indices = @transform_2, window_bounds = array<i64: 1, 400>}, {pipeline_mode = #tpu.pipeline_mode<synchronous>, transform_indices = @transform_3, window_bounds = array<i64: 400, 256>}, {pipeline_mode = #tpu.pipeline_mode<synchronous>, transform_indices = @transform_4, window_bounds = array<i64: 1, 256>}, {pipeline_mode = #tpu.pipeline_mode<synchronous>, transform_indices = @transform_5, window_bounds = array<i64: 13, 256, 256>}, {pipeline_mode = #tpu.pipeline_mode<synchronous>, transform_indices = @transform_6, window_bounds = array<i64: 13, 1, 256>}, {pipeline_mode = #tpu.pipeline_mode<synchronous>, transform_indices = @transform_7, window_bounds = array<i64: 1, 256>}, {pipeline_mode = #tpu.pipeline_mode<synchronous>, transform_indices = @transform_8, window_bounds = array<i64: 1, 256>}, {pipeline_mode = #tpu.pipeline_mode<synchronous>, transform_indices = @transform_9, window_bounds = array<i64: 256, 30>}, {pipeline_mode = #tpu.pipeline_mode<synchronous>, transform_indices = @transform_10, window_bounds = array<i64: 1, 30>}, {pipeline_mode = #tpu.pipeline_mode<synchronous>, transform_indices = @transform_11, window_bounds = array<i64: 1, 2100>}, {transform_indices = @transform_12, window_bounds = array<i64: 8, 2100>}]} {
    %c0 = arith.constant 0 : index
    %c0_0 = arith.constant 0 : index
    %0 = vector.load %arg1[%c0, %c0_0] : memref<8x16xf32, #tpu.memory_space<vmem>>, vector<8x16xf32>
    %c0_1 = arith.constant 0 : index
    %c0_2 = arith.constant 0 : index
    %1 = vector.load %arg2[%c0_1, %c0_2] : memref<16x400xbf16, #tpu.memory_space<vmem>>, vector<16x400xbf16>
    %c0_3 = arith.constant 0 : index
    %c0_4 = arith.constant 0 : index
    %2 = vector.load %arg3[%c0_3, %c0_4] : memref<1x400xf32, #tpu.memory_space<vmem>>, vector<1x400xf32>
    %3 = arith.truncf %0 : vector<8x16xf32> to vector<8x16xbf16>
    %cst = arith.constant dense<0.000000e+00> : vector<8x400xf32>
    %4 = tpu.matmul %3, %1, %cst {dimension_numbers = #tpu.dot_dimension_numbers<[1], [0], [0], [1], [0, 0, 1, 1], [], []>} : vector<8x16xbf16>, vector<16x400xbf16>, vector<8x400xf32> -> vector<8x400xf32>
    %5 = vector.broadcast %2 : vector<1x400xf32> to vector<8x400xf32>
    %6 = arith.addf %4, %5 : vector<8x400xf32>
    %cst_5 = arith.constant 0.000000e+00 : f32
    %7 = vector.broadcast %cst_5 : f32 to vector<8x400xf32>
    %8 = arith.maximumf %6, %7 : vector<8x400xf32>
    %c0_6 = arith.constant 0 : index
    %c0_7 = arith.constant 0 : index
    %9 = vector.load %arg4[%c0_6, %c0_7] : memref<400x256xbf16, #tpu.memory_space<vmem>>, vector<400x256xbf16>
    %c0_8 = arith.constant 0 : index
    %c0_9 = arith.constant 0 : index
    %10 = vector.load %arg5[%c0_8, %c0_9] : memref<1x256xf32, #tpu.memory_space<vmem>>, vector<1x256xf32>
    %11 = arith.truncf %8 : vector<8x400xf32> to vector<8x400xbf16>
    %cst_10 = arith.constant dense<0.000000e+00> : vector<8x256xf32>
    %12 = tpu.matmul %11, %9, %cst_10 {dimension_numbers = #tpu.dot_dimension_numbers<[1], [0], [0], [1], [0, 0, 1, 1], [], []>} : vector<8x400xbf16>, vector<400x256xbf16>, vector<8x256xf32> -> vector<8x256xf32>
    %13 = vector.broadcast %10 : vector<1x256xf32> to vector<8x256xf32>
    %14 = arith.addf %12, %13 : vector<8x256xf32>
    %cst_11 = arith.constant 0.000000e+00 : f32
    %15 = vector.broadcast %cst_11 : f32 to vector<8x256xf32>
    %16 = arith.maximumf %14, %15 : vector<8x256xf32>
    %c0_12 = arith.constant 0 : index
    %c0_13 = arith.constant 0 : index
    %c0_14 = arith.constant 0 : index
    %17 = vector.load %arg6[%c0_12, %c0_13, %c0_14] : memref<13x256x256xbf16, #tpu.memory_space<vmem>>, vector<1x256x256xbf16>
    %18 = vector.shape_cast %17 : vector<1x256x256xbf16> to vector<256x256xbf16>
    %c0_15 = arith.constant 0 : index
    %c0_16 = arith.constant 0 : index
    %c0_17 = arith.constant 0 : index
    %19 = vector.load %arg7[%c0_15, %c0_16, %c0_17] : memref<13x1x256xf32, #tpu.memory_space<vmem>>, vector<1x1x256xf32>
    %20 = vector.shape_cast %19 : vector<1x1x256xf32> to vector<1x256xf32>
    %21 = arith.truncf %16 : vector<8x256xf32> to vector<8x256xbf16>
    %cst_18 = arith.constant dense<0.000000e+00> : vector<8x256xf32>
    %22 = tpu.matmul %21, %18, %cst_18 {dimension_numbers = #tpu.dot_dimension_numbers<[1], [0], [0], [1], [0, 0, 1, 1], [], []>} : vector<8x256xbf16>, vector<256x256xbf16>, vector<8x256xf32> -> vector<8x256xf32>
    %23 = vector.broadcast %20 : vector<1x256xf32> to vector<8x256xf32>
    %24 = arith.addf %22, %23 : vector<8x256xf32>
    %cst_19 = arith.constant 0.000000e+00 : f32
    %25 = vector.broadcast %cst_19 : f32 to vector<8x256xf32>
    %26 = arith.maximumf %24, %25 : vector<8x256xf32>
    %c1 = arith.constant 1 : index
    %c0_20 = arith.constant 0 : index
    %c0_21 = arith.constant 0 : index
    %27 = vector.load %arg6[%c1, %c0_20, %c0_21] : memref<13x256x256xbf16, #tpu.memory_space<vmem>>, vector<1x256x256xbf16>
    %28 = vector.shape_cast %27 : vector<1x256x256xbf16> to vector<256x256xbf16>
    %c1_22 = arith.constant 1 : index
    %c0_23 = arith.constant 0 : index
    %c0_24 = arith.constant 0 : index
    %29 = vector.load %arg7[%c1_22, %c0_23, %c0_24] : memref<13x1x256xf32, #tpu.memory_space<vmem>>, vector<1x1x256xf32>
    %30 = vector.shape_cast %29 : vector<1x1x256xf32> to vector<1x256xf32>
    %31 = arith.truncf %26 : vector<8x256xf32> to vector<8x256xbf16>
    %cst_25 = arith.constant dense<0.000000e+00> : vector<8x256xf32>
    %32 = tpu.matmul %31, %28, %cst_25 {dimension_numbers = #tpu.dot_dimension_numbers<[1], [0], [0], [1], [0, 0, 1, 1], [], []>} : vector<8x256xbf16>, vector<256x256xbf16>, vector<8x256xf32> -> vector<8x256xf32>
    %33 = vector.broadcast %30 : vector<1x256xf32> to vector<8x256xf32>
    %34 = arith.addf %32, %33 : vector<8x256xf32>
    %cst_26 = arith.constant 0.000000e+00 : f32
    %35 = vector.broadcast %cst_26 : f32 to vector<8x256xf32>
    %36 = arith.maximumf %34, %35 : vector<8x256xf32>
    %c2 = arith.constant 2 : index
    %c0_27 = arith.constant 0 : index
    %c0_28 = arith.constant 0 : index
    %37 = vector.load %arg6[%c2, %c0_27, %c0_28] : memref<13x256x256xbf16, #tpu.memory_space<vmem>>, vector<1x256x256xbf16>
    %38 = vector.shape_cast %37 : vector<1x256x256xbf16> to vector<256x256xbf16>
    %c2_29 = arith.constant 2 : index
    %c0_30 = arith.constant 0 : index
    %c0_31 = arith.constant 0 : index
    %39 = vector.load %arg7[%c2_29, %c0_30, %c0_31] : memref<13x1x256xf32, #tpu.memory_space<vmem>>, vector<1x1x256xf32>
    %40 = vector.shape_cast %39 : vector<1x1x256xf32> to vector<1x256xf32>
    %41 = arith.truncf %36 : vector<8x256xf32> to vector<8x256xbf16>
    %cst_32 = arith.constant dense<0.000000e+00> : vector<8x256xf32>
    %42 = tpu.matmul %41, %38, %cst_32 {dimension_numbers = #tpu.dot_dimension_numbers<[1], [0], [0], [1], [0, 0, 1, 1], [], []>} : vector<8x256xbf16>, vector<256x256xbf16>, vector<8x256xf32> -> vector<8x256xf32>
    %43 = vector.broadcast %40 : vector<1x256xf32> to vector<8x256xf32>
    %44 = arith.addf %42, %43 : vector<8x256xf32>
    %cst_33 = arith.constant 0.000000e+00 : f32
    %45 = vector.broadcast %cst_33 : f32 to vector<8x256xf32>
    %46 = arith.maximumf %44, %45 : vector<8x256xf32>
    %c3 = arith.constant 3 : index
    %c0_34 = arith.constant 0 : index
    %c0_35 = arith.constant 0 : index
    %47 = vector.load %arg6[%c3, %c0_34, %c0_35] : memref<13x256x256xbf16, #tpu.memory_space<vmem>>, vector<1x256x256xbf16>
    %48 = vector.shape_cast %47 : vector<1x256x256xbf16> to vector<256x256xbf16>
    %c3_36 = arith.constant 3 : index
    %c0_37 = arith.constant 0 : index
    %c0_38 = arith.constant 0 : index
    %49 = vector.load %arg7[%c3_36, %c0_37, %c0_38] : memref<13x1x256xf32, #tpu.memory_space<vmem>>, vector<1x1x256xf32>
    %50 = vector.shape_cast %49 : vector<1x1x256xf32> to vector<1x256xf32>
    %51 = arith.truncf %46 : vector<8x256xf32> to vector<8x256xbf16>
    %cst_39 = arith.constant dense<0.000000e+00> : vector<8x256xf32>
    %52 = tpu.matmul %51, %48, %cst_39 {dimension_numbers = #tpu.dot_dimension_numbers<[1], [0], [0], [1], [0, 0, 1, 1], [], []>} : vector<8x256xbf16>, vector<256x256xbf16>, vector<8x256xf32> -> vector<8x256xf32>
    %53 = vector.broadcast %50 : vector<1x256xf32> to vector<8x256xf32>
    %54 = arith.addf %52, %53 : vector<8x256xf32>
    %cst_40 = arith.constant 0.000000e+00 : f32
    %55 = vector.broadcast %cst_40 : f32 to vector<8x256xf32>
    %56 = arith.maximumf %54, %55 : vector<8x256xf32>
    %c4 = arith.constant 4 : index
    %c0_41 = arith.constant 0 : index
    %c0_42 = arith.constant 0 : index
    %57 = vector.load %arg6[%c4, %c0_41, %c0_42] : memref<13x256x256xbf16, #tpu.memory_space<vmem>>, vector<1x256x256xbf16>
    %58 = vector.shape_cast %57 : vector<1x256x256xbf16> to vector<256x256xbf16>
    %c4_43 = arith.constant 4 : index
    %c0_44 = arith.constant 0 : index
    %c0_45 = arith.constant 0 : index
    %59 = vector.load %arg7[%c4_43, %c0_44, %c0_45] : memref<13x1x256xf32, #tpu.memory_space<vmem>>, vector<1x1x256xf32>
    %60 = vector.shape_cast %59 : vector<1x1x256xf32> to vector<1x256xf32>
    %61 = arith.truncf %56 : vector<8x256xf32> to vector<8x256xbf16>
    %cst_46 = arith.constant dense<0.000000e+00> : vector<8x256xf32>
    %62 = tpu.matmul %61, %58, %cst_46 {dimension_numbers = #tpu.dot_dimension_numbers<[1], [0], [0], [1], [0, 0, 1, 1], [], []>} : vector<8x256xbf16>, vector<256x256xbf16>, vector<8x256xf32> -> vector<8x256xf32>
    %63 = vector.broadcast %60 : vector<1x256xf32> to vector<8x256xf32>
    %64 = arith.addf %62, %63 : vector<8x256xf32>
    %cst_47 = arith.constant 0.000000e+00 : f32
    %65 = vector.broadcast %cst_47 : f32 to vector<8x256xf32>
    %66 = arith.maximumf %64, %65 : vector<8x256xf32>
    %c5 = arith.constant 5 : index
    %c0_48 = arith.constant 0 : index
    %c0_49 = arith.constant 0 : index
    %67 = vector.load %arg6[%c5, %c0_48, %c0_49] : memref<13x256x256xbf16, #tpu.memory_space<vmem>>, vector<1x256x256xbf16>
    %68 = vector.shape_cast %67 : vector<1x256x256xbf16> to vector<256x256xbf16>
    %c5_50 = arith.constant 5 : index
    %c0_51 = arith.constant 0 : index
    %c0_52 = arith.constant 0 : index
    %69 = vector.load %arg7[%c5_50, %c0_51, %c0_52] : memref<13x1x256xf32, #tpu.memory_space<vmem>>, vector<1x1x256xf32>
    %70 = vector.shape_cast %69 : vector<1x1x256xf32> to vector<1x256xf32>
    %71 = arith.truncf %66 : vector<8x256xf32> to vector<8x256xbf16>
    %cst_53 = arith.constant dense<0.000000e+00> : vector<8x256xf32>
    %72 = tpu.matmul %71, %68, %cst_53 {dimension_numbers = #tpu.dot_dimension_numbers<[1], [0], [0], [1], [0, 0, 1, 1], [], []>} : vector<8x256xbf16>, vector<256x256xbf16>, vector<8x256xf32> -> vector<8x256xf32>
    %73 = vector.broadcast %70 : vector<1x256xf32> to vector<8x256xf32>
    %74 = arith.addf %72, %73 : vector<8x256xf32>
    %cst_54 = arith.constant 0.000000e+00 : f32
    %75 = vector.broadcast %cst_54 : f32 to vector<8x256xf32>
    %76 = arith.maximumf %74, %75 : vector<8x256xf32>
    %c6 = arith.constant 6 : index
    %c0_55 = arith.constant 0 : index
    %c0_56 = arith.constant 0 : index
    %77 = vector.load %arg6[%c6, %c0_55, %c0_56] : memref<13x256x256xbf16, #tpu.memory_space<vmem>>, vector<1x256x256xbf16>
    %78 = vector.shape_cast %77 : vector<1x256x256xbf16> to vector<256x256xbf16>
    %c6_57 = arith.constant 6 : index
    %c0_58 = arith.constant 0 : index
    %c0_59 = arith.constant 0 : index
    %79 = vector.load %arg7[%c6_57, %c0_58, %c0_59] : memref<13x1x256xf32, #tpu.memory_space<vmem>>, vector<1x1x256xf32>
    %80 = vector.shape_cast %79 : vector<1x1x256xf32> to vector<1x256xf32>
    %81 = arith.truncf %76 : vector<8x256xf32> to vector<8x256xbf16>
    %cst_60 = arith.constant dense<0.000000e+00> : vector<8x256xf32>
    %82 = tpu.matmul %81, %78, %cst_60 {dimension_numbers = #tpu.dot_dimension_numbers<[1], [0], [0], [1], [0, 0, 1, 1], [], []>} : vector<8x256xbf16>, vector<256x256xbf16>, vector<8x256xf32> -> vector<8x256xf32>
    %83 = vector.broadcast %80 : vector<1x256xf32> to vector<8x256xf32>
    %84 = arith.addf %82, %83 : vector<8x256xf32>
    %cst_61 = arith.constant 0.000000e+00 : f32
    %85 = vector.broadcast %cst_61 : f32 to vector<8x256xf32>
    %86 = arith.maximumf %84, %85 : vector<8x256xf32>
    %c7 = arith.constant 7 : index
    %c0_62 = arith.constant 0 : index
    %c0_63 = arith.constant 0 : index
    %87 = vector.load %arg6[%c7, %c0_62, %c0_63] : memref<13x256x256xbf16, #tpu.memory_space<vmem>>, vector<1x256x256xbf16>
    %88 = vector.shape_cast %87 : vector<1x256x256xbf16> to vector<256x256xbf16>
    %c7_64 = arith.constant 7 : index
    %c0_65 = arith.constant 0 : index
    %c0_66 = arith.constant 0 : index
    %89 = vector.load %arg7[%c7_64, %c0_65, %c0_66] : memref<13x1x256xf32, #tpu.memory_space<vmem>>, vector<1x1x256xf32>
    %90 = vector.shape_cast %89 : vector<1x1x256xf32> to vector<1x256xf32>
    %91 = arith.truncf %86 : vector<8x256xf32> to vector<8x256xbf16>
    %cst_67 = arith.constant dense<0.000000e+00> : vector<8x256xf32>
    %92 = tpu.matmul %91, %88, %cst_67 {dimension_numbers = #tpu.dot_dimension_numbers<[1], [0], [0], [1], [0, 0, 1, 1], [], []>} : vector<8x256xbf16>, vector<256x256xbf16>, vector<8x256xf32> -> vector<8x256xf32>
    %93 = vector.broadcast %90 : vector<1x256xf32> to vector<8x256xf32>
    %94 = arith.addf %92, %93 : vector<8x256xf32>
    %cst_68 = arith.constant 0.000000e+00 : f32
    %95 = vector.broadcast %cst_68 : f32 to vector<8x256xf32>
    %96 = arith.maximumf %94, %95 : vector<8x256xf32>
    %c8 = arith.constant 8 : index
    %c0_69 = arith.constant 0 : index
    %c0_70 = arith.constant 0 : index
    %97 = vector.load %arg6[%c8, %c0_69, %c0_70] : memref<13x256x256xbf16, #tpu.memory_space<vmem>>, vector<1x256x256xbf16>
    %98 = vector.shape_cast %97 : vector<1x256x256xbf16> to vector<256x256xbf16>
    %c8_71 = arith.constant 8 : index
    %c0_72 = arith.constant 0 : index
    %c0_73 = arith.constant 0 : index
    %99 = vector.load %arg7[%c8_71, %c0_72, %c0_73] : memref<13x1x256xf32, #tpu.memory_space<vmem>>, vector<1x1x256xf32>
    %100 = vector.shape_cast %99 : vector<1x1x256xf32> to vector<1x256xf32>
    %101 = arith.truncf %96 : vector<8x256xf32> to vector<8x256xbf16>
    %cst_74 = arith.constant dense<0.000000e+00> : vector<8x256xf32>
    %102 = tpu.matmul %101, %98, %cst_74 {dimension_numbers = #tpu.dot_dimension_numbers<[1], [0], [0], [1], [0, 0, 1, 1], [], []>} : vector<8x256xbf16>, vector<256x256xbf16>, vector<8x256xf32> -> vector<8x256xf32>
    %103 = vector.broadcast %100 : vector<1x256xf32> to vector<8x256xf32>
    %104 = arith.addf %102, %103 : vector<8x256xf32>
    %cst_75 = arith.constant 0.000000e+00 : f32
    %105 = vector.broadcast %cst_75 : f32 to vector<8x256xf32>
    %106 = arith.maximumf %104, %105 : vector<8x256xf32>
    %c9 = arith.constant 9 : index
    %c0_76 = arith.constant 0 : index
    %c0_77 = arith.constant 0 : index
    %107 = vector.load %arg6[%c9, %c0_76, %c0_77] : memref<13x256x256xbf16, #tpu.memory_space<vmem>>, vector<1x256x256xbf16>
    %108 = vector.shape_cast %107 : vector<1x256x256xbf16> to vector<256x256xbf16>
    %c9_78 = arith.constant 9 : index
    %c0_79 = arith.constant 0 : index
    %c0_80 = arith.constant 0 : index
    %109 = vector.load %arg7[%c9_78, %c0_79, %c0_80] : memref<13x1x256xf32, #tpu.memory_space<vmem>>, vector<1x1x256xf32>
    %110 = vector.shape_cast %109 : vector<1x1x256xf32> to vector<1x256xf32>
    %111 = arith.truncf %106 : vector<8x256xf32> to vector<8x256xbf16>
    %cst_81 = arith.constant dense<0.000000e+00> : vector<8x256xf32>
    %112 = tpu.matmul %111, %108, %cst_81 {dimension_numbers = #tpu.dot_dimension_numbers<[1], [0], [0], [1], [0, 0, 1, 1], [], []>} : vector<8x256xbf16>, vector<256x256xbf16>, vector<8x256xf32> -> vector<8x256xf32>
    %113 = vector.broadcast %110 : vector<1x256xf32> to vector<8x256xf32>
    %114 = arith.addf %112, %113 : vector<8x256xf32>
    %cst_82 = arith.constant 0.000000e+00 : f32
    %115 = vector.broadcast %cst_82 : f32 to vector<8x256xf32>
    %116 = arith.maximumf %114, %115 : vector<8x256xf32>
    %c10 = arith.constant 10 : index
    %c0_83 = arith.constant 0 : index
    %c0_84 = arith.constant 0 : index
    %117 = vector.load %arg6[%c10, %c0_83, %c0_84] : memref<13x256x256xbf16, #tpu.memory_space<vmem>>, vector<1x256x256xbf16>
    %118 = vector.shape_cast %117 : vector<1x256x256xbf16> to vector<256x256xbf16>
    %c10_85 = arith.constant 10 : index
    %c0_86 = arith.constant 0 : index
    %c0_87 = arith.constant 0 : index
    %119 = vector.load %arg7[%c10_85, %c0_86, %c0_87] : memref<13x1x256xf32, #tpu.memory_space<vmem>>, vector<1x1x256xf32>
    %120 = vector.shape_cast %119 : vector<1x1x256xf32> to vector<1x256xf32>
    %121 = arith.truncf %116 : vector<8x256xf32> to vector<8x256xbf16>
    %cst_88 = arith.constant dense<0.000000e+00> : vector<8x256xf32>
    %122 = tpu.matmul %121, %118, %cst_88 {dimension_numbers = #tpu.dot_dimension_numbers<[1], [0], [0], [1], [0, 0, 1, 1], [], []>} : vector<8x256xbf16>, vector<256x256xbf16>, vector<8x256xf32> -> vector<8x256xf32>
    %123 = vector.broadcast %120 : vector<1x256xf32> to vector<8x256xf32>
    %124 = arith.addf %122, %123 : vector<8x256xf32>
    %cst_89 = arith.constant 0.000000e+00 : f32
    %125 = vector.broadcast %cst_89 : f32 to vector<8x256xf32>
    %126 = arith.maximumf %124, %125 : vector<8x256xf32>
    %c11 = arith.constant 11 : index
    %c0_90 = arith.constant 0 : index
    %c0_91 = arith.constant 0 : index
    %127 = vector.load %arg6[%c11, %c0_90, %c0_91] : memref<13x256x256xbf16, #tpu.memory_space<vmem>>, vector<1x256x256xbf16>
    %128 = vector.shape_cast %127 : vector<1x256x256xbf16> to vector<256x256xbf16>
    %c11_92 = arith.constant 11 : index
    %c0_93 = arith.constant 0 : index
    %c0_94 = arith.constant 0 : index
    %129 = vector.load %arg7[%c11_92, %c0_93, %c0_94] : memref<13x1x256xf32, #tpu.memory_space<vmem>>, vector<1x1x256xf32>
    %130 = vector.shape_cast %129 : vector<1x1x256xf32> to vector<1x256xf32>
    %131 = arith.truncf %126 : vector<8x256xf32> to vector<8x256xbf16>
    %cst_95 = arith.constant dense<0.000000e+00> : vector<8x256xf32>
    %132 = tpu.matmul %131, %128, %cst_95 {dimension_numbers = #tpu.dot_dimension_numbers<[1], [0], [0], [1], [0, 0, 1, 1], [], []>} : vector<8x256xbf16>, vector<256x256xbf16>, vector<8x256xf32> -> vector<8x256xf32>
    %133 = vector.broadcast %130 : vector<1x256xf32> to vector<8x256xf32>
    %134 = arith.addf %132, %133 : vector<8x256xf32>
    %cst_96 = arith.constant 0.000000e+00 : f32
    %135 = vector.broadcast %cst_96 : f32 to vector<8x256xf32>
    %136 = arith.maximumf %134, %135 : vector<8x256xf32>
    %c12 = arith.constant 12 : index
    %c0_97 = arith.constant 0 : index
    %c0_98 = arith.constant 0 : index
    %137 = vector.load %arg6[%c12, %c0_97, %c0_98] : memref<13x256x256xbf16, #tpu.memory_space<vmem>>, vector<1x256x256xbf16>
    %138 = vector.shape_cast %137 : vector<1x256x256xbf16> to vector<256x256xbf16>
    %c12_99 = arith.constant 12 : index
    %c0_100 = arith.constant 0 : index
    %c0_101 = arith.constant 0 : index
    %139 = vector.load %arg7[%c12_99, %c0_100, %c0_101] : memref<13x1x256xf32, #tpu.memory_space<vmem>>, vector<1x1x256xf32>
    %140 = vector.shape_cast %139 : vector<1x1x256xf32> to vector<1x256xf32>
    %141 = arith.truncf %136 : vector<8x256xf32> to vector<8x256xbf16>
    %cst_102 = arith.constant dense<0.000000e+00> : vector<8x256xf32>
    %142 = tpu.matmul %141, %138, %cst_102 {dimension_numbers = #tpu.dot_dimension_numbers<[1], [0], [0], [1], [0, 0, 1, 1], [], []>} : vector<8x256xbf16>, vector<256x256xbf16>, vector<8x256xf32> -> vector<8x256xf32>
    %143 = vector.broadcast %140 : vector<1x256xf32> to vector<8x256xf32>
    %144 = arith.addf %142, %143 : vector<8x256xf32>
    %cst_103 = arith.constant 0.000000e+00 : f32
    %145 = vector.broadcast %cst_103 : f32 to vector<8x256xf32>
    %146 = arith.maximumf %144, %145 : vector<8x256xf32>
    %c0_104 = arith.constant 0 : index
    %c0_105 = arith.constant 0 : index
    %147 = vector.load %arg8[%c0_104, %c0_105] : memref<1x256xf32, #tpu.memory_space<vmem>>, vector<1x256xf32>
    %148 = vector.broadcast %147 : vector<1x256xf32> to vector<8x256xf32>
    %149 = arith.mulf %146, %148 : vector<8x256xf32>
    %c0_106 = arith.constant 0 : index
    %c0_107 = arith.constant 0 : index
    %150 = vector.load %arg9[%c0_106, %c0_107] : memref<1x256xf32, #tpu.memory_space<vmem>>, vector<1x256xf32>
    %151 = vector.broadcast %150 : vector<1x256xf32> to vector<8x256xf32>
    %152 = arith.addf %149, %151 : vector<8x256xf32>
    %cst_108 = arith.constant 0.000000e+00 : f32
    %153 = vector.broadcast %cst_108 : f32 to vector<8x256xf32>
    %154 = arith.maximumf %152, %153 : vector<8x256xf32>
    %155 = arith.truncf %154 : vector<8x256xf32> to vector<8x256xbf16>
    %c0_109 = arith.constant 0 : index
    %c0_110 = arith.constant 0 : index
    %156 = vector.load %arg10[%c0_109, %c0_110] : memref<256x30xbf16, #tpu.memory_space<vmem>>, vector<256x30xbf16>
    %cst_111 = arith.constant dense<0.000000e+00> : vector<8x30xf32>
    %157 = tpu.matmul %155, %156, %cst_111 {dimension_numbers = #tpu.dot_dimension_numbers<[1], [0], [0], [1], [0, 0, 1, 1], [], []>} : vector<8x256xbf16>, vector<256x30xbf16>, vector<8x30xf32> -> vector<8x30xf32>
    %c0_112 = arith.constant 0 : index
    %c0_113 = arith.constant 0 : index
    %158 = vector.load %arg11[%c0_112, %c0_113] : memref<1x30xf32, #tpu.memory_space<vmem>>, vector<1x30xf32>
    %159 = vector.broadcast %158 : vector<1x30xf32> to vector<8x30xf32>
    %160 = arith.addf %157, %159 : vector<8x30xf32>
    %161 = vector.extract_strided_slice %160 {offsets = [0, 0], sizes = [8, 10], strides = [1, 1]} : vector<8x30xf32> to vector<8x10xf32>
    %162 = vector.extract_strided_slice %160 {offsets = [0, 10], sizes = [8, 10], strides = [1, 1]} : vector<8x30xf32> to vector<8x10xf32>
    %163 = vector.extract_strided_slice %160 {offsets = [0, 20], sizes = [8, 10], strides = [1, 1]} : vector<8x30xf32> to vector<8x10xf32>
    %cst_114 = arith.constant dense<0xFF800000> : vector<8xf32>
    %164 = vector.multi_reduction <maximumf>, %161, %cst_114 [1] : vector<8x10xf32> to vector<8xf32>
    %165 = vector.shape_cast %164 : vector<8xf32> to vector<8x1xf32>
    %166 = vector.broadcast %165 : vector<8x1xf32> to vector<8x10xf32>
    %167 = arith.subf %161, %166 : vector<8x10xf32>
    %168 = math.exp %167 : vector<8x10xf32>
    %cst_115 = arith.constant dense<0.000000e+00> : vector<8xf32>
    %169 = vector.multi_reduction <add>, %168, %cst_115 [1] : vector<8x10xf32> to vector<8xf32>
    %170 = vector.shape_cast %169 : vector<8xf32> to vector<8x1xf32>
    %171 = math.log %170 : vector<8x1xf32>
    %172 = arith.addf %165, %171 : vector<8x1xf32>
    %173 = vector.broadcast %172 : vector<8x1xf32> to vector<8x10xf32>
    %174 = arith.subf %161, %173 : vector<8x10xf32>
    %175 = arith.subf %174, %163 : vector<8x10xf32>
    %cst_116 = arith.constant dense<0xFF800000> : vector<8xf32>
    %176 = vector.multi_reduction <maximumf>, %175, %cst_116 [1] : vector<8x10xf32> to vector<8xf32>
    %177 = vector.shape_cast %176 : vector<8xf32> to vector<8x1xf32>
    %178 = vector.broadcast %177 : vector<8x1xf32> to vector<8x10xf32>
    %179 = arith.subf %175, %178 : vector<8x10xf32>
    %180 = math.exp %179 : vector<8x10xf32>
    %cst_117 = arith.constant -2.000000e+00 : f32
    %181 = vector.broadcast %cst_117 : f32 to vector<8x10xf32>
    %182 = arith.mulf %181, %163 : vector<8x10xf32>
    %183 = math.exp %182 : vector<8x10xf32>
    %cst_118 = arith.constant -5.000000e-01 : f32
    %184 = vector.broadcast %cst_118 : f32 to vector<8x10xf32>
    %185 = arith.mulf %184, %183 : vector<8x10xf32>
    %186 = vector.extract_strided_slice %180 {offsets = [0, 0], sizes = [8, 1], strides = [1, 1]} : vector<8x10xf32> to vector<8x1xf32>
    %187 = vector.extract_strided_slice %180 {offsets = [0, 1], sizes = [8, 1], strides = [1, 1]} : vector<8x10xf32> to vector<8x1xf32>
    %188 = vector.extract_strided_slice %180 {offsets = [0, 2], sizes = [8, 1], strides = [1, 1]} : vector<8x10xf32> to vector<8x1xf32>
    %189 = vector.extract_strided_slice %180 {offsets = [0, 3], sizes = [8, 1], strides = [1, 1]} : vector<8x10xf32> to vector<8x1xf32>
    %190 = vector.extract_strided_slice %180 {offsets = [0, 4], sizes = [8, 1], strides = [1, 1]} : vector<8x10xf32> to vector<8x1xf32>
    %191 = vector.extract_strided_slice %180 {offsets = [0, 5], sizes = [8, 1], strides = [1, 1]} : vector<8x10xf32> to vector<8x1xf32>
    %192 = vector.extract_strided_slice %180 {offsets = [0, 6], sizes = [8, 1], strides = [1, 1]} : vector<8x10xf32> to vector<8x1xf32>
    %193 = vector.extract_strided_slice %180 {offsets = [0, 7], sizes = [8, 1], strides = [1, 1]} : vector<8x10xf32> to vector<8x1xf32>
    %194 = vector.extract_strided_slice %180 {offsets = [0, 8], sizes = [8, 1], strides = [1, 1]} : vector<8x10xf32> to vector<8x1xf32>
    %195 = vector.extract_strided_slice %180 {offsets = [0, 9], sizes = [8, 1], strides = [1, 1]} : vector<8x10xf32> to vector<8x1xf32>
    %196 = vector.extract_strided_slice %185 {offsets = [0, 0], sizes = [8, 1], strides = [1, 1]} : vector<8x10xf32> to vector<8x1xf32>
    %197 = vector.extract_strided_slice %185 {offsets = [0, 1], sizes = [8, 1], strides = [1, 1]} : vector<8x10xf32> to vector<8x1xf32>
    %198 = vector.extract_strided_slice %185 {offsets = [0, 2], sizes = [8, 1], strides = [1, 1]} : vector<8x10xf32> to vector<8x1xf32>
    %199 = vector.extract_strided_slice %185 {offsets = [0, 3], sizes = [8, 1], strides = [1, 1]} : vector<8x10xf32> to vector<8x1xf32>
    %200 = vector.extract_strided_slice %185 {offsets = [0, 4], sizes = [8, 1], strides = [1, 1]} : vector<8x10xf32> to vector<8x1xf32>
    %201 = vector.extract_strided_slice %185 {offsets = [0, 5], sizes = [8, 1], strides = [1, 1]} : vector<8x10xf32> to vector<8x1xf32>
    %202 = vector.extract_strided_slice %185 {offsets = [0, 6], sizes = [8, 1], strides = [1, 1]} : vector<8x10xf32> to vector<8x1xf32>
    %203 = vector.extract_strided_slice %185 {offsets = [0, 7], sizes = [8, 1], strides = [1, 1]} : vector<8x10xf32> to vector<8x1xf32>
    %204 = vector.extract_strided_slice %185 {offsets = [0, 8], sizes = [8, 1], strides = [1, 1]} : vector<8x10xf32> to vector<8x1xf32>
    %205 = vector.extract_strided_slice %185 {offsets = [0, 9], sizes = [8, 1], strides = [1, 1]} : vector<8x10xf32> to vector<8x1xf32>
    %206 = vector.extract_strided_slice %162 {offsets = [0, 0], sizes = [8, 1], strides = [1, 1]} : vector<8x10xf32> to vector<8x1xf32>
    %207 = vector.extract_strided_slice %162 {offsets = [0, 1], sizes = [8, 1], strides = [1, 1]} : vector<8x10xf32> to vector<8x1xf32>
    %208 = vector.extract_strided_slice %162 {offsets = [0, 2], sizes = [8, 1], strides = [1, 1]} : vector<8x10xf32> to vector<8x1xf32>
    %209 = vector.extract_strided_slice %162 {offsets = [0, 3], sizes = [8, 1], strides = [1, 1]} : vector<8x10xf32> to vector<8x1xf32>
    %210 = vector.extract_strided_slice %162 {offsets = [0, 4], sizes = [8, 1], strides = [1, 1]} : vector<8x10xf32> to vector<8x1xf32>
    %211 = vector.extract_strided_slice %162 {offsets = [0, 5], sizes = [8, 1], strides = [1, 1]} : vector<8x10xf32> to vector<8x1xf32>
    %212 = vector.extract_strided_slice %162 {offsets = [0, 6], sizes = [8, 1], strides = [1, 1]} : vector<8x10xf32> to vector<8x1xf32>
    %213 = vector.extract_strided_slice %162 {offsets = [0, 7], sizes = [8, 1], strides = [1, 1]} : vector<8x10xf32> to vector<8x1xf32>
    %214 = vector.extract_strided_slice %162 {offsets = [0, 8], sizes = [8, 1], strides = [1, 1]} : vector<8x10xf32> to vector<8x1xf32>
    %215 = vector.extract_strided_slice %162 {offsets = [0, 9], sizes = [8, 1], strides = [1, 1]} : vector<8x10xf32> to vector<8x1xf32>
    %cst_119 = arith.constant 0.000000e+00 : f32
    %216 = vector.broadcast %cst_119 : f32 to vector<8x1xf32>
    %c0_120 = arith.constant 0 : index
    %c0_121 = arith.constant 0 : index
    %217 = vector.load %arg12[%c0_120, %c0_121] : memref<1x2100xf32, #tpu.memory_space<vmem>>, vector<1x128xf32>
    %218 = vector.broadcast %217 : vector<1x128xf32> to vector<8x128xf32>
    %219 = vector.broadcast %206 : vector<8x1xf32> to vector<8x128xf32>
    %220 = arith.subf %218, %219 : vector<8x128xf32>
    %221 = arith.mulf %220, %220 : vector<8x128xf32>
    %222 = vector.broadcast %196 : vector<8x1xf32> to vector<8x128xf32>
    %223 = arith.mulf %222, %221 : vector<8x128xf32>
    %224 = math.exp %223 : vector<8x128xf32>
    %225 = vector.broadcast %186 : vector<8x1xf32> to vector<8x128xf32>
    %226 = arith.mulf %225, %224 : vector<8x128xf32>
    %227 = vector.broadcast %217 : vector<1x128xf32> to vector<8x128xf32>
    %228 = vector.broadcast %207 : vector<8x1xf32> to vector<8x128xf32>
    %229 = arith.subf %227, %228 : vector<8x128xf32>
    %230 = arith.mulf %229, %229 : vector<8x128xf32>
    %231 = vector.broadcast %197 : vector<8x1xf32> to vector<8x128xf32>
    %232 = arith.mulf %231, %230 : vector<8x128xf32>
    %233 = math.exp %232 : vector<8x128xf32>
    %234 = vector.broadcast %187 : vector<8x1xf32> to vector<8x128xf32>
    %235 = arith.mulf %234, %233 : vector<8x128xf32>
    %236 = arith.addf %226, %235 : vector<8x128xf32>
    %237 = vector.broadcast %217 : vector<1x128xf32> to vector<8x128xf32>
    %238 = vector.broadcast %208 : vector<8x1xf32> to vector<8x128xf32>
    %239 = arith.subf %237, %238 : vector<8x128xf32>
    %240 = arith.mulf %239, %239 : vector<8x128xf32>
    %241 = vector.broadcast %198 : vector<8x1xf32> to vector<8x128xf32>
    %242 = arith.mulf %241, %240 : vector<8x128xf32>
    %243 = math.exp %242 : vector<8x128xf32>
    %244 = vector.broadcast %188 : vector<8x1xf32> to vector<8x128xf32>
    %245 = arith.mulf %244, %243 : vector<8x128xf32>
    %246 = arith.addf %236, %245 : vector<8x128xf32>
    %247 = vector.broadcast %217 : vector<1x128xf32> to vector<8x128xf32>
    %248 = vector.broadcast %209 : vector<8x1xf32> to vector<8x128xf32>
    %249 = arith.subf %247, %248 : vector<8x128xf32>
    %250 = arith.mulf %249, %249 : vector<8x128xf32>
    %251 = vector.broadcast %199 : vector<8x1xf32> to vector<8x128xf32>
    %252 = arith.mulf %251, %250 : vector<8x128xf32>
    %253 = math.exp %252 : vector<8x128xf32>
    %254 = vector.broadcast %189 : vector<8x1xf32> to vector<8x128xf32>
    %255 = arith.mulf %254, %253 : vector<8x128xf32>
    %256 = arith.addf %246, %255 : vector<8x128xf32>
    %257 = vector.broadcast %217 : vector<1x128xf32> to vector<8x128xf32>
    %258 = vector.broadcast %210 : vector<8x1xf32> to vector<8x128xf32>
    %259 = arith.subf %257, %258 : vector<8x128xf32>
    %260 = arith.mulf %259, %259 : vector<8x128xf32>
    %261 = vector.broadcast %200 : vector<8x1xf32> to vector<8x128xf32>
    %262 = arith.mulf %261, %260 : vector<8x128xf32>
    %263 = math.exp %262 : vector<8x128xf32>
    %264 = vector.broadcast %190 : vector<8x1xf32> to vector<8x128xf32>
    %265 = arith.mulf %264, %263 : vector<8x128xf32>
    %266 = arith.addf %256, %265 : vector<8x128xf32>
    %267 = vector.broadcast %217 : vector<1x128xf32> to vector<8x128xf32>
    %268 = vector.broadcast %211 : vector<8x1xf32> to vector<8x128xf32>
    %269 = arith.subf %267, %268 : vector<8x128xf32>
    %270 = arith.mulf %269, %269 : vector<8x128xf32>
    %271 = vector.broadcast %201 : vector<8x1xf32> to vector<8x128xf32>
    %272 = arith.mulf %271, %270 : vector<8x128xf32>
    %273 = math.exp %272 : vector<8x128xf32>
    %274 = vector.broadcast %191 : vector<8x1xf32> to vector<8x128xf32>
    %275 = arith.mulf %274, %273 : vector<8x128xf32>
    %276 = arith.addf %266, %275 : vector<8x128xf32>
    %277 = vector.broadcast %217 : vector<1x128xf32> to vector<8x128xf32>
    %278 = vector.broadcast %212 : vector<8x1xf32> to vector<8x128xf32>
    %279 = arith.subf %277, %278 : vector<8x128xf32>
    %280 = arith.mulf %279, %279 : vector<8x128xf32>
    %281 = vector.broadcast %202 : vector<8x1xf32> to vector<8x128xf32>
    %282 = arith.mulf %281, %280 : vector<8x128xf32>
    %283 = math.exp %282 : vector<8x128xf32>
    %284 = vector.broadcast %192 : vector<8x1xf32> to vector<8x128xf32>
    %285 = arith.mulf %284, %283 : vector<8x128xf32>
    %286 = arith.addf %276, %285 : vector<8x128xf32>
    %287 = vector.broadcast %217 : vector<1x128xf32> to vector<8x128xf32>
    %288 = vector.broadcast %213 : vector<8x1xf32> to vector<8x128xf32>
    %289 = arith.subf %287, %288 : vector<8x128xf32>
    %290 = arith.mulf %289, %289 : vector<8x128xf32>
    %291 = vector.broadcast %203 : vector<8x1xf32> to vector<8x128xf32>
    %292 = arith.mulf %291, %290 : vector<8x128xf32>
    %293 = math.exp %292 : vector<8x128xf32>
    %294 = vector.broadcast %193 : vector<8x1xf32> to vector<8x128xf32>
    %295 = arith.mulf %294, %293 : vector<8x128xf32>
    %296 = arith.addf %286, %295 : vector<8x128xf32>
    %297 = vector.broadcast %217 : vector<1x128xf32> to vector<8x128xf32>
    %298 = vector.broadcast %214 : vector<8x1xf32> to vector<8x128xf32>
    %299 = arith.subf %297, %298 : vector<8x128xf32>
    %300 = arith.mulf %299, %299 : vector<8x128xf32>
    %301 = vector.broadcast %204 : vector<8x1xf32> to vector<8x128xf32>
    %302 = arith.mulf %301, %300 : vector<8x128xf32>
    %303 = math.exp %302 : vector<8x128xf32>
    %304 = vector.broadcast %194 : vector<8x1xf32> to vector<8x128xf32>
    %305 = arith.mulf %304, %303 : vector<8x128xf32>
    %306 = arith.addf %296, %305 : vector<8x128xf32>
    %307 = vector.broadcast %217 : vector<1x128xf32> to vector<8x128xf32>
    %308 = vector.broadcast %215 : vector<8x1xf32> to vector<8x128xf32>
    %309 = arith.subf %307, %308 : vector<8x128xf32>
    %310 = arith.mulf %309, %309 : vector<8x128xf32>
    %311 = vector.broadcast %205 : vector<8x1xf32> to vector<8x128xf32>
    %312 = arith.mulf %311, %310 : vector<8x128xf32>
    %313 = math.exp %312 : vector<8x128xf32>
    %314 = vector.broadcast %195 : vector<8x1xf32> to vector<8x128xf32>
    %315 = arith.mulf %314, %313 : vector<8x128xf32>
    %316 = arith.addf %306, %315 : vector<8x128xf32>
    %cst_122 = arith.constant dense<0.000000e+00> : vector<8xf32>
    %317 = vector.multi_reduction <add>, %316, %cst_122 [1] : vector<8x128xf32> to vector<8xf32>
    %318 = vector.shape_cast %317 : vector<8xf32> to vector<8x1xf32>
    %319 = arith.addf %216, %318 : vector<8x1xf32>
    %c0_123 = arith.constant 0 : index
    %c0_124 = arith.constant 0 : index
    %320 = vector.load %arg13[%c0_123, %c0_124] : memref<8x2100xf32, #tpu.memory_space<vmem>>, vector<8x128xf32>
    tpu.vector_store %arg13[%c0_123, %c0_124], %316 {strides = array<i32>} : memref<8x2100xf32, #tpu.memory_space<vmem>>, vector<8x128xf32>,
    %c0_125 = arith.constant 0 : index
    %c128 = arith.constant 128 : index
    %321 = vector.load %arg12[%c0_125, %c128] : memref<1x2100xf32, #tpu.memory_space<vmem>>, vector<1x128xf32>
    %322 = vector.broadcast %321 : vector<1x128xf32> to vector<8x128xf32>
    %323 = vector.broadcast %206 : vector<8x1xf32> to vector<8x128xf32>
    %324 = arith.subf %322, %323 : vector<8x128xf32>
    %325 = arith.mulf %324, %324 : vector<8x128xf32>
    %326 = vector.broadcast %196 : vector<8x1xf32> to vector<8x128xf32>
    %327 = arith.mulf %326, %325 : vector<8x128xf32>
    %328 = math.exp %327 : vector<8x128xf32>
    %329 = vector.broadcast %186 : vector<8x1xf32> to vector<8x128xf32>
    %330 = arith.mulf %329, %328 : vector<8x128xf32>
    %331 = vector.broadcast %321 : vector<1x128xf32> to vector<8x128xf32>
    %332 = vector.broadcast %207 : vector<8x1xf32> to vector<8x128xf32>
    %333 = arith.subf %331, %332 : vector<8x128xf32>
    %334 = arith.mulf %333, %333 : vector<8x128xf32>
    %335 = vector.broadcast %197 : vector<8x1xf32> to vector<8x128xf32>
    %336 = arith.mulf %335, %334 : vector<8x128xf32>
    %337 = math.exp %336 : vector<8x128xf32>
    %338 = vector.broadcast %187 : vector<8x1xf32> to vector<8x128xf32>
    %339 = arith.mulf %338, %337 : vector<8x128xf32>
    %340 = arith.addf %330, %339 : vector<8x128xf32>
    %341 = vector.broadcast %321 : vector<1x128xf32> to vector<8x128xf32>
    %342 = vector.broadcast %208 : vector<8x1xf32> to vector<8x128xf32>
    %343 = arith.subf %341, %342 : vector<8x128xf32>
    %344 = arith.mulf %343, %343 : vector<8x128xf32>
    %345 = vector.broadcast %198 : vector<8x1xf32> to vector<8x128xf32>
    %346 = arith.mulf %345, %344 : vector<8x128xf32>
    %347 = math.exp %346 : vector<8x128xf32>
    %348 = vector.broadcast %188 : vector<8x1xf32> to vector<8x128xf32>
    %349 = arith.mulf %348, %347 : vector<8x128xf32>
    %350 = arith.addf %340, %349 : vector<8x128xf32>
    %351 = vector.broadcast %321 : vector<1x128xf32> to vector<8x128xf32>
    %352 = vector.broadcast %209 : vector<8x1xf32> to vector<8x128xf32>
    %353 = arith.subf %351, %352 : vector<8x128xf32>
    %354 = arith.mulf %353, %353 : vector<8x128xf32>
    %355 = vector.broadcast %199 : vector<8x1xf32> to vector<8x128xf32>
    %356 = arith.mulf %355, %354 : vector<8x128xf32>
    %357 = math.exp %356 : vector<8x128xf32>
    %358 = vector.broadcast %189 : vector<8x1xf32> to vector<8x128xf32>
    %359 = arith.mulf %358, %357 : vector<8x128xf32>
    %360 = arith.addf %350, %359 : vector<8x128xf32>
    %361 = vector.broadcast %321 : vector<1x128xf32> to vector<8x128xf32>
    %362 = vector.broadcast %210 : vector<8x1xf32> to vector<8x128xf32>
    %363 = arith.subf %361, %362 : vector<8x128xf32>
    %364 = arith.mulf %363, %363 : vector<8x128xf32>
    %365 = vector.broadcast %200 : vector<8x1xf32> to vector<8x128xf32>
    %366 = arith.mulf %365, %364 : vector<8x128xf32>
    %367 = math.exp %366 : vector<8x128xf32>
    %368 = vector.broadcast %190 : vector<8x1xf32> to vector<8x128xf32>
    %369 = arith.mulf %368, %367 : vector<8x128xf32>
    %370 = arith.addf %360, %369 : vector<8x128xf32>
    %371 = vector.broadcast %321 : vector<1x128xf32> to vector<8x128xf32>
    %372 = vector.broadcast %211 : vector<8x1xf32> to vector<8x128xf32>
    %373 = arith.subf %371, %372 : vector<8x128xf32>
    %374 = arith.mulf %373, %373 : vector<8x128xf32>
    %375 = vector.broadcast %201 : vector<8x1xf32> to vector<8x128xf32>
    %376 = arith.mulf %375, %374 : vector<8x128xf32>
    %377 = math.exp %376 : vector<8x128xf32>
    %378 = vector.broadcast %191 : vector<8x1xf32> to vector<8x128xf32>
    %379 = arith.mulf %378, %377 : vector<8x128xf32>
    %380 = arith.addf %370, %379 : vector<8x128xf32>
    %381 = vector.broadcast %321 : vector<1x128xf32> to vector<8x128xf32>
    %382 = vector.broadcast %212 : vector<8x1xf32> to vector<8x128xf32>
    %383 = arith.subf %381, %382 : vector<8x128xf32>
    %384 = arith.mulf %383, %383 : vector<8x128xf32>
    %385 = vector.broadcast %202 : vector<8x1xf32> to vector<8x128xf32>
    %386 = arith.mulf %385, %384 : vector<8x128xf32>
    %387 = math.exp %386 : vector<8x128xf32>
    %388 = vector.broadcast %192 : vector<8x1xf32> to vector<8x128xf32>
    %389 = arith.mulf %388, %387 : vector<8x128xf32>
    %390 = arith.addf %380, %389 : vector<8x128xf32>
    %391 = vector.broadcast %321 : vector<1x128xf32> to vector<8x128xf32>
    %392 = vector.broadcast %213 : vector<8x1xf32> to vector<8x128xf32>
    %393 = arith.subf %391, %392 : vector<8x128xf32>
    %394 = arith.mulf %393, %393 : vector<8x128xf32>
    %395 = vector.broadcast %203 : vector<8x1xf32> to vector<8x128xf32>
    %396 = arith.mulf %395, %394 : vector<8x128xf32>
    %397 = math.exp %396 : vector<8x128xf32>
    %398 = vector.broadcast %193 : vector<8x1xf32> to vector<8x128xf32>
    %399 = arith.mulf %398, %397 : vector<8x128xf32>
    %400 = arith.addf %390, %399 : vector<8x128xf32>
    %401 = vector.broadcast %321 : vector<1x128xf32> to vector<8x128xf32>
    %402 = vector.broadcast %214 : vector<8x1xf32> to vector<8x128xf32>
    %403 = arith.subf %401, %402 : vector<8x128xf32>
    %404 = arith.mulf %403, %403 : vector<8x128xf32>
    %405 = vector.broadcast %204 : vector<8x1xf32> to vector<8x128xf32>
    %406 = arith.mulf %405, %404 : vector<8x128xf32>
    %407 = math.exp %406 : vector<8x128xf32>
    %408 = vector.broadcast %194 : vector<8x1xf32> to vector<8x128xf32>
    %409 = arith.mulf %408, %407 : vector<8x128xf32>
    %410 = arith.addf %400, %409 : vector<8x128xf32>
    %411 = vector.broadcast %321 : vector<1x128xf32> to vector<8x128xf32>
    %412 = vector.broadcast %215 : vector<8x1xf32> to vector<8x128xf32>
    %413 = arith.subf %411, %412 : vector<8x128xf32>
    %414 = arith.mulf %413, %413 : vector<8x128xf32>
    %415 = vector.broadcast %205 : vector<8x1xf32> to vector<8x128xf32>
    %416 = arith.mulf %415, %414 : vector<8x128xf32>
    %417 = math.exp %416 : vector<8x128xf32>
    %418 = vector.broadcast %195 : vector<8x1xf32> to vector<8x128xf32>
    %419 = arith.mulf %418, %417 : vector<8x128xf32>
    %420 = arith.addf %410, %419 : vector<8x128xf32>
    %cst_126 = arith.constant dense<0.000000e+00> : vector<8xf32>
    %421 = vector.multi_reduction <add>, %420, %cst_126 [1] : vector<8x128xf32> to vector<8xf32>
    %422 = vector.shape_cast %421 : vector<8xf32> to vector<8x1xf32>
    %423 = arith.addf %319, %422 : vector<8x1xf32>
    %c0_127 = arith.constant 0 : index
    %c128_128 = arith.constant 128 : index
    %424 = vector.load %arg13[%c0_127, %c128_128] : memref<8x2100xf32, #tpu.memory_space<vmem>>, vector<8x128xf32>
    tpu.vector_store %arg13[%c0_127, %c128_128], %420 {strides = array<i32>} : memref<8x2100xf32, #tpu.memory_space<vmem>>, vector<8x128xf32>,
    %c0_129 = arith.constant 0 : index
    %c256 = arith.constant 256 : index
    %425 = vector.load %arg12[%c0_129, %c256] : memref<1x2100xf32, #tpu.memory_space<vmem>>, vector<1x128xf32>
    %426 = vector.broadcast %425 : vector<1x128xf32> to vector<8x128xf32>
    %427 = vector.broadcast %206 : vector<8x1xf32> to vector<8x128xf32>
    %428 = arith.subf %426, %427 : vector<8x128xf32>
    %429 = arith.mulf %428, %428 : vector<8x128xf32>
    %430 = vector.broadcast %196 : vector<8x1xf32> to vector<8x128xf32>
    %431 = arith.mulf %430, %429 : vector<8x128xf32>
    %432 = math.exp %431 : vector<8x128xf32>
    %433 = vector.broadcast %186 : vector<8x1xf32> to vector<8x128xf32>
    %434 = arith.mulf %433, %432 : vector<8x128xf32>
    %435 = vector.broadcast %425 : vector<1x128xf32> to vector<8x128xf32>
    %436 = vector.broadcast %207 : vector<8x1xf32> to vector<8x128xf32>
    %437 = arith.subf %435, %436 : vector<8x128xf32>
    %438 = arith.mulf %437, %437 : vector<8x128xf32>
    %439 = vector.broadcast %197 : vector<8x1xf32> to vector<8x128xf32>
    %440 = arith.mulf %439, %438 : vector<8x128xf32>
    %441 = math.exp %440 : vector<8x128xf32>
    %442 = vector.broadcast %187 : vector<8x1xf32> to vector<8x128xf32>
    %443 = arith.mulf %442, %441 : vector<8x128xf32>
    %444 = arith.addf %434, %443 : vector<8x128xf32>
    %445 = vector.broadcast %425 : vector<1x128xf32> to vector<8x128xf32>
    %446 = vector.broadcast %208 : vector<8x1xf32> to vector<8x128xf32>
    %447 = arith.subf %445, %446 : vector<8x128xf32>
    %448 = arith.mulf %447, %447 : vector<8x128xf32>
    %449 = vector.broadcast %198 : vector<8x1xf32> to vector<8x128xf32>
    %450 = arith.mulf %449, %448 : vector<8x128xf32>
    %451 = math.exp %450 : vector<8x128xf32>
    %452 = vector.broadcast %188 : vector<8x1xf32> to vector<8x128xf32>
    %453 = arith.mulf %452, %451 : vector<8x128xf32>
    %454 = arith.addf %444, %453 : vector<8x128xf32>
    %455 = vector.broadcast %425 : vector<1x128xf32> to vector<8x128xf32>
    %456 = vector.broadcast %209 : vector<8x1xf32> to vector<8x128xf32>
    %457 = arith.subf %455, %456 : vector<8x128xf32>
    %458 = arith.mulf %457, %457 : vector<8x128xf32>
    %459 = vector.broadcast %199 : vector<8x1xf32> to vector<8x128xf32>
    %460 = arith.mulf %459, %458 : vector<8x128xf32>
    %461 = math.exp %460 : vector<8x128xf32>
    %462 = vector.broadcast %189 : vector<8x1xf32> to vector<8x128xf32>
    %463 = arith.mulf %462, %461 : vector<8x128xf32>
    %464 = arith.addf %454, %463 : vector<8x128xf32>
    %465 = vector.broadcast %425 : vector<1x128xf32> to vector<8x128xf32>
    %466 = vector.broadcast %210 : vector<8x1xf32> to vector<8x128xf32>
    %467 = arith.subf %465, %466 : vector<8x128xf32>
    %468 = arith.mulf %467, %467 : vector<8x128xf32>
    %469 = vector.broadcast %200 : vector<8x1xf32> to vector<8x128xf32>
    %470 = arith.mulf %469, %468 : vector<8x128xf32>
    %471 = math.exp %470 : vector<8x128xf32>
    %472 = vector.broadcast %190 : vector<8x1xf32> to vector<8x128xf32>
    %473 = arith.mulf %472, %471 : vector<8x128xf32>
    %474 = arith.addf %464, %473 : vector<8x128xf32>
    %475 = vector.broadcast %425 : vector<1x128xf32> to vector<8x128xf32>
    %476 = vector.broadcast %211 : vector<8x1xf32> to vector<8x128xf32>
    %477 = arith.subf %475, %476 : vector<8x128xf32>
    %478 = arith.mulf %477, %477 : vector<8x128xf32>
    %479 = vector.broadcast %201 : vector<8x1xf32> to vector<8x128xf32>
    %480 = arith.mulf %479, %478 : vector<8x128xf32>
    %481 = math.exp %480 : vector<8x128xf32>
    %482 = vector.broadcast %191 : vector<8x1xf32> to vector<8x128xf32>
    %483 = arith.mulf %482, %481 : vector<8x128xf32>
    %484 = arith.addf %474, %483 : vector<8x128xf32>
    %485 = vector.broadcast %425 : vector<1x128xf32> to vector<8x128xf32>
    %486 = vector.broadcast %212 : vector<8x1xf32> to vector<8x128xf32>
    %487 = arith.subf %485, %486 : vector<8x128xf32>
    %488 = arith.mulf %487, %487 : vector<8x128xf32>
    %489 = vector.broadcast %202 : vector<8x1xf32> to vector<8x128xf32>
    %490 = arith.mulf %489, %488 : vector<8x128xf32>
    %491 = math.exp %490 : vector<8x128xf32>
    %492 = vector.broadcast %192 : vector<8x1xf32> to vector<8x128xf32>
    %493 = arith.mulf %492, %491 : vector<8x128xf32>
    %494 = arith.addf %484, %493 : vector<8x128xf32>
    %495 = vector.broadcast %425 : vector<1x128xf32> to vector<8x128xf32>
    %496 = vector.broadcast %213 : vector<8x1xf32> to vector<8x128xf32>
    %497 = arith.subf %495, %496 : vector<8x128xf32>
    %498 = arith.mulf %497, %497 : vector<8x128xf32>
    %499 = vector.broadcast %203 : vector<8x1xf32> to vector<8x128xf32>
    %500 = arith.mulf %499, %498 : vector<8x128xf32>
    %501 = math.exp %500 : vector<8x128xf32>
    %502 = vector.broadcast %193 : vector<8x1xf32> to vector<8x128xf32>
    %503 = arith.mulf %502, %501 : vector<8x128xf32>
    %504 = arith.addf %494, %503 : vector<8x128xf32>
    %505 = vector.broadcast %425 : vector<1x128xf32> to vector<8x128xf32>
    %506 = vector.broadcast %214 : vector<8x1xf32> to vector<8x128xf32>
    %507 = arith.subf %505, %506 : vector<8x128xf32>
    %508 = arith.mulf %507, %507 : vector<8x128xf32>
    %509 = vector.broadcast %204 : vector<8x1xf32> to vector<8x128xf32>
    %510 = arith.mulf %509, %508 : vector<8x128xf32>
    %511 = math.exp %510 : vector<8x128xf32>
    %512 = vector.broadcast %194 : vector<8x1xf32> to vector<8x128xf32>
    %513 = arith.mulf %512, %511 : vector<8x128xf32>
    %514 = arith.addf %504, %513 : vector<8x128xf32>
    %515 = vector.broadcast %425 : vector<1x128xf32> to vector<8x128xf32>
    %516 = vector.broadcast %215 : vector<8x1xf32> to vector<8x128xf32>
    %517 = arith.subf %515, %516 : vector<8x128xf32>
    %518 = arith.mulf %517, %517 : vector<8x128xf32>
    %519 = vector.broadcast %205 : vector<8x1xf32> to vector<8x128xf32>
    %520 = arith.mulf %519, %518 : vector<8x128xf32>
    %521 = math.exp %520 : vector<8x128xf32>
    %522 = vector.broadcast %195 : vector<8x1xf32> to vector<8x128xf32>
    %523 = arith.mulf %522, %521 : vector<8x128xf32>
    %524 = arith.addf %514, %523 : vector<8x128xf32>
    %cst_130 = arith.constant dense<0.000000e+00> : vector<8xf32>
    %525 = vector.multi_reduction <add>, %524, %cst_130 [1] : vector<8x128xf32> to vector<8xf32>
    %526 = vector.shape_cast %525 : vector<8xf32> to vector<8x1xf32>
    %527 = arith.addf %423, %526 : vector<8x1xf32>
    %c0_131 = arith.constant 0 : index
    %c256_132 = arith.constant 256 : index
    %528 = vector.load %arg13[%c0_131, %c256_132] : memref<8x2100xf32, #tpu.memory_space<vmem>>, vector<8x128xf32>
    tpu.vector_store %arg13[%c0_131, %c256_132], %524 {strides = array<i32>} : memref<8x2100xf32, #tpu.memory_space<vmem>>, vector<8x128xf32>,
    %c0_133 = arith.constant 0 : index
    %c384 = arith.constant 384 : index
    %529 = vector.load %arg12[%c0_133, %c384] : memref<1x2100xf32, #tpu.memory_space<vmem>>, vector<1x128xf32>
    %530 = vector.broadcast %529 : vector<1x128xf32> to vector<8x128xf32>
    %531 = vector.broadcast %206 : vector<8x1xf32> to vector<8x128xf32>
    %532 = arith.subf %530, %531 : vector<8x128xf32>
    %533 = arith.mulf %532, %532 : vector<8x128xf32>
    %534 = vector.broadcast %196 : vector<8x1xf32> to vector<8x128xf32>
    %535 = arith.mulf %534, %533 : vector<8x128xf32>
    %536 = math.exp %535 : vector<8x128xf32>
    %537 = vector.broadcast %186 : vector<8x1xf32> to vector<8x128xf32>
    %538 = arith.mulf %537, %536 : vector<8x128xf32>
    %539 = vector.broadcast %529 : vector<1x128xf32> to vector<8x128xf32>
    %540 = vector.broadcast %207 : vector<8x1xf32> to vector<8x128xf32>
    %541 = arith.subf %539, %540 : vector<8x128xf32>
    %542 = arith.mulf %541, %541 : vector<8x128xf32>
    %543 = vector.broadcast %197 : vector<8x1xf32> to vector<8x128xf32>
    %544 = arith.mulf %543, %542 : vector<8x128xf32>
    %545 = math.exp %544 : vector<8x128xf32>
    %546 = vector.broadcast %187 : vector<8x1xf32> to vector<8x128xf32>
    %547 = arith.mulf %546, %545 : vector<8x128xf32>
    %548 = arith.addf %538, %547 : vector<8x128xf32>
    %549 = vector.broadcast %529 : vector<1x128xf32> to vector<8x128xf32>
    %550 = vector.broadcast %208 : vector<8x1xf32> to vector<8x128xf32>
    %551 = arith.subf %549, %550 : vector<8x128xf32>
    %552 = arith.mulf %551, %551 : vector<8x128xf32>
    %553 = vector.broadcast %198 : vector<8x1xf32> to vector<8x128xf32>
    %554 = arith.mulf %553, %552 : vector<8x128xf32>
    %555 = math.exp %554 : vector<8x128xf32>
    %556 = vector.broadcast %188 : vector<8x1xf32> to vector<8x128xf32>
    %557 = arith.mulf %556, %555 : vector<8x128xf32>
    %558 = arith.addf %548, %557 : vector<8x128xf32>
    %559 = vector.broadcast %529 : vector<1x128xf32> to vector<8x128xf32>
    %560 = vector.broadcast %209 : vector<8x1xf32> to vector<8x128xf32>
    %561 = arith.subf %559, %560 : vector<8x128xf32>
    %562 = arith.mulf %561, %561 : vector<8x128xf32>
    %563 = vector.broadcast %199 : vector<8x1xf32> to vector<8x128xf32>
    %564 = arith.mulf %563, %562 : vector<8x128xf32>
    %565 = math.exp %564 : vector<8x128xf32>
    %566 = vector.broadcast %189 : vector<8x1xf32> to vector<8x128xf32>
    %567 = arith.mulf %566, %565 : vector<8x128xf32>
    %568 = arith.addf %558, %567 : vector<8x128xf32>
    %569 = vector.broadcast %529 : vector<1x128xf32> to vector<8x128xf32>
    %570 = vector.broadcast %210 : vector<8x1xf32> to vector<8x128xf32>
    %571 = arith.subf %569, %570 : vector<8x128xf32>
    %572 = arith.mulf %571, %571 : vector<8x128xf32>
    %573 = vector.broadcast %200 : vector<8x1xf32> to vector<8x128xf32>
    %574 = arith.mulf %573, %572 : vector<8x128xf32>
    %575 = math.exp %574 : vector<8x128xf32>
    %576 = vector.broadcast %190 : vector<8x1xf32> to vector<8x128xf32>
    %577 = arith.mulf %576, %575 : vector<8x128xf32>
    %578 = arith.addf %568, %577 : vector<8x128xf32>
    %579 = vector.broadcast %529 : vector<1x128xf32> to vector<8x128xf32>
    %580 = vector.broadcast %211 : vector<8x1xf32> to vector<8x128xf32>
    %581 = arith.subf %579, %580 : vector<8x128xf32>
    %582 = arith.mulf %581, %581 : vector<8x128xf32>
    %583 = vector.broadcast %201 : vector<8x1xf32> to vector<8x128xf32>
    %584 = arith.mulf %583, %582 : vector<8x128xf32>
    %585 = math.exp %584 : vector<8x128xf32>
    %586 = vector.broadcast %191 : vector<8x1xf32> to vector<8x128xf32>
    %587 = arith.mulf %586, %585 : vector<8x128xf32>
    %588 = arith.addf %578, %587 : vector<8x128xf32>
    %589 = vector.broadcast %529 : vector<1x128xf32> to vector<8x128xf32>
    %590 = vector.broadcast %212 : vector<8x1xf32> to vector<8x128xf32>
    %591 = arith.subf %589, %590 : vector<8x128xf32>
    %592 = arith.mulf %591, %591 : vector<8x128xf32>
    %593 = vector.broadcast %202 : vector<8x1xf32> to vector<8x128xf32>
    %594 = arith.mulf %593, %592 : vector<8x128xf32>
    %595 = math.exp %594 : vector<8x128xf32>
    %596 = vector.broadcast %192 : vector<8x1xf32> to vector<8x128xf32>
    %597 = arith.mulf %596, %595 : vector<8x128xf32>
    %598 = arith.addf %588, %597 : vector<8x128xf32>
    %599 = vector.broadcast %529 : vector<1x128xf32> to vector<8x128xf32>
    %600 = vector.broadcast %213 : vector<8x1xf32> to vector<8x128xf32>
    %601 = arith.subf %599, %600 : vector<8x128xf32>
    %602 = arith.mulf %601, %601 : vector<8x128xf32>
    %603 = vector.broadcast %203 : vector<8x1xf32> to vector<8x128xf32>
    %604 = arith.mulf %603, %602 : vector<8x128xf32>
    %605 = math.exp %604 : vector<8x128xf32>
    %606 = vector.broadcast %193 : vector<8x1xf32> to vector<8x128xf32>
    %607 = arith.mulf %606, %605 : vector<8x128xf32>
    %608 = arith.addf %598, %607 : vector<8x128xf32>
    %609 = vector.broadcast %529 : vector<1x128xf32> to vector<8x128xf32>
    %610 = vector.broadcast %214 : vector<8x1xf32> to vector<8x128xf32>
    %611 = arith.subf %609, %610 : vector<8x128xf32>
    %612 = arith.mulf %611, %611 : vector<8x128xf32>
    %613 = vector.broadcast %204 : vector<8x1xf32> to vector<8x128xf32>
    %614 = arith.mulf %613, %612 : vector<8x128xf32>
    %615 = math.exp %614 : vector<8x128xf32>
    %616 = vector.broadcast %194 : vector<8x1xf32> to vector<8x128xf32>
    %617 = arith.mulf %616, %615 : vector<8x128xf32>
    %618 = arith.addf %608, %617 : vector<8x128xf32>
    %619 = vector.broadcast %529 : vector<1x128xf32> to vector<8x128xf32>
    %620 = vector.broadcast %215 : vector<8x1xf32> to vector<8x128xf32>
    %621 = arith.subf %619, %620 : vector<8x128xf32>
    %622 = arith.mulf %621, %621 : vector<8x128xf32>
    %623 = vector.broadcast %205 : vector<8x1xf32> to vector<8x128xf32>
    %624 = arith.mulf %623, %622 : vector<8x128xf32>
    %625 = math.exp %624 : vector<8x128xf32>
    %626 = vector.broadcast %195 : vector<8x1xf32> to vector<8x128xf32>
    %627 = arith.mulf %626, %625 : vector<8x128xf32>
    %628 = arith.addf %618, %627 : vector<8x128xf32>
    %cst_134 = arith.constant dense<0.000000e+00> : vector<8xf32>
    %629 = vector.multi_reduction <add>, %628, %cst_134 [1] : vector<8x128xf32> to vector<8xf32>
    %630 = vector.shape_cast %629 : vector<8xf32> to vector<8x1xf32>
    %631 = arith.addf %527, %630 : vector<8x1xf32>
    %c0_135 = arith.constant 0 : index
    %c384_136 = arith.constant 384 : index
    %632 = vector.load %arg13[%c0_135, %c384_136] : memref<8x2100xf32, #tpu.memory_space<vmem>>, vector<8x128xf32>
    tpu.vector_store %arg13[%c0_135, %c384_136], %628 {strides = array<i32>} : memref<8x2100xf32, #tpu.memory_space<vmem>>, vector<8x128xf32>,
    %c0_137 = arith.constant 0 : index
    %c512 = arith.constant 512 : index
    %633 = vector.load %arg12[%c0_137, %c512] : memref<1x2100xf32, #tpu.memory_space<vmem>>, vector<1x128xf32>
    %634 = vector.broadcast %633 : vector<1x128xf32> to vector<8x128xf32>
    %635 = vector.broadcast %206 : vector<8x1xf32> to vector<8x128xf32>
    %636 = arith.subf %634, %635 : vector<8x128xf32>
    %637 = arith.mulf %636, %636 : vector<8x128xf32>
    %638 = vector.broadcast %196 : vector<8x1xf32> to vector<8x128xf32>
    %639 = arith.mulf %638, %637 : vector<8x128xf32>
    %640 = math.exp %639 : vector<8x128xf32>
    %641 = vector.broadcast %186 : vector<8x1xf32> to vector<8x128xf32>
    %642 = arith.mulf %641, %640 : vector<8x128xf32>
    %643 = vector.broadcast %633 : vector<1x128xf32> to vector<8x128xf32>
    %644 = vector.broadcast %207 : vector<8x1xf32> to vector<8x128xf32>
    %645 = arith.subf %643, %644 : vector<8x128xf32>
    %646 = arith.mulf %645, %645 : vector<8x128xf32>
    %647 = vector.broadcast %197 : vector<8x1xf32> to vector<8x128xf32>
    %648 = arith.mulf %647, %646 : vector<8x128xf32>
    %649 = math.exp %648 : vector<8x128xf32>
    %650 = vector.broadcast %187 : vector<8x1xf32> to vector<8x128xf32>
    %651 = arith.mulf %650, %649 : vector<8x128xf32>
    %652 = arith.addf %642, %651 : vector<8x128xf32>
    %653 = vector.broadcast %633 : vector<1x128xf32> to vector<8x128xf32>
    %654 = vector.broadcast %208 : vector<8x1xf32> to vector<8x128xf32>
    %655 = arith.subf %653, %654 : vector<8x128xf32>
    %656 = arith.mulf %655, %655 : vector<8x128xf32>
    %657 = vector.broadcast %198 : vector<8x1xf32> to vector<8x128xf32>
    %658 = arith.mulf %657, %656 : vector<8x128xf32>
    %659 = math.exp %658 : vector<8x128xf32>
    %660 = vector.broadcast %188 : vector<8x1xf32> to vector<8x128xf32>
    %661 = arith.mulf %660, %659 : vector<8x128xf32>
    %662 = arith.addf %652, %661 : vector<8x128xf32>
    %663 = vector.broadcast %633 : vector<1x128xf32> to vector<8x128xf32>
    %664 = vector.broadcast %209 : vector<8x1xf32> to vector<8x128xf32>
    %665 = arith.subf %663, %664 : vector<8x128xf32>
    %666 = arith.mulf %665, %665 : vector<8x128xf32>
    %667 = vector.broadcast %199 : vector<8x1xf32> to vector<8x128xf32>
    %668 = arith.mulf %667, %666 : vector<8x128xf32>
    %669 = math.exp %668 : vector<8x128xf32>
    %670 = vector.broadcast %189 : vector<8x1xf32> to vector<8x128xf32>
    %671 = arith.mulf %670, %669 : vector<8x128xf32>
    %672 = arith.addf %662, %671 : vector<8x128xf32>
    %673 = vector.broadcast %633 : vector<1x128xf32> to vector<8x128xf32>
    %674 = vector.broadcast %210 : vector<8x1xf32> to vector<8x128xf32>
    %675 = arith.subf %673, %674 : vector<8x128xf32>
    %676 = arith.mulf %675, %675 : vector<8x128xf32>
    %677 = vector.broadcast %200 : vector<8x1xf32> to vector<8x128xf32>
    %678 = arith.mulf %677, %676 : vector<8x128xf32>
    %679 = math.exp %678 : vector<8x128xf32>
    %680 = vector.broadcast %190 : vector<8x1xf32> to vector<8x128xf32>
    %681 = arith.mulf %680, %679 : vector<8x128xf32>
    %682 = arith.addf %672, %681 : vector<8x128xf32>
    %683 = vector.broadcast %633 : vector<1x128xf32> to vector<8x128xf32>
    %684 = vector.broadcast %211 : vector<8x1xf32> to vector<8x128xf32>
    %685 = arith.subf %683, %684 : vector<8x128xf32>
    %686 = arith.mulf %685, %685 : vector<8x128xf32>
    %687 = vector.broadcast %201 : vector<8x1xf32> to vector<8x128xf32>
    %688 = arith.mulf %687, %686 : vector<8x128xf32>
    %689 = math.exp %688 : vector<8x128xf32>
    %690 = vector.broadcast %191 : vector<8x1xf32> to vector<8x128xf32>
    %691 = arith.mulf %690, %689 : vector<8x128xf32>
    %692 = arith.addf %682, %691 : vector<8x128xf32>
    %693 = vector.broadcast %633 : vector<1x128xf32> to vector<8x128xf32>
    %694 = vector.broadcast %212 : vector<8x1xf32> to vector<8x128xf32>
    %695 = arith.subf %693, %694 : vector<8x128xf32>
    %696 = arith.mulf %695, %695 : vector<8x128xf32>
    %697 = vector.broadcast %202 : vector<8x1xf32> to vector<8x128xf32>
    %698 = arith.mulf %697, %696 : vector<8x128xf32>
    %699 = math.exp %698 : vector<8x128xf32>
    %700 = vector.broadcast %192 : vector<8x1xf32> to vector<8x128xf32>
    %701 = arith.mulf %700, %699 : vector<8x128xf32>
    %702 = arith.addf %692, %701 : vector<8x128xf32>
    %703 = vector.broadcast %633 : vector<1x128xf32> to vector<8x128xf32>
    %704 = vector.broadcast %213 : vector<8x1xf32> to vector<8x128xf32>
    %705 = arith.subf %703, %704 : vector<8x128xf32>
    %706 = arith.mulf %705, %705 : vector<8x128xf32>
    %707 = vector.broadcast %203 : vector<8x1xf32> to vector<8x128xf32>
    %708 = arith.mulf %707, %706 : vector<8x128xf32>
    %709 = math.exp %708 : vector<8x128xf32>
    %710 = vector.broadcast %193 : vector<8x1xf32> to vector<8x128xf32>
    %711 = arith.mulf %710, %709 : vector<8x128xf32>
    %712 = arith.addf %702, %711 : vector<8x128xf32>
    %713 = vector.broadcast %633 : vector<1x128xf32> to vector<8x128xf32>
    %714 = vector.broadcast %214 : vector<8x1xf32> to vector<8x128xf32>
    %715 = arith.subf %713, %714 : vector<8x128xf32>
    %716 = arith.mulf %715, %715 : vector<8x128xf32>
    %717 = vector.broadcast %204 : vector<8x1xf32> to vector<8x128xf32>
    %718 = arith.mulf %717, %716 : vector<8x128xf32>
    %719 = math.exp %718 : vector<8x128xf32>
    %720 = vector.broadcast %194 : vector<8x1xf32> to vector<8x128xf32>
    %721 = arith.mulf %720, %719 : vector<8x128xf32>
    %722 = arith.addf %712, %721 : vector<8x128xf32>
    %723 = vector.broadcast %633 : vector<1x128xf32> to vector<8x128xf32>
    %724 = vector.broadcast %215 : vector<8x1xf32> to vector<8x128xf32>
    %725 = arith.subf %723, %724 : vector<8x128xf32>
    %726 = arith.mulf %725, %725 : vector<8x128xf32>
    %727 = vector.broadcast %205 : vector<8x1xf32> to vector<8x128xf32>
    %728 = arith.mulf %727, %726 : vector<8x128xf32>
    %729 = math.exp %728 : vector<8x128xf32>
    %730 = vector.broadcast %195 : vector<8x1xf32> to vector<8x128xf32>
    %731 = arith.mulf %730, %729 : vector<8x128xf32>
    %732 = arith.addf %722, %731 : vector<8x128xf32>
    %cst_138 = arith.constant dense<0.000000e+00> : vector<8xf32>
    %733 = vector.multi_reduction <add>, %732, %cst_138 [1] : vector<8x128xf32> to vector<8xf32>
    %734 = vector.shape_cast %733 : vector<8xf32> to vector<8x1xf32>
    %735 = arith.addf %631, %734 : vector<8x1xf32>
    %c0_139 = arith.constant 0 : index
    %c512_140 = arith.constant 512 : index
    %736 = vector.load %arg13[%c0_139, %c512_140] : memref<8x2100xf32, #tpu.memory_space<vmem>>, vector<8x128xf32>
    tpu.vector_store %arg13[%c0_139, %c512_140], %732 {strides = array<i32>} : memref<8x2100xf32, #tpu.memory_space<vmem>>, vector<8x128xf32>,
    %c0_141 = arith.constant 0 : index
    %c640 = arith.constant 640 : index
    %737 = vector.load %arg12[%c0_141, %c640] : memref<1x2100xf32, #tpu.memory_space<vmem>>, vector<1x128xf32>
    %738 = vector.broadcast %737 : vector<1x128xf32> to vector<8x128xf32>
    %739 = vector.broadcast %206 : vector<8x1xf32> to vector<8x128xf32>
    %740 = arith.subf %738, %739 : vector<8x128xf32>
    %741 = arith.mulf %740, %740 : vector<8x128xf32>
    %742 = vector.broadcast %196 : vector<8x1xf32> to vector<8x128xf32>
    %743 = arith.mulf %742, %741 : vector<8x128xf32>
    %744 = math.exp %743 : vector<8x128xf32>
    %745 = vector.broadcast %186 : vector<8x1xf32> to vector<8x128xf32>
    %746 = arith.mulf %745, %744 : vector<8x128xf32>
    %747 = vector.broadcast %737 : vector<1x128xf32> to vector<8x128xf32>
    %748 = vector.broadcast %207 : vector<8x1xf32> to vector<8x128xf32>
    %749 = arith.subf %747, %748 : vector<8x128xf32>
    %750 = arith.mulf %749, %749 : vector<8x128xf32>
    %751 = vector.broadcast %197 : vector<8x1xf32> to vector<8x128xf32>
    %752 = arith.mulf %751, %750 : vector<8x128xf32>
    %753 = math.exp %752 : vector<8x128xf32>
    %754 = vector.broadcast %187 : vector<8x1xf32> to vector<8x128xf32>
    %755 = arith.mulf %754, %753 : vector<8x128xf32>
    %756 = arith.addf %746, %755 : vector<8x128xf32>
    %757 = vector.broadcast %737 : vector<1x128xf32> to vector<8x128xf32>
    %758 = vector.broadcast %208 : vector<8x1xf32> to vector<8x128xf32>
    %759 = arith.subf %757, %758 : vector<8x128xf32>
    %760 = arith.mulf %759, %759 : vector<8x128xf32>
    %761 = vector.broadcast %198 : vector<8x1xf32> to vector<8x128xf32>
    %762 = arith.mulf %761, %760 : vector<8x128xf32>
    %763 = math.exp %762 : vector<8x128xf32>
    %764 = vector.broadcast %188 : vector<8x1xf32> to vector<8x128xf32>
    %765 = arith.mulf %764, %763 : vector<8x128xf32>
    %766 = arith.addf %756, %765 : vector<8x128xf32>
    %767 = vector.broadcast %737 : vector<1x128xf32> to vector<8x128xf32>
    %768 = vector.broadcast %209 : vector<8x1xf32> to vector<8x128xf32>
    %769 = arith.subf %767, %768 : vector<8x128xf32>
    %770 = arith.mulf %769, %769 : vector<8x128xf32>
    %771 = vector.broadcast %199 : vector<8x1xf32> to vector<8x128xf32>
    %772 = arith.mulf %771, %770 : vector<8x128xf32>
    %773 = math.exp %772 : vector<8x128xf32>
    %774 = vector.broadcast %189 : vector<8x1xf32> to vector<8x128xf32>
    %775 = arith.mulf %774, %773 : vector<8x128xf32>
    %776 = arith.addf %766, %775 : vector<8x128xf32>
    %777 = vector.broadcast %737 : vector<1x128xf32> to vector<8x128xf32>
    %778 = vector.broadcast %210 : vector<8x1xf32> to vector<8x128xf32>
    %779 = arith.subf %777, %778 : vector<8x128xf32>
    %780 = arith.mulf %779, %779 : vector<8x128xf32>
    %781 = vector.broadcast %200 : vector<8x1xf32> to vector<8x128xf32>
    %782 = arith.mulf %781, %780 : vector<8x128xf32>
    %783 = math.exp %782 : vector<8x128xf32>
    %784 = vector.broadcast %190 : vector<8x1xf32> to vector<8x128xf32>
    %785 = arith.mulf %784, %783 : vector<8x128xf32>
    %786 = arith.addf %776, %785 : vector<8x128xf32>
    %787 = vector.broadcast %737 : vector<1x128xf32> to vector<8x128xf32>
    %788 = vector.broadcast %211 : vector<8x1xf32> to vector<8x128xf32>
    %789 = arith.subf %787, %788 : vector<8x128xf32>
    %790 = arith.mulf %789, %789 : vector<8x128xf32>
    %791 = vector.broadcast %201 : vector<8x1xf32> to vector<8x128xf32>
    %792 = arith.mulf %791, %790 : vector<8x128xf32>
    %793 = math.exp %792 : vector<8x128xf32>
    %794 = vector.broadcast %191 : vector<8x1xf32> to vector<8x128xf32>
    %795 = arith.mulf %794, %793 : vector<8x128xf32>
    %796 = arith.addf %786, %795 : vector<8x128xf32>
    %797 = vector.broadcast %737 : vector<1x128xf32> to vector<8x128xf32>
    %798 = vector.broadcast %212 : vector<8x1xf32> to vector<8x128xf32>
    %799 = arith.subf %797, %798 : vector<8x128xf32>
    %800 = arith.mulf %799, %799 : vector<8x128xf32>
    %801 = vector.broadcast %202 : vector<8x1xf32> to vector<8x128xf32>
    %802 = arith.mulf %801, %800 : vector<8x128xf32>
    %803 = math.exp %802 : vector<8x128xf32>
    %804 = vector.broadcast %192 : vector<8x1xf32> to vector<8x128xf32>
    %805 = arith.mulf %804, %803 : vector<8x128xf32>
    %806 = arith.addf %796, %805 : vector<8x128xf32>
    %807 = vector.broadcast %737 : vector<1x128xf32> to vector<8x128xf32>
    %808 = vector.broadcast %213 : vector<8x1xf32> to vector<8x128xf32>
    %809 = arith.subf %807, %808 : vector<8x128xf32>
    %810 = arith.mulf %809, %809 : vector<8x128xf32>
    %811 = vector.broadcast %203 : vector<8x1xf32> to vector<8x128xf32>
    %812 = arith.mulf %811, %810 : vector<8x128xf32>
    %813 = math.exp %812 : vector<8x128xf32>
    %814 = vector.broadcast %193 : vector<8x1xf32> to vector<8x128xf32>
    %815 = arith.mulf %814, %813 : vector<8x128xf32>
    %816 = arith.addf %806, %815 : vector<8x128xf32>
    %817 = vector.broadcast %737 : vector<1x128xf32> to vector<8x128xf32>
    %818 = vector.broadcast %214 : vector<8x1xf32> to vector<8x128xf32>
    %819 = arith.subf %817, %818 : vector<8x128xf32>
    %820 = arith.mulf %819, %819 : vector<8x128xf32>
    %821 = vector.broadcast %204 : vector<8x1xf32> to vector<8x128xf32>
    %822 = arith.mulf %821, %820 : vector<8x128xf32>
    %823 = math.exp %822 : vector<8x128xf32>
    %824 = vector.broadcast %194 : vector<8x1xf32> to vector<8x128xf32>
    %825 = arith.mulf %824, %823 : vector<8x128xf32>
    %826 = arith.addf %816, %825 : vector<8x128xf32>
    %827 = vector.broadcast %737 : vector<1x128xf32> to vector<8x128xf32>
    %828 = vector.broadcast %215 : vector<8x1xf32> to vector<8x128xf32>
    %829 = arith.subf %827, %828 : vector<8x128xf32>
    %830 = arith.mulf %829, %829 : vector<8x128xf32>
    %831 = vector.broadcast %205 : vector<8x1xf32> to vector<8x128xf32>
    %832 = arith.mulf %831, %830 : vector<8x128xf32>
    %833 = math.exp %832 : vector<8x128xf32>
    %834 = vector.broadcast %195 : vector<8x1xf32> to vector<8x128xf32>
    %835 = arith.mulf %834, %833 : vector<8x128xf32>
    %836 = arith.addf %826, %835 : vector<8x128xf32>
    %cst_142 = arith.constant dense<0.000000e+00> : vector<8xf32>
    %837 = vector.multi_reduction <add>, %836, %cst_142 [1] : vector<8x128xf32> to vector<8xf32>
    %838 = vector.shape_cast %837 : vector<8xf32> to vector<8x1xf32>
    %839 = arith.addf %735, %838 : vector<8x1xf32>
    %c0_143 = arith.constant 0 : index
    %c640_144 = arith.constant 640 : index
    %840 = vector.load %arg13[%c0_143, %c640_144] : memref<8x2100xf32, #tpu.memory_space<vmem>>, vector<8x128xf32>
    tpu.vector_store %arg13[%c0_143, %c640_144], %836 {strides = array<i32>} : memref<8x2100xf32, #tpu.memory_space<vmem>>, vector<8x128xf32>,
    %c0_145 = arith.constant 0 : index
    %c768 = arith.constant 768 : index
    %841 = vector.load %arg12[%c0_145, %c768] : memref<1x2100xf32, #tpu.memory_space<vmem>>, vector<1x128xf32>
    %842 = vector.broadcast %841 : vector<1x128xf32> to vector<8x128xf32>
    %843 = vector.broadcast %206 : vector<8x1xf32> to vector<8x128xf32>
    %844 = arith.subf %842, %843 : vector<8x128xf32>
    %845 = arith.mulf %844, %844 : vector<8x128xf32>
    %846 = vector.broadcast %196 : vector<8x1xf32> to vector<8x128xf32>
    %847 = arith.mulf %846, %845 : vector<8x128xf32>
    %848 = math.exp %847 : vector<8x128xf32>
    %849 = vector.broadcast %186 : vector<8x1xf32> to vector<8x128xf32>
    %850 = arith.mulf %849, %848 : vector<8x128xf32>
    %851 = vector.broadcast %841 : vector<1x128xf32> to vector<8x128xf32>
    %852 = vector.broadcast %207 : vector<8x1xf32> to vector<8x128xf32>
    %853 = arith.subf %851, %852 : vector<8x128xf32>
    %854 = arith.mulf %853, %853 : vector<8x128xf32>
    %855 = vector.broadcast %197 : vector<8x1xf32> to vector<8x128xf32>
    %856 = arith.mulf %855, %854 : vector<8x128xf32>
    %857 = math.exp %856 : vector<8x128xf32>
    %858 = vector.broadcast %187 : vector<8x1xf32> to vector<8x128xf32>
    %859 = arith.mulf %858, %857 : vector<8x128xf32>
    %860 = arith.addf %850, %859 : vector<8x128xf32>
    %861 = vector.broadcast %841 : vector<1x128xf32> to vector<8x128xf32>
    %862 = vector.broadcast %208 : vector<8x1xf32> to vector<8x128xf32>
    %863 = arith.subf %861, %862 : vector<8x128xf32>
    %864 = arith.mulf %863, %863 : vector<8x128xf32>
    %865 = vector.broadcast %198 : vector<8x1xf32> to vector<8x128xf32>
    %866 = arith.mulf %865, %864 : vector<8x128xf32>
    %867 = math.exp %866 : vector<8x128xf32>
    %868 = vector.broadcast %188 : vector<8x1xf32> to vector<8x128xf32>
    %869 = arith.mulf %868, %867 : vector<8x128xf32>
    %870 = arith.addf %860, %869 : vector<8x128xf32>
    %871 = vector.broadcast %841 : vector<1x128xf32> to vector<8x128xf32>
    %872 = vector.broadcast %209 : vector<8x1xf32> to vector<8x128xf32>
    %873 = arith.subf %871, %872 : vector<8x128xf32>
    %874 = arith.mulf %873, %873 : vector<8x128xf32>
    %875 = vector.broadcast %199 : vector<8x1xf32> to vector<8x128xf32>
    %876 = arith.mulf %875, %874 : vector<8x128xf32>
    %877 = math.exp %876 : vector<8x128xf32>
    %878 = vector.broadcast %189 : vector<8x1xf32> to vector<8x128xf32>
    %879 = arith.mulf %878, %877 : vector<8x128xf32>
    %880 = arith.addf %870, %879 : vector<8x128xf32>
    %881 = vector.broadcast %841 : vector<1x128xf32> to vector<8x128xf32>
    %882 = vector.broadcast %210 : vector<8x1xf32> to vector<8x128xf32>
    %883 = arith.subf %881, %882 : vector<8x128xf32>
    %884 = arith.mulf %883, %883 : vector<8x128xf32>
    %885 = vector.broadcast %200 : vector<8x1xf32> to vector<8x128xf32>
    %886 = arith.mulf %885, %884 : vector<8x128xf32>
    %887 = math.exp %886 : vector<8x128xf32>
    %888 = vector.broadcast %190 : vector<8x1xf32> to vector<8x128xf32>
    %889 = arith.mulf %888, %887 : vector<8x128xf32>
    %890 = arith.addf %880, %889 : vector<8x128xf32>
    %891 = vector.broadcast %841 : vector<1x128xf32> to vector<8x128xf32>
    %892 = vector.broadcast %211 : vector<8x1xf32> to vector<8x128xf32>
    %893 = arith.subf %891, %892 : vector<8x128xf32>
    %894 = arith.mulf %893, %893 : vector<8x128xf32>
    %895 = vector.broadcast %201 : vector<8x1xf32> to vector<8x128xf32>
    %896 = arith.mulf %895, %894 : vector<8x128xf32>
    %897 = math.exp %896 : vector<8x128xf32>
    %898 = vector.broadcast %191 : vector<8x1xf32> to vector<8x128xf32>
    %899 = arith.mulf %898, %897 : vector<8x128xf32>
    %900 = arith.addf %890, %899 : vector<8x128xf32>
    %901 = vector.broadcast %841 : vector<1x128xf32> to vector<8x128xf32>
    %902 = vector.broadcast %212 : vector<8x1xf32> to vector<8x128xf32>
    %903 = arith.subf %901, %902 : vector<8x128xf32>
    %904 = arith.mulf %903, %903 : vector<8x128xf32>
    %905 = vector.broadcast %202 : vector<8x1xf32> to vector<8x128xf32>
    %906 = arith.mulf %905, %904 : vector<8x128xf32>
    %907 = math.exp %906 : vector<8x128xf32>
    %908 = vector.broadcast %192 : vector<8x1xf32> to vector<8x128xf32>
    %909 = arith.mulf %908, %907 : vector<8x128xf32>
    %910 = arith.addf %900, %909 : vector<8x128xf32>
    %911 = vector.broadcast %841 : vector<1x128xf32> to vector<8x128xf32>
    %912 = vector.broadcast %213 : vector<8x1xf32> to vector<8x128xf32>
    %913 = arith.subf %911, %912 : vector<8x128xf32>
    %914 = arith.mulf %913, %913 : vector<8x128xf32>
    %915 = vector.broadcast %203 : vector<8x1xf32> to vector<8x128xf32>
    %916 = arith.mulf %915, %914 : vector<8x128xf32>
    %917 = math.exp %916 : vector<8x128xf32>
    %918 = vector.broadcast %193 : vector<8x1xf32> to vector<8x128xf32>
    %919 = arith.mulf %918, %917 : vector<8x128xf32>
    %920 = arith.addf %910, %919 : vector<8x128xf32>
    %921 = vector.broadcast %841 : vector<1x128xf32> to vector<8x128xf32>
    %922 = vector.broadcast %214 : vector<8x1xf32> to vector<8x128xf32>
    %923 = arith.subf %921, %922 : vector<8x128xf32>
    %924 = arith.mulf %923, %923 : vector<8x128xf32>
    %925 = vector.broadcast %204 : vector<8x1xf32> to vector<8x128xf32>
    %926 = arith.mulf %925, %924 : vector<8x128xf32>
    %927 = math.exp %926 : vector<8x128xf32>
    %928 = vector.broadcast %194 : vector<8x1xf32> to vector<8x128xf32>
    %929 = arith.mulf %928, %927 : vector<8x128xf32>
    %930 = arith.addf %920, %929 : vector<8x128xf32>
    %931 = vector.broadcast %841 : vector<1x128xf32> to vector<8x128xf32>
    %932 = vector.broadcast %215 : vector<8x1xf32> to vector<8x128xf32>
    %933 = arith.subf %931, %932 : vector<8x128xf32>
    %934 = arith.mulf %933, %933 : vector<8x128xf32>
    %935 = vector.broadcast %205 : vector<8x1xf32> to vector<8x128xf32>
    %936 = arith.mulf %935, %934 : vector<8x128xf32>
    %937 = math.exp %936 : vector<8x128xf32>
    %938 = vector.broadcast %195 : vector<8x1xf32> to vector<8x128xf32>
    %939 = arith.mulf %938, %937 : vector<8x128xf32>
    %940 = arith.addf %930, %939 : vector<8x128xf32>
    %cst_146 = arith.constant dense<0.000000e+00> : vector<8xf32>
    %941 = vector.multi_reduction <add>, %940, %cst_146 [1] : vector<8x128xf32> to vector<8xf32>
    %942 = vector.shape_cast %941 : vector<8xf32> to vector<8x1xf32>
    %943 = arith.addf %839, %942 : vector<8x1xf32>
    %c0_147 = arith.constant 0 : index
    %c768_148 = arith.constant 768 : index
    %944 = vector.load %arg13[%c0_147, %c768_148] : memref<8x2100xf32, #tpu.memory_space<vmem>>, vector<8x128xf32>
    tpu.vector_store %arg13[%c0_147, %c768_148], %940 {strides = array<i32>} : memref<8x2100xf32, #tpu.memory_space<vmem>>, vector<8x128xf32>,
    %c0_149 = arith.constant 0 : index
    %c896 = arith.constant 896 : index
    %945 = vector.load %arg12[%c0_149, %c896] : memref<1x2100xf32, #tpu.memory_space<vmem>>, vector<1x128xf32>
    %946 = vector.broadcast %945 : vector<1x128xf32> to vector<8x128xf32>
    %947 = vector.broadcast %206 : vector<8x1xf32> to vector<8x128xf32>
    %948 = arith.subf %946, %947 : vector<8x128xf32>
    %949 = arith.mulf %948, %948 : vector<8x128xf32>
    %950 = vector.broadcast %196 : vector<8x1xf32> to vector<8x128xf32>
    %951 = arith.mulf %950, %949 : vector<8x128xf32>
    %952 = math.exp %951 : vector<8x128xf32>
    %953 = vector.broadcast %186 : vector<8x1xf32> to vector<8x128xf32>
    %954 = arith.mulf %953, %952 : vector<8x128xf32>
    %955 = vector.broadcast %945 : vector<1x128xf32> to vector<8x128xf32>
    %956 = vector.broadcast %207 : vector<8x1xf32> to vector<8x128xf32>
    %957 = arith.subf %955, %956 : vector<8x128xf32>
    %958 = arith.mulf %957, %957 : vector<8x128xf32>
    %959 = vector.broadcast %197 : vector<8x1xf32> to vector<8x128xf32>
    %960 = arith.mulf %959, %958 : vector<8x128xf32>
    %961 = math.exp %960 : vector<8x128xf32>
    %962 = vector.broadcast %187 : vector<8x1xf32> to vector<8x128xf32>
    %963 = arith.mulf %962, %961 : vector<8x128xf32>
    %964 = arith.addf %954, %963 : vector<8x128xf32>
    %965 = vector.broadcast %945 : vector<1x128xf32> to vector<8x128xf32>
    %966 = vector.broadcast %208 : vector<8x1xf32> to vector<8x128xf32>
    %967 = arith.subf %965, %966 : vector<8x128xf32>
    %968 = arith.mulf %967, %967 : vector<8x128xf32>
    %969 = vector.broadcast %198 : vector<8x1xf32> to vector<8x128xf32>
    %970 = arith.mulf %969, %968 : vector<8x128xf32>
    %971 = math.exp %970 : vector<8x128xf32>
    %972 = vector.broadcast %188 : vector<8x1xf32> to vector<8x128xf32>
    %973 = arith.mulf %972, %971 : vector<8x128xf32>
    %974 = arith.addf %964, %973 : vector<8x128xf32>
    %975 = vector.broadcast %945 : vector<1x128xf32> to vector<8x128xf32>
    %976 = vector.broadcast %209 : vector<8x1xf32> to vector<8x128xf32>
    %977 = arith.subf %975, %976 : vector<8x128xf32>
    %978 = arith.mulf %977, %977 : vector<8x128xf32>
    %979 = vector.broadcast %199 : vector<8x1xf32> to vector<8x128xf32>
    %980 = arith.mulf %979, %978 : vector<8x128xf32>
    %981 = math.exp %980 : vector<8x128xf32>
    %982 = vector.broadcast %189 : vector<8x1xf32> to vector<8x128xf32>
    %983 = arith.mulf %982, %981 : vector<8x128xf32>
    %984 = arith.addf %974, %983 : vector<8x128xf32>
    %985 = vector.broadcast %945 : vector<1x128xf32> to vector<8x128xf32>
    %986 = vector.broadcast %210 : vector<8x1xf32> to vector<8x128xf32>
    %987 = arith.subf %985, %986 : vector<8x128xf32>
    %988 = arith.mulf %987, %987 : vector<8x128xf32>
    %989 = vector.broadcast %200 : vector<8x1xf32> to vector<8x128xf32>
    %990 = arith.mulf %989, %988 : vector<8x128xf32>
    %991 = math.exp %990 : vector<8x128xf32>
    %992 = vector.broadcast %190 : vector<8x1xf32> to vector<8x128xf32>
    %993 = arith.mulf %992, %991 : vector<8x128xf32>
    %994 = arith.addf %984, %993 : vector<8x128xf32>
    %995 = vector.broadcast %945 : vector<1x128xf32> to vector<8x128xf32>
    %996 = vector.broadcast %211 : vector<8x1xf32> to vector<8x128xf32>
    %997 = arith.subf %995, %996 : vector<8x128xf32>
    %998 = arith.mulf %997, %997 : vector<8x128xf32>
    %999 = vector.broadcast %201 : vector<8x1xf32> to vector<8x128xf32>
    %1000 = arith.mulf %999, %998 : vector<8x128xf32>
    %1001 = math.exp %1000 : vector<8x128xf32>
    %1002 = vector.broadcast %191 : vector<8x1xf32> to vector<8x128xf32>
    %1003 = arith.mulf %1002, %1001 : vector<8x128xf32>
    %1004 = arith.addf %994, %1003 : vector<8x128xf32>
    %1005 = vector.broadcast %945 : vector<1x128xf32> to vector<8x128xf32>
    %1006 = vector.broadcast %212 : vector<8x1xf32> to vector<8x128xf32>
    %1007 = arith.subf %1005, %1006 : vector<8x128xf32>
    %1008 = arith.mulf %1007, %1007 : vector<8x128xf32>
    %1009 = vector.broadcast %202 : vector<8x1xf32> to vector<8x128xf32>
    %1010 = arith.mulf %1009, %1008 : vector<8x128xf32>
    %1011 = math.exp %1010 : vector<8x128xf32>
    %1012 = vector.broadcast %192 : vector<8x1xf32> to vector<8x128xf32>
    %1013 = arith.mulf %1012, %1011 : vector<8x128xf32>
    %1014 = arith.addf %1004, %1013 : vector<8x128xf32>
    %1015 = vector.broadcast %945 : vector<1x128xf32> to vector<8x128xf32>
    %1016 = vector.broadcast %213 : vector<8x1xf32> to vector<8x128xf32>
    %1017 = arith.subf %1015, %1016 : vector<8x128xf32>
    %1018 = arith.mulf %1017, %1017 : vector<8x128xf32>
    %1019 = vector.broadcast %203 : vector<8x1xf32> to vector<8x128xf32>
    %1020 = arith.mulf %1019, %1018 : vector<8x128xf32>
    %1021 = math.exp %1020 : vector<8x128xf32>
    %1022 = vector.broadcast %193 : vector<8x1xf32> to vector<8x128xf32>
    %1023 = arith.mulf %1022, %1021 : vector<8x128xf32>
    %1024 = arith.addf %1014, %1023 : vector<8x128xf32>
    %1025 = vector.broadcast %945 : vector<1x128xf32> to vector<8x128xf32>
    %1026 = vector.broadcast %214 : vector<8x1xf32> to vector<8x128xf32>
    %1027 = arith.subf %1025, %1026 : vector<8x128xf32>
    %1028 = arith.mulf %1027, %1027 : vector<8x128xf32>
    %1029 = vector.broadcast %204 : vector<8x1xf32> to vector<8x128xf32>
    %1030 = arith.mulf %1029, %1028 : vector<8x128xf32>
    %1031 = math.exp %1030 : vector<8x128xf32>
    %1032 = vector.broadcast %194 : vector<8x1xf32> to vector<8x128xf32>
    %1033 = arith.mulf %1032, %1031 : vector<8x128xf32>
    %1034 = arith.addf %1024, %1033 : vector<8x128xf32>
    %1035 = vector.broadcast %945 : vector<1x128xf32> to vector<8x128xf32>
    %1036 = vector.broadcast %215 : vector<8x1xf32> to vector<8x128xf32>
    %1037 = arith.subf %1035, %1036 : vector<8x128xf32>
    %1038 = arith.mulf %1037, %1037 : vector<8x128xf32>
    %1039 = vector.broadcast %205 : vector<8x1xf32> to vector<8x128xf32>
    %1040 = arith.mulf %1039, %1038 : vector<8x128xf32>
    %1041 = math.exp %1040 : vector<8x128xf32>
    %1042 = vector.broadcast %195 : vector<8x1xf32> to vector<8x128xf32>
    %1043 = arith.mulf %1042, %1041 : vector<8x128xf32>
    %1044 = arith.addf %1034, %1043 : vector<8x128xf32>
    %cst_150 = arith.constant dense<0.000000e+00> : vector<8xf32>
    %1045 = vector.multi_reduction <add>, %1044, %cst_150 [1] : vector<8x128xf32> to vector<8xf32>
    %1046 = vector.shape_cast %1045 : vector<8xf32> to vector<8x1xf32>
    %1047 = arith.addf %943, %1046 : vector<8x1xf32>
    %c0_151 = arith.constant 0 : index
    %c896_152 = arith.constant 896 : index
    %1048 = vector.load %arg13[%c0_151, %c896_152] : memref<8x2100xf32, #tpu.memory_space<vmem>>, vector<8x128xf32>
    tpu.vector_store %arg13[%c0_151, %c896_152], %1044 {strides = array<i32>} : memref<8x2100xf32, #tpu.memory_space<vmem>>, vector<8x128xf32>,
    %c0_153 = arith.constant 0 : index
    %c1024 = arith.constant 1024 : index
    %1049 = vector.load %arg12[%c0_153, %c1024] : memref<1x2100xf32, #tpu.memory_space<vmem>>, vector<1x128xf32>
    %1050 = vector.broadcast %1049 : vector<1x128xf32> to vector<8x128xf32>
    %1051 = vector.broadcast %206 : vector<8x1xf32> to vector<8x128xf32>
    %1052 = arith.subf %1050, %1051 : vector<8x128xf32>
    %1053 = arith.mulf %1052, %1052 : vector<8x128xf32>
    %1054 = vector.broadcast %196 : vector<8x1xf32> to vector<8x128xf32>
    %1055 = arith.mulf %1054, %1053 : vector<8x128xf32>
    %1056 = math.exp %1055 : vector<8x128xf32>
    %1057 = vector.broadcast %186 : vector<8x1xf32> to vector<8x128xf32>
    %1058 = arith.mulf %1057, %1056 : vector<8x128xf32>
    %1059 = vector.broadcast %1049 : vector<1x128xf32> to vector<8x128xf32>
    %1060 = vector.broadcast %207 : vector<8x1xf32> to vector<8x128xf32>
    %1061 = arith.subf %1059, %1060 : vector<8x128xf32>
    %1062 = arith.mulf %1061, %1061 : vector<8x128xf32>
    %1063 = vector.broadcast %197 : vector<8x1xf32> to vector<8x128xf32>
    %1064 = arith.mulf %1063, %1062 : vector<8x128xf32>
    %1065 = math.exp %1064 : vector<8x128xf32>
    %1066 = vector.broadcast %187 : vector<8x1xf32> to vector<8x128xf32>
    %1067 = arith.mulf %1066, %1065 : vector<8x128xf32>
    %1068 = arith.addf %1058, %1067 : vector<8x128xf32>
    %1069 = vector.broadcast %1049 : vector<1x128xf32> to vector<8x128xf32>
    %1070 = vector.broadcast %208 : vector<8x1xf32> to vector<8x128xf32>
    %1071 = arith.subf %1069, %1070 : vector<8x128xf32>
    %1072 = arith.mulf %1071, %1071 : vector<8x128xf32>
    %1073 = vector.broadcast %198 : vector<8x1xf32> to vector<8x128xf32>
    %1074 = arith.mulf %1073, %1072 : vector<8x128xf32>
    %1075 = math.exp %1074 : vector<8x128xf32>
    %1076 = vector.broadcast %188 : vector<8x1xf32> to vector<8x128xf32>
    %1077 = arith.mulf %1076, %1075 : vector<8x128xf32>
    %1078 = arith.addf %1068, %1077 : vector<8x128xf32>
    %1079 = vector.broadcast %1049 : vector<1x128xf32> to vector<8x128xf32>
    %1080 = vector.broadcast %209 : vector<8x1xf32> to vector<8x128xf32>
    %1081 = arith.subf %1079, %1080 : vector<8x128xf32>
    %1082 = arith.mulf %1081, %1081 : vector<8x128xf32>
    %1083 = vector.broadcast %199 : vector<8x1xf32> to vector<8x128xf32>
    %1084 = arith.mulf %1083, %1082 : vector<8x128xf32>
    %1085 = math.exp %1084 : vector<8x128xf32>
    %1086 = vector.broadcast %189 : vector<8x1xf32> to vector<8x128xf32>
    %1087 = arith.mulf %1086, %1085 : vector<8x128xf32>
    %1088 = arith.addf %1078, %1087 : vector<8x128xf32>
    %1089 = vector.broadcast %1049 : vector<1x128xf32> to vector<8x128xf32>
    %1090 = vector.broadcast %210 : vector<8x1xf32> to vector<8x128xf32>
    %1091 = arith.subf %1089, %1090 : vector<8x128xf32>
    %1092 = arith.mulf %1091, %1091 : vector<8x128xf32>
    %1093 = vector.broadcast %200 : vector<8x1xf32> to vector<8x128xf32>
    %1094 = arith.mulf %1093, %1092 : vector<8x128xf32>
    %1095 = math.exp %1094 : vector<8x128xf32>
    %1096 = vector.broadcast %190 : vector<8x1xf32> to vector<8x128xf32>
    %1097 = arith.mulf %1096, %1095 : vector<8x128xf32>
    %1098 = arith.addf %1088, %1097 : vector<8x128xf32>
    %1099 = vector.broadcast %1049 : vector<1x128xf32> to vector<8x128xf32>
    %1100 = vector.broadcast %211 : vector<8x1xf32> to vector<8x128xf32>
    %1101 = arith.subf %1099, %1100 : vector<8x128xf32>
    %1102 = arith.mulf %1101, %1101 : vector<8x128xf32>
    %1103 = vector.broadcast %201 : vector<8x1xf32> to vector<8x128xf32>
    %1104 = arith.mulf %1103, %1102 : vector<8x128xf32>
    %1105 = math.exp %1104 : vector<8x128xf32>
    %1106 = vector.broadcast %191 : vector<8x1xf32> to vector<8x128xf32>
    %1107 = arith.mulf %1106, %1105 : vector<8x128xf32>
    %1108 = arith.addf %1098, %1107 : vector<8x128xf32>
    %1109 = vector.broadcast %1049 : vector<1x128xf32> to vector<8x128xf32>
    %1110 = vector.broadcast %212 : vector<8x1xf32> to vector<8x128xf32>
    %1111 = arith.subf %1109, %1110 : vector<8x128xf32>
    %1112 = arith.mulf %1111, %1111 : vector<8x128xf32>
    %1113 = vector.broadcast %202 : vector<8x1xf32> to vector<8x128xf32>
    %1114 = arith.mulf %1113, %1112 : vector<8x128xf32>
    %1115 = math.exp %1114 : vector<8x128xf32>
    %1116 = vector.broadcast %192 : vector<8x1xf32> to vector<8x128xf32>
    %1117 = arith.mulf %1116, %1115 : vector<8x128xf32>
    %1118 = arith.addf %1108, %1117 : vector<8x128xf32>
    %1119 = vector.broadcast %1049 : vector<1x128xf32> to vector<8x128xf32>
    %1120 = vector.broadcast %213 : vector<8x1xf32> to vector<8x128xf32>
    %1121 = arith.subf %1119, %1120 : vector<8x128xf32>
    %1122 = arith.mulf %1121, %1121 : vector<8x128xf32>
    %1123 = vector.broadcast %203 : vector<8x1xf32> to vector<8x128xf32>
    %1124 = arith.mulf %1123, %1122 : vector<8x128xf32>
    %1125 = math.exp %1124 : vector<8x128xf32>
    %1126 = vector.broadcast %193 : vector<8x1xf32> to vector<8x128xf32>
    %1127 = arith.mulf %1126, %1125 : vector<8x128xf32>
    %1128 = arith.addf %1118, %1127 : vector<8x128xf32>
    %1129 = vector.broadcast %1049 : vector<1x128xf32> to vector<8x128xf32>
    %1130 = vector.broadcast %214 : vector<8x1xf32> to vector<8x128xf32>
    %1131 = arith.subf %1129, %1130 : vector<8x128xf32>
    %1132 = arith.mulf %1131, %1131 : vector<8x128xf32>
    %1133 = vector.broadcast %204 : vector<8x1xf32> to vector<8x128xf32>
    %1134 = arith.mulf %1133, %1132 : vector<8x128xf32>
    %1135 = math.exp %1134 : vector<8x128xf32>
    %1136 = vector.broadcast %194 : vector<8x1xf32> to vector<8x128xf32>
    %1137 = arith.mulf %1136, %1135 : vector<8x128xf32>
    %1138 = arith.addf %1128, %1137 : vector<8x128xf32>
    %1139 = vector.broadcast %1049 : vector<1x128xf32> to vector<8x128xf32>
    %1140 = vector.broadcast %215 : vector<8x1xf32> to vector<8x128xf32>
    %1141 = arith.subf %1139, %1140 : vector<8x128xf32>
    %1142 = arith.mulf %1141, %1141 : vector<8x128xf32>
    %1143 = vector.broadcast %205 : vector<8x1xf32> to vector<8x128xf32>
    %1144 = arith.mulf %1143, %1142 : vector<8x128xf32>
    %1145 = math.exp %1144 : vector<8x128xf32>
    %1146 = vector.broadcast %195 : vector<8x1xf32> to vector<8x128xf32>
    %1147 = arith.mulf %1146, %1145 : vector<8x128xf32>
    %1148 = arith.addf %1138, %1147 : vector<8x128xf32>
    %cst_154 = arith.constant dense<0.000000e+00> : vector<8xf32>
    %1149 = vector.multi_reduction <add>, %1148, %cst_154 [1] : vector<8x128xf32> to vector<8xf32>
    %1150 = vector.shape_cast %1149 : vector<8xf32> to vector<8x1xf32>
    %1151 = arith.addf %1047, %1150 : vector<8x1xf32>
    %c0_155 = arith.constant 0 : index
    %c1024_156 = arith.constant 1024 : index
    %1152 = vector.load %arg13[%c0_155, %c1024_156] : memref<8x2100xf32, #tpu.memory_space<vmem>>, vector<8x128xf32>
    tpu.vector_store %arg13[%c0_155, %c1024_156], %1148 {strides = array<i32>} : memref<8x2100xf32, #tpu.memory_space<vmem>>, vector<8x128xf32>,
    %c0_157 = arith.constant 0 : index
    %c1152 = arith.constant 1152 : index
    %1153 = vector.load %arg12[%c0_157, %c1152] : memref<1x2100xf32, #tpu.memory_space<vmem>>, vector<1x128xf32>
    %1154 = vector.broadcast %1153 : vector<1x128xf32> to vector<8x128xf32>
    %1155 = vector.broadcast %206 : vector<8x1xf32> to vector<8x128xf32>
    %1156 = arith.subf %1154, %1155 : vector<8x128xf32>
    %1157 = arith.mulf %1156, %1156 : vector<8x128xf32>
    %1158 = vector.broadcast %196 : vector<8x1xf32> to vector<8x128xf32>
    %1159 = arith.mulf %1158, %1157 : vector<8x128xf32>
    %1160 = math.exp %1159 : vector<8x128xf32>
    %1161 = vector.broadcast %186 : vector<8x1xf32> to vector<8x128xf32>
    %1162 = arith.mulf %1161, %1160 : vector<8x128xf32>
    %1163 = vector.broadcast %1153 : vector<1x128xf32> to vector<8x128xf32>
    %1164 = vector.broadcast %207 : vector<8x1xf32> to vector<8x128xf32>
    %1165 = arith.subf %1163, %1164 : vector<8x128xf32>
    %1166 = arith.mulf %1165, %1165 : vector<8x128xf32>
    %1167 = vector.broadcast %197 : vector<8x1xf32> to vector<8x128xf32>
    %1168 = arith.mulf %1167, %1166 : vector<8x128xf32>
    %1169 = math.exp %1168 : vector<8x128xf32>
    %1170 = vector.broadcast %187 : vector<8x1xf32> to vector<8x128xf32>
    %1171 = arith.mulf %1170, %1169 : vector<8x128xf32>
    %1172 = arith.addf %1162, %1171 : vector<8x128xf32>
    %1173 = vector.broadcast %1153 : vector<1x128xf32> to vector<8x128xf32>
    %1174 = vector.broadcast %208 : vector<8x1xf32> to vector<8x128xf32>
    %1175 = arith.subf %1173, %1174 : vector<8x128xf32>
    %1176 = arith.mulf %1175, %1175 : vector<8x128xf32>
    %1177 = vector.broadcast %198 : vector<8x1xf32> to vector<8x128xf32>
    %1178 = arith.mulf %1177, %1176 : vector<8x128xf32>
    %1179 = math.exp %1178 : vector<8x128xf32>
    %1180 = vector.broadcast %188 : vector<8x1xf32> to vector<8x128xf32>
    %1181 = arith.mulf %1180, %1179 : vector<8x128xf32>
    %1182 = arith.addf %1172, %1181 : vector<8x128xf32>
    %1183 = vector.broadcast %1153 : vector<1x128xf32> to vector<8x128xf32>
    %1184 = vector.broadcast %209 : vector<8x1xf32> to vector<8x128xf32>
    %1185 = arith.subf %1183, %1184 : vector<8x128xf32>
    %1186 = arith.mulf %1185, %1185 : vector<8x128xf32>
    %1187 = vector.broadcast %199 : vector<8x1xf32> to vector<8x128xf32>
    %1188 = arith.mulf %1187, %1186 : vector<8x128xf32>
    %1189 = math.exp %1188 : vector<8x128xf32>
    %1190 = vector.broadcast %189 : vector<8x1xf32> to vector<8x128xf32>
    %1191 = arith.mulf %1190, %1189 : vector<8x128xf32>
    %1192 = arith.addf %1182, %1191 : vector<8x128xf32>
    %1193 = vector.broadcast %1153 : vector<1x128xf32> to vector<8x128xf32>
    %1194 = vector.broadcast %210 : vector<8x1xf32> to vector<8x128xf32>
    %1195 = arith.subf %1193, %1194 : vector<8x128xf32>
    %1196 = arith.mulf %1195, %1195 : vector<8x128xf32>
    %1197 = vector.broadcast %200 : vector<8x1xf32> to vector<8x128xf32>
    %1198 = arith.mulf %1197, %1196 : vector<8x128xf32>
    %1199 = math.exp %1198 : vector<8x128xf32>
    %1200 = vector.broadcast %190 : vector<8x1xf32> to vector<8x128xf32>
    %1201 = arith.mulf %1200, %1199 : vector<8x128xf32>
    %1202 = arith.addf %1192, %1201 : vector<8x128xf32>
    %1203 = vector.broadcast %1153 : vector<1x128xf32> to vector<8x128xf32>
    %1204 = vector.broadcast %211 : vector<8x1xf32> to vector<8x128xf32>
    %1205 = arith.subf %1203, %1204 : vector<8x128xf32>
    %1206 = arith.mulf %1205, %1205 : vector<8x128xf32>
    %1207 = vector.broadcast %201 : vector<8x1xf32> to vector<8x128xf32>
    %1208 = arith.mulf %1207, %1206 : vector<8x128xf32>
    %1209 = math.exp %1208 : vector<8x128xf32>
    %1210 = vector.broadcast %191 : vector<8x1xf32> to vector<8x128xf32>
    %1211 = arith.mulf %1210, %1209 : vector<8x128xf32>
    %1212 = arith.addf %1202, %1211 : vector<8x128xf32>
    %1213 = vector.broadcast %1153 : vector<1x128xf32> to vector<8x128xf32>
    %1214 = vector.broadcast %212 : vector<8x1xf32> to vector<8x128xf32>
    %1215 = arith.subf %1213, %1214 : vector<8x128xf32>
    %1216 = arith.mulf %1215, %1215 : vector<8x128xf32>
    %1217 = vector.broadcast %202 : vector<8x1xf32> to vector<8x128xf32>
    %1218 = arith.mulf %1217, %1216 : vector<8x128xf32>
    %1219 = math.exp %1218 : vector<8x128xf32>
    %1220 = vector.broadcast %192 : vector<8x1xf32> to vector<8x128xf32>
    %1221 = arith.mulf %1220, %1219 : vector<8x128xf32>
    %1222 = arith.addf %1212, %1221 : vector<8x128xf32>
    %1223 = vector.broadcast %1153 : vector<1x128xf32> to vector<8x128xf32>
    %1224 = vector.broadcast %213 : vector<8x1xf32> to vector<8x128xf32>
    %1225 = arith.subf %1223, %1224 : vector<8x128xf32>
    %1226 = arith.mulf %1225, %1225 : vector<8x128xf32>
    %1227 = vector.broadcast %203 : vector<8x1xf32> to vector<8x128xf32>
    %1228 = arith.mulf %1227, %1226 : vector<8x128xf32>
    %1229 = math.exp %1228 : vector<8x128xf32>
    %1230 = vector.broadcast %193 : vector<8x1xf32> to vector<8x128xf32>
    %1231 = arith.mulf %1230, %1229 : vector<8x128xf32>
    %1232 = arith.addf %1222, %1231 : vector<8x128xf32>
    %1233 = vector.broadcast %1153 : vector<1x128xf32> to vector<8x128xf32>
    %1234 = vector.broadcast %214 : vector<8x1xf32> to vector<8x128xf32>
    %1235 = arith.subf %1233, %1234 : vector<8x128xf32>
    %1236 = arith.mulf %1235, %1235 : vector<8x128xf32>
    %1237 = vector.broadcast %204 : vector<8x1xf32> to vector<8x128xf32>
    %1238 = arith.mulf %1237, %1236 : vector<8x128xf32>
    %1239 = math.exp %1238 : vector<8x128xf32>
    %1240 = vector.broadcast %194 : vector<8x1xf32> to vector<8x128xf32>
    %1241 = arith.mulf %1240, %1239 : vector<8x128xf32>
    %1242 = arith.addf %1232, %1241 : vector<8x128xf32>
    %1243 = vector.broadcast %1153 : vector<1x128xf32> to vector<8x128xf32>
    %1244 = vector.broadcast %215 : vector<8x1xf32> to vector<8x128xf32>
    %1245 = arith.subf %1243, %1244 : vector<8x128xf32>
    %1246 = arith.mulf %1245, %1245 : vector<8x128xf32>
    %1247 = vector.broadcast %205 : vector<8x1xf32> to vector<8x128xf32>
    %1248 = arith.mulf %1247, %1246 : vector<8x128xf32>
    %1249 = math.exp %1248 : vector<8x128xf32>
    %1250 = vector.broadcast %195 : vector<8x1xf32> to vector<8x128xf32>
    %1251 = arith.mulf %1250, %1249 : vector<8x128xf32>
    %1252 = arith.addf %1242, %1251 : vector<8x128xf32>
    %cst_158 = arith.constant dense<0.000000e+00> : vector<8xf32>
    %1253 = vector.multi_reduction <add>, %1252, %cst_158 [1] : vector<8x128xf32> to vector<8xf32>
    %1254 = vector.shape_cast %1253 : vector<8xf32> to vector<8x1xf32>
    %1255 = arith.addf %1151, %1254 : vector<8x1xf32>
    %c0_159 = arith.constant 0 : index
    %c1152_160 = arith.constant 1152 : index
    %1256 = vector.load %arg13[%c0_159, %c1152_160] : memref<8x2100xf32, #tpu.memory_space<vmem>>, vector<8x128xf32>
    tpu.vector_store %arg13[%c0_159, %c1152_160], %1252 {strides = array<i32>} : memref<8x2100xf32, #tpu.memory_space<vmem>>, vector<8x128xf32>,
    %c0_161 = arith.constant 0 : index
    %c1280 = arith.constant 1280 : index
    %1257 = vector.load %arg12[%c0_161, %c1280] : memref<1x2100xf32, #tpu.memory_space<vmem>>, vector<1x128xf32>
    %1258 = vector.broadcast %1257 : vector<1x128xf32> to vector<8x128xf32>
    %1259 = vector.broadcast %206 : vector<8x1xf32> to vector<8x128xf32>
    %1260 = arith.subf %1258, %1259 : vector<8x128xf32>
    %1261 = arith.mulf %1260, %1260 : vector<8x128xf32>
    %1262 = vector.broadcast %196 : vector<8x1xf32> to vector<8x128xf32>
    %1263 = arith.mulf %1262, %1261 : vector<8x128xf32>
    %1264 = math.exp %1263 : vector<8x128xf32>
    %1265 = vector.broadcast %186 : vector<8x1xf32> to vector<8x128xf32>
    %1266 = arith.mulf %1265, %1264 : vector<8x128xf32>
    %1267 = vector.broadcast %1257 : vector<1x128xf32> to vector<8x128xf32>
    %1268 = vector.broadcast %207 : vector<8x1xf32> to vector<8x128xf32>
    %1269 = arith.subf %1267, %1268 : vector<8x128xf32>
    %1270 = arith.mulf %1269, %1269 : vector<8x128xf32>
    %1271 = vector.broadcast %197 : vector<8x1xf32> to vector<8x128xf32>
    %1272 = arith.mulf %1271, %1270 : vector<8x128xf32>
    %1273 = math.exp %1272 : vector<8x128xf32>
    %1274 = vector.broadcast %187 : vector<8x1xf32> to vector<8x128xf32>
    %1275 = arith.mulf %1274, %1273 : vector<8x128xf32>
    %1276 = arith.addf %1266, %1275 : vector<8x128xf32>
    %1277 = vector.broadcast %1257 : vector<1x128xf32> to vector<8x128xf32>
    %1278 = vector.broadcast %208 : vector<8x1xf32> to vector<8x128xf32>
    %1279 = arith.subf %1277, %1278 : vector<8x128xf32>
    %1280 = arith.mulf %1279, %1279 : vector<8x128xf32>
    %1281 = vector.broadcast %198 : vector<8x1xf32> to vector<8x128xf32>
    %1282 = arith.mulf %1281, %1280 : vector<8x128xf32>
    %1283 = math.exp %1282 : vector<8x128xf32>
    %1284 = vector.broadcast %188 : vector<8x1xf32> to vector<8x128xf32>
    %1285 = arith.mulf %1284, %1283 : vector<8x128xf32>
    %1286 = arith.addf %1276, %1285 : vector<8x128xf32>
    %1287 = vector.broadcast %1257 : vector<1x128xf32> to vector<8x128xf32>
    %1288 = vector.broadcast %209 : vector<8x1xf32> to vector<8x128xf32>
    %1289 = arith.subf %1287, %1288 : vector<8x128xf32>
    %1290 = arith.mulf %1289, %1289 : vector<8x128xf32>
    %1291 = vector.broadcast %199 : vector<8x1xf32> to vector<8x128xf32>
    %1292 = arith.mulf %1291, %1290 : vector<8x128xf32>
    %1293 = math.exp %1292 : vector<8x128xf32>
    %1294 = vector.broadcast %189 : vector<8x1xf32> to vector<8x128xf32>
    %1295 = arith.mulf %1294, %1293 : vector<8x128xf32>
    %1296 = arith.addf %1286, %1295 : vector<8x128xf32>
    %1297 = vector.broadcast %1257 : vector<1x128xf32> to vector<8x128xf32>
    %1298 = vector.broadcast %210 : vector<8x1xf32> to vector<8x128xf32>
    %1299 = arith.subf %1297, %1298 : vector<8x128xf32>
    %1300 = arith.mulf %1299, %1299 : vector<8x128xf32>
    %1301 = vector.broadcast %200 : vector<8x1xf32> to vector<8x128xf32>
    %1302 = arith.mulf %1301, %1300 : vector<8x128xf32>
    %1303 = math.exp %1302 : vector<8x128xf32>
    %1304 = vector.broadcast %190 : vector<8x1xf32> to vector<8x128xf32>
    %1305 = arith.mulf %1304, %1303 : vector<8x128xf32>
    %1306 = arith.addf %1296, %1305 : vector<8x128xf32>
    %1307 = vector.broadcast %1257 : vector<1x128xf32> to vector<8x128xf32>
    %1308 = vector.broadcast %211 : vector<8x1xf32> to vector<8x128xf32>
    %1309 = arith.subf %1307, %1308 : vector<8x128xf32>
    %1310 = arith.mulf %1309, %1309 : vector<8x128xf32>
    %1311 = vector.broadcast %201 : vector<8x1xf32> to vector<8x128xf32>
    %1312 = arith.mulf %1311, %1310 : vector<8x128xf32>
    %1313 = math.exp %1312 : vector<8x128xf32>
    %1314 = vector.broadcast %191 : vector<8x1xf32> to vector<8x128xf32>
    %1315 = arith.mulf %1314, %1313 : vector<8x128xf32>
    %1316 = arith.addf %1306, %1315 : vector<8x128xf32>
    %1317 = vector.broadcast %1257 : vector<1x128xf32> to vector<8x128xf32>
    %1318 = vector.broadcast %212 : vector<8x1xf32> to vector<8x128xf32>
    %1319 = arith.subf %1317, %1318 : vector<8x128xf32>
    %1320 = arith.mulf %1319, %1319 : vector<8x128xf32>
    %1321 = vector.broadcast %202 : vector<8x1xf32> to vector<8x128xf32>
    %1322 = arith.mulf %1321, %1320 : vector<8x128xf32>
    %1323 = math.exp %1322 : vector<8x128xf32>
    %1324 = vector.broadcast %192 : vector<8x1xf32> to vector<8x128xf32>
    %1325 = arith.mulf %1324, %1323 : vector<8x128xf32>
    %1326 = arith.addf %1316, %1325 : vector<8x128xf32>
    %1327 = vector.broadcast %1257 : vector<1x128xf32> to vector<8x128xf32>
    %1328 = vector.broadcast %213 : vector<8x1xf32> to vector<8x128xf32>
    %1329 = arith.subf %1327, %1328 : vector<8x128xf32>
    %1330 = arith.mulf %1329, %1329 : vector<8x128xf32>
    %1331 = vector.broadcast %203 : vector<8x1xf32> to vector<8x128xf32>
    %1332 = arith.mulf %1331, %1330 : vector<8x128xf32>
    %1333 = math.exp %1332 : vector<8x128xf32>
    %1334 = vector.broadcast %193 : vector<8x1xf32> to vector<8x128xf32>
    %1335 = arith.mulf %1334, %1333 : vector<8x128xf32>
    %1336 = arith.addf %1326, %1335 : vector<8x128xf32>
    %1337 = vector.broadcast %1257 : vector<1x128xf32> to vector<8x128xf32>
    %1338 = vector.broadcast %214 : vector<8x1xf32> to vector<8x128xf32>
    %1339 = arith.subf %1337, %1338 : vector<8x128xf32>
    %1340 = arith.mulf %1339, %1339 : vector<8x128xf32>
    %1341 = vector.broadcast %204 : vector<8x1xf32> to vector<8x128xf32>
    %1342 = arith.mulf %1341, %1340 : vector<8x128xf32>
    %1343 = math.exp %1342 : vector<8x128xf32>
    %1344 = vector.broadcast %194 : vector<8x1xf32> to vector<8x128xf32>
    %1345 = arith.mulf %1344, %1343 : vector<8x128xf32>
    %1346 = arith.addf %1336, %1345 : vector<8x128xf32>
    %1347 = vector.broadcast %1257 : vector<1x128xf32> to vector<8x128xf32>
    %1348 = vector.broadcast %215 : vector<8x1xf32> to vector<8x128xf32>
    %1349 = arith.subf %1347, %1348 : vector<8x128xf32>
    %1350 = arith.mulf %1349, %1349 : vector<8x128xf32>
    %1351 = vector.broadcast %205 : vector<8x1xf32> to vector<8x128xf32>
    %1352 = arith.mulf %1351, %1350 : vector<8x128xf32>
    %1353 = math.exp %1352 : vector<8x128xf32>
    %1354 = vector.broadcast %195 : vector<8x1xf32> to vector<8x128xf32>
    %1355 = arith.mulf %1354, %1353 : vector<8x128xf32>
    %1356 = arith.addf %1346, %1355 : vector<8x128xf32>
    %cst_162 = arith.constant dense<0.000000e+00> : vector<8xf32>
    %1357 = vector.multi_reduction <add>, %1356, %cst_162 [1] : vector<8x128xf32> to vector<8xf32>
    %1358 = vector.shape_cast %1357 : vector<8xf32> to vector<8x1xf32>
    %1359 = arith.addf %1255, %1358 : vector<8x1xf32>
    %c0_163 = arith.constant 0 : index
    %c1280_164 = arith.constant 1280 : index
    %1360 = vector.load %arg13[%c0_163, %c1280_164] : memref<8x2100xf32, #tpu.memory_space<vmem>>, vector<8x128xf32>
    tpu.vector_store %arg13[%c0_163, %c1280_164], %1356 {strides = array<i32>} : memref<8x2100xf32, #tpu.memory_space<vmem>>, vector<8x128xf32>,
    %c0_165 = arith.constant 0 : index
    %c1408 = arith.constant 1408 : index
    %1361 = vector.load %arg12[%c0_165, %c1408] : memref<1x2100xf32, #tpu.memory_space<vmem>>, vector<1x128xf32>
    %1362 = vector.broadcast %1361 : vector<1x128xf32> to vector<8x128xf32>
    %1363 = vector.broadcast %206 : vector<8x1xf32> to vector<8x128xf32>
    %1364 = arith.subf %1362, %1363 : vector<8x128xf32>
    %1365 = arith.mulf %1364, %1364 : vector<8x128xf32>
    %1366 = vector.broadcast %196 : vector<8x1xf32> to vector<8x128xf32>
    %1367 = arith.mulf %1366, %1365 : vector<8x128xf32>
    %1368 = math.exp %1367 : vector<8x128xf32>
    %1369 = vector.broadcast %186 : vector<8x1xf32> to vector<8x128xf32>
    %1370 = arith.mulf %1369, %1368 : vector<8x128xf32>
    %1371 = vector.broadcast %1361 : vector<1x128xf32> to vector<8x128xf32>
    %1372 = vector.broadcast %207 : vector<8x1xf32> to vector<8x128xf32>
    %1373 = arith.subf %1371, %1372 : vector<8x128xf32>
    %1374 = arith.mulf %1373, %1373 : vector<8x128xf32>
    %1375 = vector.broadcast %197 : vector<8x1xf32> to vector<8x128xf32>
    %1376 = arith.mulf %1375, %1374 : vector<8x128xf32>
    %1377 = math.exp %1376 : vector<8x128xf32>
    %1378 = vector.broadcast %187 : vector<8x1xf32> to vector<8x128xf32>
    %1379 = arith.mulf %1378, %1377 : vector<8x128xf32>
    %1380 = arith.addf %1370, %1379 : vector<8x128xf32>
    %1381 = vector.broadcast %1361 : vector<1x128xf32> to vector<8x128xf32>
    %1382 = vector.broadcast %208 : vector<8x1xf32> to vector<8x128xf32>
    %1383 = arith.subf %1381, %1382 : vector<8x128xf32>
    %1384 = arith.mulf %1383, %1383 : vector<8x128xf32>
    %1385 = vector.broadcast %198 : vector<8x1xf32> to vector<8x128xf32>
    %1386 = arith.mulf %1385, %1384 : vector<8x128xf32>
    %1387 = math.exp %1386 : vector<8x128xf32>
    %1388 = vector.broadcast %188 : vector<8x1xf32> to vector<8x128xf32>
    %1389 = arith.mulf %1388, %1387 : vector<8x128xf32>
    %1390 = arith.addf %1380, %1389 : vector<8x128xf32>
    %1391 = vector.broadcast %1361 : vector<1x128xf32> to vector<8x128xf32>
    %1392 = vector.broadcast %209 : vector<8x1xf32> to vector<8x128xf32>
    %1393 = arith.subf %1391, %1392 : vector<8x128xf32>
    %1394 = arith.mulf %1393, %1393 : vector<8x128xf32>
    %1395 = vector.broadcast %199 : vector<8x1xf32> to vector<8x128xf32>
    %1396 = arith.mulf %1395, %1394 : vector<8x128xf32>
    %1397 = math.exp %1396 : vector<8x128xf32>
    %1398 = vector.broadcast %189 : vector<8x1xf32> to vector<8x128xf32>
    %1399 = arith.mulf %1398, %1397 : vector<8x128xf32>
    %1400 = arith.addf %1390, %1399 : vector<8x128xf32>
    %1401 = vector.broadcast %1361 : vector<1x128xf32> to vector<8x128xf32>
    %1402 = vector.broadcast %210 : vector<8x1xf32> to vector<8x128xf32>
    %1403 = arith.subf %1401, %1402 : vector<8x128xf32>
    %1404 = arith.mulf %1403, %1403 : vector<8x128xf32>
    %1405 = vector.broadcast %200 : vector<8x1xf32> to vector<8x128xf32>
    %1406 = arith.mulf %1405, %1404 : vector<8x128xf32>
    %1407 = math.exp %1406 : vector<8x128xf32>
    %1408 = vector.broadcast %190 : vector<8x1xf32> to vector<8x128xf32>
    %1409 = arith.mulf %1408, %1407 : vector<8x128xf32>
    %1410 = arith.addf %1400, %1409 : vector<8x128xf32>
    %1411 = vector.broadcast %1361 : vector<1x128xf32> to vector<8x128xf32>
    %1412 = vector.broadcast %211 : vector<8x1xf32> to vector<8x128xf32>
    %1413 = arith.subf %1411, %1412 : vector<8x128xf32>
    %1414 = arith.mulf %1413, %1413 : vector<8x128xf32>
    %1415 = vector.broadcast %201 : vector<8x1xf32> to vector<8x128xf32>
    %1416 = arith.mulf %1415, %1414 : vector<8x128xf32>
    %1417 = math.exp %1416 : vector<8x128xf32>
    %1418 = vector.broadcast %191 : vector<8x1xf32> to vector<8x128xf32>
    %1419 = arith.mulf %1418, %1417 : vector<8x128xf32>
    %1420 = arith.addf %1410, %1419 : vector<8x128xf32>
    %1421 = vector.broadcast %1361 : vector<1x128xf32> to vector<8x128xf32>
    %1422 = vector.broadcast %212 : vector<8x1xf32> to vector<8x128xf32>
    %1423 = arith.subf %1421, %1422 : vector<8x128xf32>
    %1424 = arith.mulf %1423, %1423 : vector<8x128xf32>
    %1425 = vector.broadcast %202 : vector<8x1xf32> to vector<8x128xf32>
    %1426 = arith.mulf %1425, %1424 : vector<8x128xf32>
    %1427 = math.exp %1426 : vector<8x128xf32>
    %1428 = vector.broadcast %192 : vector<8x1xf32> to vector<8x128xf32>
    %1429 = arith.mulf %1428, %1427 : vector<8x128xf32>
    %1430 = arith.addf %1420, %1429 : vector<8x128xf32>
    %1431 = vector.broadcast %1361 : vector<1x128xf32> to vector<8x128xf32>
    %1432 = vector.broadcast %213 : vector<8x1xf32> to vector<8x128xf32>
    %1433 = arith.subf %1431, %1432 : vector<8x128xf32>
    %1434 = arith.mulf %1433, %1433 : vector<8x128xf32>
    %1435 = vector.broadcast %203 : vector<8x1xf32> to vector<8x128xf32>
    %1436 = arith.mulf %1435, %1434 : vector<8x128xf32>
    %1437 = math.exp %1436 : vector<8x128xf32>
    %1438 = vector.broadcast %193 : vector<8x1xf32> to vector<8x128xf32>
    %1439 = arith.mulf %1438, %1437 : vector<8x128xf32>
    %1440 = arith.addf %1430, %1439 : vector<8x128xf32>
    %1441 = vector.broadcast %1361 : vector<1x128xf32> to vector<8x128xf32>
    %1442 = vector.broadcast %214 : vector<8x1xf32> to vector<8x128xf32>
    %1443 = arith.subf %1441, %1442 : vector<8x128xf32>
    %1444 = arith.mulf %1443, %1443 : vector<8x128xf32>
    %1445 = vector.broadcast %204 : vector<8x1xf32> to vector<8x128xf32>
    %1446 = arith.mulf %1445, %1444 : vector<8x128xf32>
    %1447 = math.exp %1446 : vector<8x128xf32>
    %1448 = vector.broadcast %194 : vector<8x1xf32> to vector<8x128xf32>
    %1449 = arith.mulf %1448, %1447 : vector<8x128xf32>
    %1450 = arith.addf %1440, %1449 : vector<8x128xf32>
    %1451 = vector.broadcast %1361 : vector<1x128xf32> to vector<8x128xf32>
    %1452 = vector.broadcast %215 : vector<8x1xf32> to vector<8x128xf32>
    %1453 = arith.subf %1451, %1452 : vector<8x128xf32>
    %1454 = arith.mulf %1453, %1453 : vector<8x128xf32>
    %1455 = vector.broadcast %205 : vector<8x1xf32> to vector<8x128xf32>
    %1456 = arith.mulf %1455, %1454 : vector<8x128xf32>
    %1457 = math.exp %1456 : vector<8x128xf32>
    %1458 = vector.broadcast %195 : vector<8x1xf32> to vector<8x128xf32>
    %1459 = arith.mulf %1458, %1457 : vector<8x128xf32>
    %1460 = arith.addf %1450, %1459 : vector<8x128xf32>
    %cst_166 = arith.constant dense<0.000000e+00> : vector<8xf32>
    %1461 = vector.multi_reduction <add>, %1460, %cst_166 [1] : vector<8x128xf32> to vector<8xf32>
    %1462 = vector.shape_cast %1461 : vector<8xf32> to vector<8x1xf32>
    %1463 = arith.addf %1359, %1462 : vector<8x1xf32>
    %c0_167 = arith.constant 0 : index
    %c1408_168 = arith.constant 1408 : index
    %1464 = vector.load %arg13[%c0_167, %c1408_168] : memref<8x2100xf32, #tpu.memory_space<vmem>>, vector<8x128xf32>
    tpu.vector_store %arg13[%c0_167, %c1408_168], %1460 {strides = array<i32>} : memref<8x2100xf32, #tpu.memory_space<vmem>>, vector<8x128xf32>,
    %c0_169 = arith.constant 0 : index
    %c1536 = arith.constant 1536 : index
    %1465 = vector.load %arg12[%c0_169, %c1536] : memref<1x2100xf32, #tpu.memory_space<vmem>>, vector<1x128xf32>
    %1466 = vector.broadcast %1465 : vector<1x128xf32> to vector<8x128xf32>
    %1467 = vector.broadcast %206 : vector<8x1xf32> to vector<8x128xf32>
    %1468 = arith.subf %1466, %1467 : vector<8x128xf32>
    %1469 = arith.mulf %1468, %1468 : vector<8x128xf32>
    %1470 = vector.broadcast %196 : vector<8x1xf32> to vector<8x128xf32>
    %1471 = arith.mulf %1470, %1469 : vector<8x128xf32>
    %1472 = math.exp %1471 : vector<8x128xf32>
    %1473 = vector.broadcast %186 : vector<8x1xf32> to vector<8x128xf32>
    %1474 = arith.mulf %1473, %1472 : vector<8x128xf32>
    %1475 = vector.broadcast %1465 : vector<1x128xf32> to vector<8x128xf32>
    %1476 = vector.broadcast %207 : vector<8x1xf32> to vector<8x128xf32>
    %1477 = arith.subf %1475, %1476 : vector<8x128xf32>
    %1478 = arith.mulf %1477, %1477 : vector<8x128xf32>
    %1479 = vector.broadcast %197 : vector<8x1xf32> to vector<8x128xf32>
    %1480 = arith.mulf %1479, %1478 : vector<8x128xf32>
    %1481 = math.exp %1480 : vector<8x128xf32>
    %1482 = vector.broadcast %187 : vector<8x1xf32> to vector<8x128xf32>
    %1483 = arith.mulf %1482, %1481 : vector<8x128xf32>
    %1484 = arith.addf %1474, %1483 : vector<8x128xf32>
    %1485 = vector.broadcast %1465 : vector<1x128xf32> to vector<8x128xf32>
    %1486 = vector.broadcast %208 : vector<8x1xf32> to vector<8x128xf32>
    %1487 = arith.subf %1485, %1486 : vector<8x128xf32>
    %1488 = arith.mulf %1487, %1487 : vector<8x128xf32>
    %1489 = vector.broadcast %198 : vector<8x1xf32> to vector<8x128xf32>
    %1490 = arith.mulf %1489, %1488 : vector<8x128xf32>
    %1491 = math.exp %1490 : vector<8x128xf32>
    %1492 = vector.broadcast %188 : vector<8x1xf32> to vector<8x128xf32>
    %1493 = arith.mulf %1492, %1491 : vector<8x128xf32>
    %1494 = arith.addf %1484, %1493 : vector<8x128xf32>
    %1495 = vector.broadcast %1465 : vector<1x128xf32> to vector<8x128xf32>
    %1496 = vector.broadcast %209 : vector<8x1xf32> to vector<8x128xf32>
    %1497 = arith.subf %1495, %1496 : vector<8x128xf32>
    %1498 = arith.mulf %1497, %1497 : vector<8x128xf32>
    %1499 = vector.broadcast %199 : vector<8x1xf32> to vector<8x128xf32>
    %1500 = arith.mulf %1499, %1498 : vector<8x128xf32>
    %1501 = math.exp %1500 : vector<8x128xf32>
    %1502 = vector.broadcast %189 : vector<8x1xf32> to vector<8x128xf32>
    %1503 = arith.mulf %1502, %1501 : vector<8x128xf32>
    %1504 = arith.addf %1494, %1503 : vector<8x128xf32>
    %1505 = vector.broadcast %1465 : vector<1x128xf32> to vector<8x128xf32>
    %1506 = vector.broadcast %210 : vector<8x1xf32> to vector<8x128xf32>
    %1507 = arith.subf %1505, %1506 : vector<8x128xf32>
    %1508 = arith.mulf %1507, %1507 : vector<8x128xf32>
    %1509 = vector.broadcast %200 : vector<8x1xf32> to vector<8x128xf32>
    %1510 = arith.mulf %1509, %1508 : vector<8x128xf32>
    %1511 = math.exp %1510 : vector<8x128xf32>
    %1512 = vector.broadcast %190 : vector<8x1xf32> to vector<8x128xf32>
    %1513 = arith.mulf %1512, %1511 : vector<8x128xf32>
    %1514 = arith.addf %1504, %1513 : vector<8x128xf32>
    %1515 = vector.broadcast %1465 : vector<1x128xf32> to vector<8x128xf32>
    %1516 = vector.broadcast %211 : vector<8x1xf32> to vector<8x128xf32>
    %1517 = arith.subf %1515, %1516 : vector<8x128xf32>
    %1518 = arith.mulf %1517, %1517 : vector<8x128xf32>
    %1519 = vector.broadcast %201 : vector<8x1xf32> to vector<8x128xf32>
    %1520 = arith.mulf %1519, %1518 : vector<8x128xf32>
    %1521 = math.exp %1520 : vector<8x128xf32>
    %1522 = vector.broadcast %191 : vector<8x1xf32> to vector<8x128xf32>
    %1523 = arith.mulf %1522, %1521 : vector<8x128xf32>
    %1524 = arith.addf %1514, %1523 : vector<8x128xf32>
    %1525 = vector.broadcast %1465 : vector<1x128xf32> to vector<8x128xf32>
    %1526 = vector.broadcast %212 : vector<8x1xf32> to vector<8x128xf32>
    %1527 = arith.subf %1525, %1526 : vector<8x128xf32>
    %1528 = arith.mulf %1527, %1527 : vector<8x128xf32>
    %1529 = vector.broadcast %202 : vector<8x1xf32> to vector<8x128xf32>
    %1530 = arith.mulf %1529, %1528 : vector<8x128xf32>
    %1531 = math.exp %1530 : vector<8x128xf32>
    %1532 = vector.broadcast %192 : vector<8x1xf32> to vector<8x128xf32>
    %1533 = arith.mulf %1532, %1531 : vector<8x128xf32>
    %1534 = arith.addf %1524, %1533 : vector<8x128xf32>
    %1535 = vector.broadcast %1465 : vector<1x128xf32> to vector<8x128xf32>
    %1536 = vector.broadcast %213 : vector<8x1xf32> to vector<8x128xf32>
    %1537 = arith.subf %1535, %1536 : vector<8x128xf32>
    %1538 = arith.mulf %1537, %1537 : vector<8x128xf32>
    %1539 = vector.broadcast %203 : vector<8x1xf32> to vector<8x128xf32>
    %1540 = arith.mulf %1539, %1538 : vector<8x128xf32>
    %1541 = math.exp %1540 : vector<8x128xf32>
    %1542 = vector.broadcast %193 : vector<8x1xf32> to vector<8x128xf32>
    %1543 = arith.mulf %1542, %1541 : vector<8x128xf32>
    %1544 = arith.addf %1534, %1543 : vector<8x128xf32>
    %1545 = vector.broadcast %1465 : vector<1x128xf32> to vector<8x128xf32>
    %1546 = vector.broadcast %214 : vector<8x1xf32> to vector<8x128xf32>
    %1547 = arith.subf %1545, %1546 : vector<8x128xf32>
    %1548 = arith.mulf %1547, %1547 : vector<8x128xf32>
    %1549 = vector.broadcast %204 : vector<8x1xf32> to vector<8x128xf32>
    %1550 = arith.mulf %1549, %1548 : vector<8x128xf32>
    %1551 = math.exp %1550 : vector<8x128xf32>
    %1552 = vector.broadcast %194 : vector<8x1xf32> to vector<8x128xf32>
    %1553 = arith.mulf %1552, %1551 : vector<8x128xf32>
    %1554 = arith.addf %1544, %1553 : vector<8x128xf32>
    %1555 = vector.broadcast %1465 : vector<1x128xf32> to vector<8x128xf32>
    %1556 = vector.broadcast %215 : vector<8x1xf32> to vector<8x128xf32>
    %1557 = arith.subf %1555, %1556 : vector<8x128xf32>
    %1558 = arith.mulf %1557, %1557 : vector<8x128xf32>
    %1559 = vector.broadcast %205 : vector<8x1xf32> to vector<8x128xf32>
    %1560 = arith.mulf %1559, %1558 : vector<8x128xf32>
    %1561 = math.exp %1560 : vector<8x128xf32>
    %1562 = vector.broadcast %195 : vector<8x1xf32> to vector<8x128xf32>
    %1563 = arith.mulf %1562, %1561 : vector<8x128xf32>
    %1564 = arith.addf %1554, %1563 : vector<8x128xf32>
    %cst_170 = arith.constant dense<0.000000e+00> : vector<8xf32>
    %1565 = vector.multi_reduction <add>, %1564, %cst_170 [1] : vector<8x128xf32> to vector<8xf32>
    %1566 = vector.shape_cast %1565 : vector<8xf32> to vector<8x1xf32>
    %1567 = arith.addf %1463, %1566 : vector<8x1xf32>
    %c0_171 = arith.constant 0 : index
    %c1536_172 = arith.constant 1536 : index
    %1568 = vector.load %arg13[%c0_171, %c1536_172] : memref<8x2100xf32, #tpu.memory_space<vmem>>, vector<8x128xf32>
    tpu.vector_store %arg13[%c0_171, %c1536_172], %1564 {strides = array<i32>} : memref<8x2100xf32, #tpu.memory_space<vmem>>, vector<8x128xf32>,
    %c0_173 = arith.constant 0 : index
    %c1664 = arith.constant 1664 : index
    %1569 = vector.load %arg12[%c0_173, %c1664] : memref<1x2100xf32, #tpu.memory_space<vmem>>, vector<1x128xf32>
    %1570 = vector.broadcast %1569 : vector<1x128xf32> to vector<8x128xf32>
    %1571 = vector.broadcast %206 : vector<8x1xf32> to vector<8x128xf32>
    %1572 = arith.subf %1570, %1571 : vector<8x128xf32>
    %1573 = arith.mulf %1572, %1572 : vector<8x128xf32>
    %1574 = vector.broadcast %196 : vector<8x1xf32> to vector<8x128xf32>
    %1575 = arith.mulf %1574, %1573 : vector<8x128xf32>
    %1576 = math.exp %1575 : vector<8x128xf32>
    %1577 = vector.broadcast %186 : vector<8x1xf32> to vector<8x128xf32>
    %1578 = arith.mulf %1577, %1576 : vector<8x128xf32>
    %1579 = vector.broadcast %1569 : vector<1x128xf32> to vector<8x128xf32>
    %1580 = vector.broadcast %207 : vector<8x1xf32> to vector<8x128xf32>
    %1581 = arith.subf %1579, %1580 : vector<8x128xf32>
    %1582 = arith.mulf %1581, %1581 : vector<8x128xf32>
    %1583 = vector.broadcast %197 : vector<8x1xf32> to vector<8x128xf32>
    %1584 = arith.mulf %1583, %1582 : vector<8x128xf32>
    %1585 = math.exp %1584 : vector<8x128xf32>
    %1586 = vector.broadcast %187 : vector<8x1xf32> to vector<8x128xf32>
    %1587 = arith.mulf %1586, %1585 : vector<8x128xf32>
    %1588 = arith.addf %1578, %1587 : vector<8x128xf32>
    %1589 = vector.broadcast %1569 : vector<1x128xf32> to vector<8x128xf32>
    %1590 = vector.broadcast %208 : vector<8x1xf32> to vector<8x128xf32>
    %1591 = arith.subf %1589, %1590 : vector<8x128xf32>
    %1592 = arith.mulf %1591, %1591 : vector<8x128xf32>
    %1593 = vector.broadcast %198 : vector<8x1xf32> to vector<8x128xf32>
    %1594 = arith.mulf %1593, %1592 : vector<8x128xf32>
    %1595 = math.exp %1594 : vector<8x128xf32>
    %1596 = vector.broadcast %188 : vector<8x1xf32> to vector<8x128xf32>
    %1597 = arith.mulf %1596, %1595 : vector<8x128xf32>
    %1598 = arith.addf %1588, %1597 : vector<8x128xf32>
    %1599 = vector.broadcast %1569 : vector<1x128xf32> to vector<8x128xf32>
    %1600 = vector.broadcast %209 : vector<8x1xf32> to vector<8x128xf32>
    %1601 = arith.subf %1599, %1600 : vector<8x128xf32>
    %1602 = arith.mulf %1601, %1601 : vector<8x128xf32>
    %1603 = vector.broadcast %199 : vector<8x1xf32> to vector<8x128xf32>
    %1604 = arith.mulf %1603, %1602 : vector<8x128xf32>
    %1605 = math.exp %1604 : vector<8x128xf32>
    %1606 = vector.broadcast %189 : vector<8x1xf32> to vector<8x128xf32>
    %1607 = arith.mulf %1606, %1605 : vector<8x128xf32>
    %1608 = arith.addf %1598, %1607 : vector<8x128xf32>
    %1609 = vector.broadcast %1569 : vector<1x128xf32> to vector<8x128xf32>
    %1610 = vector.broadcast %210 : vector<8x1xf32> to vector<8x128xf32>
    %1611 = arith.subf %1609, %1610 : vector<8x128xf32>
    %1612 = arith.mulf %1611, %1611 : vector<8x128xf32>
    %1613 = vector.broadcast %200 : vector<8x1xf32> to vector<8x128xf32>
    %1614 = arith.mulf %1613, %1612 : vector<8x128xf32>
    %1615 = math.exp %1614 : vector<8x128xf32>
    %1616 = vector.broadcast %190 : vector<8x1xf32> to vector<8x128xf32>
    %1617 = arith.mulf %1616, %1615 : vector<8x128xf32>
    %1618 = arith.addf %1608, %1617 : vector<8x128xf32>
    %1619 = vector.broadcast %1569 : vector<1x128xf32> to vector<8x128xf32>
    %1620 = vector.broadcast %211 : vector<8x1xf32> to vector<8x128xf32>
    %1621 = arith.subf %1619, %1620 : vector<8x128xf32>
    %1622 = arith.mulf %1621, %1621 : vector<8x128xf32>
    %1623 = vector.broadcast %201 : vector<8x1xf32> to vector<8x128xf32>
    %1624 = arith.mulf %1623, %1622 : vector<8x128xf32>
    %1625 = math.exp %1624 : vector<8x128xf32>
    %1626 = vector.broadcast %191 : vector<8x1xf32> to vector<8x128xf32>
    %1627 = arith.mulf %1626, %1625 : vector<8x128xf32>
    %1628 = arith.addf %1618, %1627 : vector<8x128xf32>
    %1629 = vector.broadcast %1569 : vector<1x128xf32> to vector<8x128xf32>
    %1630 = vector.broadcast %212 : vector<8x1xf32> to vector<8x128xf32>
    %1631 = arith.subf %1629, %1630 : vector<8x128xf32>
    %1632 = arith.mulf %1631, %1631 : vector<8x128xf32>
    %1633 = vector.broadcast %202 : vector<8x1xf32> to vector<8x128xf32>
    %1634 = arith.mulf %1633, %1632 : vector<8x128xf32>
    %1635 = math.exp %1634 : vector<8x128xf32>
    %1636 = vector.broadcast %192 : vector<8x1xf32> to vector<8x128xf32>
    %1637 = arith.mulf %1636, %1635 : vector<8x128xf32>
    %1638 = arith.addf %1628, %1637 : vector<8x128xf32>
    %1639 = vector.broadcast %1569 : vector<1x128xf32> to vector<8x128xf32>
    %1640 = vector.broadcast %213 : vector<8x1xf32> to vector<8x128xf32>
    %1641 = arith.subf %1639, %1640 : vector<8x128xf32>
    %1642 = arith.mulf %1641, %1641 : vector<8x128xf32>
    %1643 = vector.broadcast %203 : vector<8x1xf32> to vector<8x128xf32>
    %1644 = arith.mulf %1643, %1642 : vector<8x128xf32>
    %1645 = math.exp %1644 : vector<8x128xf32>
    %1646 = vector.broadcast %193 : vector<8x1xf32> to vector<8x128xf32>
    %1647 = arith.mulf %1646, %1645 : vector<8x128xf32>
    %1648 = arith.addf %1638, %1647 : vector<8x128xf32>
    %1649 = vector.broadcast %1569 : vector<1x128xf32> to vector<8x128xf32>
    %1650 = vector.broadcast %214 : vector<8x1xf32> to vector<8x128xf32>
    %1651 = arith.subf %1649, %1650 : vector<8x128xf32>
    %1652 = arith.mulf %1651, %1651 : vector<8x128xf32>
    %1653 = vector.broadcast %204 : vector<8x1xf32> to vector<8x128xf32>
    %1654 = arith.mulf %1653, %1652 : vector<8x128xf32>
    %1655 = math.exp %1654 : vector<8x128xf32>
    %1656 = vector.broadcast %194 : vector<8x1xf32> to vector<8x128xf32>
    %1657 = arith.mulf %1656, %1655 : vector<8x128xf32>
    %1658 = arith.addf %1648, %1657 : vector<8x128xf32>
    %1659 = vector.broadcast %1569 : vector<1x128xf32> to vector<8x128xf32>
    %1660 = vector.broadcast %215 : vector<8x1xf32> to vector<8x128xf32>
    %1661 = arith.subf %1659, %1660 : vector<8x128xf32>
    %1662 = arith.mulf %1661, %1661 : vector<8x128xf32>
    %1663 = vector.broadcast %205 : vector<8x1xf32> to vector<8x128xf32>
    %1664 = arith.mulf %1663, %1662 : vector<8x128xf32>
    %1665 = math.exp %1664 : vector<8x128xf32>
    %1666 = vector.broadcast %195 : vector<8x1xf32> to vector<8x128xf32>
    %1667 = arith.mulf %1666, %1665 : vector<8x128xf32>
    %1668 = arith.addf %1658, %1667 : vector<8x128xf32>
    %cst_174 = arith.constant dense<0.000000e+00> : vector<8xf32>
    %1669 = vector.multi_reduction <add>, %1668, %cst_174 [1] : vector<8x128xf32> to vector<8xf32>
    %1670 = vector.shape_cast %1669 : vector<8xf32> to vector<8x1xf32>
    %1671 = arith.addf %1567, %1670 : vector<8x1xf32>
    %c0_175 = arith.constant 0 : index
    %c1664_176 = arith.constant 1664 : index
    %1672 = vector.load %arg13[%c0_175, %c1664_176] : memref<8x2100xf32, #tpu.memory_space<vmem>>, vector<8x128xf32>
    tpu.vector_store %arg13[%c0_175, %c1664_176], %1668 {strides = array<i32>} : memref<8x2100xf32, #tpu.memory_space<vmem>>, vector<8x128xf32>,
    %c0_177 = arith.constant 0 : index
    %c1792 = arith.constant 1792 : index
    %1673 = vector.load %arg12[%c0_177, %c1792] : memref<1x2100xf32, #tpu.memory_space<vmem>>, vector<1x128xf32>
    %1674 = vector.broadcast %1673 : vector<1x128xf32> to vector<8x128xf32>
    %1675 = vector.broadcast %206 : vector<8x1xf32> to vector<8x128xf32>
    %1676 = arith.subf %1674, %1675 : vector<8x128xf32>
    %1677 = arith.mulf %1676, %1676 : vector<8x128xf32>
    %1678 = vector.broadcast %196 : vector<8x1xf32> to vector<8x128xf32>
    %1679 = arith.mulf %1678, %1677 : vector<8x128xf32>
    %1680 = math.exp %1679 : vector<8x128xf32>
    %1681 = vector.broadcast %186 : vector<8x1xf32> to vector<8x128xf32>
    %1682 = arith.mulf %1681, %1680 : vector<8x128xf32>
    %1683 = vector.broadcast %1673 : vector<1x128xf32> to vector<8x128xf32>
    %1684 = vector.broadcast %207 : vector<8x1xf32> to vector<8x128xf32>
    %1685 = arith.subf %1683, %1684 : vector<8x128xf32>
    %1686 = arith.mulf %1685, %1685 : vector<8x128xf32>
    %1687 = vector.broadcast %197 : vector<8x1xf32> to vector<8x128xf32>
    %1688 = arith.mulf %1687, %1686 : vector<8x128xf32>
    %1689 = math.exp %1688 : vector<8x128xf32>
    %1690 = vector.broadcast %187 : vector<8x1xf32> to vector<8x128xf32>
    %1691 = arith.mulf %1690, %1689 : vector<8x128xf32>
    %1692 = arith.addf %1682, %1691 : vector<8x128xf32>
    %1693 = vector.broadcast %1673 : vector<1x128xf32> to vector<8x128xf32>
    %1694 = vector.broadcast %208 : vector<8x1xf32> to vector<8x128xf32>
    %1695 = arith.subf %1693, %1694 : vector<8x128xf32>
    %1696 = arith.mulf %1695, %1695 : vector<8x128xf32>
    %1697 = vector.broadcast %198 : vector<8x1xf32> to vector<8x128xf32>
    %1698 = arith.mulf %1697, %1696 : vector<8x128xf32>
    %1699 = math.exp %1698 : vector<8x128xf32>
    %1700 = vector.broadcast %188 : vector<8x1xf32> to vector<8x128xf32>
    %1701 = arith.mulf %1700, %1699 : vector<8x128xf32>
    %1702 = arith.addf %1692, %1701 : vector<8x128xf32>
    %1703 = vector.broadcast %1673 : vector<1x128xf32> to vector<8x128xf32>
    %1704 = vector.broadcast %209 : vector<8x1xf32> to vector<8x128xf32>
    %1705 = arith.subf %1703, %1704 : vector<8x128xf32>
    %1706 = arith.mulf %1705, %1705 : vector<8x128xf32>
    %1707 = vector.broadcast %199 : vector<8x1xf32> to vector<8x128xf32>
    %1708 = arith.mulf %1707, %1706 : vector<8x128xf32>
    %1709 = math.exp %1708 : vector<8x128xf32>
    %1710 = vector.broadcast %189 : vector<8x1xf32> to vector<8x128xf32>
    %1711 = arith.mulf %1710, %1709 : vector<8x128xf32>
    %1712 = arith.addf %1702, %1711 : vector<8x128xf32>
    %1713 = vector.broadcast %1673 : vector<1x128xf32> to vector<8x128xf32>
    %1714 = vector.broadcast %210 : vector<8x1xf32> to vector<8x128xf32>
    %1715 = arith.subf %1713, %1714 : vector<8x128xf32>
    %1716 = arith.mulf %1715, %1715 : vector<8x128xf32>
    %1717 = vector.broadcast %200 : vector<8x1xf32> to vector<8x128xf32>
    %1718 = arith.mulf %1717, %1716 : vector<8x128xf32>
    %1719 = math.exp %1718 : vector<8x128xf32>
    %1720 = vector.broadcast %190 : vector<8x1xf32> to vector<8x128xf32>
    %1721 = arith.mulf %1720, %1719 : vector<8x128xf32>
    %1722 = arith.addf %1712, %1721 : vector<8x128xf32>
    %1723 = vector.broadcast %1673 : vector<1x128xf32> to vector<8x128xf32>
    %1724 = vector.broadcast %211 : vector<8x1xf32> to vector<8x128xf32>
    %1725 = arith.subf %1723, %1724 : vector<8x128xf32>
    %1726 = arith.mulf %1725, %1725 : vector<8x128xf32>
    %1727 = vector.broadcast %201 : vector<8x1xf32> to vector<8x128xf32>
    %1728 = arith.mulf %1727, %1726 : vector<8x128xf32>
    %1729 = math.exp %1728 : vector<8x128xf32>
    %1730 = vector.broadcast %191 : vector<8x1xf32> to vector<8x128xf32>
    %1731 = arith.mulf %1730, %1729 : vector<8x128xf32>
    %1732 = arith.addf %1722, %1731 : vector<8x128xf32>
    %1733 = vector.broadcast %1673 : vector<1x128xf32> to vector<8x128xf32>
    %1734 = vector.broadcast %212 : vector<8x1xf32> to vector<8x128xf32>
    %1735 = arith.subf %1733, %1734 : vector<8x128xf32>
    %1736 = arith.mulf %1735, %1735 : vector<8x128xf32>
    %1737 = vector.broadcast %202 : vector<8x1xf32> to vector<8x128xf32>
    %1738 = arith.mulf %1737, %1736 : vector<8x128xf32>
    %1739 = math.exp %1738 : vector<8x128xf32>
    %1740 = vector.broadcast %192 : vector<8x1xf32> to vector<8x128xf32>
    %1741 = arith.mulf %1740, %1739 : vector<8x128xf32>
    %1742 = arith.addf %1732, %1741 : vector<8x128xf32>
    %1743 = vector.broadcast %1673 : vector<1x128xf32> to vector<8x128xf32>
    %1744 = vector.broadcast %213 : vector<8x1xf32> to vector<8x128xf32>
    %1745 = arith.subf %1743, %1744 : vector<8x128xf32>
    %1746 = arith.mulf %1745, %1745 : vector<8x128xf32>
    %1747 = vector.broadcast %203 : vector<8x1xf32> to vector<8x128xf32>
    %1748 = arith.mulf %1747, %1746 : vector<8x128xf32>
    %1749 = math.exp %1748 : vector<8x128xf32>
    %1750 = vector.broadcast %193 : vector<8x1xf32> to vector<8x128xf32>
    %1751 = arith.mulf %1750, %1749 : vector<8x128xf32>
    %1752 = arith.addf %1742, %1751 : vector<8x128xf32>
    %1753 = vector.broadcast %1673 : vector<1x128xf32> to vector<8x128xf32>
    %1754 = vector.broadcast %214 : vector<8x1xf32> to vector<8x128xf32>
    %1755 = arith.subf %1753, %1754 : vector<8x128xf32>
    %1756 = arith.mulf %1755, %1755 : vector<8x128xf32>
    %1757 = vector.broadcast %204 : vector<8x1xf32> to vector<8x128xf32>
    %1758 = arith.mulf %1757, %1756 : vector<8x128xf32>
    %1759 = math.exp %1758 : vector<8x128xf32>
    %1760 = vector.broadcast %194 : vector<8x1xf32> to vector<8x128xf32>
    %1761 = arith.mulf %1760, %1759 : vector<8x128xf32>
    %1762 = arith.addf %1752, %1761 : vector<8x128xf32>
    %1763 = vector.broadcast %1673 : vector<1x128xf32> to vector<8x128xf32>
    %1764 = vector.broadcast %215 : vector<8x1xf32> to vector<8x128xf32>
    %1765 = arith.subf %1763, %1764 : vector<8x128xf32>
    %1766 = arith.mulf %1765, %1765 : vector<8x128xf32>
    %1767 = vector.broadcast %205 : vector<8x1xf32> to vector<8x128xf32>
    %1768 = arith.mulf %1767, %1766 : vector<8x128xf32>
    %1769 = math.exp %1768 : vector<8x128xf32>
    %1770 = vector.broadcast %195 : vector<8x1xf32> to vector<8x128xf32>
    %1771 = arith.mulf %1770, %1769 : vector<8x128xf32>
    %1772 = arith.addf %1762, %1771 : vector<8x128xf32>
    %cst_178 = arith.constant dense<0.000000e+00> : vector<8xf32>
    %1773 = vector.multi_reduction <add>, %1772, %cst_178 [1] : vector<8x128xf32> to vector<8xf32>
    %1774 = vector.shape_cast %1773 : vector<8xf32> to vector<8x1xf32>
    %1775 = arith.addf %1671, %1774 : vector<8x1xf32>
    %c0_179 = arith.constant 0 : index
    %c1792_180 = arith.constant 1792 : index
    %1776 = vector.load %arg13[%c0_179, %c1792_180] : memref<8x2100xf32, #tpu.memory_space<vmem>>, vector<8x128xf32>
    tpu.vector_store %arg13[%c0_179, %c1792_180], %1772 {strides = array<i32>} : memref<8x2100xf32, #tpu.memory_space<vmem>>, vector<8x128xf32>,
    %c0_181 = arith.constant 0 : index
    %c1920 = arith.constant 1920 : index
    %1777 = vector.load %arg12[%c0_181, %c1920] : memref<1x2100xf32, #tpu.memory_space<vmem>>, vector<1x128xf32>
    %1778 = vector.broadcast %1777 : vector<1x128xf32> to vector<8x128xf32>
    %1779 = vector.broadcast %206 : vector<8x1xf32> to vector<8x128xf32>
    %1780 = arith.subf %1778, %1779 : vector<8x128xf32>
    %1781 = arith.mulf %1780, %1780 : vector<8x128xf32>
    %1782 = vector.broadcast %196 : vector<8x1xf32> to vector<8x128xf32>
    %1783 = arith.mulf %1782, %1781 : vector<8x128xf32>
    %1784 = math.exp %1783 : vector<8x128xf32>
    %1785 = vector.broadcast %186 : vector<8x1xf32> to vector<8x128xf32>
    %1786 = arith.mulf %1785, %1784 : vector<8x128xf32>
    %1787 = vector.broadcast %1777 : vector<1x128xf32> to vector<8x128xf32>
    %1788 = vector.broadcast %207 : vector<8x1xf32> to vector<8x128xf32>
    %1789 = arith.subf %1787, %1788 : vector<8x128xf32>
    %1790 = arith.mulf %1789, %1789 : vector<8x128xf32>
    %1791 = vector.broadcast %197 : vector<8x1xf32> to vector<8x128xf32>
    %1792 = arith.mulf %1791, %1790 : vector<8x128xf32>
    %1793 = math.exp %1792 : vector<8x128xf32>
    %1794 = vector.broadcast %187 : vector<8x1xf32> to vector<8x128xf32>
    %1795 = arith.mulf %1794, %1793 : vector<8x128xf32>
    %1796 = arith.addf %1786, %1795 : vector<8x128xf32>
    %1797 = vector.broadcast %1777 : vector<1x128xf32> to vector<8x128xf32>
    %1798 = vector.broadcast %208 : vector<8x1xf32> to vector<8x128xf32>
    %1799 = arith.subf %1797, %1798 : vector<8x128xf32>
    %1800 = arith.mulf %1799, %1799 : vector<8x128xf32>
    %1801 = vector.broadcast %198 : vector<8x1xf32> to vector<8x128xf32>
    %1802 = arith.mulf %1801, %1800 : vector<8x128xf32>
    %1803 = math.exp %1802 : vector<8x128xf32>
    %1804 = vector.broadcast %188 : vector<8x1xf32> to vector<8x128xf32>
    %1805 = arith.mulf %1804, %1803 : vector<8x128xf32>
    %1806 = arith.addf %1796, %1805 : vector<8x128xf32>
    %1807 = vector.broadcast %1777 : vector<1x128xf32> to vector<8x128xf32>
    %1808 = vector.broadcast %209 : vector<8x1xf32> to vector<8x128xf32>
    %1809 = arith.subf %1807, %1808 : vector<8x128xf32>
    %1810 = arith.mulf %1809, %1809 : vector<8x128xf32>
    %1811 = vector.broadcast %199 : vector<8x1xf32> to vector<8x128xf32>
    %1812 = arith.mulf %1811, %1810 : vector<8x128xf32>
    %1813 = math.exp %1812 : vector<8x128xf32>
    %1814 = vector.broadcast %189 : vector<8x1xf32> to vector<8x128xf32>
    %1815 = arith.mulf %1814, %1813 : vector<8x128xf32>
    %1816 = arith.addf %1806, %1815 : vector<8x128xf32>
    %1817 = vector.broadcast %1777 : vector<1x128xf32> to vector<8x128xf32>
    %1818 = vector.broadcast %210 : vector<8x1xf32> to vector<8x128xf32>
    %1819 = arith.subf %1817, %1818 : vector<8x128xf32>
    %1820 = arith.mulf %1819, %1819 : vector<8x128xf32>
    %1821 = vector.broadcast %200 : vector<8x1xf32> to vector<8x128xf32>
    %1822 = arith.mulf %1821, %1820 : vector<8x128xf32>
    %1823 = math.exp %1822 : vector<8x128xf32>
    %1824 = vector.broadcast %190 : vector<8x1xf32> to vector<8x128xf32>
    %1825 = arith.mulf %1824, %1823 : vector<8x128xf32>
    %1826 = arith.addf %1816, %1825 : vector<8x128xf32>
    %1827 = vector.broadcast %1777 : vector<1x128xf32> to vector<8x128xf32>
    %1828 = vector.broadcast %211 : vector<8x1xf32> to vector<8x128xf32>
    %1829 = arith.subf %1827, %1828 : vector<8x128xf32>
    %1830 = arith.mulf %1829, %1829 : vector<8x128xf32>
    %1831 = vector.broadcast %201 : vector<8x1xf32> to vector<8x128xf32>
    %1832 = arith.mulf %1831, %1830 : vector<8x128xf32>
    %1833 = math.exp %1832 : vector<8x128xf32>
    %1834 = vector.broadcast %191 : vector<8x1xf32> to vector<8x128xf32>
    %1835 = arith.mulf %1834, %1833 : vector<8x128xf32>
    %1836 = arith.addf %1826, %1835 : vector<8x128xf32>
    %1837 = vector.broadcast %1777 : vector<1x128xf32> to vector<8x128xf32>
    %1838 = vector.broadcast %212 : vector<8x1xf32> to vector<8x128xf32>
    %1839 = arith.subf %1837, %1838 : vector<8x128xf32>
    %1840 = arith.mulf %1839, %1839 : vector<8x128xf32>
    %1841 = vector.broadcast %202 : vector<8x1xf32> to vector<8x128xf32>
    %1842 = arith.mulf %1841, %1840 : vector<8x128xf32>
    %1843 = math.exp %1842 : vector<8x128xf32>
    %1844 = vector.broadcast %192 : vector<8x1xf32> to vector<8x128xf32>
    %1845 = arith.mulf %1844, %1843 : vector<8x128xf32>
    %1846 = arith.addf %1836, %1845 : vector<8x128xf32>
    %1847 = vector.broadcast %1777 : vector<1x128xf32> to vector<8x128xf32>
    %1848 = vector.broadcast %213 : vector<8x1xf32> to vector<8x128xf32>
    %1849 = arith.subf %1847, %1848 : vector<8x128xf32>
    %1850 = arith.mulf %1849, %1849 : vector<8x128xf32>
    %1851 = vector.broadcast %203 : vector<8x1xf32> to vector<8x128xf32>
    %1852 = arith.mulf %1851, %1850 : vector<8x128xf32>
    %1853 = math.exp %1852 : vector<8x128xf32>
    %1854 = vector.broadcast %193 : vector<8x1xf32> to vector<8x128xf32>
    %1855 = arith.mulf %1854, %1853 : vector<8x128xf32>
    %1856 = arith.addf %1846, %1855 : vector<8x128xf32>
    %1857 = vector.broadcast %1777 : vector<1x128xf32> to vector<8x128xf32>
    %1858 = vector.broadcast %214 : vector<8x1xf32> to vector<8x128xf32>
    %1859 = arith.subf %1857, %1858 : vector<8x128xf32>
    %1860 = arith.mulf %1859, %1859 : vector<8x128xf32>
    %1861 = vector.broadcast %204 : vector<8x1xf32> to vector<8x128xf32>
    %1862 = arith.mulf %1861, %1860 : vector<8x128xf32>
    %1863 = math.exp %1862 : vector<8x128xf32>
    %1864 = vector.broadcast %194 : vector<8x1xf32> to vector<8x128xf32>
    %1865 = arith.mulf %1864, %1863 : vector<8x128xf32>
    %1866 = arith.addf %1856, %1865 : vector<8x128xf32>
    %1867 = vector.broadcast %1777 : vector<1x128xf32> to vector<8x128xf32>
    %1868 = vector.broadcast %215 : vector<8x1xf32> to vector<8x128xf32>
    %1869 = arith.subf %1867, %1868 : vector<8x128xf32>
    %1870 = arith.mulf %1869, %1869 : vector<8x128xf32>
    %1871 = vector.broadcast %205 : vector<8x1xf32> to vector<8x128xf32>
    %1872 = arith.mulf %1871, %1870 : vector<8x128xf32>
    %1873 = math.exp %1872 : vector<8x128xf32>
    %1874 = vector.broadcast %195 : vector<8x1xf32> to vector<8x128xf32>
    %1875 = arith.mulf %1874, %1873 : vector<8x128xf32>
    %1876 = arith.addf %1866, %1875 : vector<8x128xf32>
    %cst_182 = arith.constant dense<0.000000e+00> : vector<8xf32>
    %1877 = vector.multi_reduction <add>, %1876, %cst_182 [1] : vector<8x128xf32> to vector<8xf32>
    %1878 = vector.shape_cast %1877 : vector<8xf32> to vector<8x1xf32>
    %1879 = arith.addf %1775, %1878 : vector<8x1xf32>
    %c0_183 = arith.constant 0 : index
    %c1920_184 = arith.constant 1920 : index
    %1880 = vector.load %arg13[%c0_183, %c1920_184] : memref<8x2100xf32, #tpu.memory_space<vmem>>, vector<8x128xf32>
    tpu.vector_store %arg13[%c0_183, %c1920_184], %1876 {strides = array<i32>} : memref<8x2100xf32, #tpu.memory_space<vmem>>, vector<8x128xf32>,
    %c0_185 = arith.constant 0 : index
    %c2048 = arith.constant 2048 : index
    %1881 = vector.load %arg12[%c0_185, %c2048] : memref<1x2100xf32, #tpu.memory_space<vmem>>, vector<1x52xf32>
    %1882 = vector.broadcast %1881 : vector<1x52xf32> to vector<8x52xf32>
    %1883 = vector.broadcast %206 : vector<8x1xf32> to vector<8x52xf32>
    %1884 = arith.subf %1882, %1883 : vector<8x52xf32>
    %1885 = arith.mulf %1884, %1884 : vector<8x52xf32>
    %1886 = vector.broadcast %196 : vector<8x1xf32> to vector<8x52xf32>
    %1887 = arith.mulf %1886, %1885 : vector<8x52xf32>
    %1888 = math.exp %1887 : vector<8x52xf32>
    %1889 = vector.broadcast %186 : vector<8x1xf32> to vector<8x52xf32>
    %1890 = arith.mulf %1889, %1888 : vector<8x52xf32>
    %1891 = vector.broadcast %1881 : vector<1x52xf32> to vector<8x52xf32>
    %1892 = vector.broadcast %207 : vector<8x1xf32> to vector<8x52xf32>
    %1893 = arith.subf %1891, %1892 : vector<8x52xf32>
    %1894 = arith.mulf %1893, %1893 : vector<8x52xf32>
    %1895 = vector.broadcast %197 : vector<8x1xf32> to vector<8x52xf32>
    %1896 = arith.mulf %1895, %1894 : vector<8x52xf32>
    %1897 = math.exp %1896 : vector<8x52xf32>
    %1898 = vector.broadcast %187 : vector<8x1xf32> to vector<8x52xf32>
    %1899 = arith.mulf %1898, %1897 : vector<8x52xf32>
    %1900 = arith.addf %1890, %1899 : vector<8x52xf32>
    %1901 = vector.broadcast %1881 : vector<1x52xf32> to vector<8x52xf32>
    %1902 = vector.broadcast %208 : vector<8x1xf32> to vector<8x52xf32>
    %1903 = arith.subf %1901, %1902 : vector<8x52xf32>
    %1904 = arith.mulf %1903, %1903 : vector<8x52xf32>
    %1905 = vector.broadcast %198 : vector<8x1xf32> to vector<8x52xf32>
    %1906 = arith.mulf %1905, %1904 : vector<8x52xf32>
    %1907 = math.exp %1906 : vector<8x52xf32>
    %1908 = vector.broadcast %188 : vector<8x1xf32> to vector<8x52xf32>
    %1909 = arith.mulf %1908, %1907 : vector<8x52xf32>
    %1910 = arith.addf %1900, %1909 : vector<8x52xf32>
    %1911 = vector.broadcast %1881 : vector<1x52xf32> to vector<8x52xf32>
    %1912 = vector.broadcast %209 : vector<8x1xf32> to vector<8x52xf32>
    %1913 = arith.subf %1911, %1912 : vector<8x52xf32>
    %1914 = arith.mulf %1913, %1913 : vector<8x52xf32>
    %1915 = vector.broadcast %199 : vector<8x1xf32> to vector<8x52xf32>
    %1916 = arith.mulf %1915, %1914 : vector<8x52xf32>
    %1917 = math.exp %1916 : vector<8x52xf32>
    %1918 = vector.broadcast %189 : vector<8x1xf32> to vector<8x52xf32>
    %1919 = arith.mulf %1918, %1917 : vector<8x52xf32>
    %1920 = arith.addf %1910, %1919 : vector<8x52xf32>
    %1921 = vector.broadcast %1881 : vector<1x52xf32> to vector<8x52xf32>
    %1922 = vector.broadcast %210 : vector<8x1xf32> to vector<8x52xf32>
    %1923 = arith.subf %1921, %1922 : vector<8x52xf32>
    %1924 = arith.mulf %1923, %1923 : vector<8x52xf32>
    %1925 = vector.broadcast %200 : vector<8x1xf32> to vector<8x52xf32>
    %1926 = arith.mulf %1925, %1924 : vector<8x52xf32>
    %1927 = math.exp %1926 : vector<8x52xf32>
    %1928 = vector.broadcast %190 : vector<8x1xf32> to vector<8x52xf32>
    %1929 = arith.mulf %1928, %1927 : vector<8x52xf32>
    %1930 = arith.addf %1920, %1929 : vector<8x52xf32>
    %1931 = vector.broadcast %1881 : vector<1x52xf32> to vector<8x52xf32>
    %1932 = vector.broadcast %211 : vector<8x1xf32> to vector<8x52xf32>
    %1933 = arith.subf %1931, %1932 : vector<8x52xf32>
    %1934 = arith.mulf %1933, %1933 : vector<8x52xf32>
    %1935 = vector.broadcast %201 : vector<8x1xf32> to vector<8x52xf32>
    %1936 = arith.mulf %1935, %1934 : vector<8x52xf32>
    %1937 = math.exp %1936 : vector<8x52xf32>
    %1938 = vector.broadcast %191 : vector<8x1xf32> to vector<8x52xf32>
    %1939 = arith.mulf %1938, %1937 : vector<8x52xf32>
    %1940 = arith.addf %1930, %1939 : vector<8x52xf32>
    %1941 = vector.broadcast %1881 : vector<1x52xf32> to vector<8x52xf32>
    %1942 = vector.broadcast %212 : vector<8x1xf32> to vector<8x52xf32>
    %1943 = arith.subf %1941, %1942 : vector<8x52xf32>
    %1944 = arith.mulf %1943, %1943 : vector<8x52xf32>
    %1945 = vector.broadcast %202 : vector<8x1xf32> to vector<8x52xf32>
    %1946 = arith.mulf %1945, %1944 : vector<8x52xf32>
    %1947 = math.exp %1946 : vector<8x52xf32>
    %1948 = vector.broadcast %192 : vector<8x1xf32> to vector<8x52xf32>
    %1949 = arith.mulf %1948, %1947 : vector<8x52xf32>
    %1950 = arith.addf %1940, %1949 : vector<8x52xf32>
    %1951 = vector.broadcast %1881 : vector<1x52xf32> to vector<8x52xf32>
    %1952 = vector.broadcast %213 : vector<8x1xf32> to vector<8x52xf32>
    %1953 = arith.subf %1951, %1952 : vector<8x52xf32>
    %1954 = arith.mulf %1953, %1953 : vector<8x52xf32>
    %1955 = vector.broadcast %203 : vector<8x1xf32> to vector<8x52xf32>
    %1956 = arith.mulf %1955, %1954 : vector<8x52xf32>
    %1957 = math.exp %1956 : vector<8x52xf32>
    %1958 = vector.broadcast %193 : vector<8x1xf32> to vector<8x52xf32>
    %1959 = arith.mulf %1958, %1957 : vector<8x52xf32>
    %1960 = arith.addf %1950, %1959 : vector<8x52xf32>
    %1961 = vector.broadcast %1881 : vector<1x52xf32> to vector<8x52xf32>
    %1962 = vector.broadcast %214 : vector<8x1xf32> to vector<8x52xf32>
    %1963 = arith.subf %1961, %1962 : vector<8x52xf32>
    %1964 = arith.mulf %1963, %1963 : vector<8x52xf32>
    %1965 = vector.broadcast %204 : vector<8x1xf32> to vector<8x52xf32>
    %1966 = arith.mulf %1965, %1964 : vector<8x52xf32>
    %1967 = math.exp %1966 : vector<8x52xf32>
    %1968 = vector.broadcast %194 : vector<8x1xf32> to vector<8x52xf32>
    %1969 = arith.mulf %1968, %1967 : vector<8x52xf32>
    %1970 = arith.addf %1960, %1969 : vector<8x52xf32>
    %1971 = vector.broadcast %1881 : vector<1x52xf32> to vector<8x52xf32>
    %1972 = vector.broadcast %215 : vector<8x1xf32> to vector<8x52xf32>
    %1973 = arith.subf %1971, %1972 : vector<8x52xf32>
    %1974 = arith.mulf %1973, %1973 : vector<8x52xf32>
    %1975 = vector.broadcast %205 : vector<8x1xf32> to vector<8x52xf32>
    %1976 = arith.mulf %1975, %1974 : vector<8x52xf32>
    %1977 = math.exp %1976 : vector<8x52xf32>
    %1978 = vector.broadcast %195 : vector<8x1xf32> to vector<8x52xf32>
    %1979 = arith.mulf %1978, %1977 : vector<8x52xf32>
    %1980 = arith.addf %1970, %1979 : vector<8x52xf32>
    %cst_186 = arith.constant dense<0.000000e+00> : vector<8xf32>
    %1981 = vector.multi_reduction <add>, %1980, %cst_186 [1] : vector<8x52xf32> to vector<8xf32>
    %1982 = vector.shape_cast %1981 : vector<8xf32> to vector<8x1xf32>
    %1983 = arith.addf %1879, %1982 : vector<8x1xf32>
    %c0_187 = arith.constant 0 : index
    %c2048_188 = arith.constant 2048 : index
    %1984 = vector.load %arg13[%c0_187, %c2048_188] : memref<8x2100xf32, #tpu.memory_space<vmem>>, vector<8x52xf32>
    tpu.vector_store %arg13[%c0_187, %c2048_188], %1980 {strides = array<i32>} : memref<8x2100xf32, #tpu.memory_space<vmem>>, vector<8x52xf32>,
    %cst_189 = arith.constant 1.000000e-30 : f32
    %1985 = vector.broadcast %cst_189 : f32 to vector<8x1xf32>
    %1986 = arith.addf %1983, %1985 : vector<8x1xf32>
    %1987 = tpu.reciprocal %1986 {approx = true} : vector<8x1xf32> -> vector<8x1xf32>
    %1988 = arith.mulf %1986, %1987 : vector<8x1xf32>
    %cst_190 = arith.constant 2.000000e+00 : f32
    %1989 = vector.broadcast %cst_190 : f32 to vector<8x1xf32>
    %1990 = arith.subf %1989, %1988 : vector<8x1xf32>
    %1991 = arith.mulf %1987, %1990 : vector<8x1xf32>
    %c0_191 = arith.constant 0 : index
    %c0_192 = arith.constant 0 : index
    %1992 = vector.load %arg13[%c0_191, %c0_192] : memref<8x2100xf32, #tpu.memory_space<vmem>>, vector<8x128xf32>
    %1993 = vector.broadcast %1991 : vector<8x1xf32> to vector<8x128xf32>
    %1994 = arith.mulf %1992, %1993 : vector<8x128xf32>
    %c0_193 = arith.constant 0 : index
    %c0_194 = arith.constant 0 : index
    %1995 = vector.load %arg13[%c0_193, %c0_194] : memref<8x2100xf32, #tpu.memory_space<vmem>>, vector<8x128xf32>
    tpu.vector_store %arg13[%c0_193, %c0_194], %1994 {strides = array<i32>} : memref<8x2100xf32, #tpu.memory_space<vmem>>, vector<8x128xf32>,
    %c0_195 = arith.constant 0 : index
    %c128_196 = arith.constant 128 : index
    %1996 = vector.load %arg13[%c0_195, %c128_196] : memref<8x2100xf32, #tpu.memory_space<vmem>>, vector<8x128xf32>
    %1997 = vector.broadcast %1991 : vector<8x1xf32> to vector<8x128xf32>
    %1998 = arith.mulf %1996, %1997 : vector<8x128xf32>
    %c0_197 = arith.constant 0 : index
    %c128_198 = arith.constant 128 : index
    %1999 = vector.load %arg13[%c0_197, %c128_198] : memref<8x2100xf32, #tpu.memory_space<vmem>>, vector<8x128xf32>
    tpu.vector_store %arg13[%c0_197, %c128_198], %1998 {strides = array<i32>} : memref<8x2100xf32, #tpu.memory_space<vmem>>, vector<8x128xf32>,
    %c0_199 = arith.constant 0 : index
    %c256_200 = arith.constant 256 : index
    %2000 = vector.load %arg13[%c0_199, %c256_200] : memref<8x2100xf32, #tpu.memory_space<vmem>>, vector<8x128xf32>
    %2001 = vector.broadcast %1991 : vector<8x1xf32> to vector<8x128xf32>
    %2002 = arith.mulf %2000, %2001 : vector<8x128xf32>
    %c0_201 = arith.constant 0 : index
    %c256_202 = arith.constant 256 : index
    %2003 = vector.load %arg13[%c0_201, %c256_202] : memref<8x2100xf32, #tpu.memory_space<vmem>>, vector<8x128xf32>
    tpu.vector_store %arg13[%c0_201, %c256_202], %2002 {strides = array<i32>} : memref<8x2100xf32, #tpu.memory_space<vmem>>, vector<8x128xf32>,
    %c0_203 = arith.constant 0 : index
    %c384_204 = arith.constant 384 : index
    %2004 = vector.load %arg13[%c0_203, %c384_204] : memref<8x2100xf32, #tpu.memory_space<vmem>>, vector<8x128xf32>
    %2005 = vector.broadcast %1991 : vector<8x1xf32> to vector<8x128xf32>
    %2006 = arith.mulf %2004, %2005 : vector<8x128xf32>
    %c0_205 = arith.constant 0 : index
    %c384_206 = arith.constant 384 : index
    %2007 = vector.load %arg13[%c0_205, %c384_206] : memref<8x2100xf32, #tpu.memory_space<vmem>>, vector<8x128xf32>
    tpu.vector_store %arg13[%c0_205, %c384_206], %2006 {strides = array<i32>} : memref<8x2100xf32, #tpu.memory_space<vmem>>, vector<8x128xf32>,
    %c0_207 = arith.constant 0 : index
    %c512_208 = arith.constant 512 : index
    %2008 = vector.load %arg13[%c0_207, %c512_208] : memref<8x2100xf32, #tpu.memory_space<vmem>>, vector<8x128xf32>
    %2009 = vector.broadcast %1991 : vector<8x1xf32> to vector<8x128xf32>
    %2010 = arith.mulf %2008, %2009 : vector<8x128xf32>
    %c0_209 = arith.constant 0 : index
    %c512_210 = arith.constant 512 : index
    %2011 = vector.load %arg13[%c0_209, %c512_210] : memref<8x2100xf32, #tpu.memory_space<vmem>>, vector<8x128xf32>
    tpu.vector_store %arg13[%c0_209, %c512_210], %2010 {strides = array<i32>} : memref<8x2100xf32, #tpu.memory_space<vmem>>, vector<8x128xf32>,
    %c0_211 = arith.constant 0 : index
    %c640_212 = arith.constant 640 : index
    %2012 = vector.load %arg13[%c0_211, %c640_212] : memref<8x2100xf32, #tpu.memory_space<vmem>>, vector<8x128xf32>
    %2013 = vector.broadcast %1991 : vector<8x1xf32> to vector<8x128xf32>
    %2014 = arith.mulf %2012, %2013 : vector<8x128xf32>
    %c0_213 = arith.constant 0 : index
    %c640_214 = arith.constant 640 : index
    %2015 = vector.load %arg13[%c0_213, %c640_214] : memref<8x2100xf32, #tpu.memory_space<vmem>>, vector<8x128xf32>
    tpu.vector_store %arg13[%c0_213, %c640_214], %2014 {strides = array<i32>} : memref<8x2100xf32, #tpu.memory_space<vmem>>, vector<8x128xf32>,
    %c0_215 = arith.constant 0 : index
    %c768_216 = arith.constant 768 : index
    %2016 = vector.load %arg13[%c0_215, %c768_216] : memref<8x2100xf32, #tpu.memory_space<vmem>>, vector<8x128xf32>
    %2017 = vector.broadcast %1991 : vector<8x1xf32> to vector<8x128xf32>
    %2018 = arith.mulf %2016, %2017 : vector<8x128xf32>
    %c0_217 = arith.constant 0 : index
    %c768_218 = arith.constant 768 : index
    %2019 = vector.load %arg13[%c0_217, %c768_218] : memref<8x2100xf32, #tpu.memory_space<vmem>>, vector<8x128xf32>
    tpu.vector_store %arg13[%c0_217, %c768_218], %2018 {strides = array<i32>} : memref<8x2100xf32, #tpu.memory_space<vmem>>, vector<8x128xf32>,
    %c0_219 = arith.constant 0 : index
    %c896_220 = arith.constant 896 : index
    %2020 = vector.load %arg13[%c0_219, %c896_220] : memref<8x2100xf32, #tpu.memory_space<vmem>>, vector<8x128xf32>
    %2021 = vector.broadcast %1991 : vector<8x1xf32> to vector<8x128xf32>
    %2022 = arith.mulf %2020, %2021 : vector<8x128xf32>
    %c0_221 = arith.constant 0 : index
    %c896_222 = arith.constant 896 : index
    %2023 = vector.load %arg13[%c0_221, %c896_222] : memref<8x2100xf32, #tpu.memory_space<vmem>>, vector<8x128xf32>
    tpu.vector_store %arg13[%c0_221, %c896_222], %2022 {strides = array<i32>} : memref<8x2100xf32, #tpu.memory_space<vmem>>, vector<8x128xf32>,
    %c0_223 = arith.constant 0 : index
    %c1024_224 = arith.constant 1024 : index
    %2024 = vector.load %arg13[%c0_223, %c1024_224] : memref<8x2100xf32, #tpu.memory_space<vmem>>, vector<8x128xf32>
    %2025 = vector.broadcast %1991 : vector<8x1xf32> to vector<8x128xf32>
    %2026 = arith.mulf %2024, %2025 : vector<8x128xf32>
    %c0_225 = arith.constant 0 : index
    %c1024_226 = arith.constant 1024 : index
    %2027 = vector.load %arg13[%c0_225, %c1024_226] : memref<8x2100xf32, #tpu.memory_space<vmem>>, vector<8x128xf32>
    tpu.vector_store %arg13[%c0_225, %c1024_226], %2026 {strides = array<i32>} : memref<8x2100xf32, #tpu.memory_space<vmem>>, vector<8x128xf32>,
    %c0_227 = arith.constant 0 : index
    %c1152_228 = arith.constant 1152 : index
    %2028 = vector.load %arg13[%c0_227, %c1152_228] : memref<8x2100xf32, #tpu.memory_space<vmem>>, vector<8x128xf32>
    %2029 = vector.broadcast %1991 : vector<8x1xf32> to vector<8x128xf32>
    %2030 = arith.mulf %2028, %2029 : vector<8x128xf32>
    %c0_229 = arith.constant 0 : index
    %c1152_230 = arith.constant 1152 : index
    %2031 = vector.load %arg13[%c0_229, %c1152_230] : memref<8x2100xf32, #tpu.memory_space<vmem>>, vector<8x128xf32>
    tpu.vector_store %arg13[%c0_229, %c1152_230], %2030 {strides = array<i32>} : memref<8x2100xf32, #tpu.memory_space<vmem>>, vector<8x128xf32>,
    %c0_231 = arith.constant 0 : index
    %c1280_232 = arith.constant 1280 : index
    %2032 = vector.load %arg13[%c0_231, %c1280_232] : memref<8x2100xf32, #tpu.memory_space<vmem>>, vector<8x128xf32>
    %2033 = vector.broadcast %1991 : vector<8x1xf32> to vector<8x128xf32>
    %2034 = arith.mulf %2032, %2033 : vector<8x128xf32>
    %c0_233 = arith.constant 0 : index
    %c1280_234 = arith.constant 1280 : index
    %2035 = vector.load %arg13[%c0_233, %c1280_234] : memref<8x2100xf32, #tpu.memory_space<vmem>>, vector<8x128xf32>
    tpu.vector_store %arg13[%c0_233, %c1280_234], %2034 {strides = array<i32>} : memref<8x2100xf32, #tpu.memory_space<vmem>>, vector<8x128xf32>,
    %c0_235 = arith.constant 0 : index
    %c1408_236 = arith.constant 1408 : index
    %2036 = vector.load %arg13[%c0_235, %c1408_236] : memref<8x2100xf32, #tpu.memory_space<vmem>>, vector<8x128xf32>
    %2037 = vector.broadcast %1991 : vector<8x1xf32> to vector<8x128xf32>
    %2038 = arith.mulf %2036, %2037 : vector<8x128xf32>
    %c0_237 = arith.constant 0 : index
    %c1408_238 = arith.constant 1408 : index
    %2039 = vector.load %arg13[%c0_237, %c1408_238] : memref<8x2100xf32, #tpu.memory_space<vmem>>, vector<8x128xf32>
    tpu.vector_store %arg13[%c0_237, %c1408_238], %2038 {strides = array<i32>} : memref<8x2100xf32, #tpu.memory_space<vmem>>, vector<8x128xf32>,
    %c0_239 = arith.constant 0 : index
    %c1536_240 = arith.constant 1536 : index
    %2040 = vector.load %arg13[%c0_239, %c1536_240] : memref<8x2100xf32, #tpu.memory_space<vmem>>, vector<8x128xf32>
    %2041 = vector.broadcast %1991 : vector<8x1xf32> to vector<8x128xf32>
    %2042 = arith.mulf %2040, %2041 : vector<8x128xf32>
    %c0_241 = arith.constant 0 : index
    %c1536_242 = arith.constant 1536 : index
    %2043 = vector.load %arg13[%c0_241, %c1536_242] : memref<8x2100xf32, #tpu.memory_space<vmem>>, vector<8x128xf32>
    tpu.vector_store %arg13[%c0_241, %c1536_242], %2042 {strides = array<i32>} : memref<8x2100xf32, #tpu.memory_space<vmem>>, vector<8x128xf32>,
    %c0_243 = arith.constant 0 : index
    %c1664_244 = arith.constant 1664 : index
    %2044 = vector.load %arg13[%c0_243, %c1664_244] : memref<8x2100xf32, #tpu.memory_space<vmem>>, vector<8x128xf32>
    %2045 = vector.broadcast %1991 : vector<8x1xf32> to vector<8x128xf32>
    %2046 = arith.mulf %2044, %2045 : vector<8x128xf32>
    %c0_245 = arith.constant 0 : index
    %c1664_246 = arith.constant 1664 : index
    %2047 = vector.load %arg13[%c0_245, %c1664_246] : memref<8x2100xf32, #tpu.memory_space<vmem>>, vector<8x128xf32>
    tpu.vector_store %arg13[%c0_245, %c1664_246], %2046 {strides = array<i32>} : memref<8x2100xf32, #tpu.memory_space<vmem>>, vector<8x128xf32>,
    %c0_247 = arith.constant 0 : index
    %c1792_248 = arith.constant 1792 : index
    %2048 = vector.load %arg13[%c0_247, %c1792_248] : memref<8x2100xf32, #tpu.memory_space<vmem>>, vector<8x128xf32>
    %2049 = vector.broadcast %1991 : vector<8x1xf32> to vector<8x128xf32>
    %2050 = arith.mulf %2048, %2049 : vector<8x128xf32>
    %c0_249 = arith.constant 0 : index
    %c1792_250 = arith.constant 1792 : index
    %2051 = vector.load %arg13[%c0_249, %c1792_250] : memref<8x2100xf32, #tpu.memory_space<vmem>>, vector<8x128xf32>
    tpu.vector_store %arg13[%c0_249, %c1792_250], %2050 {strides = array<i32>} : memref<8x2100xf32, #tpu.memory_space<vmem>>, vector<8x128xf32>,
    %c0_251 = arith.constant 0 : index
    %c1920_252 = arith.constant 1920 : index
    %2052 = vector.load %arg13[%c0_251, %c1920_252] : memref<8x2100xf32, #tpu.memory_space<vmem>>, vector<8x128xf32>
    %2053 = vector.broadcast %1991 : vector<8x1xf32> to vector<8x128xf32>
    %2054 = arith.mulf %2052, %2053 : vector<8x128xf32>
    %c0_253 = arith.constant 0 : index
    %c1920_254 = arith.constant 1920 : index
    %2055 = vector.load %arg13[%c0_253, %c1920_254] : memref<8x2100xf32, #tpu.memory_space<vmem>>, vector<8x128xf32>
    tpu.vector_store %arg13[%c0_253, %c1920_254], %2054 {strides = array<i32>} : memref<8x2100xf32, #tpu.memory_space<vmem>>, vector<8x128xf32>,
    %c0_255 = arith.constant 0 : index
    %c2048_256 = arith.constant 2048 : index
    %2056 = vector.load %arg13[%c0_255, %c2048_256] : memref<8x2100xf32, #tpu.memory_space<vmem>>, vector<8x52xf32>
    %2057 = vector.broadcast %1991 : vector<8x1xf32> to vector<8x52xf32>
    %2058 = arith.mulf %2056, %2057 : vector<8x52xf32>
    %c0_257 = arith.constant 0 : index
    %c2048_258 = arith.constant 2048 : index
    %2059 = vector.load %arg13[%c0_257, %c2048_258] : memref<8x2100xf32, #tpu.memory_space<vmem>>, vector<8x52xf32>
    tpu.vector_store %arg13[%c0_257, %c2048_258], %2058 {strides = array<i32>} : memref<8x2100xf32, #tpu.memory_space<vmem>>, vector<8x52xf32>,
    return
  }
  func.func @transform_0(%arg0: i32) -> (i32, i32) {
    %c0_i32 = arith.constant 0 : i32
    %c0_i32_0 = arith.constant 0 : i32
    return %arg0, %c0_i32 : i32, i32
  }
  func.func @transform_1(%arg0: i32) -> (i32, i32) {
    %c0_i32 = arith.constant 0 : i32
    %c0_i32_0 = arith.constant 0 : i32
    %c0_i32_1 = arith.constant 0 : i32
    return %c0_i32, %c0_i32_0 : i32, i32
  }
  func.func @transform_2(%arg0: i32) -> (i32, i32) {
    %c0_i32 = arith.constant 0 : i32
    %c0_i32_0 = arith.constant 0 : i32
    %c0_i32_1 = arith.constant 0 : i32
    return %c0_i32, %c0_i32_0 : i32, i32
  }
  func.func @transform_3(%arg0: i32) -> (i32, i32) {
    %c0_i32 = arith.constant 0 : i32
    %c0_i32_0 = arith.constant 0 : i32
    %c0_i32_1 = arith.constant 0 : i32
    return %c0_i32, %c0_i32_0 : i32, i32
  }
  func.func @transform_4(%arg0: i32) -> (i32, i32) {
    %c0_i32 = arith.constant 0 : i32
    %c0_i32_0 = arith.constant 0 : i32
    %c0_i32_1 = arith.constant 0 : i32
    return %c0_i32, %c0_i32_0 : i32, i32
  }
  func.func @transform_5(%arg0: i32) -> (i32, i32, i32) {
    %c0_i32 = arith.constant 0 : i32
    %c0_i32_0 = arith.constant 0 : i32
    %c0_i32_1 = arith.constant 0 : i32
    %c0_i32_2 = arith.constant 0 : i32
    return %c0_i32, %c0_i32_0, %c0_i32_1 : i32, i32, i32
  }
  func.func @transform_6(%arg0: i32) -> (i32, i32, i32) {
    %c0_i32 = arith.constant 0 : i32
    %c0_i32_0 = arith.constant 0 : i32
    %c0_i32_1 = arith.constant 0 : i32
    %c0_i32_2 = arith.constant 0 : i32
    return %c0_i32, %c0_i32_0, %c0_i32_1 : i32, i32, i32
  }
  func.func @transform_7(%arg0: i32) -> (i32, i32) {
    %c0_i32 = arith.constant 0 : i32
    %c0_i32_0 = arith.constant 0 : i32
    %c0_i32_1 = arith.constant 0 : i32
    return %c0_i32, %c0_i32_0 : i32, i32
  }
  func.func @transform_8(%arg0: i32) -> (i32, i32) {
    %c0_i32 = arith.constant 0 : i32
    %c0_i32_0 = arith.constant 0 : i32
    %c0_i32_1 = arith.constant 0 : i32
    return %c0_i32, %c0_i32_0 : i32, i32
  }
  func.func @transform_9(%arg0: i32) -> (i32, i32) {
    %c0_i32 = arith.constant 0 : i32
    %c0_i32_0 = arith.constant 0 : i32
    %c0_i32_1 = arith.constant 0 : i32
    return %c0_i32, %c0_i32_0 : i32, i32
  }
  func.func @transform_10(%arg0: i32) -> (i32, i32) {
    %c0_i32 = arith.constant 0 : i32
    %c0_i32_0 = arith.constant 0 : i32
    %c0_i32_1 = arith.constant 0 : i32
    return %c0_i32, %c0_i32_0 : i32, i32
  }
  func.func @transform_11(%arg0: i32) -> (i32, i32) {
    %c0_i32 = arith.constant 0 : i32
    %c0_i32_0 = arith.constant 0 : i32
    %c0_i32_1 = arith.constant 0 : i32
    return %c0_i32, %c0_i32_0 : i32, i32
  }
  func.func @transform_12(%arg0: i32) -> (i32, i32) {
    %c0_i32 = arith.constant 0 : i32
    %c0_i32_0 = arith.constant 0 : i32
    return %arg0, %c0_i32 : i32, i32
  }
}

</mosaic_0001>

<bundles_post_ra>
// kernel: tpu_custom_call.1
= control target key start
LH: loop header
LB: loop body
LE: loop exit
PB: predicated region body
PF: predicated region fallthrough
CT: control target
= control target key end

     0   :  { %17 = vsyncpa [#allocation3], 0  ;;  %s9541_s0 = inlined_call_operand.hbm [shape: f32[8,16], index: 0, kind: input, shape index: {}]   ;;  %s9542_s1 = inlined_call_operand.hbm [shape: bf16[16,400], index: 1, kind: input, shape index: {}]   ;;  %s9543_s2 = inlined_call_operand.hbm [shape: f32[1,400], index: 2, kind: input, shape index: {}]   ;;  %s9544_s3 = inlined_call_operand.hbm [shape: bf16[400,256], index: 3, kind: input, shape index: {}]   ;;  %s9545_s4 = inlined_call_operand.hbm [shape: f32[1,256], index: 4, kind: input, shape index: {}]   ;;  %s9546_s5 = inlined_call_operand.hbm [shape: bf16[13,256,256], index: 5, kind: input, shape index: {}]   ;;  %s9547_s6 = inlined_call_operand.hbm [shape: f32[13,1,256], index: 6, kind: input, shape index: {}]   ;;  %s9548_s7 = inlined_call_operand.hbm [shape: f32[1,256], index: 7, kind: input, shape index: {}]   ;;  %s9549_s8 = inlined_call_operand.hbm [shape: f32[1,256], index: 8, kind: input, shape index: {}]   ;;  %s9550_s9 = inlined_call_operand.vmem [shape: bf16[256,30], index: 9, kind: input, shape index: {}]   ;;  %s9551_s10 = inlined_call_operand.hbm [shape: f32[1,30], index: 10, kind: input, shape index: {}]   ;;  %s9552_s11 = inlined_call_operand.hbm [shape: f32[1,2100], index: 11, kind: input, shape index: {}]   ;;  %s9553_s12 = inlined_call_operand.hbm [shape: f32[8,2100], index: 12, kind: output, shape index: {}]  }
   0x1   :  { %18 = vsyncpa [#allocation6], 0 }
   0x2   :  { %19 = vsyncpa [#allocation9], 0 }
   0x3   :  { %20 = vsyncpa [#allocation12], 0 }
   0x4   :  { %21 = vsyncpa [#allocation15], 0 }
   0x5   :  { %22 = vsyncpa [#allocation18], 0 }
   0x6   :  { %23 = vsyncpa [#allocation4], 0  ;;  %s7727_s21 = smov [#allocation5]  }
   0x7   :  { %s39_s22 = sshll.u32 %s7727_s21, 4  ;;  %s40_s22 = int_to_ptr.vmem [resolvable:$true] %s39_s22 }
   0x8   :  { %s7481_s23 = scalar_lea.vmem %s40_s22, 512  ;;  %p7486_p1 = scmp.lt.s32.totalorder %s40_s22, %s40_s22 }
   0x9   :  { %p7482_p0 = scmp.ne.s32.totalorder %s40_s22, %s7481_s23  ;;  %p7487_p2 = scmp.lt.s32.totalorder %s7481_s23, %s7481_s23 }
   0xb   :  { %p7488_p3 = por %p7487_p2, %p7486_p1 }
   0xd   :  { %p7489_p4 = pnand %p7488_p3, %p7482_p0 }
   0xf   :  { %7492 = shalt.err (!%p7489_p4)
}
  0x10   :  { %s7728_s24 = smov 256   ;;  %s7729_s25 = smov 16  }
  0x11   :  { %45 = dma.hbm_to_vmem [thread:$0]  %s9542_s1, 512, %s40_s22, [#allocation6], %s7728_s24, %s7728_s24, %s7729_s25  }
  0x12   :  { %s7730_s28 = smov [#allocation8]  }
  0x13   :  { %s61_s29 = sshll.u32 %s7730_s28, 4  ;;  %s62_s29 = int_to_ptr.vmem [resolvable:$true] %s61_s29 }
  0x14   :  { %s7501_s30 = scalar_lea.vmem %s62_s29, 6400  ;;  %p7506_p6 = scmp.lt.s32.totalorder %s62_s29, %s62_s29 }
  0x15   :  { %p7502_p5 = scmp.ne.s32.totalorder %s62_s29, %s7501_s30  ;;  %p7507_p7 = scmp.lt.s32.totalorder %s7501_s30, %s7501_s30 }
  0x17   :  { %p7508_p8 = por %p7507_p7, %p7506_p6 }
  0x19   :  { %p7509_p9 = pnand %p7508_p8, %p7502_p5 }
  0x1b   :  { %7512 = shalt.err (!%p7509_p9)
}
  0x1c   :  { %s7731_s13 = smov 128   ;;  %s7732_s14 = smov 8  }
  0x1d   :  { %67 = dma.hbm_to_vmem [thread:$0]  %s9544_s3, 6400, %s62_s29, [#allocation9], %s7731_s13, %s7731_s13, %s7732_s14  }
  0x1e   :  { %s7733_s17 = smov [#allocation11]   ;;  %s7734_s19 = smov [#allocation14]  }
  0x1f   :  { %s83_s18 = sshll.u32 %s7733_s17, 4  ;;  %s108_s1 = sshll.u32 %s7734_s19, 4  ;;  %s84_s18 = int_to_ptr.vmem [resolvable:$true] %s83_s18  ;;  %s109_s1 = int_to_ptr.vmem [resolvable:$true] %s108_s1 }
  0x20   :  { %s7521_s20 = scalar_lea.vmem %s84_s18, 53248  ;;  %p7526_p11 = scmp.lt.s32.totalorder %s84_s18, %s84_s18 }
  0x21   :  { %p7522_p10 = scmp.ne.s32.totalorder %s84_s18, %s7521_s20  ;;  %p7527_p12 = scmp.lt.s32.totalorder %s7521_s20, %s7521_s20 }
  0x23   :  { %p7528_p13 = por %p7527_p12, %p7526_p11 }
  0x25   :  { %p7529_p0 = pnand %p7528_p13, %p7522_p10 }
  0x27   :  { %7532 = shalt.err (!%p7529_p0)
}
  0x28   :  { %89 = dma.hbm_to_vmem [thread:$0]  %s9546_s5, 53248, %s84_s18, [#allocation12], %s7731_s13, %s7731_s13, %s7732_s14  }
  0x29   :  { %s7541_s23 = scalar_lea.vmem %s109_s1, 32  ;;  %p7546_p2 = scmp.lt.s32.totalorder %s109_s1, %s109_s1 }
  0x2a   :  { %p7542_p1 = scmp.ne.s32.totalorder %s109_s1, %s7541_s23  ;;  %p7547_p3 = scmp.lt.s32.totalorder %s7541_s23, %s7541_s23 }
  0x2c   :  { %p7548_p4 = por %p7547_p3, %p7546_p2 }
  0x2e   :  { %p7549_p5 = pnand %p7548_p4, %p7542_p1 }
  0x30   :  { %7552 = shalt.err (!%p7549_p5)
}
  0x31   :  { %111 = dma.hbm_to_vmem [thread:$0]  %s9548_s7, 32, %s109_s1, [#allocation15]  }
  0x32   :  { %s7735_s25 = smov [#allocation17]   ;;  %s7736_s27 = smov [#allocation2]  }
  0x33   :  { %s130_s26 = sshll.u32 %s7735_s25, 4  ;;  %s30_s28 = sshll.u32 %s7736_s27, 4  ;;  %s131_s26 = int_to_ptr.vmem [resolvable:$true] %s130_s26  ;;  %s31_s28 = int_to_ptr.vmem [resolvable:$true] %s30_s28 }
  0x34   :  { %s7561_s29 = scalar_lea.vmem %s131_s26, 16  ;;  %s7565_s5 = scalar_lea.vmem %s131_s26, 32 }
  0x35   :  { %p7562_p6 = scmp.ne.s32.totalorder %s131_s26, %s7561_s29  ;;  %p7566_p7 = scmp.lt.s32.totalorder %s131_s26, %s131_s26 }
  0x36   :  { %p7567_p8 = scmp.lt.s32.totalorder %s7565_s5, %s7561_s29 }
  0x38   :  { %p7568_p9 = por %p7567_p8, %p7566_p7 }
  0x3a   :  { %p7569_p10 = pnand %p7568_p9, %p7562_p6 }
  0x3c   :  { %7572 = shalt.err (!%p7569_p10)
}
  0x3d   :  { %133 = dma.hbm_to_vmem [thread:$0]  %s9551_s10, 16, %s131_s26, [#allocation18]  }
  0x3e   :  { %s7581_s14 = scalar_lea.vmem %s31_s28, 128  ;;  %p7586_p12 = scmp.lt.s32.totalorder %s31_s28, %s31_s28 }
  0x3f   :  { %p7582_p11 = scmp.ne.s32.totalorder %s31_s28, %s7581_s14  ;;  %p7587_p13 = scmp.lt.s32.totalorder %s7581_s14, %s7581_s14 }
  0x41   :  { %p7588_p0 = por %p7587_p13, %p7586_p12 }
  0x43   :  { %p7589_p1 = pnand %p7588_p0, %p7582_p11 }
  0x45   :  { %7592 = shalt.err (!%p7589_p1)
}
  0x46   :  { %33 = dma.hbm_to_vmem [thread:$0]  %s9541_s0, 128, %s31_s28, [#allocation3]  }
  0x47   :  { %s7737_s16 = smov [#allocation7]   ;;  %s7738_s18 = smov [#allocation10]  }
  0x48   :  { %s52_s17 = sshll.u32 %s7737_s16, 4  ;;  %s74_s19 = sshll.u32 %s7738_s18, 4  ;;  %s53_s17 = int_to_ptr.vmem [resolvable:$true] %s52_s17  ;;  %s75_s19 = int_to_ptr.vmem [resolvable:$true] %s74_s19 }
  0x49   :  { %s7601_s1 = scalar_lea.vmem %s53_s17, 64  ;;  %p7606_p3 = scmp.lt.s32.totalorder %s53_s17, %s53_s17 }
  0x4a   :  { %p7602_p2 = scmp.ne.s32.totalorder %s53_s17, %s7601_s1  ;;  %p7607_p4 = scmp.lt.s32.totalorder %s7601_s1, %s7601_s1 }
  0x4c   :  { %p7608_p5 = por %p7607_p4, %p7606_p3 }
  0x4e   :  { %p7609_p6 = pnand %p7608_p5, %p7602_p2 }
  0x50   :  { %7612 = shalt.err (!%p7609_p6)
}
  0x51   :  { %55 = dma.hbm_to_vmem [thread:$0]  %s9543_s2, 64, %s53_s17, [#allocation6]  }
  0x52   :  { %s7621_s21 = scalar_lea.vmem %s75_s19, 32  ;;  %p7626_p8 = scmp.lt.s32.totalorder %s75_s19, %s75_s19 }
  0x53   :  { %p7622_p7 = scmp.ne.s32.totalorder %s75_s19, %s7621_s21  ;;  %p7627_p9 = scmp.lt.s32.totalorder %s7621_s21, %s7621_s21 }
  0x55   :  { %p7628_p10 = por %p7627_p9, %p7626_p8 }
  0x57   :  { %p7629_p11 = pnand %p7628_p10, %p7622_p7 }
  0x59   :  { %7632 = shalt.err (!%p7629_p11)
}
  0x5a   :  { %77 = dma.hbm_to_vmem [thread:$0]  %s9545_s4, 32, %s75_s19, [#allocation9]  }
  0x5b   :  { %s7739_s23 = smov [#allocation13]  }
  0x5c   :  { %s95_s3 = sshll.u32 %s7739_s23, 4  ;;  %s96_s3 = int_to_ptr.vmem [resolvable:$true] %s95_s3 }
  0x5d   :  { %s7641_s24 = scalar_lea.vmem %s96_s3, 416  ;;  %p7646_p13 = scmp.lt.s32.totalorder %s96_s3, %s96_s3 }
  0x5e   :  { %p7642_p12 = scmp.ne.s32.totalorder %s96_s3, %s7641_s24  ;;  %p7647_p0 = scmp.lt.s32.totalorder %s7641_s24, %s7641_s24 }
  0x60   :  { %p7648_p1 = por %p7647_p0, %p7646_p13 }
  0x62   :  { %p7649_p2 = pnand %p7648_p1, %p7642_p12 }
  0x64   :  { %7652 = shalt.err (!%p7649_p2)
}
  0x65   :  { %s7740_s2 = smov 32   ;;  %s7741_s25 = smov 2  }
  0x66   :  { %101 = dma.hbm_to_vmem [thread:$0]  %s9547_s6, 416, %s96_s3, [#allocation12], %s7740_s2, %s7740_s2, %s7741_s25  }
  0x67   :  { %s7742_s28 = smov [#allocation16]   ;;  %s7743_s4 = smov [#allocation19]  }
  0x68   :  { %s118_s29 = sshll.u32 %s7742_s28, 4  ;;  %s140_s5 = sshll.u32 %s7743_s4, 4  ;;  %s119_s29 = int_to_ptr.vmem [resolvable:$true] %s118_s29  ;;  %s141_s5 = int_to_ptr.vmem [resolvable:$true] %s140_s5 }
  0x69   :  { %s7661_s30 = scalar_lea.vmem %s119_s29, 32  ;;  %p7666_p4 = scmp.lt.s32.totalorder %s119_s29, %s119_s29 }
  0x6a   :  { %p7662_p3 = scmp.ne.s32.totalorder %s119_s29, %s7661_s30  ;;  %p7667_p5 = scmp.lt.s32.totalorder %s7661_s30, %s7661_s30 }
  0x6c   :  { %p7668_p6 = por %p7667_p5, %p7666_p4 }
  0x6e   :  { %p7669_p7 = pnand %p7668_p6, %p7662_p3 }
  0x70   :  { %7672 = shalt.err (!%p7669_p7)
}
  0x71   :  { %121 = dma.hbm_to_vmem [thread:$0]  %s9549_s8, 32, %s119_s29, [#allocation15]  }
  0x72   :  { %s7681_s7 = scalar_lea.vmem %s141_s5, 272  ;;  %s7685_s6 = scalar_lea.vmem %s141_s5, 288 }
  0x73   :  { %p7682_p8 = scmp.ne.s32.totalorder %s141_s5, %s7681_s7  ;;  %p7686_p9 = scmp.lt.s32.totalorder %s141_s5, %s141_s5 }
  0x74   :  { %p7687_p10 = scmp.lt.s32.totalorder %s7685_s6, %s7681_s7 }
  0x76   :  { %p7688_p11 = por %p7687_p10, %p7686_p9 }
  0x78   :  { %p7689_p12 = pnand %p7688_p11, %p7682_p8 }
  0x7a   :  { %7692 = shalt.err (!%p7689_p12)
}
  0x7b   :  { %143 = dma.hbm_to_vmem [thread:$0]  %s9552_s11, 272, %s141_s5, [#allocation18]  }
  0x7c   :  { %7713 = dma.done.wait [#allocation3], 128  }
  0x7d   :  { %7714 = vsyncadd [#allocation3], 4294967168 }
  0x7e   :  { %7715 = dma.done.wait [#allocation6], 576  }
  0x7f   :  { %7716 = vsyncadd [#allocation6], 4294966720 }
  0x80   :  { %7717 = dma.done.wait [#allocation9], 6432  }
  0x81   :  { %7718 = vsyncadd [#allocation9], 4294960864 }
  0x82   :  { %7719 = dma.done.wait [#allocation12], 53664  }
  0x83   :  { %7720 = vsyncadd [#allocation12], 4294913632 }
  0x84   :  { %7721 = dma.done.wait [#allocation15], 64  }
  0x85   :  { %7722 = vsyncadd [#allocation15], 4294967232 }
  0x86   :  { %7723 = dma.done.wait [#allocation18], 288  }
  0x87   :  { %7724 = vsyncadd [#allocation18], 4294967008  ;;  %v7744_v0 = vmov 0   ;;  %v6385_v1 = vld [vmem:[#allocation5 + $0x4] ss:$16 sps:$4 sm:$0xff]   ;;  %v178_v5 = vld [vmem:[#allocation2] sm:$0xff]  ;;  %v186_v58 = vlaneseq }
  0x88   :  { %262 = vmatprep.mubr.bf16.mxu0 %v7744_v0  ;;  %303 = vmatprep.mubr.bf16.mxu1 %v7744_v0  ;;  %v6387_v2 = vld [vmem:[#allocation5 + $0xc] ss:$16 sps:$4 sm:$0xff]   ;;  %v6389_v3 = vld [vmem:[#allocation5] ss:$16 sps:$4 sm:$0xff]   ;;  %v6390_v4 = vld [vmem:[#allocation5 + $0x8] ss:$16 sps:$4 sm:$0xff]   ;;  %v184_v6 = vpack.c.bf16 %v178_v5, %v178_v5 }
  0x89   :  { %244 = vmatprep.subr.bf16.mxu0 %v6385_v1  ;;  %285 = vmatprep.subr.bf16.mxu1 %v6387_v2  ;;  %v6391_v7 = vld [vmem:[#allocation8 + $0x70] ss:$8 sps:$4 sm:$0xff]   ;;  %vm226_vm0 = vcmask 130048   ;;  %v6393_v8 = vld [vmem:[#allocation8 + $0x74] ss:$8 sps:$4 sm:$0xff]   ;;  %v187_v59 = vshrl.u32 %v186_v58, 7 }
  0x8a   :  { %245 = vmatpush1.bf16.msra.mxu0 %v6389_v3  ;;  %286 = vmatpush1.bf16.msra.mxu1 %v6390_v4  ;;  %v6396_v9 = vld [vmem:[#allocation8 + $0x64] ss:$8 sps:$4 sm:$0xff]   ;;  %v6394_v10 = vld [vmem:[#allocation8 + $0x60] ss:$8 sps:$4 sm:$0xff]   ;;  %v6399_v11 = vld [vmem:[#allocation8 + $0x54] ss:$8 sps:$4 sm:$0xff]  }
  0x8b   :  { %635 = vmatprep.subr.bf16.mxu0 %v6393_v8  ;;  %v6397_v12 = vld [vmem:[#allocation8 + $0x50] ss:$8 sps:$4 sm:$0xff]   ;;  %v6402_v13 = vld [vmem:[#allocation8 + $0x44] ss:$8 sps:$4 sm:$0xff]   ;;  %v6417_v15 = vld [vmem:[#allocation8 + $0x174] ss:$8 sps:$4 sm:$0xff]  }
  0x8c   :  { %v6415_v14 = vld [vmem:[#allocation8 + $0x170] ss:$8 sps:$4 sm:$0xff]   ;;  %v6400_v16 = vld [vmem:[#allocation8 + $0x40] ss:$8 sps:$4 sm:$0xff]   ;;  %v6405_v17 = vld [vmem:[#allocation8 + $0x34] ss:$8 sps:$4 sm:$0xff]   ;;  %676 = vmatprep.subr.bf16.mxu1 %v6417_v15 }
  0x8d   :  { %5780 = vmatmul.mubr.msk.bf16.vlgmr.msra.gmra.mxu0 %vm226_vm0, %v184_v6  ;;  %5781 = vmatmul.mubr.msk.bf16.vlgmr.msra.gmra.mxu1 %vm226_vm0, %v184_v6  ;;  %v6421_v18 = vld [vmem:[#allocation8 + $0x160] ss:$8 sps:$4 sm:$0xff]   ;;  %v6423_v19 = vld [vmem:[#allocation8 + $0x164] ss:$8 sps:$4 sm:$0xff]   ;;  %v6403_v20 = vld [vmem:[#allocation8 + $0x30] ss:$8 sps:$4 sm:$0xff]  }
  0x8e   :  { %636 = vmatpush1.bf16.msra.mxu0 %v6391_v7  ;;  %677 = vmatpush1.bf16.msra.mxu1 %v6415_v14  ;;  %v6429_v21 = vld [vmem:[#allocation8 + $0x154] ss:$8 sps:$4 sm:$0xff]   ;;  %v6408_v22 = vld [vmem:[#allocation8 + $0x24] ss:$8 sps:$4 sm:$0xff]   ;;  %v6427_v23 = vld [vmem:[#allocation8 + $0x150] ss:$8 sps:$4 sm:$0xff]  }
  0x8f   :  { %637 = vmatprep.subr.bf16.mxu0 %v6396_v9  ;;  %678 = vmatprep.subr.bf16.mxu1 %v6423_v19  ;;  %v6435_v24 = vld [vmem:[#allocation8 + $0x144] ss:$8 sps:$4 sm:$0xff]   ;;  %v6406_v25 = vld [vmem:[#allocation8 + $0x20] ss:$8 sps:$4 sm:$0xff]   ;;  %v6411_v26 = vld [vmem:[#allocation8 + $0x14] ss:$8 sps:$4 sm:$0xff]  }
  0x90   :  { %v6433_v27 = vld [vmem:[#allocation8 + $0x140] ss:$8 sps:$4 sm:$0xff]   ;;  %v6441_v28 = vld [vmem:[#allocation8 + $0x134] ss:$8 sps:$4 sm:$0xff]   ;;  %v6409_v29 = vld [vmem:[#allocation8 + $0x10] ss:$8 sps:$4 sm:$0xff]  }
  0x91   :  { %v6414_v30 = vld [vmem:[#allocation8 + $0x4] ss:$8 sps:$4 sm:$0xff]   ;;  %v6439_v31 = vld [vmem:[#allocation8 + $0x130] ss:$8 sps:$4 sm:$0xff]   ;;  %v6412_v32 = vld [vmem:[#allocation8] ss:$8 sps:$4 sm:$0xff]  }
  0x92   :  { %638 = vmatpush1.bf16.msra.mxu0 %v6394_v10  ;;  %679 = vmatpush1.bf16.msra.mxu1 %v6421_v18  ;;  %v6447_v33 = vld [vmem:[#allocation8 + $0x124] ss:$8 sps:$4 sm:$0xff]   ;;  %v6420_v34 = vld [vmem:[#allocation8 + $0xf4] ss:$8 sps:$4 sm:$0xff]   ;;  %v6445_v35 = vld [vmem:[#allocation8 + $0x120] ss:$8 sps:$4 sm:$0xff]  }
  0x93   :  { %639 = vmatprep.subr.bf16.mxu0 %v6399_v11  ;;  %680 = vmatprep.subr.bf16.mxu1 %v6429_v21  ;;  %v6453_v36 = vld [vmem:[#allocation8 + $0x114] ss:$8 sps:$4 sm:$0xff]   ;;  %v6418_v37 = vld [vmem:[#allocation8 + $0xf0] ss:$8 sps:$4 sm:$0xff]   ;;  %v6426_v38 = vld [vmem:[#allocation8 + $0xe4] ss:$8 sps:$4 sm:$0xff]  }
  0x94   :  { %v6451_v39 = vld [vmem:[#allocation8 + $0x110] ss:$8 sps:$4 sm:$0xff]   ;;  %v6424_v40 = vld [vmem:[#allocation8 + $0xe0] ss:$8 sps:$4 sm:$0xff]   ;;  %v6432_v41 = vld [vmem:[#allocation8 + $0xd4] ss:$8 sps:$4 sm:$0xff]  }
  0x95   :  { %v6430_v42 = vld [vmem:[#allocation8 + $0xd0] ss:$8 sps:$4 sm:$0xff]   ;;  %v6438_v43 = vld [vmem:[#allocation8 + $0xc4] ss:$8 sps:$4 sm:$0xff]   ;;  %v6436_v44 = vld [vmem:[#allocation8 + $0xc0] ss:$8 sps:$4 sm:$0xff]  }
  0x96   :  { %640 = vmatpush1.bf16.msra.mxu0 %v6397_v12  ;;  %681 = vmatpush1.bf16.msra.mxu1 %v6427_v23  ;;  %v6444_v45 = vld [vmem:[#allocation8 + $0xb4] ss:$8 sps:$4 sm:$0xff]   ;;  %v6442_v46 = vld [vmem:[#allocation8 + $0xb0] ss:$8 sps:$4 sm:$0xff]   ;;  %v6450_v47 = vld [vmem:[#allocation8 + $0xa4] ss:$8 sps:$4 sm:$0xff]  }
  0x97   :  { %641 = vmatprep.subr.bf16.mxu0 %v6402_v13  ;;  %682 = vmatprep.subr.bf16.mxu1 %v6435_v24  ;;  %v6448_v48 = vld [vmem:[#allocation8 + $0xa0] ss:$8 sps:$4 sm:$0xff]   ;;  %v6456_v49 = vld [vmem:[#allocation8 + $0x94] ss:$8 sps:$4 sm:$0xff]   ;;  %v6459_v50 = vld [vmem:[#allocation8 + $0x104] ss:$8 sps:$4 sm:$0xff]  }
  0x98   :  { %v6454_v51 = vld [vmem:[#allocation8 + $0x90] ss:$8 sps:$4 sm:$0xff]   ;;  %v6457_v52 = vld [vmem:[#allocation8 + $0x100] ss:$8 sps:$4 sm:$0xff]   ;;  %v6462_v53 = vld [vmem:[#allocation8 + $0x84] ss:$8 sps:$4 sm:$0xff]  }
  0x99   :  { %v6465_v54 = vld [vmem:[#allocation8 + $0x184] ss:$8 sps:$4 sm:$0xff]   ;;  %v6460_v55 = vld [vmem:[#allocation8 + $0x80] ss:$8 sps:$4 sm:$0xff]   ;;  %v7878_v60 = vsub.s32 0, %v187_v59  ;;  %v7880_v61 = vsub.s32 1, %v187_v59 }
  0x9a   :  { %642 = vmatpush1.bf16.msra.mxu0 %v6400_v16  ;;  %683 = vmatpush1.bf16.msra.mxu1 %v6433_v27  ;;  %v6463_v56 = vld [vmem:[#allocation8 + $0x180] ss:$8 sps:$4 sm:$0xff]   ;;  %v196_v62 = vsub.s32 2, %v187_v59  ;;  %v200_v63 = vsub.s32 3, %v187_v59  ;;  %v183_v1 = vld [vmem:[#allocation7] sm:$0xf] }
  0x9b   :  { %643 = vmatprep.subr.bf16.mxu0 %v6405_v17  ;;  %684 = vmatprep.subr.bf16.mxu1 %v6441_v28  ;;  %v6468_v57 = vld [vmem:[#allocation11 + $0x74] ss:$8 sps:$4 sm:$0xff]   ;;  %v189_v2 = vrot.slane %v183_v1, %v7878_v60  ;;  %v193_v4 = vrot.slane %v183_v1, %v7880_v61  ;;  %v6471_v27 = vld [vmem:[#allocation11 + $0x64] ss:$8 sps:$4 sm:$0xff]   ;;  %v6469_v28 = vld [vmem:[#allocation11 + $0x60] ss:$8 sps:$4 sm:$0xff]  }
  0x9c   :  { %v197_v3 = vrot.slane %v183_v1, %v196_v62  ;;  %v201_v5 = vrot.slane %v183_v1, %v200_v63  ;;  %v6516_v58 = vld [vmem:[#allocation11 + $0x174] ss:$8 sps:$4 sm:$0xff]   ;;  %v6519_v59 = vld [vmem:[#allocation11 + $0x164] ss:$8 sps:$4 sm:$0xff]   ;;  %v6517_v62 = vld [vmem:[#allocation11 + $0x160] ss:$8 sps:$4 sm:$0xff]  }
  0x9d   :  { %v6522_v63 = vld [vmem:[#allocation11 + $0x154] ss:$8 sps:$4 sm:$0xff]   ;;  %v6520_v1 = vld [vmem:[#allocation11 + $0x150] ss:$8 sps:$4 sm:$0xff]   ;;  %vm4187_vm1 = vcmask 80896   ;;  %vm5694_vm2 = vcmask 424960  }
  0x9e   :  { %644 = vmatpush1.bf16.msra.mxu0 %v6403_v20  ;;  %685 = vmatpush1.bf16.msra.mxu1 %v6439_v31  ;;  %v6477_v31 = vld [vmem:[#allocation11 + $0x44] ss:$8 sps:$4 sm:$0xff]   ;;  %s7775_s18 = smov [#allocation20]  }
  0x9f   :  { %645 = vmatprep.subr.bf16.mxu0 %v6408_v22  ;;  %686 = vmatprep.subr.bf16.mxu1 %v6447_v33  ;;  %v6480_v33 = vld [vmem:[#allocation11 + $0x34] ss:$8 sps:$4 sm:$0xff]   ;;  %s5762_s19 = sshll.u32 %s7775_s18, 4  ;;  %s5763_s19 = int_to_ptr.vmem [resolvable:$true] %s5762_s19 }
  0xa0   :  { %s7693_s1 = scalar_lea.vmem %s5763_s19, 2176  ;;  %p7698_p0 = scmp.lt.s32.totalorder %s5763_s19, %s5763_s19 }
  0xa1   :  { %p7694_p13 = scmp.ne.s32.totalorder %s5763_s19, %s7693_s1  ;;  %p7699_p1 = scmp.lt.s32.totalorder %s7693_s1, %s7693_s1 }
  0xa2   :  { %646 = vmatpush1.bf16.msra.mxu0 %v6406_v25  ;;  %687 = vmatpush1.bf16.msra.mxu1 %v6445_v35  ;;  %v6466_v25 = vld [vmem:[#allocation11 + $0x70] ss:$8 sps:$4 sm:$0xff]   ;;  %v6483_v35 = vld [vmem:[#allocation11 + $0x24] ss:$8 sps:$4 sm:$0xff]  }
  0xa3   :  { %647 = vmatprep.subr.bf16.mxu0 %v6411_v26  ;;  %688 = vmatprep.subr.bf16.mxu1 %v6453_v36  ;;  %v6481_v36 = vld [vmem:[#allocation11 + $0x20] ss:$8 sps:$4 sm:$0xff]   ;;  %p7700_p2 = por %p7699_p1, %p7698_p0 }
  0xa5   :  { %p7701_p3 = pnand %p7700_p2, %p7694_p13 }
  0xa6   :  { %648 = vmatpush1.bf16.msra.mxu0 %v6409_v29  ;;  %689 = vmatpush1.bf16.msra.mxu1 %v6451_v39  ;;  %v6474_v29 = vld [vmem:[#allocation11 + $0x54] ss:$8 sps:$4 sm:$0xff]   ;;  %v6489_v39 = vld [vmem:[#allocation11 + $0x4] ss:$8 sps:$4 sm:$0xff]  }
  0xa7   :  { %649 = vmatprep.subr.bf16.mxu0 %v6414_v30  ;;  %690 = vmatprep.subr.bf16.mxu1 %v6459_v50  ;;  %v6472_v30 = vld [vmem:[#allocation11 + $0x50] ss:$8 sps:$4 sm:$0xff]  }
  0xa8   :  { %v6502_v50 = vld [vmem:[#allocation11 + $0xb0] ss:$8 sps:$4 sm:$0xff]  }
  0xaa   :  { %650 = vmatpush1.bf16.msra.mxu0 %v6412_v32  ;;  %691 = vmatpush1.bf16.msra.mxu1 %v6457_v52  ;;  %v6475_v32 = vld [vmem:[#allocation11 + $0x40] ss:$8 sps:$4 sm:$0xff]  }
  0xab   :  { %651 = vmatprep.subr.bf16.mxu0 %v6420_v34  ;;  %706 = vmatprep.subr.bf16.mxu1 %v6465_v54  ;;  %v6478_v34 = vld [vmem:[#allocation11 + $0x30] ss:$8 sps:$4 sm:$0xff]   ;;  %v6505_v52 = vld [vmem:[#allocation11 + $0xa0] ss:$8 sps:$4 sm:$0xff]  }
  0xac   :  { %v6508_v54 = vld [vmem:[#allocation11 + $0x90] ss:$8 sps:$4 sm:$0xff]  }
  0xae   :  { %652 = vmatpush2.bf16.msra.mxu0 %v6418_v37  ;;  %707 = vmatpush2.bf16.msra.mxu1 %v6463_v56  ;;  %v6486_v37 = vld [vmem:[#allocation11 + $0x14] ss:$8 sps:$4 sm:$0xff]   ;;  %v6511_v56 = vld [vmem:[#allocation11 + $0x80] ss:$8 sps:$4 sm:$0xff]  }
  0xaf   :  { %653 = vmatprep.subr.bf16.mxu0 %v6426_v38  ;;  %925 = vmatprep.subr.bf16.mxu1 %v6468_v57  ;;  %v6484_v38 = vld [vmem:[#allocation11 + $0x10] ss:$8 sps:$4 sm:$0xff]  }
  0xb0   :  { %v6514_v57 = vld [vmem:[#allocation11 + $0x170] ss:$8 sps:$4 sm:$0xff]  }
  0xb2   :  { %654 = vmatpush2.bf16.msra.mxu0 %v6424_v40  ;;  %v6487_v40 = vld [vmem:[#allocation11] ss:$8 sps:$4 sm:$0xff]  }
  0xb3   :  { %655 = vmatprep.subr.bf16.mxu0 %v6432_v41  ;;  %v6492_v41 = vld [vmem:[#allocation11 + $0xf4] ss:$8 sps:$4 sm:$0xff]  }
  0xb6   :  { %656 = vmatpush2.bf16.msra.mxu0 %v6430_v42  ;;  %v6490_v42 = vld [vmem:[#allocation11 + $0xf0] ss:$8 sps:$4 sm:$0xff]  }
  0xb7   :  { %657 = vmatprep.subr.bf16.mxu0 %v6438_v43  ;;  %v6495_v43 = vld [vmem:[#allocation11 + $0xe4] ss:$8 sps:$4 sm:$0xff]  }
  0xba   :  { %658 = vmatpush2.bf16.msra.mxu0 %v6436_v44  ;;  %v6493_v44 = vld [vmem:[#allocation11 + $0xe0] ss:$8 sps:$4 sm:$0xff]  }
  0xbb   :  { %659 = vmatprep.subr.bf16.mxu0 %v6444_v45  ;;  %v6498_v45 = vld [vmem:[#allocation11 + $0xd4] ss:$8 sps:$4 sm:$0xff]  }
  0xbe   :  { %660 = vmatpush2.bf16.msra.mxu0 %v6442_v46  ;;  %v6496_v46 = vld [vmem:[#allocation11 + $0xd0] ss:$8 sps:$4 sm:$0xff]  }
  0xbf   :  { %661 = vmatprep.subr.bf16.mxu0 %v6450_v47  ;;  %v6501_v47 = vld [vmem:[#allocation11 + $0xc4] ss:$8 sps:$4 sm:$0xff]  }
  0xc2   :  { %662 = vmatpush2.bf16.msra.mxu0 %v6448_v48  ;;  %v6499_v48 = vld [vmem:[#allocation11 + $0xc0] ss:$8 sps:$4 sm:$0xff]  }
  0xc3   :  { %663 = vmatprep.subr.bf16.mxu0 %v6456_v49  ;;  %v6504_v49 = vld [vmem:[#allocation11 + $0xb4] ss:$8 sps:$4 sm:$0xff]  }
  0xc6   :  { %664 = vmatpush2.bf16.msra.mxu0 %v6454_v51  ;;  %v6507_v51 = vld [vmem:[#allocation11 + $0xa4] ss:$8 sps:$4 sm:$0xff]  }
  0xc7   :  { %665 = vmatprep.subr.bf16.mxu0 %v6462_v53  ;;  %v6510_v53 = vld [vmem:[#allocation11 + $0x94] ss:$8 sps:$4 sm:$0xff]  }
  0xca   :  { %666 = vmatpush2.bf16.msra.mxu0 %v6460_v55  ;;  %v6513_v55 = vld [vmem:[#allocation11 + $0x84] ss:$8 sps:$4 sm:$0xff]  }
  0xcb   :  { %1176 = vmatprep.subr.bf16.mxu0 %v6516_v58  ;;  %v6577_v58 = vld [vmem:[#allocation11 + $0x220] ss:$8 sps:$4 sm:$0xff]  }
 0x14d   :  { %v264_v6 = vpop.f32.mrf.mxu0  ;;  %v305_v7 = vpop.f32.mrf.mxu1 }
 0x14e   :  { %v265_v8 = vadd.f32 %v264_v6, %v189_v2  ;;  %v306_v9 = vadd.f32 %v305_v7, %v197_v3  ;;  %v6525_v2 = vld [vmem:[#allocation11 + $0x144] ss:$8 sps:$4 sm:$0xff]   ;;  %v6523_v3 = vld [vmem:[#allocation11 + $0x140] ss:$8 sps:$4 sm:$0xff]  }
 0x14f   :  { %v266_v10 = vpop.f32.mrf.mxu0  ;;  %v307_v11 = vpop.f32.mrf.mxu1  ;;  %v6531_v6 = vld [vmem:[#allocation11 + $0x124] ss:$8 sps:$4 sm:$0xff]   ;;  %v6529_v7 = vld [vmem:[#allocation11 + $0x120] ss:$8 sps:$4 sm:$0xff]  }
 0x150   :  { %v314_v12 = vmax.f32 %v306_v9, 0.0  ;;  %v267_v13 = vadd.f32 %v266_v10, %v193_v4  ;;  %v308_v14 = vadd.f32 %v307_v11, %v201_v5  ;;  %v312_v15 = vmax.f32 %v265_v8, 0.0  ;;  %v6528_v4 = vld [vmem:[#allocation11 + $0x134] ss:$8 sps:$4 sm:$0xff]   ;;  %v6526_v5 = vld [vmem:[#allocation11 + $0x130] ss:$8 sps:$4 sm:$0xff]  }
 0x151   :  { %v268_v16 = vpop.f32.mrf.mxu0  ;;  %v309_v17 = vpop.f32.mrf.mxu1  ;;  %v6534_v8 = vld [vmem:[#allocation11 + $0x114] ss:$8 sps:$4 sm:$0xff]   ;;  %v6532_v9 = vld [vmem:[#allocation11 + $0x110] ss:$8 sps:$4 sm:$0xff]   ;;  %v6537_v10 = vld [vmem:[#allocation11 + $0x104] ss:$8 sps:$4 sm:$0xff]  }
 0x152   :  { %v313_v18 = vmax.f32 %v267_v13, 0.0  ;;  %v315_v19 = vmax.f32 %v308_v14, 0.0  ;;  %v369_v20 = vpack.c.bf16 %v314_v12, %v314_v12  ;;  %v367_v26 = vpack.c.bf16 %v312_v15, %v312_v15  ;;  %v6535_v11 = vld [vmem:[#allocation11 + $0x100] ss:$8 sps:$4 sm:$0xff]   ;;  %v6540_v12 = vld [vmem:[#allocation11 + $0x1f4] ss:$8 sps:$4 sm:$0xff]  }
 0x153   :  { %v269_v21 = vpop.f32.mrf.mxu0  ;;  %v310_v22 = vpop.f32.mrf.mxu1  ;;  %v6538_v13 = vld [vmem:[#allocation11 + $0x1f0] ss:$8 sps:$4 sm:$0xff]   ;;  %v6543_v14 = vld [vmem:[#allocation11 + $0x1e4] ss:$8 sps:$4 sm:$0xff]   ;;  %v6541_v15 = vld [vmem:[#allocation11 + $0x1e0] ss:$8 sps:$4 sm:$0xff]  }
 0x154   :  { %v368_v23 = vpack.c.bf16 %v313_v18, %v313_v18  ;;  %v370_v24 = vpack.c.bf16 %v315_v19, %v315_v19  ;;  %v6546_v16 = vld [vmem:[#allocation11 + $0x1d4] ss:$8 sps:$4 sm:$0xff]   ;;  %v6544_v17 = vld [vmem:[#allocation11 + $0x1d0] ss:$8 sps:$4 sm:$0xff]   ;;  %v6549_v18 = vld [vmem:[#allocation11 + $0x1c4] ss:$8 sps:$4 sm:$0xff]  }
 0x155   :  { %v6547_v19 = vld [vmem:[#allocation11 + $0x1c0] ss:$8 sps:$4 sm:$0xff]   ;;  %v6550_v21 = vld [vmem:[#allocation11 + $0x1b0] ss:$8 sps:$4 sm:$0xff]   ;;  %v6555_v22 = vld [vmem:[#allocation11 + $0x1a4] ss:$8 sps:$4 sm:$0xff]  }
 0x156   :  { %667 = vmatprep.mubr.bf16.mxu0 %v368_v23  ;;  %5832 = vmatprep.mubr.msk.bf16.mxu1 %vm226_vm0, %v370_v24  ;;  %v6553_v23 = vld [vmem:[#allocation11 + $0x1a0] ss:$8 sps:$4 sm:$0xff]   ;;  %v366_v24 = vld [vmem:[#allocation10] sm:$0x3] }
 0x157   :  { %668 = vmatmul.mubr.bf16.vlgmr.msra.gmra.mxu0 %v367_v26  ;;  %709 = vmatmul.mubr.bf16.vlgmr.msra.gmra.mxu1 %v369_v20  ;;  %v6552_v20 = vld [vmem:[#allocation11 + $0x1b4] ss:$8 sps:$4 sm:$0xff]   ;;  %v379_v26 = vrot.slane %v366_v24, %v7880_v61 }
 0x158   :  { %926 = vmatpush1.bf16.msra.mxu1 %v6466_v25  ;;  %1177 = vmatpush1.bf16.msra.mxu0 %v6514_v57  ;;  %v375_v25 = vrot.slane %v366_v24, %v7878_v60  ;;  %v6579_v57 = vld [vmem:[#allocation11 + $0x224] ss:$8 sps:$4 sm:$0xff]  }
 0x159   :  { %927 = vmatprep.subr.bf16.mxu1 %v6471_v27  ;;  %1178 = vmatprep.subr.bf16.mxu0 %v6519_v59  ;;  %v6582_v59 = vld [vmem:[#allocation11 + $0x214] ss:$8 sps:$4 sm:$0xff]  }
 0x15c   :  { %928 = vmatpush1.bf16.msra.mxu1 %v6469_v28  ;;  %1179 = vmatpush1.bf16.msra.mxu0 %v6517_v62  ;;  %v6580_v62 = vld [vmem:[#allocation11 + $0x210] ss:$8 sps:$4 sm:$0xff]  }
 0x15d   :  { %929 = vmatprep.subr.bf16.mxu1 %v6474_v29  ;;  %1180 = vmatprep.subr.bf16.mxu0 %v6522_v63  ;;  %v6585_v63 = vld [vmem:[#allocation11 + $0x204] ss:$8 sps:$4 sm:$0xff]  }
 0x160   :  { %930 = vmatpush1.bf16.msra.mxu1 %v6472_v30  ;;  %1181 = vmatpush1.bf16.msra.mxu0 %v6520_v1  ;;  %v6583_v1 = vld [vmem:[#allocation11 + $0x200] ss:$8 sps:$4 sm:$0xff]  }
 0x161   :  { %931 = vmatprep.subr.bf16.mxu1 %v6477_v31  ;;  %1182 = vmatprep.subr.bf16.mxu0 %v6525_v2  ;;  %v6588_v2 = vld [vmem:[#allocation11 + $0x2f4] ss:$8 sps:$4 sm:$0xff]  }
 0x164   :  { %932 = vmatpush1.bf16.msra.mxu1 %v6475_v32  ;;  %1183 = vmatpush1.bf16.msra.mxu0 %v6523_v3  ;;  %v6586_v3 = vld [vmem:[#allocation11 + $0x2f0] ss:$8 sps:$4 sm:$0xff]  }
 0x165   :  { %933 = vmatprep.subr.bf16.mxu1 %v6480_v33  ;;  %1184 = vmatprep.subr.bf16.mxu0 %v6528_v4  ;;  %v6591_v4 = vld [vmem:[#allocation11 + $0x2e4] ss:$8 sps:$4 sm:$0xff]  }
 0x168   :  { %934 = vmatpush1.bf16.msra.mxu1 %v6478_v34  ;;  %1185 = vmatpush1.bf16.msra.mxu0 %v6526_v5  ;;  %v6589_v5 = vld [vmem:[#allocation11 + $0x2e0] ss:$8 sps:$4 sm:$0xff]  }
 0x169   :  { %935 = vmatprep.subr.bf16.mxu1 %v6483_v35  ;;  %1186 = vmatprep.subr.bf16.mxu0 %v6531_v6  ;;  %v6594_v6 = vld [vmem:[#allocation11 + $0x2d4] ss:$8 sps:$4 sm:$0xff]  }
 0x16c   :  { %936 = vmatpush1.bf16.msra.mxu1 %v6481_v36  ;;  %1187 = vmatpush1.bf16.msra.mxu0 %v6529_v7  ;;  %v6592_v7 = vld [vmem:[#allocation11 + $0x2d0] ss:$8 sps:$4 sm:$0xff]  }
 0x16d   :  { %937 = vmatprep.subr.bf16.mxu1 %v6486_v37  ;;  %1188 = vmatprep.subr.bf16.mxu0 %v6534_v8  ;;  %v6597_v8 = vld [vmem:[#allocation11 + $0x2c4] ss:$8 sps:$4 sm:$0xff]  }
 0x170   :  { %938 = vmatpush1.bf16.msra.mxu1 %v6484_v38  ;;  %1189 = vmatpush1.bf16.msra.mxu0 %v6532_v9  ;;  %v6595_v9 = vld [vmem:[#allocation11 + $0x2c0] ss:$8 sps:$4 sm:$0xff]  }
 0x171   :  { %939 = vmatprep.subr.bf16.mxu1 %v6489_v39  ;;  %1190 = vmatprep.subr.bf16.mxu0 %v6537_v10  ;;  %v6600_v10 = vld [vmem:[#allocation11 + $0x2b4] ss:$8 sps:$4 sm:$0xff]  }
 0x174   :  { %940 = vmatpush1.bf16.msra.mxu1 %v6487_v40  ;;  %1191 = vmatpush1.bf16.msra.mxu0 %v6535_v11  ;;  %v6598_v11 = vld [vmem:[#allocation11 + $0x2b0] ss:$8 sps:$4 sm:$0xff]  }
 0x175   :  { %941 = vmatprep.subr.bf16.mxu1 %v6492_v41  ;;  %1192 = vmatprep.subr.bf16.mxu0 %v6540_v12  ;;  %v6603_v12 = vld [vmem:[#allocation11 + $0x2a4] ss:$8 sps:$4 sm:$0xff]  }
 0x178   :  { %942 = vmatpush2.bf16.msra.mxu1 %v6490_v42  ;;  %1193 = vmatpush2.bf16.msra.mxu0 %v6538_v13  ;;  %v6601_v13 = vld [vmem:[#allocation11 + $0x2a0] ss:$8 sps:$4 sm:$0xff]  }
 0x179   :  { %943 = vmatprep.subr.bf16.mxu1 %v6495_v43  ;;  %1194 = vmatprep.subr.bf16.mxu0 %v6543_v14  ;;  %v6558_v43 = vld [vmem:[#allocation11 + $0x194] ss:$8 sps:$4 sm:$0xff]   ;;  %v751_v14 = vld [vmem:[#allocation13] sm:$0x3] }
 0x17c   :  { %944 = vmatpush2.bf16.msra.mxu1 %v6493_v44  ;;  %1195 = vmatpush2.bf16.msra.mxu0 %v6541_v15  ;;  %v6556_v44 = vld [vmem:[#allocation11 + $0x190] ss:$8 sps:$4 sm:$0xff]   ;;  %v758_v15 = vrot.slane %v751_v14, %v7878_v60 }
 0x17d   :  { %945 = vmatprep.subr.bf16.mxu1 %v6498_v45  ;;  %1196 = vmatprep.subr.bf16.mxu0 %v6546_v16  ;;  %v6561_v45 = vld [vmem:[#allocation11 + $0x184] ss:$8 sps:$4 sm:$0xff]   ;;  %v762_v16 = vrot.slane %v751_v14, %v7880_v61  ;;  %v6655_v14 = vld [vmem:[#allocation11 + $0x380] ss:$8 sps:$4 sm:$0xff]  }
 0x180   :  { %946 = vmatpush2.bf16.msra.mxu1 %v6496_v46  ;;  %1197 = vmatpush2.bf16.msra.mxu0 %v6544_v17  ;;  %v6559_v46 = vld [vmem:[#allocation11 + $0x180] ss:$8 sps:$4 sm:$0xff]  }
 0x181   :  { %947 = vmatprep.subr.bf16.mxu1 %v6501_v47  ;;  %1198 = vmatprep.subr.bf16.mxu0 %v6549_v18  ;;  %v6562_v47 = vld [vmem:[#allocation11 + $0x270] ss:$8 sps:$4 sm:$0xff]  }
 0x184   :  { %948 = vmatpush2.bf16.msra.mxu1 %v6499_v48  ;;  %1199 = vmatpush2.bf16.msra.mxu0 %v6547_v19  ;;  %v6564_v48 = vld [vmem:[#allocation11 + $0x274] ss:$8 sps:$4 sm:$0xff]  }
 0x185   :  { %949 = vmatprep.subr.bf16.mxu1 %v6504_v49  ;;  %1200 = vmatprep.subr.bf16.mxu0 %v6552_v20  ;;  %v6567_v49 = vld [vmem:[#allocation11 + $0x264] ss:$8 sps:$4 sm:$0xff]  }
 0x188   :  { %950 = vmatpush2.bf16.msra.mxu1 %v6502_v50  ;;  %1201 = vmatpush2.bf16.msra.mxu0 %v6550_v21  ;;  %v6565_v50 = vld [vmem:[#allocation11 + $0x260] ss:$8 sps:$4 sm:$0xff]  }
 0x189   :  { %951 = vmatprep.subr.bf16.mxu1 %v6507_v51  ;;  %1202 = vmatprep.subr.bf16.mxu0 %v6555_v22  ;;  %v6570_v51 = vld [vmem:[#allocation11 + $0x254] ss:$8 sps:$4 sm:$0xff]  }
 0x18c   :  { %952 = vmatpush2.bf16.msra.mxu1 %v6505_v52  ;;  %1203 = vmatpush2.bf16.msra.mxu0 %v6553_v23  ;;  %v6568_v52 = vld [vmem:[#allocation11 + $0x250] ss:$8 sps:$4 sm:$0xff]  }
 0x18d   :  { %953 = vmatprep.subr.bf16.mxu1 %v6510_v53  ;;  %1204 = vmatprep.subr.bf16.mxu0 %v6558_v43  ;;  %v6573_v53 = vld [vmem:[#allocation11 + $0x244] ss:$8 sps:$4 sm:$0xff]   ;;  %v6630_v43 = vld [vmem:[#allocation11 + $0x314] ss:$8 sps:$4 sm:$0xff]  }
 0x190   :  { %954 = vmatpush2.bf16.msra.mxu1 %v6508_v54  ;;  %1205 = vmatpush2.bf16.msra.mxu0 %v6556_v44  ;;  %v6571_v54 = vld [vmem:[#allocation11 + $0x240] ss:$8 sps:$4 sm:$0xff]   ;;  %v6628_v44 = vld [vmem:[#allocation11 + $0x310] ss:$8 sps:$4 sm:$0xff]  }
 0x191   :  { %955 = vmatprep.subr.bf16.mxu1 %v6513_v55  ;;  %1206 = vmatprep.subr.bf16.mxu0 %v6561_v45  ;;  %v6576_v55 = vld [vmem:[#allocation11 + $0x234] ss:$8 sps:$4 sm:$0xff]   ;;  %v6633_v45 = vld [vmem:[#allocation11 + $0x304] ss:$8 sps:$4 sm:$0xff]  }
 0x194   :  { %956 = vmatpush2.bf16.msra.mxu1 %v6511_v56  ;;  %1207 = vmatpush2.bf16.msra.mxu0 %v6559_v46  ;;  %v6574_v56 = vld [vmem:[#allocation11 + $0x230] ss:$8 sps:$4 sm:$0xff]   ;;  %v6631_v46 = vld [vmem:[#allocation11 + $0x300] ss:$8 sps:$4 sm:$0xff]  }
 0x195   :  { %1427 = vmatprep.subr.bf16.mxu1 %v6564_v48  ;;  %v6634_v48 = vld [vmem:[#allocation11 + $0x3f0] ss:$8 sps:$4 sm:$0xff]  }
 0x217   :  { %v669_v27 = vpop.f32.mrf.mxu0  ;;  %v710_v28 = vpop.f32.mrf.mxu1 }
 0x218   :  { %v670_v29 = vadd.f32 %v669_v27, %v375_v25  ;;  %v6606_v27 = vld [vmem:[#allocation11 + $0x294] ss:$8 sps:$4 sm:$0xff]  }
 0x219   :  { %v671_v30 = vpop.f32.mrf.mxu0  ;;  %v712_v31 = vpop.f32.mrf.mxu1 }
 0x21a   :  { %v711_v32 = vadd.f32 %v710_v28, %v670_v29  ;;  %v672_v33 = vadd.f32 %v671_v30, %v379_v26  ;;  %v6604_v28 = vld [vmem:[#allocation11 + $0x290] ss:$8 sps:$4 sm:$0xff]   ;;  %v6609_v29 = vld [vmem:[#allocation11 + $0x284] ss:$8 sps:$4 sm:$0xff]   ;;  %v6607_v30 = vld [vmem:[#allocation11 + $0x280] ss:$8 sps:$4 sm:$0xff]  }
 0x21b   :  { %v673_v34 = vpop.f32.mrf.mxu0  ;;  %v714_v35 = vpop.f32.mrf.mxu1 }
 0x21c   :  { %v713_v36 = vadd.f32 %v712_v31, %v672_v33  ;;  %v717_v37 = vmax.f32 %v711_v32, 0.0  ;;  %v6610_v31 = vld [vmem:[#allocation11 + $0x370] ss:$8 sps:$4 sm:$0xff]   ;;  %v6612_v32 = vld [vmem:[#allocation11 + $0x374] ss:$8 sps:$4 sm:$0xff]  }
 0x21d   :  { %v674_v38 = vpop.f32.mrf.mxu0  ;;  %v715_v39 = vpop.f32.mrf.mxu1  ;;  %v6615_v33 = vld [vmem:[#allocation11 + $0x364] ss:$8 sps:$4 sm:$0xff]   ;;  %1678 = vmatprep.subr.bf16.mxu0 %v6612_v32  ;;  %v6613_v34 = vld [vmem:[#allocation11 + $0x360] ss:$8 sps:$4 sm:$0xff]   ;;  %v6618_v35 = vld [vmem:[#allocation11 + $0x354] ss:$8 sps:$4 sm:$0xff]  }
 0x21e   :  { %v718_v40 = vmax.f32 %v713_v36, 0.0  ;;  %v752_v42 = vpack.c.bf16 %v717_v37, %v717_v37  ;;  %v6616_v36 = vld [vmem:[#allocation11 + $0x350] ss:$8 sps:$4 sm:$0xff]   ;;  %v6621_v37 = vld [vmem:[#allocation11 + $0x344] ss:$8 sps:$4 sm:$0xff]  }
 0x21f   :  { %v6619_v38 = vld [vmem:[#allocation11 + $0x340] ss:$8 sps:$4 sm:$0xff]   ;;  %v6624_v39 = vld [vmem:[#allocation11 + $0x334] ss:$8 sps:$4 sm:$0xff]   ;;  %v6682_v32 = vld [vmem:[#allocation11 + $0x4f0] ss:$8 sps:$4 sm:$0xff]  }
 0x220   :  { %v753_v41 = vpack.c.bf16 %v718_v40, %v718_v40  ;;  %v6622_v40 = vld [vmem:[#allocation11 + $0x330] ss:$8 sps:$4 sm:$0xff]  }
 0x222   :  { %957 = vmatprep.mubr.bf16.mxu1 %v753_v41  ;;  %v6627_v41 = vld [vmem:[#allocation11 + $0x324] ss:$8 sps:$4 sm:$0xff]  }
 0x223   :  { %958 = vmatmul.mubr.bf16.vlgmr.msra.gmra.mxu1 %v752_v42  ;;  %v6625_v42 = vld [vmem:[#allocation11 + $0x320] ss:$8 sps:$4 sm:$0xff]  }
 0x224   :  { %1428 = vmatpush1.bf16.msra.mxu1 %v6562_v47  ;;  %v6636_v47 = vld [vmem:[#allocation11 + $0x3f4] ss:$8 sps:$4 sm:$0xff]  }
 0x225   :  { %1429 = vmatprep.subr.bf16.mxu1 %v6567_v49  ;;  %v6639_v49 = vld [vmem:[#allocation11 + $0x3e4] ss:$8 sps:$4 sm:$0xff]  }
 0x228   :  { %1430 = vmatpush1.bf16.msra.mxu1 %v6565_v50  ;;  %v6637_v50 = vld [vmem:[#allocation11 + $0x3e0] ss:$8 sps:$4 sm:$0xff]  }
 0x229   :  { %1431 = vmatprep.subr.bf16.mxu1 %v6570_v51  ;;  %v6642_v51 = vld [vmem:[#allocation11 + $0x3d4] ss:$8 sps:$4 sm:$0xff]  }
 0x22c   :  { %1432 = vmatpush1.bf16.msra.mxu1 %v6568_v52  ;;  %v6640_v52 = vld [vmem:[#allocation11 + $0x3d0] ss:$8 sps:$4 sm:$0xff]  }
 0x22d   :  { %1433 = vmatprep.subr.bf16.mxu1 %v6573_v53  ;;  %v6645_v53 = vld [vmem:[#allocation11 + $0x3c4] ss:$8 sps:$4 sm:$0xff]  }
 0x230   :  { %1434 = vmatpush1.bf16.msra.mxu1 %v6571_v54  ;;  %v6643_v54 = vld [vmem:[#allocation11 + $0x3c0] ss:$8 sps:$4 sm:$0xff]  }
 0x231   :  { %1435 = vmatprep.subr.bf16.mxu1 %v6576_v55  ;;  %v6648_v55 = vld [vmem:[#allocation11 + $0x3b4] ss:$8 sps:$4 sm:$0xff]  }
 0x234   :  { %1436 = vmatpush1.bf16.msra.mxu1 %v6574_v56  ;;  %v6646_v56 = vld [vmem:[#allocation11 + $0x3b0] ss:$8 sps:$4 sm:$0xff]  }
 0x235   :  { %1437 = vmatprep.subr.bf16.mxu1 %v6579_v57  ;;  %v6651_v57 = vld [vmem:[#allocation11 + $0x3a4] ss:$8 sps:$4 sm:$0xff]  }
 0x238   :  { %1438 = vmatpush1.bf16.msra.mxu1 %v6577_v58  ;;  %v6649_v58 = vld [vmem:[#allocation11 + $0x3a0] ss:$8 sps:$4 sm:$0xff]  }
 0x239   :  { %1439 = vmatprep.subr.bf16.mxu1 %v6582_v59  ;;  %v1002_v59 = vld [vmem:[#allocation13 + $0x2] sm:$0x3] }
 0x23c   :  { %1440 = vmatpush1.bf16.msra.mxu1 %v6580_v62  ;;  %v1009_v62 = vrot.slane %v1002_v59, %v7878_v60 }
 0x23d   :  { %1441 = vmatprep.subr.bf16.mxu1 %v6585_v63  ;;  %v1013_v63 = vrot.slane %v1002_v59, %v7880_v61  ;;  %v6703_v59 = vld [vmem:[#allocation11 + $0x480] ss:$8 sps:$4 sm:$0xff]  }
 0x240   :  { %1442 = vmatpush1.bf16.msra.mxu1 %v6583_v1 }
 0x241   :  { %1443 = vmatprep.subr.bf16.mxu1 %v6588_v2 }
 0x244   :  { %1444 = vmatpush2.bf16.msra.mxu1 %v6586_v3 }
 0x245   :  { %1445 = vmatprep.subr.bf16.mxu1 %v6591_v4 }
 0x248   :  { %1446 = vmatpush2.bf16.msra.mxu1 %v6589_v5 }
 0x249   :  { %1447 = vmatprep.subr.bf16.mxu1 %v6594_v6 }
 0x24c   :  { %1448 = vmatpush2.bf16.msra.mxu1 %v6592_v7 }
 0x24d   :  { %1449 = vmatprep.subr.bf16.mxu1 %v6597_v8 }
 0x250   :  { %1450 = vmatpush2.bf16.msra.mxu1 %v6595_v9 }
 0x251   :  { %1451 = vmatprep.subr.bf16.mxu1 %v6600_v10 }
 0x254   :  { %1452 = vmatpush2.bf16.msra.mxu1 %v6598_v11  ;;  %v6654_v11 = vld [vmem:[#allocation11 + $0x394] ss:$8 sps:$4 sm:$0xff]  }
 0x255   :  { %1453 = vmatprep.subr.bf16.mxu1 %v6603_v12  ;;  %v6652_v12 = vld [vmem:[#allocation11 + $0x390] ss:$8 sps:$4 sm:$0xff]  }
 0x258   :  { %1454 = vmatpush2.bf16.msra.mxu1 %v6601_v13  ;;  %v6657_v13 = vld [vmem:[#allocation11 + $0x384] ss:$8 sps:$4 sm:$0xff]  }
 0x259   :  { %1455 = vmatprep.subr.bf16.mxu1 %v6606_v27  ;;  %v6678_v27 = vld [vmem:[#allocation11 + $0x414] ss:$8 sps:$4 sm:$0xff]  }
 0x25c   :  { %1456 = vmatpush2.bf16.msra.mxu1 %v6604_v28  ;;  %v6676_v28 = vld [vmem:[#allocation11 + $0x410] ss:$8 sps:$4 sm:$0xff]  }
 0x25d   :  { %1457 = vmatprep.subr.bf16.mxu1 %v6609_v29  ;;  %v6681_v29 = vld [vmem:[#allocation11 + $0x404] ss:$8 sps:$4 sm:$0xff]  }
 0x260   :  { %1458 = vmatpush2.bf16.msra.mxu1 %v6607_v30  ;;  %v6679_v30 = vld [vmem:[#allocation11 + $0x400] ss:$8 sps:$4 sm:$0xff]  }
 0x2e3   :  { %v959_v17 = vpop.f32.mrf.mxu1 }
 0x2e4   :  { %v960_v18 = vadd.f32 %v959_v17, %v758_v15  ;;  %v6658_v15 = vld [vmem:[#allocation11 + $0x470] ss:$8 sps:$4 sm:$0xff]   ;;  %v6663_v17 = vld [vmem:[#allocation11 + $0x464] ss:$8 sps:$4 sm:$0xff]  }
 0x2e5   :  { %v961_v19 = vpop.f32.mrf.mxu1 }
 0x2e6   :  { %v962_v20 = vadd.f32 %v961_v19, %v762_v16  ;;  %v966_v21 = vmax.f32 %v960_v18, 0.0  ;;  %v6660_v16 = vld [vmem:[#allocation11 + $0x474] ss:$8 sps:$4 sm:$0xff]   ;;  %v6661_v18 = vld [vmem:[#allocation11 + $0x460] ss:$8 sps:$4 sm:$0xff]  }
 0x2e7   :  { %v963_v22 = vpop.f32.mrf.mxu1  ;;  %1929 = vmatprep.subr.bf16.mxu1 %v6660_v16  ;;  %v6666_v19 = vld [vmem:[#allocation11 + $0x454] ss:$8 sps:$4 sm:$0xff]   ;;  %v6730_v16 = vld [vmem:[#allocation11 + $0x5f0] ss:$8 sps:$4 sm:$0xff]  }
 0x2e8   :  { %v967_v23 = vmax.f32 %v962_v20, 0.0  ;;  %v1003_v26 = vpack.c.bf16 %v966_v21, %v966_v21  ;;  %v6664_v20 = vld [vmem:[#allocation11 + $0x450] ss:$8 sps:$4 sm:$0xff]   ;;  %v6669_v21 = vld [vmem:[#allocation11 + $0x444] ss:$8 sps:$4 sm:$0xff]  }
 0x2e9   :  { %v964_v24 = vpop.f32.mrf.mxu1  ;;  %v6667_v22 = vld [vmem:[#allocation11 + $0x440] ss:$8 sps:$4 sm:$0xff]  }
 0x2ea   :  { %v1004_v25 = vpack.c.bf16 %v967_v23, %v967_v23  ;;  %v6672_v23 = vld [vmem:[#allocation11 + $0x434] ss:$8 sps:$4 sm:$0xff]   ;;  %v6670_v24 = vld [vmem:[#allocation11 + $0x430] ss:$8 sps:$4 sm:$0xff]  }
 0x2ec   :  { %1208 = vmatprep.mubr.bf16.mxu0 %v1004_v25  ;;  %v6675_v25 = vld [vmem:[#allocation11 + $0x424] ss:$8 sps:$4 sm:$0xff]  }
 0x2ed   :  { %1209 = vmatmul.mubr.bf16.vlgmr.msra.gmra.mxu0 %v1003_v26  ;;  %v6673_v26 = vld [vmem:[#allocation11 + $0x420] ss:$8 sps:$4 sm:$0xff]  }
 0x2ee   :  { %1679 = vmatpush1.bf16.msra.mxu0 %v6610_v31  ;;  %v6684_v31 = vld [vmem:[#allocation11 + $0x4f4] ss:$8 sps:$4 sm:$0xff]  }
 0x2ef   :  { %1680 = vmatprep.subr.bf16.mxu0 %v6615_v33  ;;  %v6687_v33 = vld [vmem:[#allocation11 + $0x4e4] ss:$8 sps:$4 sm:$0xff]  }
 0x2f2   :  { %1681 = vmatpush1.bf16.msra.mxu0 %v6613_v34  ;;  %v6685_v34 = vld [vmem:[#allocation11 + $0x4e0] ss:$8 sps:$4 sm:$0xff]  }
 0x2f3   :  { %1682 = vmatprep.subr.bf16.mxu0 %v6618_v35  ;;  %v6690_v35 = vld [vmem:[#allocation11 + $0x4d4] ss:$8 sps:$4 sm:$0xff]  }
 0x2f6   :  { %1683 = vmatpush1.bf16.msra.mxu0 %v6616_v36  ;;  %v6688_v36 = vld [vmem:[#allocation11 + $0x4d0] ss:$8 sps:$4 sm:$0xff]  }
 0x2f7   :  { %1684 = vmatprep.subr.bf16.mxu0 %v6621_v37  ;;  %v6693_v37 = vld [vmem:[#allocation11 + $0x4c4] ss:$8 sps:$4 sm:$0xff]  }
 0x2fa   :  { %1685 = vmatpush1.bf16.msra.mxu0 %v6619_v38  ;;  %v6691_v38 = vld [vmem:[#allocation11 + $0x4c0] ss:$8 sps:$4 sm:$0xff]  }
 0x2fb   :  { %1686 = vmatprep.subr.bf16.mxu0 %v6624_v39  ;;  %v6696_v39 = vld [vmem:[#allocation11 + $0x4b4] ss:$8 sps:$4 sm:$0xff]  }
 0x2fe   :  { %1687 = vmatpush1.bf16.msra.mxu0 %v6622_v40  ;;  %v6694_v40 = vld [vmem:[#allocation11 + $0x4b0] ss:$8 sps:$4 sm:$0xff]  }
 0x2ff   :  { %1688 = vmatprep.subr.bf16.mxu0 %v6627_v41  ;;  %v6699_v41 = vld [vmem:[#allocation11 + $0x4a4] ss:$8 sps:$4 sm:$0xff]  }
 0x302   :  { %1689 = vmatpush1.bf16.msra.mxu0 %v6625_v42  ;;  %v6697_v42 = vld [vmem:[#allocation11 + $0x4a0] ss:$8 sps:$4 sm:$0xff]  }
 0x303   :  { %1690 = vmatprep.subr.bf16.mxu0 %v6630_v43  ;;  %v1253_v43 = vld [vmem:[#allocation13 + $0x4] sm:$0x3] }
 0x306   :  { %1691 = vmatpush1.bf16.msra.mxu0 %v6628_v44  ;;  %v1260_v44 = vrot.slane %v1253_v43, %v7878_v60 }
 0x307   :  { %1692 = vmatprep.subr.bf16.mxu0 %v6633_v45  ;;  %v1264_v45 = vrot.slane %v1253_v43, %v7880_v61  ;;  %v6751_v43 = vld [vmem:[#allocation11 + $0x580] ss:$8 sps:$4 sm:$0xff]  }
 0x30a   :  { %1693 = vmatpush1.bf16.msra.mxu0 %v6631_v46 }
 0x30b   :  { %1694 = vmatprep.subr.bf16.mxu0 %v6636_v47 }
 0x30e   :  { %1695 = vmatpush2.bf16.msra.mxu0 %v6634_v48 }
 0x30f   :  { %1696 = vmatprep.subr.bf16.mxu0 %v6639_v49 }
 0x312   :  { %1697 = vmatpush2.bf16.msra.mxu0 %v6637_v50 }
 0x313   :  { %1698 = vmatprep.subr.bf16.mxu0 %v6642_v51 }
 0x316   :  { %1699 = vmatpush2.bf16.msra.mxu0 %v6640_v52 }
 0x317   :  { %1700 = vmatprep.subr.bf16.mxu0 %v6645_v53 }
 0x31a   :  { %1701 = vmatpush2.bf16.msra.mxu0 %v6643_v54 }
 0x31b   :  { %1702 = vmatprep.subr.bf16.mxu0 %v6648_v55 }
 0x31e   :  { %1703 = vmatpush2.bf16.msra.mxu0 %v6646_v56  ;;  %v6702_v56 = vld [vmem:[#allocation11 + $0x494] ss:$8 sps:$4 sm:$0xff]  }
 0x31f   :  { %1704 = vmatprep.subr.bf16.mxu0 %v6651_v57  ;;  %v6700_v57 = vld [vmem:[#allocation11 + $0x490] ss:$8 sps:$4 sm:$0xff]  }
 0x322   :  { %1705 = vmatpush2.bf16.msra.mxu0 %v6649_v58  ;;  %v6705_v58 = vld [vmem:[#allocation11 + $0x484] ss:$8 sps:$4 sm:$0xff]  }
 0x323   :  { %1706 = vmatprep.subr.bf16.mxu0 %v6654_v11  ;;  %v6726_v11 = vld [vmem:[#allocation11 + $0x514] ss:$8 sps:$4 sm:$0xff]  }
 0x326   :  { %1707 = vmatpush2.bf16.msra.mxu0 %v6652_v12  ;;  %v6724_v12 = vld [vmem:[#allocation11 + $0x510] ss:$8 sps:$4 sm:$0xff]  }
 0x327   :  { %1708 = vmatprep.subr.bf16.mxu0 %v6657_v13  ;;  %v6729_v13 = vld [vmem:[#allocation11 + $0x504] ss:$8 sps:$4 sm:$0xff]  }
 0x32a   :  { %1709 = vmatpush2.bf16.msra.mxu0 %v6655_v14  ;;  %v6727_v14 = vld [vmem:[#allocation11 + $0x500] ss:$8 sps:$4 sm:$0xff]  }
 0x3ad   :  { %v1210_v1 = vpop.f32.mrf.mxu0 }
 0x3ae   :  { %v1211_v2 = vadd.f32 %v1210_v1, %v1009_v62  ;;  %v6706_v62 = vld [vmem:[#allocation11 + $0x570] ss:$8 sps:$4 sm:$0xff]   ;;  %v6711_v1 = vld [vmem:[#allocation11 + $0x564] ss:$8 sps:$4 sm:$0xff]  }
 0x3af   :  { %v1212_v3 = vpop.f32.mrf.mxu0 }
 0x3b0   :  { %v1213_v4 = vadd.f32 %v1212_v3, %v1013_v63  ;;  %v1217_v5 = vmax.f32 %v1211_v2, 0.0  ;;  %v6708_v63 = vld [vmem:[#allocation11 + $0x574] ss:$8 sps:$4 sm:$0xff]   ;;  %v6709_v2 = vld [vmem:[#allocation11 + $0x560] ss:$8 sps:$4 sm:$0xff]  }
 0x3b1   :  { %v1214_v6 = vpop.f32.mrf.mxu0  ;;  %2180 = vmatprep.subr.bf16.mxu0 %v6708_v63  ;;  %v6714_v3 = vld [vmem:[#allocation11 + $0x554] ss:$8 sps:$4 sm:$0xff]   ;;  %v6778_v63 = vld [vmem:[#allocation11 + $0x6f0] ss:$8 sps:$4 sm:$0xff]  }
 0x3b2   :  { %v1218_v7 = vmax.f32 %v1213_v4, 0.0  ;;  %v1254_v10 = vpack.c.bf16 %v1217_v5, %v1217_v5  ;;  %v6712_v4 = vld [vmem:[#allocation11 + $0x550] ss:$8 sps:$4 sm:$0xff]   ;;  %v6717_v5 = vld [vmem:[#allocation11 + $0x544] ss:$8 sps:$4 sm:$0xff]  }
 0x3b3   :  { %v1215_v8 = vpop.f32.mrf.mxu0  ;;  %v6715_v6 = vld [vmem:[#allocation11 + $0x540] ss:$8 sps:$4 sm:$0xff]  }
 0x3b4   :  { %v1255_v9 = vpack.c.bf16 %v1218_v7, %v1218_v7  ;;  %v6720_v7 = vld [vmem:[#allocation11 + $0x534] ss:$8 sps:$4 sm:$0xff]   ;;  %v6718_v8 = vld [vmem:[#allocation11 + $0x530] ss:$8 sps:$4 sm:$0xff]  }
 0x3b6   :  { %1459 = vmatprep.mubr.bf16.mxu1 %v1255_v9  ;;  %v6723_v9 = vld [vmem:[#allocation11 + $0x524] ss:$8 sps:$4 sm:$0xff]  }
 0x3b7   :  { %1460 = vmatmul.mubr.bf16.vlgmr.msra.gmra.mxu1 %v1254_v10  ;;  %v6721_v10 = vld [vmem:[#allocation11 + $0x520] ss:$8 sps:$4 sm:$0xff]  }
 0x3b8   :  { %1930 = vmatpush1.bf16.msra.mxu1 %v6658_v15  ;;  %v6732_v15 = vld [vmem:[#allocation11 + $0x5f4] ss:$8 sps:$4 sm:$0xff]  }
 0x3b9   :  { %1931 = vmatprep.subr.bf16.mxu1 %v6663_v17  ;;  %v6735_v17 = vld [vmem:[#allocation11 + $0x5e4] ss:$8 sps:$4 sm:$0xff]  }
 0x3bc   :  { %1932 = vmatpush1.bf16.msra.mxu1 %v6661_v18  ;;  %v6733_v18 = vld [vmem:[#allocation11 + $0x5e0] ss:$8 sps:$4 sm:$0xff]  }
 0x3bd   :  { %1933 = vmatprep.subr.bf16.mxu1 %v6666_v19  ;;  %v6738_v19 = vld [vmem:[#allocation11 + $0x5d4] ss:$8 sps:$4 sm:$0xff]  }
 0x3c0   :  { %1934 = vmatpush1.bf16.msra.mxu1 %v6664_v20  ;;  %v6736_v20 = vld [vmem:[#allocation11 + $0x5d0] ss:$8 sps:$4 sm:$0xff]  }
 0x3c1   :  { %1935 = vmatprep.subr.bf16.mxu1 %v6669_v21  ;;  %v6741_v21 = vld [vmem:[#allocation11 + $0x5c4] ss:$8 sps:$4 sm:$0xff]  }
 0x3c4   :  { %1936 = vmatpush1.bf16.msra.mxu1 %v6667_v22  ;;  %v6739_v22 = vld [vmem:[#allocation11 + $0x5c0] ss:$8 sps:$4 sm:$0xff]  }
 0x3c5   :  { %1937 = vmatprep.subr.bf16.mxu1 %v6672_v23  ;;  %v6744_v23 = vld [vmem:[#allocation11 + $0x5b4] ss:$8 sps:$4 sm:$0xff]  }
 0x3c8   :  { %1938 = vmatpush1.bf16.msra.mxu1 %v6670_v24  ;;  %v6742_v24 = vld [vmem:[#allocation11 + $0x5b0] ss:$8 sps:$4 sm:$0xff]  }
 0x3c9   :  { %1939 = vmatprep.subr.bf16.mxu1 %v6675_v25  ;;  %v6747_v25 = vld [vmem:[#allocation11 + $0x5a4] ss:$8 sps:$4 sm:$0xff]  }
 0x3cc   :  { %1940 = vmatpush1.bf16.msra.mxu1 %v6673_v26  ;;  %v6745_v26 = vld [vmem:[#allocation11 + $0x5a0] ss:$8 sps:$4 sm:$0xff]  }
 0x3cd   :  { %1941 = vmatprep.subr.bf16.mxu1 %v6678_v27  ;;  %v1504_v27 = vld [vmem:[#allocation13 + $0x6] sm:$0x3] }
 0x3d0   :  { %1942 = vmatpush1.bf16.msra.mxu1 %v6676_v28  ;;  %v1511_v28 = vrot.slane %v1504_v27, %v7878_v60 }
 0x3d1   :  { %1943 = vmatprep.subr.bf16.mxu1 %v6681_v29  ;;  %v1515_v29 = vrot.slane %v1504_v27, %v7880_v61  ;;  %v6799_v27 = vld [vmem:[#allocation11 + $0x680] ss:$8 sps:$4 sm:$0xff]  }
 0x3d4   :  { %1944 = vmatpush1.bf16.msra.mxu1 %v6679_v30 }
 0x3d5   :  { %1945 = vmatprep.subr.bf16.mxu1 %v6684_v31 }
 0x3d8   :  { %1946 = vmatpush2.bf16.msra.mxu1 %v6682_v32 }
 0x3d9   :  { %1947 = vmatprep.subr.bf16.mxu1 %v6687_v33 }
 0x3dc   :  { %1948 = vmatpush2.bf16.msra.mxu1 %v6685_v34 }
 0x3dd   :  { %1949 = vmatprep.subr.bf16.mxu1 %v6690_v35 }
 0x3e0   :  { %1950 = vmatpush2.bf16.msra.mxu1 %v6688_v36 }
 0x3e1   :  { %1951 = vmatprep.subr.bf16.mxu1 %v6693_v37 }
 0x3e4   :  { %1952 = vmatpush2.bf16.msra.mxu1 %v6691_v38 }
 0x3e5   :  { %1953 = vmatprep.subr.bf16.mxu1 %v6696_v39 }
 0x3e8   :  { %1954 = vmatpush2.bf16.msra.mxu1 %v6694_v40  ;;  %v6750_v40 = vld [vmem:[#allocation11 + $0x594] ss:$8 sps:$4 sm:$0xff]  }
 0x3e9   :  { %1955 = vmatprep.subr.bf16.mxu1 %v6699_v41  ;;  %v6748_v41 = vld [vmem:[#allocation11 + $0x590] ss:$8 sps:$4 sm:$0xff]  }
 0x3ec   :  { %1956 = vmatpush2.bf16.msra.mxu1 %v6697_v42  ;;  %v6753_v42 = vld [vmem:[#allocation11 + $0x584] ss:$8 sps:$4 sm:$0xff]  }
 0x3ed   :  { %1957 = vmatprep.subr.bf16.mxu1 %v6702_v56  ;;  %v6774_v56 = vld [vmem:[#allocation11 + $0x614] ss:$8 sps:$4 sm:$0xff]  }
 0x3f0   :  { %1958 = vmatpush2.bf16.msra.mxu1 %v6700_v57  ;;  %v6772_v57 = vld [vmem:[#allocation11 + $0x610] ss:$8 sps:$4 sm:$0xff]  }
 0x3f1   :  { %1959 = vmatprep.subr.bf16.mxu1 %v6705_v58  ;;  %v6777_v58 = vld [vmem:[#allocation11 + $0x604] ss:$8 sps:$4 sm:$0xff]  }
 0x3f4   :  { %1960 = vmatpush2.bf16.msra.mxu1 %v6703_v59  ;;  %v6775_v59 = vld [vmem:[#allocation11 + $0x600] ss:$8 sps:$4 sm:$0xff]  }
 0x477   :  { %v1461_v46 = vpop.f32.mrf.mxu1 }
 0x478   :  { %v1462_v47 = vadd.f32 %v1461_v46, %v1260_v44  ;;  %v6754_v44 = vld [vmem:[#allocation11 + $0x670] ss:$8 sps:$4 sm:$0xff]   ;;  %v6759_v46 = vld [vmem:[#allocation11 + $0x664] ss:$8 sps:$4 sm:$0xff]  }
 0x479   :  { %v1463_v48 = vpop.f32.mrf.mxu1 }
 0x47a   :  { %v1464_v49 = vadd.f32 %v1463_v48, %v1264_v45  ;;  %v1468_v50 = vmax.f32 %v1462_v47, 0.0  ;;  %v6756_v45 = vld [vmem:[#allocation11 + $0x674] ss:$8 sps:$4 sm:$0xff]   ;;  %v6757_v47 = vld [vmem:[#allocation11 + $0x660] ss:$8 sps:$4 sm:$0xff]  }
 0x47b   :  { %v1465_v51 = vpop.f32.mrf.mxu1  ;;  %2431 = vmatprep.subr.bf16.mxu1 %v6756_v45  ;;  %v6762_v48 = vld [vmem:[#allocation11 + $0x654] ss:$8 sps:$4 sm:$0xff]   ;;  %v6826_v45 = vld [vmem:[#allocation11 + $0x7f0] ss:$8 sps:$4 sm:$0xff]  }
 0x47c   :  { %v1469_v52 = vmax.f32 %v1464_v49, 0.0  ;;  %v1505_v55 = vpack.c.bf16 %v1468_v50, %v1468_v50  ;;  %v6760_v49 = vld [vmem:[#allocation11 + $0x650] ss:$8 sps:$4 sm:$0xff]   ;;  %v6765_v50 = vld [vmem:[#allocation11 + $0x644] ss:$8 sps:$4 sm:$0xff]  }
 0x47d   :  { %v1466_v53 = vpop.f32.mrf.mxu1  ;;  %v6763_v51 = vld [vmem:[#allocation11 + $0x640] ss:$8 sps:$4 sm:$0xff]  }
 0x47e   :  { %v1506_v54 = vpack.c.bf16 %v1469_v52, %v1469_v52  ;;  %v6768_v52 = vld [vmem:[#allocation11 + $0x634] ss:$8 sps:$4 sm:$0xff]   ;;  %v6766_v53 = vld [vmem:[#allocation11 + $0x630] ss:$8 sps:$4 sm:$0xff]  }
 0x480   :  { %1710 = vmatprep.mubr.bf16.mxu0 %v1506_v54  ;;  %v6771_v54 = vld [vmem:[#allocation11 + $0x624] ss:$8 sps:$4 sm:$0xff]  }
 0x481   :  { %1711 = vmatmul.mubr.bf16.vlgmr.msra.gmra.mxu0 %v1505_v55  ;;  %v6769_v55 = vld [vmem:[#allocation11 + $0x620] ss:$8 sps:$4 sm:$0xff]  }
 0x482   :  { %2181 = vmatpush1.bf16.msra.mxu0 %v6706_v62  ;;  %v6780_v62 = vld [vmem:[#allocation11 + $0x6f4] ss:$8 sps:$4 sm:$0xff]  }
 0x483   :  { %2182 = vmatprep.subr.bf16.mxu0 %v6711_v1  ;;  %v6783_v1 = vld [vmem:[#allocation11 + $0x6e4] ss:$8 sps:$4 sm:$0xff]  }
 0x486   :  { %2183 = vmatpush1.bf16.msra.mxu0 %v6709_v2  ;;  %v6781_v2 = vld [vmem:[#allocation11 + $0x6e0] ss:$8 sps:$4 sm:$0xff]  }
 0x487   :  { %2184 = vmatprep.subr.bf16.mxu0 %v6714_v3  ;;  %v6786_v3 = vld [vmem:[#allocation11 + $0x6d4] ss:$8 sps:$4 sm:$0xff]  }
 0x48a   :  { %2185 = vmatpush1.bf16.msra.mxu0 %v6712_v4  ;;  %v6784_v4 = vld [vmem:[#allocation11 + $0x6d0] ss:$8 sps:$4 sm:$0xff]  }
 0x48b   :  { %2186 = vmatprep.subr.bf16.mxu0 %v6717_v5  ;;  %v6789_v5 = vld [vmem:[#allocation11 + $0x6c4] ss:$8 sps:$4 sm:$0xff]  }
 0x48e   :  { %2187 = vmatpush1.bf16.msra.mxu0 %v6715_v6  ;;  %v6787_v6 = vld [vmem:[#allocation11 + $0x6c0] ss:$8 sps:$4 sm:$0xff]  }
 0x48f   :  { %2188 = vmatprep.subr.bf16.mxu0 %v6720_v7  ;;  %v6792_v7 = vld [vmem:[#allocation11 + $0x6b4] ss:$8 sps:$4 sm:$0xff]  }
 0x492   :  { %2189 = vmatpush1.bf16.msra.mxu0 %v6718_v8  ;;  %v6790_v8 = vld [vmem:[#allocation11 + $0x6b0] ss:$8 sps:$4 sm:$0xff]  }
 0x493   :  { %2190 = vmatprep.subr.bf16.mxu0 %v6723_v9  ;;  %v6795_v9 = vld [vmem:[#allocation11 + $0x6a4] ss:$8 sps:$4 sm:$0xff]  }
 0x496   :  { %2191 = vmatpush1.bf16.msra.mxu0 %v6721_v10  ;;  %v6793_v10 = vld [vmem:[#allocation11 + $0x6a0] ss:$8 sps:$4 sm:$0xff]  }
 0x497   :  { %2192 = vmatprep.subr.bf16.mxu0 %v6726_v11  ;;  %v1755_v11 = vld [vmem:[#allocation13 + $0x8] sm:$0x3] }
 0x49a   :  { %2193 = vmatpush1.bf16.msra.mxu0 %v6724_v12  ;;  %v1762_v12 = vrot.slane %v1755_v11, %v7878_v60 }
 0x49b   :  { %2194 = vmatprep.subr.bf16.mxu0 %v6729_v13  ;;  %v1766_v13 = vrot.slane %v1755_v11, %v7880_v61  ;;  %v6847_v11 = vld [vmem:[#allocation11 + $0x780] ss:$8 sps:$4 sm:$0xff]  }
 0x49e   :  { %2195 = vmatpush1.bf16.msra.mxu0 %v6727_v14 }
 0x49f   :  { %2196 = vmatprep.subr.bf16.mxu0 %v6732_v15 }
 0x4a2   :  { %2197 = vmatpush2.bf16.msra.mxu0 %v6730_v16 }
 0x4a3   :  { %2198 = vmatprep.subr.bf16.mxu0 %v6735_v17 }
 0x4a6   :  { %2199 = vmatpush2.bf16.msra.mxu0 %v6733_v18 }
 0x4a7   :  { %2200 = vmatprep.subr.bf16.mxu0 %v6738_v19 }
 0x4aa   :  { %2201 = vmatpush2.bf16.msra.mxu0 %v6736_v20 }
 0x4ab   :  { %2202 = vmatprep.subr.bf16.mxu0 %v6741_v21 }
 0x4ae   :  { %2203 = vmatpush2.bf16.msra.mxu0 %v6739_v22 }
 0x4af   :  { %2204 = vmatprep.subr.bf16.mxu0 %v6744_v23 }
 0x4b2   :  { %2205 = vmatpush2.bf16.msra.mxu0 %v6742_v24  ;;  %v6798_v24 = vld [vmem:[#allocation11 + $0x694] ss:$8 sps:$4 sm:$0xff]  }
 0x4b3   :  { %2206 = vmatprep.subr.bf16.mxu0 %v6747_v25  ;;  %v6796_v25 = vld [vmem:[#allocation11 + $0x690] ss:$8 sps:$4 sm:$0xff]  }
 0x4b6   :  { %2207 = vmatpush2.bf16.msra.mxu0 %v6745_v26  ;;  %v6801_v26 = vld [vmem:[#allocation11 + $0x684] ss:$8 sps:$4 sm:$0xff]  }
 0x4b7   :  { %2208 = vmatprep.subr.bf16.mxu0 %v6750_v40  ;;  %v6822_v40 = vld [vmem:[#allocation11 + $0x714] ss:$8 sps:$4 sm:$0xff]  }
 0x4ba   :  { %2209 = vmatpush2.bf16.msra.mxu0 %v6748_v41  ;;  %v6820_v41 = vld [vmem:[#allocation11 + $0x710] ss:$8 sps:$4 sm:$0xff]  }
 0x4bb   :  { %2210 = vmatprep.subr.bf16.mxu0 %v6753_v42  ;;  %v6825_v42 = vld [vmem:[#allocation11 + $0x704] ss:$8 sps:$4 sm:$0xff]  }
 0x4be   :  { %2211 = vmatpush2.bf16.msra.mxu0 %v6751_v43  ;;  %v6823_v43 = vld [vmem:[#allocation11 + $0x700] ss:$8 sps:$4 sm:$0xff]  }
 0x541   :  { %v1712_v30 = vpop.f32.mrf.mxu0 }
 0x542   :  { %v1713_v31 = vadd.f32 %v1712_v30, %v1511_v28  ;;  %v6802_v28 = vld [vmem:[#allocation11 + $0x770] ss:$8 sps:$4 sm:$0xff]   ;;  %v6807_v30 = vld [vmem:[#allocation11 + $0x764] ss:$8 sps:$4 sm:$0xff]  }
 0x543   :  { %v1714_v32 = vpop.f32.mrf.mxu0 }
 0x544   :  { %v1715_v33 = vadd.f32 %v1714_v32, %v1515_v29  ;;  %v1719_v34 = vmax.f32 %v1713_v31, 0.0  ;;  %v6804_v29 = vld [vmem:[#allocation11 + $0x774] ss:$8 sps:$4 sm:$0xff]   ;;  %v6805_v31 = vld [vmem:[#allocation11 + $0x760] ss:$8 sps:$4 sm:$0xff]  }
 0x545   :  { %v1716_v35 = vpop.f32.mrf.mxu0  ;;  %2682 = vmatprep.subr.bf16.mxu0 %v6804_v29  ;;  %v6810_v32 = vld [vmem:[#allocation11 + $0x754] ss:$8 sps:$4 sm:$0xff]   ;;  %v6874_v29 = vld [vmem:[#allocation11 + $0x8f0] ss:$8 sps:$4 sm:$0xff]  }
 0x546   :  { %v1720_v36 = vmax.f32 %v1715_v33, 0.0  ;;  %v1756_v39 = vpack.c.bf16 %v1719_v34, %v1719_v34  ;;  %v6808_v33 = vld [vmem:[#allocation11 + $0x750] ss:$8 sps:$4 sm:$0xff]   ;;  %v6813_v34 = vld [vmem:[#allocation11 + $0x744] ss:$8 sps:$4 sm:$0xff]  }
 0x547   :  { %v1717_v37 = vpop.f32.mrf.mxu0  ;;  %v6811_v35 = vld [vmem:[#allocation11 + $0x740] ss:$8 sps:$4 sm:$0xff]  }
 0x548   :  { %v1757_v38 = vpack.c.bf16 %v1720_v36, %v1720_v36  ;;  %v6816_v36 = vld [vmem:[#allocation11 + $0x734] ss:$8 sps:$4 sm:$0xff]   ;;  %v6814_v37 = vld [vmem:[#allocation11 + $0x730] ss:$8 sps:$4 sm:$0xff]  }
 0x54a   :  { %1961 = vmatprep.mubr.bf16.mxu1 %v1757_v38  ;;  %v6819_v38 = vld [vmem:[#allocation11 + $0x724] ss:$8 sps:$4 sm:$0xff]  }
 0x54b   :  { %1962 = vmatmul.mubr.bf16.vlgmr.msra.gmra.mxu1 %v1756_v39  ;;  %v6817_v39 = vld [vmem:[#allocation11 + $0x720] ss:$8 sps:$4 sm:$0xff]  }
 0x54c   :  { %2432 = vmatpush1.bf16.msra.mxu1 %v6754_v44  ;;  %v6828_v44 = vld [vmem:[#allocation11 + $0x7f4] ss:$8 sps:$4 sm:$0xff]  }
 0x54d   :  { %2433 = vmatprep.subr.bf16.mxu1 %v6759_v46  ;;  %v6831_v46 = vld [vmem:[#allocation11 + $0x7e4] ss:$8 sps:$4 sm:$0xff]  }
 0x550   :  { %2434 = vmatpush1.bf16.msra.mxu1 %v6757_v47  ;;  %v6829_v47 = vld [vmem:[#allocation11 + $0x7e0] ss:$8 sps:$4 sm:$0xff]  }
 0x551   :  { %2435 = vmatprep.subr.bf16.mxu1 %v6762_v48  ;;  %v6834_v48 = vld [vmem:[#allocation11 + $0x7d4] ss:$8 sps:$4 sm:$0xff]  }
 0x554   :  { %2436 = vmatpush1.bf16.msra.mxu1 %v6760_v49  ;;  %v6832_v49 = vld [vmem:[#allocation11 + $0x7d0] ss:$8 sps:$4 sm:$0xff]  }
 0x555   :  { %2437 = vmatprep.subr.bf16.mxu1 %v6765_v50  ;;  %v6837_v50 = vld [vmem:[#allocation11 + $0x7c4] ss:$8 sps:$4 sm:$0xff]  }
 0x558   :  { %2438 = vmatpush1.bf16.msra.mxu1 %v6763_v51  ;;  %v6835_v51 = vld [vmem:[#allocation11 + $0x7c0] ss:$8 sps:$4 sm:$0xff]  }
 0x559   :  { %2439 = vmatprep.subr.bf16.mxu1 %v6768_v52  ;;  %v6840_v52 = vld [vmem:[#allocation11 + $0x7b4] ss:$8 sps:$4 sm:$0xff]  }
 0x55c   :  { %2440 = vmatpush1.bf16.msra.mxu1 %v6766_v53  ;;  %v6838_v53 = vld [vmem:[#allocation11 + $0x7b0] ss:$8 sps:$4 sm:$0xff]  }
 0x55d   :  { %2441 = vmatprep.subr.bf16.mxu1 %v6771_v54  ;;  %v6843_v54 = vld [vmem:[#allocation11 + $0x7a4] ss:$8 sps:$4 sm:$0xff]  }
 0x560   :  { %2442 = vmatpush1.bf16.msra.mxu1 %v6769_v55  ;;  %v6841_v55 = vld [vmem:[#allocation11 + $0x7a0] ss:$8 sps:$4 sm:$0xff]  }
 0x561   :  { %2443 = vmatprep.subr.bf16.mxu1 %v6774_v56  ;;  %v2006_v56 = vld [vmem:[#allocation13 + $0xa] sm:$0x3] }
 0x564   :  { %2444 = vmatpush1.bf16.msra.mxu1 %v6772_v57  ;;  %v2013_v57 = vrot.slane %v2006_v56, %v7878_v60 }
 0x565   :  { %2445 = vmatprep.subr.bf16.mxu1 %v6777_v58  ;;  %v2017_v58 = vrot.slane %v2006_v56, %v7880_v61  ;;  %v6895_v56 = vld [vmem:[#allocation11 + $0x880] ss:$8 sps:$4 sm:$0xff]  }
 0x568   :  { %2446 = vmatpush1.bf16.msra.mxu1 %v6775_v59 }
 0x569   :  { %2447 = vmatprep.subr.bf16.mxu1 %v6780_v62 }
 0x56c   :  { %2448 = vmatpush2.bf16.msra.mxu1 %v6778_v63 }
 0x56d   :  { %2449 = vmatprep.subr.bf16.mxu1 %v6783_v1 }
 0x570   :  { %2450 = vmatpush2.bf16.msra.mxu1 %v6781_v2 }
 0x571   :  { %2451 = vmatprep.subr.bf16.mxu1 %v6786_v3 }
 0x574   :  { %2452 = vmatpush2.bf16.msra.mxu1 %v6784_v4 }
 0x575   :  { %2453 = vmatprep.subr.bf16.mxu1 %v6789_v5 }
 0x578   :  { %2454 = vmatpush2.bf16.msra.mxu1 %v6787_v6 }
 0x579   :  { %2455 = vmatprep.subr.bf16.mxu1 %v6792_v7 }
 0x57c   :  { %2456 = vmatpush2.bf16.msra.mxu1 %v6790_v8  ;;  %v6846_v8 = vld [vmem:[#allocation11 + $0x794] ss:$8 sps:$4 sm:$0xff]  }
 0x57d   :  { %2457 = vmatprep.subr.bf16.mxu1 %v6795_v9  ;;  %v6844_v9 = vld [vmem:[#allocation11 + $0x790] ss:$8 sps:$4 sm:$0xff]  }
 0x580   :  { %2458 = vmatpush2.bf16.msra.mxu1 %v6793_v10  ;;  %v6849_v10 = vld [vmem:[#allocation11 + $0x784] ss:$8 sps:$4 sm:$0xff]  }
 0x581   :  { %2459 = vmatprep.subr.bf16.mxu1 %v6798_v24  ;;  %v6870_v24 = vld [vmem:[#allocation11 + $0x814] ss:$8 sps:$4 sm:$0xff]  }
 0x584   :  { %2460 = vmatpush2.bf16.msra.mxu1 %v6796_v25  ;;  %v6868_v25 = vld [vmem:[#allocation11 + $0x810] ss:$8 sps:$4 sm:$0xff]  }
 0x585   :  { %2461 = vmatprep.subr.bf16.mxu1 %v6801_v26  ;;  %v6873_v26 = vld [vmem:[#allocation11 + $0x804] ss:$8 sps:$4 sm:$0xff]  }
 0x588   :  { %2462 = vmatpush2.bf16.msra.mxu1 %v6799_v27  ;;  %v6871_v27 = vld [vmem:[#allocation11 + $0x800] ss:$8 sps:$4 sm:$0xff]  }
 0x60b   :  { %v1963_v14 = vpop.f32.mrf.mxu1 }
 0x60c   :  { %v1964_v15 = vadd.f32 %v1963_v14, %v1762_v12  ;;  %v6850_v12 = vld [vmem:[#allocation11 + $0x870] ss:$8 sps:$4 sm:$0xff]   ;;  %v6855_v14 = vld [vmem:[#allocation11 + $0x864] ss:$8 sps:$4 sm:$0xff]  }
 0x60d   :  { %v1965_v16 = vpop.f32.mrf.mxu1 }
 0x60e   :  { %v1966_v17 = vadd.f32 %v1965_v16, %v1766_v13  ;;  %v1970_v18 = vmax.f32 %v1964_v15, 0.0  ;;  %v6852_v13 = vld [vmem:[#allocation11 + $0x874] ss:$8 sps:$4 sm:$0xff]   ;;  %v6853_v15 = vld [vmem:[#allocation11 + $0x860] ss:$8 sps:$4 sm:$0xff]  }
 0x60f   :  { %v1967_v19 = vpop.f32.mrf.mxu1  ;;  %2933 = vmatprep.subr.bf16.mxu1 %v6852_v13  ;;  %v6858_v16 = vld [vmem:[#allocation11 + $0x854] ss:$8 sps:$4 sm:$0xff]   ;;  %v6922_v13 = vld [vmem:[#allocation11 + $0x9f0] ss:$8 sps:$4 sm:$0xff]  }
 0x610   :  { %v1971_v20 = vmax.f32 %v1966_v17, 0.0  ;;  %v2007_v23 = vpack.c.bf16 %v1970_v18, %v1970_v18  ;;  %v6856_v17 = vld [vmem:[#allocation11 + $0x850] ss:$8 sps:$4 sm:$0xff]   ;;  %v6861_v18 = vld [vmem:[#allocation11 + $0x844] ss:$8 sps:$4 sm:$0xff]  }
 0x611   :  { %v1968_v21 = vpop.f32.mrf.mxu1  ;;  %v6859_v19 = vld [vmem:[#allocation11 + $0x840] ss:$8 sps:$4 sm:$0xff]  }
 0x612   :  { %v2008_v22 = vpack.c.bf16 %v1971_v20, %v1971_v20  ;;  %v6864_v20 = vld [vmem:[#allocation11 + $0x834] ss:$8 sps:$4 sm:$0xff]   ;;  %v6862_v21 = vld [vmem:[#allocation11 + $0x830] ss:$8 sps:$4 sm:$0xff]  }
 0x614   :  { %2212 = vmatprep.mubr.bf16.mxu0 %v2008_v22  ;;  %v6867_v22 = vld [vmem:[#allocation11 + $0x824] ss:$8 sps:$4 sm:$0xff]  }
 0x615   :  { %2213 = vmatmul.mubr.bf16.vlgmr.msra.gmra.mxu0 %v2007_v23  ;;  %v6865_v23 = vld [vmem:[#allocation11 + $0x820] ss:$8 sps:$4 sm:$0xff]  }
 0x616   :  { %2683 = vmatpush1.bf16.msra.mxu0 %v6802_v28  ;;  %v6876_v28 = vld [vmem:[#allocation11 + $0x8f4] ss:$8 sps:$4 sm:$0xff]  }
 0x617   :  { %2684 = vmatprep.subr.bf16.mxu0 %v6807_v30  ;;  %v6879_v30 = vld [vmem:[#allocation11 + $0x8e4] ss:$8 sps:$4 sm:$0xff]  }
 0x61a   :  { %2685 = vmatpush1.bf16.msra.mxu0 %v6805_v31  ;;  %v6877_v31 = vld [vmem:[#allocation11 + $0x8e0] ss:$8 sps:$4 sm:$0xff]  }
 0x61b   :  { %2686 = vmatprep.subr.bf16.mxu0 %v6810_v32  ;;  %v6882_v32 = vld [vmem:[#allocation11 + $0x8d4] ss:$8 sps:$4 sm:$0xff]  }
 0x61e   :  { %2687 = vmatpush1.bf16.msra.mxu0 %v6808_v33  ;;  %v6880_v33 = vld [vmem:[#allocation11 + $0x8d0] ss:$8 sps:$4 sm:$0xff]  }
 0x61f   :  { %2688 = vmatprep.subr.bf16.mxu0 %v6813_v34  ;;  %v6885_v34 = vld [vmem:[#allocation11 + $0x8c4] ss:$8 sps:$4 sm:$0xff]  }
 0x622   :  { %2689 = vmatpush1.bf16.msra.mxu0 %v6811_v35  ;;  %v6883_v35 = vld [vmem:[#allocation11 + $0x8c0] ss:$8 sps:$4 sm:$0xff]  }
 0x623   :  { %2690 = vmatprep.subr.bf16.mxu0 %v6816_v36  ;;  %v6888_v36 = vld [vmem:[#allocation11 + $0x8b4] ss:$8 sps:$4 sm:$0xff]  }
 0x626   :  { %2691 = vmatpush1.bf16.msra.mxu0 %v6814_v37  ;;  %v6886_v37 = vld [vmem:[#allocation11 + $0x8b0] ss:$8 sps:$4 sm:$0xff]  }
 0x627   :  { %2692 = vmatprep.subr.bf16.mxu0 %v6819_v38  ;;  %v6891_v38 = vld [vmem:[#allocation11 + $0x8a4] ss:$8 sps:$4 sm:$0xff]  }
 0x62a   :  { %2693 = vmatpush1.bf16.msra.mxu0 %v6817_v39  ;;  %v6889_v39 = vld [vmem:[#allocation11 + $0x8a0] ss:$8 sps:$4 sm:$0xff]  }
 0x62b   :  { %2694 = vmatprep.subr.bf16.mxu0 %v6822_v40  ;;  %v2257_v40 = vld [vmem:[#allocation13 + $0xc] sm:$0x3] }
 0x62e   :  { %2695 = vmatpush1.bf16.msra.mxu0 %v6820_v41  ;;  %v2264_v41 = vrot.slane %v2257_v40, %v7878_v60 }
 0x62f   :  { %2696 = vmatprep.subr.bf16.mxu0 %v6825_v42  ;;  %v2268_v42 = vrot.slane %v2257_v40, %v7880_v61  ;;  %v6943_v40 = vld [vmem:[#allocation11 + $0x980] ss:$8 sps:$4 sm:$0xff]  }
 0x632   :  { %2697 = vmatpush1.bf16.msra.mxu0 %v6823_v43 }
 0x633   :  { %2698 = vmatprep.subr.bf16.mxu0 %v6828_v44 }
 0x636   :  { %2699 = vmatpush2.bf16.msra.mxu0 %v6826_v45 }
 0x637   :  { %2700 = vmatprep.subr.bf16.mxu0 %v6831_v46 }
 0x63a   :  { %2701 = vmatpush2.bf16.msra.mxu0 %v6829_v47 }
 0x63b   :  { %2702 = vmatprep.subr.bf16.mxu0 %v6834_v48 }
 0x63e   :  { %2703 = vmatpush2.bf16.msra.mxu0 %v6832_v49 }
 0x63f   :  { %2704 = vmatprep.subr.bf16.mxu0 %v6837_v50 }
 0x642   :  { %2705 = vmatpush2.bf16.msra.mxu0 %v6835_v51 }
 0x643   :  { %2706 = vmatprep.subr.bf16.mxu0 %v6840_v52 }
 0x646   :  { %2707 = vmatpush2.bf16.msra.mxu0 %v6838_v53  ;;  %v6894_v53 = vld [vmem:[#allocation11 + $0x894] ss:$8 sps:$4 sm:$0xff]  }
 0x647   :  { %2708 = vmatprep.subr.bf16.mxu0 %v6843_v54  ;;  %v6892_v54 = vld [vmem:[#allocation11 + $0x890] ss:$8 sps:$4 sm:$0xff]  }
 0x64a   :  { %2709 = vmatpush2.bf16.msra.mxu0 %v6841_v55  ;;  %v6897_v55 = vld [vmem:[#allocation11 + $0x884] ss:$8 sps:$4 sm:$0xff]  }
 0x64b   :  { %2710 = vmatprep.subr.bf16.mxu0 %v6846_v8  ;;  %v6918_v8 = vld [vmem:[#allocation11 + $0x914] ss:$8 sps:$4 sm:$0xff]  }
 0x64e   :  { %2711 = vmatpush2.bf16.msra.mxu0 %v6844_v9  ;;  %v6916_v9 = vld [vmem:[#allocation11 + $0x910] ss:$8 sps:$4 sm:$0xff]  }
 0x64f   :  { %2712 = vmatprep.subr.bf16.mxu0 %v6849_v10  ;;  %v6921_v10 = vld [vmem:[#allocation11 + $0x904] ss:$8 sps:$4 sm:$0xff]  }
 0x652   :  { %2713 = vmatpush2.bf16.msra.mxu0 %v6847_v11  ;;  %v6919_v11 = vld [vmem:[#allocation11 + $0x900] ss:$8 sps:$4 sm:$0xff]  }
 0x6d5   :  { %v2214_v59 = vpop.f32.mrf.mxu0 }
 0x6d6   :  { %v2215_v62 = vadd.f32 %v2214_v59, %v2013_v57  ;;  %v6898_v57 = vld [vmem:[#allocation11 + $0x970] ss:$8 sps:$4 sm:$0xff]   ;;  %v6903_v59 = vld [vmem:[#allocation11 + $0x964] ss:$8 sps:$4 sm:$0xff]  }
 0x6d7   :  { %v2216_v63 = vpop.f32.mrf.mxu0 }
 0x6d8   :  { %v2217_v1 = vadd.f32 %v2216_v63, %v2017_v58  ;;  %v2221_v2 = vmax.f32 %v2215_v62, 0.0  ;;  %v6900_v58 = vld [vmem:[#allocation11 + $0x974] ss:$8 sps:$4 sm:$0xff]   ;;  %v6901_v62 = vld [vmem:[#allocation11 + $0x960] ss:$8 sps:$4 sm:$0xff]  }
 0x6d9   :  { %v2218_v3 = vpop.f32.mrf.mxu0  ;;  %3184 = vmatprep.subr.bf16.mxu0 %v6900_v58  ;;  %v6906_v63 = vld [vmem:[#allocation11 + $0x954] ss:$8 sps:$4 sm:$0xff]   ;;  %v6970_v58 = vld [vmem:[#allocation11 + $0xaf0] ss:$8 sps:$4 sm:$0xff]  }
 0x6da   :  { %v2222_v4 = vmax.f32 %v2217_v1, 0.0  ;;  %v2258_v7 = vpack.c.bf16 %v2221_v2, %v2221_v2  ;;  %v6904_v1 = vld [vmem:[#allocation11 + $0x950] ss:$8 sps:$4 sm:$0xff]   ;;  %v6909_v2 = vld [vmem:[#allocation11 + $0x944] ss:$8 sps:$4 sm:$0xff]  }
 0x6db   :  { %v2219_v5 = vpop.f32.mrf.mxu0  ;;  %v6907_v3 = vld [vmem:[#allocation11 + $0x940] ss:$8 sps:$4 sm:$0xff]  }
 0x6dc   :  { %v2259_v6 = vpack.c.bf16 %v2222_v4, %v2222_v4  ;;  %v6912_v4 = vld [vmem:[#allocation11 + $0x934] ss:$8 sps:$4 sm:$0xff]   ;;  %v6910_v5 = vld [vmem:[#allocation11 + $0x930] ss:$8 sps:$4 sm:$0xff]  }
 0x6de   :  { %2463 = vmatprep.mubr.bf16.mxu1 %v2259_v6  ;;  %v6915_v6 = vld [vmem:[#allocation11 + $0x924] ss:$8 sps:$4 sm:$0xff]  }
 0x6df   :  { %2464 = vmatmul.mubr.bf16.vlgmr.msra.gmra.mxu1 %v2258_v7  ;;  %v6913_v7 = vld [vmem:[#allocation11 + $0x920] ss:$8 sps:$4 sm:$0xff]  }
 0x6e0   :  { %2934 = vmatpush1.bf16.msra.mxu1 %v6850_v12  ;;  %v6924_v12 = vld [vmem:[#allocation11 + $0x9f4] ss:$8 sps:$4 sm:$0xff]  }
 0x6e1   :  { %2935 = vmatprep.subr.bf16.mxu1 %v6855_v14  ;;  %v6927_v14 = vld [vmem:[#allocation11 + $0x9e4] ss:$8 sps:$4 sm:$0xff]  }
 0x6e4   :  { %2936 = vmatpush1.bf16.msra.mxu1 %v6853_v15  ;;  %v6925_v15 = vld [vmem:[#allocation11 + $0x9e0] ss:$8 sps:$4 sm:$0xff]  }
 0x6e5   :  { %2937 = vmatprep.subr.bf16.mxu1 %v6858_v16  ;;  %v6930_v16 = vld [vmem:[#allocation11 + $0x9d4] ss:$8 sps:$4 sm:$0xff]  }
 0x6e8   :  { %2938 = vmatpush1.bf16.msra.mxu1 %v6856_v17  ;;  %v6928_v17 = vld [vmem:[#allocation11 + $0x9d0] ss:$8 sps:$4 sm:$0xff]  }
 0x6e9   :  { %2939 = vmatprep.subr.bf16.mxu1 %v6861_v18  ;;  %v6933_v18 = vld [vmem:[#allocation11 + $0x9c4] ss:$8 sps:$4 sm:$0xff]  }
 0x6ec   :  { %2940 = vmatpush1.bf16.msra.mxu1 %v6859_v19  ;;  %v6931_v19 = vld [vmem:[#allocation11 + $0x9c0] ss:$8 sps:$4 sm:$0xff]  }
 0x6ed   :  { %2941 = vmatprep.subr.bf16.mxu1 %v6864_v20  ;;  %v6936_v20 = vld [vmem:[#allocation11 + $0x9b4] ss:$8 sps:$4 sm:$0xff]  }
 0x6f0   :  { %2942 = vmatpush1.bf16.msra.mxu1 %v6862_v21  ;;  %v6934_v21 = vld [vmem:[#allocation11 + $0x9b0] ss:$8 sps:$4 sm:$0xff]  }
 0x6f1   :  { %2943 = vmatprep.subr.bf16.mxu1 %v6867_v22  ;;  %v6939_v22 = vld [vmem:[#allocation11 + $0x9a4] ss:$8 sps:$4 sm:$0xff]  }
 0x6f4   :  { %2944 = vmatpush1.bf16.msra.mxu1 %v6865_v23  ;;  %v6937_v23 = vld [vmem:[#allocation11 + $0x9a0] ss:$8 sps:$4 sm:$0xff]  }
 0x6f5   :  { %2945 = vmatprep.subr.bf16.mxu1 %v6870_v24  ;;  %v2508_v24 = vld [vmem:[#allocation13 + $0xe] sm:$0x3] }
 0x6f8   :  { %2946 = vmatpush1.bf16.msra.mxu1 %v6868_v25  ;;  %v2515_v25 = vrot.slane %v2508_v24, %v7878_v60 }
 0x6f9   :  { %2947 = vmatprep.subr.bf16.mxu1 %v6873_v26  ;;  %v2519_v26 = vrot.slane %v2508_v24, %v7880_v61  ;;  %v6991_v24 = vld [vmem:[#allocation11 + $0xa80] ss:$8 sps:$4 sm:$0xff]  }
 0x6fc   :  { %2948 = vmatpush1.bf16.msra.mxu1 %v6871_v27 }
 0x6fd   :  { %2949 = vmatprep.subr.bf16.mxu1 %v6876_v28 }
 0x700   :  { %2950 = vmatpush2.bf16.msra.mxu1 %v6874_v29 }
 0x701   :  { %2951 = vmatprep.subr.bf16.mxu1 %v6879_v30 }
 0x704   :  { %2952 = vmatpush2.bf16.msra.mxu1 %v6877_v31 }
 0x705   :  { %2953 = vmatprep.subr.bf16.mxu1 %v6882_v32 }
 0x708   :  { %2954 = vmatpush2.bf16.msra.mxu1 %v6880_v33 }
 0x709   :  { %2955 = vmatprep.subr.bf16.mxu1 %v6885_v34 }
 0x70c   :  { %2956 = vmatpush2.bf16.msra.mxu1 %v6883_v35 }
 0x70d   :  { %2957 = vmatprep.subr.bf16.mxu1 %v6888_v36 }
 0x710   :  { %2958 = vmatpush2.bf16.msra.mxu1 %v6886_v37  ;;  %v6942_v37 = vld [vmem:[#allocation11 + $0x994] ss:$8 sps:$4 sm:$0xff]  }
 0x711   :  { %2959 = vmatprep.subr.bf16.mxu1 %v6891_v38  ;;  %v6940_v38 = vld [vmem:[#allocation11 + $0x990] ss:$8 sps:$4 sm:$0xff]  }
 0x714   :  { %2960 = vmatpush2.bf16.msra.mxu1 %v6889_v39  ;;  %v6945_v39 = vld [vmem:[#allocation11 + $0x984] ss:$8 sps:$4 sm:$0xff]  }
 0x715   :  { %2961 = vmatprep.subr.bf16.mxu1 %v6894_v53  ;;  %v6966_v53 = vld [vmem:[#allocation11 + $0xa14] ss:$8 sps:$4 sm:$0xff]  }
 0x718   :  { %2962 = vmatpush2.bf16.msra.mxu1 %v6892_v54  ;;  %v6964_v54 = vld [vmem:[#allocation11 + $0xa10] ss:$8 sps:$4 sm:$0xff]  }
 0x719   :  { %2963 = vmatprep.subr.bf16.mxu1 %v6897_v55  ;;  %v6969_v55 = vld [vmem:[#allocation11 + $0xa04] ss:$8 sps:$4 sm:$0xff]  }
 0x71c   :  { %2964 = vmatpush2.bf16.msra.mxu1 %v6895_v56  ;;  %v6967_v56 = vld [vmem:[#allocation11 + $0xa00] ss:$8 sps:$4 sm:$0xff]  }
 0x79f   :  { %v2465_v43 = vpop.f32.mrf.mxu1 }
 0x7a0   :  { %v2466_v44 = vadd.f32 %v2465_v43, %v2264_v41  ;;  %v6946_v41 = vld [vmem:[#allocation11 + $0xa70] ss:$8 sps:$4 sm:$0xff]   ;;  %v6951_v43 = vld [vmem:[#allocation11 + $0xa64] ss:$8 sps:$4 sm:$0xff]  }
 0x7a1   :  { %v2467_v45 = vpop.f32.mrf.mxu1 }
 0x7a2   :  { %v2468_v46 = vadd.f32 %v2467_v45, %v2268_v42  ;;  %v2472_v47 = vmax.f32 %v2466_v44, 0.0  ;;  %v6948_v42 = vld [vmem:[#allocation11 + $0xa74] ss:$8 sps:$4 sm:$0xff]   ;;  %v6949_v44 = vld [vmem:[#allocation11 + $0xa60] ss:$8 sps:$4 sm:$0xff]  }
 0x7a3   :  { %v2469_v48 = vpop.f32.mrf.mxu1  ;;  %3435 = vmatprep.subr.bf16.mxu1 %v6948_v42  ;;  %v6954_v45 = vld [vmem:[#allocation11 + $0xa54] ss:$8 sps:$4 sm:$0xff]   ;;  %v7018_v42 = vld [vmem:[#allocation11 + $0xbf0] ss:$8 sps:$4 sm:$0xff]  }
 0x7a4   :  { %v2473_v49 = vmax.f32 %v2468_v46, 0.0  ;;  %v2509_v52 = vpack.c.bf16 %v2472_v47, %v2472_v47  ;;  %v6952_v46 = vld [vmem:[#allocation11 + $0xa50] ss:$8 sps:$4 sm:$0xff]   ;;  %v6957_v47 = vld [vmem:[#allocation11 + $0xa44] ss:$8 sps:$4 sm:$0xff]  }
 0x7a5   :  { %v2470_v50 = vpop.f32.mrf.mxu1  ;;  %v6955_v48 = vld [vmem:[#allocation11 + $0xa40] ss:$8 sps:$4 sm:$0xff]  }
 0x7a6   :  { %v2510_v51 = vpack.c.bf16 %v2473_v49, %v2473_v49  ;;  %v6960_v49 = vld [vmem:[#allocation11 + $0xa34] ss:$8 sps:$4 sm:$0xff]   ;;  %v6958_v50 = vld [vmem:[#allocation11 + $0xa30] ss:$8 sps:$4 sm:$0xff]  }
 0x7a8   :  { %2714 = vmatprep.mubr.bf16.mxu0 %v2510_v51  ;;  %v6963_v51 = vld [vmem:[#allocation11 + $0xa24] ss:$8 sps:$4 sm:$0xff]  }
 0x7a9   :  { %2715 = vmatmul.mubr.bf16.vlgmr.msra.gmra.mxu0 %v2509_v52  ;;  %v6961_v52 = vld [vmem:[#allocation11 + $0xa20] ss:$8 sps:$4 sm:$0xff]  }
 0x7aa   :  { %3185 = vmatpush1.bf16.msra.mxu0 %v6898_v57  ;;  %v6972_v57 = vld [vmem:[#allocation11 + $0xaf4] ss:$8 sps:$4 sm:$0xff]  }
 0x7ab   :  { %3186 = vmatprep.subr.bf16.mxu0 %v6903_v59  ;;  %v6975_v59 = vld [vmem:[#allocation11 + $0xae4] ss:$8 sps:$4 sm:$0xff]  }
 0x7ae   :  { %3187 = vmatpush1.bf16.msra.mxu0 %v6901_v62  ;;  %v6973_v62 = vld [vmem:[#allocation11 + $0xae0] ss:$8 sps:$4 sm:$0xff]  }
 0x7af   :  { %3188 = vmatprep.subr.bf16.mxu0 %v6906_v63  ;;  %v6978_v63 = vld [vmem:[#allocation11 + $0xad4] ss:$8 sps:$4 sm:$0xff]  }
 0x7b2   :  { %3189 = vmatpush1.bf16.msra.mxu0 %v6904_v1  ;;  %v6976_v1 = vld [vmem:[#allocation11 + $0xad0] ss:$8 sps:$4 sm:$0xff]  }
 0x7b3   :  { %3190 = vmatprep.subr.bf16.mxu0 %v6909_v2  ;;  %v6981_v2 = vld [vmem:[#allocation11 + $0xac4] ss:$8 sps:$4 sm:$0xff]  }
 0x7b6   :  { %3191 = vmatpush1.bf16.msra.mxu0 %v6907_v3  ;;  %v6979_v3 = vld [vmem:[#allocation11 + $0xac0] ss:$8 sps:$4 sm:$0xff]  }
 0x7b7   :  { %3192 = vmatprep.subr.bf16.mxu0 %v6912_v4  ;;  %v6984_v4 = vld [vmem:[#allocation11 + $0xab4] ss:$8 sps:$4 sm:$0xff]  }
 0x7ba   :  { %3193 = vmatpush1.bf16.msra.mxu0 %v6910_v5  ;;  %v6982_v5 = vld [vmem:[#allocation11 + $0xab0] ss:$8 sps:$4 sm:$0xff]  }
 0x7bb   :  { %3194 = vmatprep.subr.bf16.mxu0 %v6915_v6  ;;  %v6987_v6 = vld [vmem:[#allocation11 + $0xaa4] ss:$8 sps:$4 sm:$0xff]  }
 0x7be   :  { %3195 = vmatpush1.bf16.msra.mxu0 %v6913_v7  ;;  %v6985_v7 = vld [vmem:[#allocation11 + $0xaa0] ss:$8 sps:$4 sm:$0xff]  }
 0x7bf   :  { %3196 = vmatprep.subr.bf16.mxu0 %v6918_v8  ;;  %v2759_v8 = vld [vmem:[#allocation13 + $0x10] sm:$0x3] }
 0x7c2   :  { %3197 = vmatpush1.bf16.msra.mxu0 %v6916_v9  ;;  %v2766_v9 = vrot.slane %v2759_v8, %v7878_v60 }
 0x7c3   :  { %3198 = vmatprep.subr.bf16.mxu0 %v6921_v10  ;;  %v2770_v10 = vrot.slane %v2759_v8, %v7880_v61  ;;  %v7039_v8 = vld [vmem:[#allocation11 + $0xb80] ss:$8 sps:$4 sm:$0xff]  }
 0x7c6   :  { %3199 = vmatpush1.bf16.msra.mxu0 %v6919_v11 }
 0x7c7   :  { %3200 = vmatprep.subr.bf16.mxu0 %v6924_v12 }
 0x7ca   :  { %3201 = vmatpush2.bf16.msra.mxu0 %v6922_v13 }
 0x7cb   :  { %3202 = vmatprep.subr.bf16.mxu0 %v6927_v14 }
 0x7ce   :  { %3203 = vmatpush2.bf16.msra.mxu0 %v6925_v15 }
 0x7cf   :  { %3204 = vmatprep.subr.bf16.mxu0 %v6930_v16 }
 0x7d2   :  { %3205 = vmatpush2.bf16.msra.mxu0 %v6928_v17 }
 0x7d3   :  { %3206 = vmatprep.subr.bf16.mxu0 %v6933_v18 }
 0x7d6   :  { %3207 = vmatpush2.bf16.msra.mxu0 %v6931_v19 }
 0x7d7   :  { %3208 = vmatprep.subr.bf16.mxu0 %v6936_v20 }
 0x7da   :  { %3209 = vmatpush2.bf16.msra.mxu0 %v6934_v21  ;;  %v6990_v21 = vld [vmem:[#allocation11 + $0xa94] ss:$8 sps:$4 sm:$0xff]  }
 0x7db   :  { %3210 = vmatprep.subr.bf16.mxu0 %v6939_v22  ;;  %v6988_v22 = vld [vmem:[#allocation11 + $0xa90] ss:$8 sps:$4 sm:$0xff]  }
 0x7de   :  { %3211 = vmatpush2.bf16.msra.mxu0 %v6937_v23  ;;  %v6993_v23 = vld [vmem:[#allocation11 + $0xa84] ss:$8 sps:$4 sm:$0xff]  }
 0x7df   :  { %3212 = vmatprep.subr.bf16.mxu0 %v6942_v37  ;;  %v7014_v37 = vld [vmem:[#allocation11 + $0xb14] ss:$8 sps:$4 sm:$0xff]  }
 0x7e2   :  { %3213 = vmatpush2.bf16.msra.mxu0 %v6940_v38  ;;  %v7012_v38 = vld [vmem:[#allocation11 + $0xb10] ss:$8 sps:$4 sm:$0xff]  }
 0x7e3   :  { %3214 = vmatprep.subr.bf16.mxu0 %v6945_v39  ;;  %v7017_v39 = vld [vmem:[#allocation11 + $0xb04] ss:$8 sps:$4 sm:$0xff]  }
 0x7e6   :  { %3215 = vmatpush2.bf16.msra.mxu0 %v6943_v40  ;;  %v7015_v40 = vld [vmem:[#allocation11 + $0xb00] ss:$8 sps:$4 sm:$0xff]  }
 0x869   :  { %v2716_v27 = vpop.f32.mrf.mxu0 }
 0x86a   :  { %v2717_v28 = vadd.f32 %v2716_v27, %v2515_v25  ;;  %v6994_v25 = vld [vmem:[#allocation11 + $0xb70] ss:$8 sps:$4 sm:$0xff]   ;;  %v6999_v27 = vld [vmem:[#allocation11 + $0xb64] ss:$8 sps:$4 sm:$0xff]  }
 0x86b   :  { %v2718_v29 = vpop.f32.mrf.mxu0 }
 0x86c   :  { %v2719_v30 = vadd.f32 %v2718_v29, %v2519_v26  ;;  %v2723_v31 = vmax.f32 %v2717_v28, 0.0  ;;  %v6996_v26 = vld [vmem:[#allocation11 + $0xb74] ss:$8 sps:$4 sm:$0xff]   ;;  %v6997_v28 = vld [vmem:[#allocation11 + $0xb60] ss:$8 sps:$4 sm:$0xff]  }
 0x86d   :  { %v2720_v32 = vpop.f32.mrf.mxu0  ;;  %3686 = vmatprep.subr.bf16.mxu0 %v6996_v26  ;;  %v7002_v29 = vld [vmem:[#allocation11 + $0xb54] ss:$8 sps:$4 sm:$0xff]   ;;  %v7066_v26 = vld [vmem:[#allocation11 + $0xcf0] ss:$8 sps:$4 sm:$0xff]  }
 0x86e   :  { %v2724_v33 = vmax.f32 %v2719_v30, 0.0  ;;  %v2760_v36 = vpack.c.bf16 %v2723_v31, %v2723_v31  ;;  %v7000_v30 = vld [vmem:[#allocation11 + $0xb50] ss:$8 sps:$4 sm:$0xff]   ;;  %v7005_v31 = vld [vmem:[#allocation11 + $0xb44] ss:$8 sps:$4 sm:$0xff]  }
 0x86f   :  { %v2721_v34 = vpop.f32.mrf.mxu0  ;;  %v7003_v32 = vld [vmem:[#allocation11 + $0xb40] ss:$8 sps:$4 sm:$0xff]  }
 0x870   :  { %v2761_v35 = vpack.c.bf16 %v2724_v33, %v2724_v33  ;;  %v7008_v33 = vld [vmem:[#allocation11 + $0xb34] ss:$8 sps:$4 sm:$0xff]   ;;  %v7006_v34 = vld [vmem:[#allocation11 + $0xb30] ss:$8 sps:$4 sm:$0xff]  }
 0x872   :  { %2965 = vmatprep.mubr.bf16.mxu1 %v2761_v35  ;;  %v7011_v35 = vld [vmem:[#allocation11 + $0xb24] ss:$8 sps:$4 sm:$0xff]  }
 0x873   :  { %2966 = vmatmul.mubr.bf16.vlgmr.msra.gmra.mxu1 %v2760_v36  ;;  %v7009_v36 = vld [vmem:[#allocation11 + $0xb20] ss:$8 sps:$4 sm:$0xff]  }
 0x874   :  { %3436 = vmatpush1.bf16.msra.mxu1 %v6946_v41  ;;  %v7020_v41 = vld [vmem:[#allocation11 + $0xbf4] ss:$8 sps:$4 sm:$0xff]  }
 0x875   :  { %3437 = vmatprep.subr.bf16.mxu1 %v6951_v43  ;;  %v7023_v43 = vld [vmem:[#allocation11 + $0xbe4] ss:$8 sps:$4 sm:$0xff]  }
 0x878   :  { %3438 = vmatpush1.bf16.msra.mxu1 %v6949_v44  ;;  %v7021_v44 = vld [vmem:[#allocation11 + $0xbe0] ss:$8 sps:$4 sm:$0xff]  }
 0x879   :  { %3439 = vmatprep.subr.bf16.mxu1 %v6954_v45  ;;  %v7026_v45 = vld [vmem:[#allocation11 + $0xbd4] ss:$8 sps:$4 sm:$0xff]  }
 0x87c   :  { %3440 = vmatpush1.bf16.msra.mxu1 %v6952_v46  ;;  %v7024_v46 = vld [vmem:[#allocation11 + $0xbd0] ss:$8 sps:$4 sm:$0xff]  }
 0x87d   :  { %3441 = vmatprep.subr.bf16.mxu1 %v6957_v47  ;;  %v7029_v47 = vld [vmem:[#allocation11 + $0xbc4] ss:$8 sps:$4 sm:$0xff]  }
 0x880   :  { %3442 = vmatpush1.bf16.msra.mxu1 %v6955_v48  ;;  %v7027_v48 = vld [vmem:[#allocation11 + $0xbc0] ss:$8 sps:$4 sm:$0xff]  }
 0x881   :  { %3443 = vmatprep.subr.bf16.mxu1 %v6960_v49  ;;  %v7032_v49 = vld [vmem:[#allocation11 + $0xbb4] ss:$8 sps:$4 sm:$0xff]  }
 0x884   :  { %3444 = vmatpush1.bf16.msra.mxu1 %v6958_v50  ;;  %v7030_v50 = vld [vmem:[#allocation11 + $0xbb0] ss:$8 sps:$4 sm:$0xff]  }
 0x885   :  { %3445 = vmatprep.subr.bf16.mxu1 %v6963_v51  ;;  %v7035_v51 = vld [vmem:[#allocation11 + $0xba4] ss:$8 sps:$4 sm:$0xff]  }
 0x888   :  { %3446 = vmatpush1.bf16.msra.mxu1 %v6961_v52  ;;  %v7033_v52 = vld [vmem:[#allocation11 + $0xba0] ss:$8 sps:$4 sm:$0xff]  }
 0x889   :  { %3447 = vmatprep.subr.bf16.mxu1 %v6966_v53  ;;  %v3010_v53 = vld [vmem:[#allocation13 + $0x12] sm:$0x3] }
 0x88c   :  { %3448 = vmatpush1.bf16.msra.mxu1 %v6964_v54  ;;  %v3017_v54 = vrot.slane %v3010_v53, %v7878_v60 }
 0x88d   :  { %3449 = vmatprep.subr.bf16.mxu1 %v6969_v55  ;;  %v3021_v55 = vrot.slane %v3010_v53, %v7880_v61  ;;  %v7087_v53 = vld [vmem:[#allocation11 + $0xc80] ss:$8 sps:$4 sm:$0xff]  }
 0x890   :  { %3450 = vmatpush1.bf16.msra.mxu1 %v6967_v56 }
 0x891   :  { %3451 = vmatprep.subr.bf16.mxu1 %v6972_v57 }
 0x894   :  { %3452 = vmatpush2.bf16.msra.mxu1 %v6970_v58 }
 0x895   :  { %3453 = vmatprep.subr.bf16.mxu1 %v6975_v59 }
 0x898   :  { %3454 = vmatpush2.bf16.msra.mxu1 %v6973_v62 }
 0x899   :  { %3455 = vmatprep.subr.bf16.mxu1 %v6978_v63 }
 0x89c   :  { %3456 = vmatpush2.bf16.msra.mxu1 %v6976_v1 }
 0x89d   :  { %3457 = vmatprep.subr.bf16.mxu1 %v6981_v2 }
 0x8a0   :  { %3458 = vmatpush2.bf16.msra.mxu1 %v6979_v3 }
 0x8a1   :  { %3459 = vmatprep.subr.bf16.mxu1 %v6984_v4 }
 0x8a4   :  { %3460 = vmatpush2.bf16.msra.mxu1 %v6982_v5  ;;  %v7038_v5 = vld [vmem:[#allocation11 + $0xb94] ss:$8 sps:$4 sm:$0xff]  }
 0x8a5   :  { %3461 = vmatprep.subr.bf16.mxu1 %v6987_v6  ;;  %v7036_v6 = vld [vmem:[#allocation11 + $0xb90] ss:$8 sps:$4 sm:$0xff]  }
 0x8a8   :  { %3462 = vmatpush2.bf16.msra.mxu1 %v6985_v7  ;;  %v7041_v7 = vld [vmem:[#allocation11 + $0xb84] ss:$8 sps:$4 sm:$0xff]  }
 0x8a9   :  { %3463 = vmatprep.subr.bf16.mxu1 %v6990_v21  ;;  %v7062_v21 = vld [vmem:[#allocation11 + $0xc14] ss:$8 sps:$4 sm:$0xff]  }
 0x8ac   :  { %3464 = vmatpush2.bf16.msra.mxu1 %v6988_v22  ;;  %v7060_v22 = vld [vmem:[#allocation11 + $0xc10] ss:$8 sps:$4 sm:$0xff]  }
 0x8ad   :  { %3465 = vmatprep.subr.bf16.mxu1 %v6993_v23  ;;  %v7065_v23 = vld [vmem:[#allocation11 + $0xc04] ss:$8 sps:$4 sm:$0xff]  }
 0x8b0   :  { %3466 = vmatpush2.bf16.msra.mxu1 %v6991_v24  ;;  %v7063_v24 = vld [vmem:[#allocation11 + $0xc00] ss:$8 sps:$4 sm:$0xff]  }
 0x933   :  { %v2967_v11 = vpop.f32.mrf.mxu1 }
 0x934   :  { %v2968_v12 = vadd.f32 %v2967_v11, %v2766_v9  ;;  %v7042_v9 = vld [vmem:[#allocation11 + $0xc70] ss:$8 sps:$4 sm:$0xff]   ;;  %v7047_v11 = vld [vmem:[#allocation11 + $0xc64] ss:$8 sps:$4 sm:$0xff]  }
 0x935   :  { %v2969_v13 = vpop.f32.mrf.mxu1 }
 0x936   :  { %v2970_v14 = vadd.f32 %v2969_v13, %v2770_v10  ;;  %v2974_v15 = vmax.f32 %v2968_v12, 0.0  ;;  %v7044_v10 = vld [vmem:[#allocation11 + $0xc74] ss:$8 sps:$4 sm:$0xff]   ;;  %v7045_v12 = vld [vmem:[#allocation11 + $0xc60] ss:$8 sps:$4 sm:$0xff]  }
 0x937   :  { %v2971_v16 = vpop.f32.mrf.mxu1  ;;  %3937 = vmatprep.subr.bf16.mxu1 %v7044_v10  ;;  %v7050_v13 = vld [vmem:[#allocation11 + $0xc54] ss:$8 sps:$4 sm:$0xff]  }
 0x938   :  { %v2975_v17 = vmax.f32 %v2970_v14, 0.0  ;;  %v3011_v20 = vpack.c.bf16 %v2974_v15, %v2974_v15  ;;  %v7048_v14 = vld [vmem:[#allocation11 + $0xc50] ss:$8 sps:$4 sm:$0xff]   ;;  %v7053_v15 = vld [vmem:[#allocation11 + $0xc44] ss:$8 sps:$4 sm:$0xff]  }
 0x939   :  { %v2972_v18 = vpop.f32.mrf.mxu1  ;;  %v7051_v16 = vld [vmem:[#allocation11 + $0xc40] ss:$8 sps:$4 sm:$0xff]  }
 0x93a   :  { %v3012_v19 = vpack.c.bf16 %v2975_v17, %v2975_v17  ;;  %v7056_v17 = vld [vmem:[#allocation11 + $0xc34] ss:$8 sps:$4 sm:$0xff]   ;;  %v7054_v18 = vld [vmem:[#allocation11 + $0xc30] ss:$8 sps:$4 sm:$0xff]  }
 0x93c   :  { %3216 = vmatprep.mubr.bf16.mxu0 %v3012_v19  ;;  %v7059_v19 = vld [vmem:[#allocation11 + $0xc24] ss:$8 sps:$4 sm:$0xff]  }
 0x93d   :  { %3217 = vmatmul.mubr.bf16.vlgmr.msra.gmra.mxu0 %v3011_v20  ;;  %v7057_v20 = vld [vmem:[#allocation11 + $0xc20] ss:$8 sps:$4 sm:$0xff]  }
 0x93e   :  { %3687 = vmatpush1.bf16.msra.mxu0 %v6994_v25  ;;  %v7068_v25 = vld [vmem:[#allocation11 + $0xcf4] ss:$8 sps:$4 sm:$0xff]  }
 0x93f   :  { %3688 = vmatprep.subr.bf16.mxu0 %v6999_v27  ;;  %v7071_v27 = vld [vmem:[#allocation11 + $0xce4] ss:$8 sps:$4 sm:$0xff]  }
 0x942   :  { %3689 = vmatpush1.bf16.msra.mxu0 %v6997_v28  ;;  %v7069_v28 = vld [vmem:[#allocation11 + $0xce0] ss:$8 sps:$4 sm:$0xff]  }
 0x943   :  { %3690 = vmatprep.subr.bf16.mxu0 %v7002_v29  ;;  %v7074_v29 = vld [vmem:[#allocation11 + $0xcd4] ss:$8 sps:$4 sm:$0xff]  }
 0x946   :  { %3691 = vmatpush1.bf16.msra.mxu0 %v7000_v30  ;;  %v7072_v30 = vld [vmem:[#allocation11 + $0xcd0] ss:$8 sps:$4 sm:$0xff]  }
 0x947   :  { %3692 = vmatprep.subr.bf16.mxu0 %v7005_v31  ;;  %v7077_v31 = vld [vmem:[#allocation11 + $0xcc4] ss:$8 sps:$4 sm:$0xff]  }
 0x94a   :  { %3693 = vmatpush1.bf16.msra.mxu0 %v7003_v32  ;;  %v7075_v32 = vld [vmem:[#allocation11 + $0xcc0] ss:$8 sps:$4 sm:$0xff]  }
 0x94b   :  { %3694 = vmatprep.subr.bf16.mxu0 %v7008_v33  ;;  %v7080_v33 = vld [vmem:[#allocation11 + $0xcb4] ss:$8 sps:$4 sm:$0xff]  }
 0x94e   :  { %3695 = vmatpush1.bf16.msra.mxu0 %v7006_v34  ;;  %v7078_v34 = vld [vmem:[#allocation11 + $0xcb0] ss:$8 sps:$4 sm:$0xff]  }
 0x94f   :  { %3696 = vmatprep.subr.bf16.mxu0 %v7011_v35  ;;  %v7083_v35 = vld [vmem:[#allocation11 + $0xca4] ss:$8 sps:$4 sm:$0xff]  }
 0x952   :  { %3697 = vmatpush1.bf16.msra.mxu0 %v7009_v36  ;;  %v7081_v36 = vld [vmem:[#allocation11 + $0xca0] ss:$8 sps:$4 sm:$0xff]  }
 0x953   :  { %3698 = vmatprep.subr.bf16.mxu0 %v7014_v37  ;;  %v3261_v37 = vld [vmem:[#allocation13 + $0x14] sm:$0x3] }
 0x956   :  { %3699 = vmatpush1.bf16.msra.mxu0 %v7012_v38  ;;  %v3268_v38 = vrot.slane %v3261_v37, %v7878_v60 }
 0x957   :  { %3700 = vmatprep.subr.bf16.mxu0 %v7017_v39  ;;  %v3272_v39 = vrot.slane %v3261_v37, %v7880_v61 }
 0x95a   :  { %3701 = vmatpush1.bf16.msra.mxu0 %v7015_v40 }
 0x95b   :  { %3702 = vmatprep.subr.bf16.mxu0 %v7020_v41 }
 0x95e   :  { %3703 = vmatpush2.bf16.msra.mxu0 %v7018_v42 }
 0x95f   :  { %3704 = vmatprep.subr.bf16.mxu0 %v7023_v43 }
 0x962   :  { %3705 = vmatpush2.bf16.msra.mxu0 %v7021_v44 }
 0x963   :  { %3706 = vmatprep.subr.bf16.mxu0 %v7026_v45 }
 0x966   :  { %3707 = vmatpush2.bf16.msra.mxu0 %v7024_v46 }
 0x967   :  { %3708 = vmatprep.subr.bf16.mxu0 %v7029_v47 }
 0x96a   :  { %3709 = vmatpush2.bf16.msra.mxu0 %v7027_v48 }
 0x96b   :  { %3710 = vmatprep.subr.bf16.mxu0 %v7032_v49 }
 0x96e   :  { %3711 = vmatpush2.bf16.msra.mxu0 %v7030_v50  ;;  %v7086_v50 = vld [vmem:[#allocation11 + $0xc94] ss:$8 sps:$4 sm:$0xff]  }
 0x96f   :  { %3712 = vmatprep.subr.bf16.mxu0 %v7035_v51  ;;  %v7084_v51 = vld [vmem:[#allocation11 + $0xc90] ss:$8 sps:$4 sm:$0xff]  }
 0x972   :  { %3713 = vmatpush2.bf16.msra.mxu0 %v7033_v52  ;;  %v7089_v52 = vld [vmem:[#allocation11 + $0xc84] ss:$8 sps:$4 sm:$0xff]  }
 0x973   :  { %3714 = vmatprep.subr.bf16.mxu0 %v7038_v5 }
 0x976   :  { %3715 = vmatpush2.bf16.msra.mxu0 %v7036_v6 }
 0x977   :  { %3716 = vmatprep.subr.bf16.mxu0 %v7041_v7 }
 0x97a   :  { %3717 = vmatpush2.bf16.msra.mxu0 %v7039_v8 }
 0x9fd   :  { %v3218_v56 = vpop.f32.mrf.mxu0 }
 0x9fe   :  { %v3219_v57 = vadd.f32 %v3218_v56, %v3017_v54  ;;  %v7090_v54 = vld [vmem:[%s9550_s9 + $0x78] sm:$0xff]   ;;  %v7092_v56 = vld [vmem:[%s9550_s9 + $0x70] sm:$0xff]  }
 0x9ff   :  { %v3220_v58 = vpop.f32.mrf.mxu0  ;;  %6283 = vmatprep.subr.bf16.mxu0 %v7090_v54  ;;  %v7747_v54 = vmov 10  }
 0xa00   :  { %v3221_v59 = vadd.f32 %v3220_v58, %v3021_v55  ;;  %v3225_v62 = vmax.f32 %v3219_v57, 0.0  ;;  %v7091_v55 = vld [vmem:[%s9550_s9 + $0x38] sm:$0xff]   ;;  %v7093_v57 = vld [vmem:[%s9550_s9 + $0x30] sm:$0xff]   ;;  %v7094_v58 = vld [vmem:[%s9550_s9 + $0x68] sm:$0xff]   ;;  %6354 = vset.pattern.permute.xlu0 %v7747_v54 }
 0xa01   :  { %v3222_v63 = vpop.f32.mrf.mxu0  ;;  %v8038_v54 = vld [vmem:[#allocation19 + $0xd] ss:$0 sm:$0xff] }
 0xa02   :  { %v3226_v1 = vmax.f32 %v3221_v59, 0.0  ;;  %v3262_v4 = vpack.c.bf16 %v3225_v62, %v3225_v62  ;;  %v7095_v59 = vld [vmem:[%s9550_s9 + $0x28] sm:$0xff]   ;;  %v7096_v62 = vld [vmem:[%s9550_s9 + $0x60] sm:$0xff]  }
 0xa03   :  { %v3223_v2 = vpop.f32.mrf.mxu0  ;;  %v7097_v63 = vld [vmem:[%s9550_s9 + $0x20] sm:$0xff]  }
 0xa04   :  { %v3263_v3 = vpack.c.bf16 %v3226_v1, %v3226_v1  ;;  %v3512_v1 = vld [vmem:[#allocation13 + $0x16] sm:$0x3] }
 0xa05   :  { %v3519_v2 = vrot.slane %v3512_v1, %v7878_v60 }
 0xa06   :  { %3467 = vmatprep.mubr.bf16.mxu1 %v3263_v3  ;;  %v3523_v3 = vrot.slane %v3512_v1, %v7880_v61  ;;  %v7748_v1 = vmov 12  }
 0xa07   :  { %3468 = vmatmul.mubr.bf16.vlgmr.msra.gmra.mxu1 %v3262_v4 }
 0xa08   :  { %3938 = vmatpush1.bf16.msra.mxu1 %v7042_v9 }
 0xa09   :  { %3939 = vmatprep.subr.bf16.mxu1 %v7047_v11 }
 0xa0c   :  { %3940 = vmatpush1.bf16.msra.mxu1 %v7045_v12 }
 0xa0d   :  { %3941 = vmatprep.subr.bf16.mxu1 %v7050_v13 }
 0xa10   :  { %3942 = vmatpush1.bf16.msra.mxu1 %v7048_v14  ;;  %v7098_v14 = vld [vmem:[%s9550_s9 + $0x58] sm:$0xff]  }
 0xa11   :  { %3943 = vmatprep.subr.bf16.mxu1 %v7053_v15  ;;  %v7099_v15 = vld [vmem:[%s9550_s9 + $0x18] sm:$0xff]  }
 0xa14   :  { %3944 = vmatpush1.bf16.msra.mxu1 %v7051_v16  ;;  %v7100_v16 = vld [vmem:[%s9550_s9 + $0x50] sm:$0xff]  }
 0xa15   :  { %3945 = vmatprep.subr.bf16.mxu1 %v7056_v17  ;;  %v7101_v17 = vld [vmem:[%s9550_s9 + $0x10] sm:$0xff]  }
 0xa18   :  { %3946 = vmatpush1.bf16.msra.mxu1 %v7054_v18  ;;  %v7102_v18 = vld [vmem:[%s9550_s9 + $0x48] sm:$0xff]  }
 0xa19   :  { %3947 = vmatprep.subr.bf16.mxu1 %v7059_v19  ;;  %v7103_v19 = vld [vmem:[%s9550_s9 + $0x8] sm:$0xff]  }
 0xa1c   :  { %3948 = vmatpush1.bf16.msra.mxu1 %v7057_v20  ;;  %v7104_v20 = vld [vmem:[%s9550_s9 + $0x40] sm:$0xff]  }
 0xa1d   :  { %3949 = vmatprep.subr.bf16.mxu1 %v7062_v21  ;;  %v7105_v21 = vld [vmem:[%s9550_s9] sm:$0xff]   ;;  %s7746_s9 = smov 108  }
 0xa20   :  { %3950 = vmatpush1.bf16.msra.mxu1 %v7060_v22  ;;  %v3763_v22 = vld [vmem:[#allocation13 + $0x18] sm:$0x3] }
 0xa21   :  { %3951 = vmatprep.subr.bf16.mxu1 %v7065_v23  ;;  %v3770_v23 = vrot.slane %v3763_v22, %v7878_v60 }
 0xa24   :  { %3952 = vmatpush1.bf16.msra.mxu1 %v7063_v24  ;;  %v3980_v24 = vld [vmem:[#allocation14] sm:$0x3] }
 0xa25   :  { %3953 = vmatprep.subr.bf16.mxu1 %v7068_v25  ;;  %v3774_v25 = vrot.slane %v3763_v22, %v7880_v61  ;;  %v7759_v22 = vmov 23  }
 0xa28   :  { %3954 = vmatpush2.bf16.msra.mxu1 %v7066_v26 }
 0xa29   :  { %3955 = vmatprep.subr.bf16.mxu1 %v7071_v27  ;;  %v3994_v27 = vld [vmem:[#allocation16] sm:$0x3] }
 0xa2c   :  { %3956 = vmatpush2.bf16.msra.mxu1 %v7069_v28 }
 0xa2d   :  { %3957 = vmatprep.subr.bf16.mxu1 %v7074_v29  ;;  %v3985_v29 = vrot.slane %v3980_v24, %v7878_v60 }
 0xa30   :  { %3958 = vmatpush2.bf16.msra.mxu1 %v7072_v30 }
 0xa31   :  { %3959 = vmatprep.subr.bf16.mxu1 %v7077_v31 }
 0xa34   :  { %3960 = vmatpush2.bf16.msra.mxu1 %v7075_v32  ;;  %v3999_v32 = vrot.slane %v3994_v27, %v7878_v60 }
 0xa35   :  { %3961 = vmatprep.subr.bf16.mxu1 %v7080_v33 }
 0xa38   :  { %3962 = vmatpush2.bf16.msra.mxu1 %v7078_v34  ;;  %v3989_v34 = vrot.slane %v3980_v24, %v7880_v61  ;;  %v7761_v24 = vmov 16  }
 0xa39   :  { %3963 = vmatprep.subr.bf16.mxu1 %v7083_v35 }
 0xa3c   :  { %3964 = vmatpush2.bf16.msra.mxu1 %v7081_v36 }
 0xa3d   :  { %3965 = vmatprep.subr.bf16.mxu1 %v7086_v50 }
 0xa40   :  { %3966 = vmatpush2.bf16.msra.mxu1 %v7084_v51 }
 0xa41   :  { %3967 = vmatprep.subr.bf16.mxu1 %v7089_v52 }
 0xa44   :  { %3968 = vmatpush2.bf16.msra.mxu1 %v7087_v53 }
 0xac7   :  { %v3469_v40 = vpop.f32.mrf.mxu1 }
 0xac8   :  { %v3470_v41 = vadd.f32 %v3469_v40, %v3268_v38  ;;  %v4003_v38 = vrot.slane %v3994_v27, %v7880_v61  ;;  %v7764_v27 = vmov 18  }
 0xac9   :  { %v3471_v42 = vpop.f32.mrf.mxu1 }
 0xaca   :  { %v3472_v43 = vadd.f32 %v3471_v42, %v3272_v39  ;;  %v3476_v44 = vmax.f32 %v3470_v41, 0.0 }
 0xacb   :  { %v3473_v45 = vpop.f32.mrf.mxu1 }
 0xacc   :  { %v3477_v46 = vmax.f32 %v3472_v43, 0.0  ;;  %v3513_v49 = vpack.c.bf16 %v3476_v44, %v3476_v44 }
 0xacd   :  { %v3474_v47 = vpop.f32.mrf.mxu1 }
 0xace   :  { %v3514_v48 = vpack.c.bf16 %v3477_v46, %v3477_v46  ;;  %v7745_v47 = vmov 11  }
 0xacf   :  { %6355 = vset.pattern.permute.xlu1 %v7745_v47 }
 0xad0   :  { %3718 = vmatprep.mubr.bf16.mxu0 %v3514_v48  ;;  %v6249_v48 = vld [vmem:[#allocation17] ss:$0 sm:$0xff] }
 0xad1   :  { %3719 = vmatmul.mubr.bf16.vlgmr.msra.gmra.mxu0 %v3513_v49 }
 0xad2   :  { %6284 = vmatpush3.bf16.msra.mxu0 %v7091_v55 }
 0xad3   :  { %6285 = vmatprep.subr.bf16.mxu0 %v7092_v56 }
 0xad6   :  { %6286 = vmatpush3.bf16.msra.mxu0 %v7093_v57 }
 0xad7   :  { %6287 = vmatprep.subr.bf16.mxu0 %v7094_v58 }
 0xada   :  { %6288 = vmatpush3.bf16.msra.mxu0 %v7095_v59 }
 0xadb   :  { %6289 = vmatprep.subr.bf16.mxu0 %v7096_v62 }
 0xade   :  { %6290 = vmatpush3.bf16.msra.mxu0 %v7097_v63 }
 0xadf   :  { %6291 = vmatprep.subr.bf16.mxu0 %v7098_v14 }
 0xae2   :  { %6292 = vmatpush3.bf16.msra.mxu0 %v7099_v15 }
 0xae3   :  { %6293 = vmatprep.subr.bf16.mxu0 %v7100_v16 }
 0xae6   :  { %6294 = vmatpush3.bf16.msra.mxu0 %v7101_v17 }
 0xae7   :  { %6295 = vmatprep.subr.bf16.mxu0 %v7102_v18 }
 0xaea   :  { %6296 = vmatpush3.bf16.msra.mxu0 %v7103_v19  ;;  %v7756_v19 = vmov 13  }
 0xaeb   :  { %6297 = vmatprep.subr.bf16.mxu0 %v7104_v20  ;;  %v7757_v20 = vmov 2  }
 0xaee   :  { %6298 = vmatpush3.bf16.msra.mxu0 %v7105_v21  ;;  %v7758_v21 = vmov 22  }
 0xb91   :  { %v3720_v4 = vpop.f32.mrf.mxu0 }
 0xb92   :  { %v3721_v5 = vadd.f32 %v3720_v4, %v3519_v2  ;;  %v7749_v4 = vmov 21  }
 0xb93   :  { %v3722_v6 = vpop.f32.mrf.mxu0 }
 0xb94   :  { %v3723_v7 = vadd.f32 %v3722_v6, %v3523_v3  ;;  %v3727_v8 = vmax.f32 %v3721_v5, 0.0  ;;  %v7750_v5 = vmov 14   ;;  %v7751_v6 = vmov 24  }
 0xb95   :  { %v3724_v9 = vpop.f32.mrf.mxu0 }
 0xb96   :  { %v3728_v10 = vmax.f32 %v3723_v7, 0.0  ;;  %v3764_v13 = vpack.c.bf16 %v3727_v8, %v3727_v8  ;;  %v7752_v7 = vmov 17   ;;  %v7753_v8 = vmov 20  }
 0xb97   :  { %v3725_v11 = vpop.f32.mrf.mxu0  ;;  %v7754_v9 = vmov 27  }
 0xb98   :  { %v3765_v12 = vpack.c.bf16 %v3728_v10, %v3728_v10  ;;  %v7755_v10 = vmov 29  }
 0xb9a   :  { %3969 = vmatprep.mubr.bf16.mxu1 %v3765_v12 }
 0xb9b   :  { %3970 = vmatmul.mubr.bf16.vlgmr.msra.gmra.mxu1 %v3764_v13 }
 0xc5b   :  { %v3971_v26 = vpop.f32.mrf.mxu1 }
 0xc5c   :  { %v3972_v28 = vadd.f32 %v3971_v26, %v3770_v23  ;;  %v7760_v23 = vmov 15   ;;  %v7763_v26 = vmov 26  }
 0xc5d   :  { %v3973_v30 = vpop.f32.mrf.mxu1 }
 0xc5e   :  { %v3978_v31 = vmax.f32 %v3972_v28, 0.0  ;;  %v3974_v33 = vadd.f32 %v3973_v30, %v3774_v25  ;;  %v7762_v25 = vmov 25   ;;  %v8000_v30 = vld [vmem:[#allocation19 + $0x1] ss:$0 sm:$0xff] }
 0xc5f   :  { %v3975_v35 = vpop.f32.mrf.mxu1 }
 0xc60   :  { %v3992_v36 = vmul.f32 %v3985_v29, %v3978_v31  ;;  %v3979_v37 = vmax.f32 %v3974_v33, 0.0  ;;  %v8002_v31 = vld [vmem:[#allocation19] ss:$0 sm:$0xff]  ;;  %v8006_v33 = vld [vmem:[#allocation19 + $0x3] ss:$0 sm:$0xff]  ;;  %v7765_v35 = vmov 19  }
 0xc61   :  { %v3976_v39 = vpop.f32.mrf.mxu1  ;;  %9566 = vst [vmem:[#allocation28_spill] sm:$0xff] %v8002_v31  ;;  %9568 = vst [vmem:[#allocation30_spill] sm:$0xff] %v8006_v33 }
 0xc62   :  { %v4006_v40 = vadd.f32 %v3999_v32, %v3992_v36  ;;  %v3993_v41 = vmul.f32 %v3989_v34, %v3979_v37  ;;  %v8004_v32 = vld [vmem:[#allocation19 + $0x2] ss:$0 sm:$0xff]  ;;  %v8008_v34 = vld [vmem:[#allocation19 + $0x4] ss:$0 sm:$0xff]  ;;  %v8010_v36 = vld [vmem:[#allocation19 + $0x5] ss:$0 sm:$0xff] }
 0xc63   :  { %9567 = vst [vmem:[#allocation29_spill] sm:$0xff] %v8004_v32  ;;  %9569 = vst [vmem:[#allocation31_spill] sm:$0xff] %v8008_v34  ;;  %v8012_v37 = vld [vmem:[#allocation19 + $0x6] ss:$0 sm:$0xff] }
 0xc64   :  { %v4007_v42 = vadd.f32 %v4003_v38, %v3993_v41  ;;  %v4008_v43 = vmax.f32 %v4006_v40, 0.0  ;;  %9570 = vst [vmem:[#allocation32_spill] sm:$0xff] %v8010_v36  ;;  %9571 = vst [vmem:[#allocation33_spill] sm:$0xff] %v8012_v37  ;;  %v8017_v40 = vld [vmem:[#allocation19 + $0x7] ss:$0 sm:$0xff] }
 0xc66   :  { %v4009_v44 = vmax.f32 %v4007_v42, 0.0  ;;  %v4010_v46 = vpack.c.bf16 %v4008_v43, %v4008_v43 }
 0xc68   :  { %v4011_v45 = vpack.c.bf16 %v4009_v44, %v4009_v44  ;;  %v8022_v44 = vld [vmem:[#allocation19 + $0x8] ss:$0 sm:$0xff] }
 0xc6a   :  { %4179 = vmatprep.mubr.bf16.mxu0 %v4011_v45 }
 0xc6b   :  { %4180 = vmatmul.mubr.bf16.vlgmr.msra.gmra.mxu0 %v4010_v46 }
 0xd2b   :  { %v6299_v60 = vpop.f32.mrf.mxu0 }
 0xd2d   :  { %v6300_v49 = vpop.f32.mrf.mxu0 }
 0xd2e   :  { %v6301_v50 = vadd.f32 %v6300_v49, %v6299_v60  ;;  %v8031_v49 = vld [vmem:[#allocation19 + $0xa] ss:$0 sm:$0xff] }
 0xd2f   :  { %v6302_v51 = vpop.f32.mrf.mxu0 }
 0xd30   :  { %v7965_v52 = vadd.f32 %v6301_v50, %v6249_v48  ;;  %v8029_v48 = vld [vmem:[#allocation19 + $0x9] ss:$0 sm:$0xff]  ;;  %v7766_v50 = vmov 28  }
 0xd31   :  { %v6303_v61 = vpop.f32.mrf.mxu0 }
 0xd32   :  { %4202 = vrot.lane.b32.xlu1 %v7965_v52, %s7746_s9  ;;  %v4188_v53 = vsel %vm4187_vm1, %v7965_v52, -inf  ;;  %v4212_v62 = vmul.f32 -2.0, %v7965_v52  ;;  %v8034_v61 = vld [vmem:[#allocation19 + $0xb] ss:$0 sm:$0xff] }
 0xd33   :  { %4189 = vmax.xlane.f32.xlu0 %v4188_v53  ;;  %v8036_v53 = vld [vmem:[#allocation19 + $0xc] ss:$0 sm:$0xff] }
 0xd34   :  { %v4213_v63 = vmul.f32 1.442695, %v4212_v62  ;;  %v8045_v62 = vld [vmem:[#allocation19 + $0xf] ss:$0 sm:$0xff] }
 0xd36   :  { %4244 = vperm.xlu1 %6355, %v7965_v52  }
 0xd3a   :  { %6357 = vset.pattern.permute.xlu1 %v7753_v8 }
 0xda4   :  { %v4203_v16 = vpop.permute.xlu1 %4202 }
 0xdb1   :  { %v4245_v29 = vpop.permute.xlu1 %4244 }
 0xdb2   :  { %v4431_v38 = vsub.f32 %v8000_v30, %v4245_v29  ;;  %v4247_v39 = vsub.f32 %v8002_v31, %v4245_v29  ;;  %v4511_v41 = vsub.f32 %v8004_v32, %v4245_v29  ;;  %v4591_v42 = vsub.f32 %v8006_v33, %v4245_v29 }
 0xdb3   :  { %v4671_v43 = vsub.f32 %v8008_v34, %v4245_v29  ;;  %v4751_v46 = vsub.f32 %v8010_v36, %v4245_v29  ;;  %v4831_v47 = vsub.f32 %v8012_v37, %v4245_v29  ;;  %v4911_v60 = vsub.f32 %v8017_v40, %v4245_v29 }
 0xdb4   :  { %v4432_v51 = vmul.f32 %v4431_v38, %v4431_v38  ;;  %v5391_v8 = vsub.f32 %v8038_v54, %v4245_v29 }
 0xdbc   :  { %v4190_v55 = vpop.xlane.xlu0 %4189 }
 0xdbd   :  { %v4191_v56 = vsub.f32 %v7965_v52, %v4190_v55 }
 0xdbf   :  { %v4192_v57 = vmul.f32 1.442695, %v4191_v56  ;;  %v4512_v56 = vmul.f32 %v4511_v41, %v4511_v41 }
 0xdc1   :  { %7106 = vpow2.f32 %v4192_v57  ;;  %v4592_v57 = vmul.f32 %v4591_v42, %v4591_v42 }
 0xdc2   :  { %7108 = vpow2.f32 %v4213_v63  ;;  %v8047_v63 = vld [vmem:[#allocation19 + $0x10] ss:$0 sm:$0xff] }
 0xdce   :  { %v7107_v58 = vpop.eup %7106 }
 0xdcf   :  { %v4194_v59 = vsel %vm4187_vm1, %v7107_v58, 0.0  ;;  %v7109_v2 = vpop.eup %7108  ;;  %v8041_v58 = vmul.f32 %v4671_v43, %v4671_v43 }
 0xdd0   :  { %4195 = vadd.xlane.f32.xlu0 %v4194_v59  ;;  %v7976_v3 = vmul.f32 -0.5, %v7109_v2  ;;  %v8043_v59 = vld [vmem:[#allocation19 + $0xe] ss:$0 sm:$0xff]  ;;  %v8051_v2 = vmul.f32 %v4831_v47, %v4831_v47 }
 0xde6   :  { %4224 = vperm.xlu0 %6354, %v7965_v52  }
 0xdea   :  { %6356 = vset.pattern.permute.xlu0 %v7748_v1  ;;  %v8049_v1 = vmul.f32 %v4751_v46, %v4751_v46 }
 0xdeb   :  { %4263 = vperm.xlu0 %6356, %v7965_v52  }
 0xdef   :  { %6358 = vset.pattern.permute.xlu0 %v7749_v4  ;;  %v5071_v4 = vsub.f32 %v8029_v48, %v4245_v29 }
 0xdf0   :  { %4250 = vperm.xlu0 %6358, %v7976_v3  }
 0xdf4   :  { %6361 = vset.pattern.permute.xlu0 %v7750_v5  ;;  %v5151_v5 = vsub.f32 %v8031_v49, %v4245_v29 }
 0xdf5   :  { %4301 = vperm.xlu0 %6361, %v7965_v52  }
 0xdf9   :  { %6364 = vset.pattern.permute.xlu0 %v7751_v6  ;;  %v5231_v6 = vsub.f32 %v8034_v61, %v4245_v29 }
 0xdfa   :  { %4307 = vperm.xlu0 %6364, %v7976_v3  }
 0xdfe   :  { %6367 = vset.pattern.permute.xlu0 %v7752_v7  ;;  %v5311_v7 = vsub.f32 %v8036_v53, %v4245_v29 }
 0xdff   :  { %4358 = vperm.xlu0 %6367, %v7965_v52  }
 0xe03   :  { %6370 = vset.pattern.permute.xlu0 %v7754_v9 }
 0xe04   :  { %4364 = vperm.xlu0 %6370, %v7976_v3  }
 0xe08   :  { %6373 = vset.pattern.permute.xlu0 %v7755_v10 }
 0xe09   :  { %4402 = vperm.xlu0 %6373, %v7976_v3  }
 0xe0d   :  { %6376 = vset.pattern.permute.xlu0 %v7757_v20 }
 0xe59   :  { %v4196_v11 = vpop.xlane.xlu0 %4195 }
 0xe5a   :  { %7110 = vlog2.f32 %v4196_v11  ;;  %v5471_v11 = vsub.f32 %v8043_v59, %v4245_v29 }
 0xe61   :  { %v7998_v28 = vpop.permute.xlu0 %4224 }
 0xe62   :  { %v4745_v20 = vsub.f32 %v8010_v36, %v7998_v28 }
 0xe66   :  { %v8024_v45 = vpop.permute.xlu0 %4263 }
 0xe67   :  { %v7111_v12 = vpop.eup %7110  ;;  %v4438_v46 = vsub.f32 %v8000_v30, %v8024_v45  ;;  %v4266_v47 = vsub.f32 %v8002_v31, %v8024_v45 }
 0xe68   :  { %v4198_v13 = vmul.f32 0.6931472, %v7111_v12  ;;  %v5551_v12 = vsub.f32 %v8045_v62, %v4245_v29 }
 0xe6a   :  { %v4199_v14 = vadd.f32 %v4198_v13, %v4190_v55  ;;  %v4248_v55 = vmul.f32 %v4247_v39, %v4247_v39  ;;  %v5631_v13 = vsub.f32 %v8047_v63, %v4245_v29 }
 0xe6b   :  { %v8060_v9 = vpop.permute.xlu0 %4250 }
 0xe6c   :  { %v4200_v15 = vsub.f32 %v7965_v52, %v4199_v14  ;;  %v4425_v14 = vsub.f32 %v8000_v30, %v7998_v28 }
 0xe6e   :  { %v7985_v17 = vsub.f32 %v4200_v15, %v4203_v16  ;;  %v4227_v15 = vsub.f32 %v8002_v31, %v7998_v28  ;;  %v4505_v16 = vsub.f32 %v8004_v32, %v7998_v28  ;;  %v8100_v38 = vmul.f32 %v4425_v14, %v4425_v14 }
 0xe6f   :  { %v4838_v14 = vsub.f32 %v8012_v37, %v8024_v45 }
 0xe70   :  { %v4206_v18 = vsel %vm4187_vm1, %v7985_v17, -inf  ;;  %v8102_v39 = vmul.f32 %v4227_v15, %v4227_v15  ;;  %v8104_v41 = vmul.f32 %v4505_v16, %v4505_v16  ;;  %v8108_v43 = vpop.permute.xlu0 %4301  ;;  %v5065_v15 = vsub.f32 %v8029_v48, %v7998_v28 }
 0xe71   :  { %4207 = vmax.xlane.f32.xlu1 %v4206_v18  ;;  %v4585_v18 = vsub.f32 %v8006_v33, %v7998_v28  ;;  %v8140_v16 = vsub.f32 %v8031_v49, %v7998_v28 }
 0xe73   :  { %v8106_v42 = vmul.f32 %v4585_v18, %v4585_v18  ;;  %v8144_v18 = vmul.f32 %v4266_v47, %v4266_v47  ;;  %v4452_v47 = vsub.f32 %v8000_v30, %v8108_v43 }
 0xe75   :  { %9577 = vst [vmem:[#allocation39_spill] sm:$0xff] %v8144_v18 }
 0xe82   :  { %4231 = vperm.xlu1 %6357, %v7976_v3  }
 0xe86   :  { %6359 = vset.pattern.permute.xlu1 %v7756_v19  ;;  %v4665_v19 = vsub.f32 %v8008_v34, %v7998_v28 }
 0xe87   :  { %4282 = vperm.xlu1 %6359, %v7965_v52  }
 0xe8b   :  { %6360 = vset.pattern.permute.xlu1 %v7758_v21  ;;  %v8080_v21 = vmul.f32 %v5071_v4, %v5071_v4  ;;  %v4598_v4 = vsub.f32 %v8006_v33, %v8024_v45 }
 0xe8c   :  { %4269 = vperm.xlu1 %6360, %v7976_v3  }
 0xe90   :  { %6362 = vset.pattern.permute.xlu1 %v7759_v22  ;;  %v4825_v22 = vsub.f32 %v8012_v37, %v7998_v28 }
 0xe91   :  { %4288 = vperm.xlu1 %6362, %v7976_v3  }
 0xe95   :  { %6363 = vset.pattern.permute.xlu1 %v7760_v23  ;;  %v8086_v23 = vmul.f32 %v5231_v6, %v5231_v6  ;;  %v8124_v6 = vmul.f32 %v4825_v22, %v4825_v22  ;;  %v4593_v22 = vmul.f32 %v4592_v57, %v8060_v9  ;;  %v4753_v57 = vmul.f32 %v8049_v1, %v8060_v9 }
 0xe96   :  { %4320 = vperm.xlu1 %6363, %v7965_v52   ;;  %v4772_v1 = vsub.f32 %v8010_v36, %v8108_v43 }
 0xe97   :  { %9574 = vst [vmem:[#allocation36_spill] sm:$0xff] %v8124_v6  ;;  %v8158_v6 = vpop.permute.xlu0 %4307 }
 0xe9a   :  { %6365 = vset.pattern.permute.xlu1 %v7761_v24  ;;  %v8088_v24 = vmul.f32 %v5311_v7, %v5311_v7  ;;  %v4433_v7 = vmul.f32 %v4432_v51, %v8060_v9  ;;  %v8142_v51 = vmul.f32 %v4438_v46, %v4438_v46 }
 0xe9b   :  { %4339 = vperm.xlu1 %6365, %v7965_v52  }
 0xe9c   :  { %9576 = vst [vmem:[#allocation38_spill] sm:$0xff] %v8142_v51  ;;  %v4434_v46 = vmul.f32 1.442695, %v4433_v7  ;;  %v4532_v7 = vsub.f32 %v8004_v32, %v8108_v43 }
 0xe9e   :  { %7112 = vpow2.f32 %v4434_v46 }
 0xe9f   :  { %6366 = vset.pattern.permute.xlu1 %v7762_v25  ;;  %v8090_v25 = vmul.f32 %v5391_v8, %v5391_v8  ;;  %v4758_v8 = vsub.f32 %v8010_v36, %v8024_v45 }
 0xea0   :  { %4326 = vperm.xlu1 %6366, %v7976_v3  }
 0xea1   :  { %v8164_v18 = vmul.f32 %v4758_v8, %v4758_v8  ;;  %v4612_v8 = vsub.f32 %v8006_v33, %v8108_v43 }
 0xea3   :  { %9581 = vst [vmem:[#allocation43_spill] sm:$0xff] %v8164_v18  ;;  %v4613_v46 = vmul.f32 %v4612_v8, %v4612_v8 }
 0xea4   :  { %6368 = vset.pattern.permute.xlu1 %v7763_v26  ;;  %v4905_v26 = vsub.f32 %v8017_v40, %v7998_v28 }
 0xea5   :  { %4345 = vperm.xlu1 %6368, %v7976_v3  }
 0xea9   :  { %6369 = vset.pattern.permute.xlu1 %v7764_v27  ;;  %v8094_v27 = vmul.f32 %v5471_v11, %v5471_v11  ;;  %v8129_v11 = vmul.f32 %v4905_v26, %v4905_v26  ;;  %v8154_v26 = vmul.f32 %v4598_v4, %v4598_v4  ;;  %v8170_v4 = vmul.f32 %v4838_v14, %v4838_v14 }
 0xeaa   :  { %4377 = vperm.xlu1 %6369, %v7965_v52   ;;  %v4453_v14 = vmul.f32 %v4452_v47, %v4452_v47 }
 0xeab   :  { %9575 = vst [vmem:[#allocation37_spill] sm:$0xff] %v8129_v11  ;;  %9579 = vst [vmem:[#allocation41_spill] sm:$0xff] %v8154_v26 }
 0xeac   :  { %9582 = vst [vmem:[#allocation44_spill] sm:$0xff] %v8170_v4  ;;  %v4833_v4 = vmul.f32 %v8051_v2, %v8060_v9  ;;  %v4454_v2 = vmul.f32 %v4453_v14, %v8158_v6 }
 0xeae   :  { %6371 = vset.pattern.permute.xlu1 %v7765_v35  ;;  %v8098_v35 = vmul.f32 %v5631_v13, %v5631_v13  ;;  %v4253_v13 = vmul.f32 %v8060_v9, %v4248_v55 }
 0xeaf   :  { %4396 = vperm.xlu1 %6371, %v7965_v52   ;;  %v4991_v52 = vsub.f32 %v8022_v44, %v4245_v29  ;;  %v8096_v29 = vmul.f32 %v5551_v12, %v5551_v12  ;;  %v4985_v12 = vsub.f32 %v8022_v44, %v7998_v28 }
 0xeb0   :  { %v4254_v51 = vmul.f32 1.442695, %v4253_v13  ;;  %v4692_v13 = vsub.f32 %v8008_v34, %v8108_v43 }
 0xeb1   :  { %v8062_v10 = vmul.f32 %v4991_v52, %v4991_v52  ;;  %v4518_v52 = vsub.f32 %v8004_v32, %v8024_v45  ;;  %v8176_v26 = vmul.f32 %v4985_v12, %v4985_v12  ;;  %v4754_v12 = vmul.f32 1.442695, %v4753_v57 }
 0xeb2   :  { %7114 = vpow2.f32 %v4254_v51  ;;  %v4693_v47 = vmul.f32 %v4692_v13, %v4692_v13  ;;  %v4834_v51 = vmul.f32 1.442695, %v4833_v4  ;;  %v4932_v4 = vsub.f32 %v8017_v40, %v8108_v43 }
 0xeb3   :  { %6372 = vset.pattern.permute.xlu1 %v7766_v50  ;;  %v8116_v50 = vmul.f32 %v4745_v20, %v4745_v20  ;;  %v8149_v20 = vsub.f32 %v8034_v61, %v7998_v28  ;;  %v8151_v55 = vmul.f32 %v4518_v52, %v4518_v52  ;;  %v4304_v52 = vsub.f32 %v8002_v31, %v8108_v43 }
 0xeb4   :  { %4383 = vperm.xlu1 %6372, %v7976_v3   ;;  %v8055_v3 = vmul.f32 %v4911_v60, %v4911_v60  ;;  %v8114_v60 = vmul.f32 %v4665_v19, %v4665_v19  ;;  %v4513_v19 = vmul.f32 %v4512_v56, %v8060_v9  ;;  %v4673_v56 = vmul.f32 %v8041_v58, %v8060_v9 }
 0xeb5   :  { %9573 = vst [vmem:[#allocation35_spill] sm:$0xff] %v8116_v50  ;;  %9578 = vst [vmem:[#allocation40_spill] sm:$0xff] %v8151_v55  ;;  %v4594_v58 = vmul.f32 1.442695, %v4593_v22  ;;  %v4305_v18 = vmul.f32 %v4304_v52, %v4304_v52  ;;  %v4998_v22 = vsub.f32 %v8022_v44, %v8024_v45  ;;  %v4533_v55 = vmul.f32 %v4532_v7, %v4532_v7 }
 0xeb6   :  { %9572 = vst [vmem:[#allocation34_spill] sm:$0xff] %v8114_v60  ;;  %9583 = vst [vmem:[#allocation45_spill] sm:$0xff] %v8176_v26  ;;  %v8188_v26 = vpop.permute.xlu0 %4358  ;;  %v4913_v50 = vmul.f32 %v8055_v3, %v8060_v9  ;;  %v8192_v60 = vmul.f32 %v5065_v15, %v5065_v15  ;;  %v4852_v52 = vsub.f32 %v8012_v37, %v8108_v43 }
 0xeb7   :  { %v4473_v57 = vsub.f32 %v8000_v30, %v8188_v26  ;;  %v4361_v15 = vsub.f32 %v8002_v31, %v8188_v26  ;;  %v4534_v7 = vmul.f32 %v4533_v55, %v8158_v6  ;;  %v4553_v8 = vsub.f32 %v8004_v32, %v8188_v26  ;;  %v8223_v32 = vpop.eup %7112 }
 0xeb8   :  { %6374 = vset.pattern.permute.xlu1 %v7744_v0  ;;  %v8082_v0 = vmul.f32 %v5151_v5, %v5151_v5  ;;  %v4678_v5 = vsub.f32 %v8008_v34, %v8024_v45  ;;  %9584 = vst [vmem:[#allocation46_spill] sm:$0xff] %v8192_v60  ;;  %v4614_v13 = vmul.f32 %v4613_v46, %v8158_v6  ;;  %9586 = vst [vmem:[#allocation48_spill] sm:$0xff] %v8223_v32 }
 0xeb9   :  { %v4633_v14 = vsub.f32 %v8006_v33, %v8188_v26  ;;  %v4474_v55 = vmul.f32 %v4473_v57, %v4473_v57  ;;  %v4793_v60 = vsub.f32 %v8010_v36, %v8188_v26  ;;  %v4362_v46 = vmul.f32 %v4361_v15, %v4361_v15 }
 0xeba   :  { %v8156_v11 = vmul.f32 %v4678_v5, %v4678_v5  ;;  %v4514_v5 = vmul.f32 1.442695, %v4513_v19  ;;  %v4674_v19 = vmul.f32 1.442695, %v4673_v56  ;;  %v4773_v56 = vmul.f32 %v4772_v1, %v4772_v1 }
 0xebb   :  { %v4694_v1 = vmul.f32 %v4693_v47, %v8158_v6  ;;  %v4535_v47 = vmul.f32 1.442695, %v4534_v7  ;;  %v4615_v33 = vmul.f32 1.442695, %v4614_v13  ;;  %v4634_v57 = vmul.f32 %v4633_v14, %v4633_v14 }
 0xebc   :  { %9580 = vst [vmem:[#allocation42_spill] sm:$0xff] %v8156_v11  ;;  %v4918_v11 = vsub.f32 %v8017_v40, %v8024_v45  ;;  %7116 = vpow2.f32 %v4514_v5  ;;  %v4310_v5 = vmul.f32 %v8158_v6, %v4305_v18  ;;  %v4774_v18 = vmul.f32 %v4773_v56, %v8158_v6 }
 0xebd   :  { %7118 = vpow2.f32 %v4594_v58  ;;  %v4914_v58 = vmul.f32 1.442695, %v4913_v50  ;;  %v4873_v56 = vsub.f32 %v8012_v37, %v8188_v26  ;;  %v4794_v15 = vmul.f32 %v4793_v60, %v4793_v60 }
 0xebe   :  { %7120 = vpow2.f32 %v4674_v19  ;;  %v8200_v3 = vmul.f32 %v4918_v11, %v4918_v11  ;;  %v4455_v11 = vmul.f32 1.442695, %v4454_v2  ;;  %v4853_v19 = vmul.f32 %v4852_v52, %v4852_v52 }
 0xebf   :  { %7122 = vpow2.f32 %v4754_v12  ;;  %v4311_v50 = vmul.f32 1.442695, %v4310_v5  ;;  %v4713_v12 = vsub.f32 %v8008_v34, %v8188_v26  ;;  %v4554_v2 = vmul.f32 %v4553_v8, %v4553_v8  ;;  %v8228_v37 = vpop.eup %7114 }
 0xec0   :  { %9585 = vst [vmem:[#allocation47_spill] sm:$0xff] %v8200_v3  ;;  %7124 = vpow2.f32 %v4834_v51  ;;  %v8218_v3 = vpop.permute.xlu0 %4364  ;;  %v4695_v51 = vmul.f32 1.442695, %v4694_v1  ;;  %v4775_v52 = vmul.f32 1.442695, %v4774_v18  ;;  %v4854_v5 = vmul.f32 %v4853_v19, %v8158_v6  ;;  %9587 = vst [vmem:[#allocation49_spill] sm:$0xff] %v8228_v37 }
 0xec1   :  { %7126 = vpow2.f32 %v4914_v58  ;;  %v4933_v34 = vmul.f32 %v4932_v4, %v4932_v4  ;;  %v4475_v36 = vmul.f32 %v4474_v55, %v8218_v3  ;;  %v4714_v31 = vmul.f32 %v4713_v12, %v4713_v12 }
 0xec2   :  { %7128 = vpow2.f32 %v4455_v11  ;;  %v4953_v7 = vsub.f32 %v8017_v40, %v8188_v26  ;;  %v4367_v58 = vmul.f32 %v8218_v3, %v4362_v46  ;;  %v4874_v8 = vmul.f32 %v4873_v56, %v4873_v56 }
 0xec3   :  { %7130 = vpow2.f32 %v4311_v50  ;;  %v4993_v13 = vmul.f32 %v8062_v10, %v8060_v9  ;;  %v4555_v4 = vmul.f32 %v4554_v2, %v8218_v3  ;;  %v8236_v18 = vmul.f32 %v4998_v22, %v4998_v22 }
 0xec4   :  { %7132 = vpow2.f32 %v4535_v47  ;;  %v5012_v60 = vsub.f32 %v8022_v44, %v8108_v43  ;;  %v4635_v14 = vmul.f32 %v4634_v57, %v8218_v3  ;;  %v4855_v19 = vmul.f32 1.442695, %v4854_v5 }
 0xec5   :  { %7134 = vpow2.f32 %v4615_v33  ;;  %v5033_v55 = vsub.f32 %v8022_v44, %v8188_v26  ;;  %v4476_v50 = vmul.f32 1.442695, %v4475_v36  ;;  %v4715_v12 = vmul.f32 %v4714_v31, %v8218_v3 }
 0xec6   :  { %v4795_v22 = vmul.f32 %v4794_v15, %v8218_v3  ;;  %v4954_v46 = vmul.f32 %v4953_v7, %v4953_v7  ;;  %v4368_v56 = vmul.f32 1.442695, %v4367_v58  ;;  %7136 = vpow2.f32 %v4695_v51 }
 0xec7   :  { %v4875_v33 = vmul.f32 %v4874_v8, %v8218_v3  ;;  %v5092_v2 = vsub.f32 %v8029_v48, %v8108_v43  ;;  %v4556_v57 = vmul.f32 1.442695, %v4555_v4  ;;  %7138 = vpow2.f32 %v4775_v52 }
 0xec8   :  { %v5013_v44 = vmul.f32 %v5012_v60, %v5012_v60  ;;  %v5113_v36 = vsub.f32 %v8029_v48, %v8188_v26  ;;  %v4636_v5 = vmul.f32 1.442695, %v4635_v14  ;;  %7140 = vpow2.f32 %v4855_v19 }
 0xec9   :  { %v8233_v1 = vpop.eup %7116  ;;  %v4934_v31 = vmul.f32 %v4933_v34, %v8158_v6  ;;  %v5034_v15 = vmul.f32 %v5033_v55, %v5033_v55  ;;  %7142 = vpow2.f32 %v4476_v50  ;;  %v4716_v51 = vmul.f32 1.442695, %v4715_v12 }
 0xeca   :  { %9588 = vst [vmem:[#allocation50_spill] sm:$0xff] %v8233_v1  ;;  %v8240_v11 = vpop.eup %7118  ;;  %v4796_v58 = vmul.f32 1.442695, %v4795_v22  ;;  %v4955_v8 = vmul.f32 %v4954_v46, %v8218_v3  ;;  %7144 = vpow2.f32 %v4368_v56  ;;  %v5073_v52 = vmul.f32 %v8080_v21, %v8060_v9 }
 0xecb   :  { %9589 = vst [vmem:[#allocation51_spill] sm:$0xff] %v8240_v11  ;;  %v8245_v10 = vpop.eup %7120  ;;  %v5093_v4 = vmul.f32 %v5092_v2, %v5092_v2  ;;  %7146 = vpow2.f32 %v4556_v57  ;;  %v5014_v14 = vmul.f32 %v5013_v44, %v8158_v6  ;;  %v5114_v34 = vmul.f32 %v5113_v36, %v5113_v36  ;;  %v8601_v11 = vld [vmem:[#allocation19 + $0x6] ss:$0 sm:$0xff] }
 0xecc   :  { %9590 = vst [vmem:[#allocation52_spill] sm:$0xff] %v8245_v10  ;;  %v8249_v47 = vpop.eup %7122  ;;  %v5172_v19 = vsub.f32 %v8031_v49, %v8108_v43  ;;  %7148 = vpow2.f32 %v4636_v5  ;;  %v4935_v55 = vmul.f32 1.442695, %v4934_v31  ;;  %v5035_v50 = vmul.f32 %v5034_v15, %v8218_v3 }
 0xecd   :  { %9591 = vst [vmem:[#allocation53_spill] sm:$0xff] %v8249_v47  ;;  %v8257_v7 = vpop.eup %7124  ;;  %v4876_v47 = vmul.f32 1.442695, %v4875_v33  ;;  %v5193_v12 = vsub.f32 %v8031_v49, %v8188_v26  ;;  %7150 = vpow2.f32 %v4716_v51  ;;  %v4956_v21 = vmul.f32 1.442695, %v4955_v8 }
 0xece   :  { %9592 = vst [vmem:[#allocation54_spill] sm:$0xff] %v8257_v7  ;;  %v8262_v60 = vpop.eup %7126  ;;  %v5078_v46 = vsub.f32 %v8029_v48, %v8024_v45  ;;  %v5153_v56 = vmul.f32 %v8082_v0, %v8060_v9  ;;  %7152 = vpow2.f32 %v4796_v58  ;;  %v4994_v33 = vmul.f32 1.442695, %v4993_v13 }
 0xecf   :  { %9593 = vst [vmem:[#allocation55_spill] sm:$0xff] %v8262_v60  ;;  %v8270_v22 = vpop.eup %7128  ;;  %v5074_v2 = vmul.f32 1.442695, %v5073_v52  ;;  %v5094_v57 = vmul.f32 %v5093_v4, %v8158_v6  ;;  %7154 = vpow2.f32 %v4876_v47  ;;  %v5015_v36 = vmul.f32 1.442695, %v5014_v14 }
 0xed0   :  { %9594 = vst [vmem:[#allocation56_spill] sm:$0xff] %v8270_v22  ;;  %v8277_v44 = vpop.eup %7130  ;;  %v5115_v5 = vmul.f32 %v5114_v34, %v8218_v3  ;;  %v5173_v31 = vmul.f32 %v5172_v19, %v5172_v19  ;;  %7156 = vpow2.f32 %v4935_v55  ;;  %v5036_v51 = vmul.f32 1.442695, %v5035_v50 }
 0xed1   :  { %9595 = vst [vmem:[#allocation57_spill] sm:$0xff] %v8277_v44  ;;  %v8280_v15 = vpop.eup %7132  ;;  %v5158_v48 = vsub.f32 %v8031_v49, %v8024_v45  ;;  %v5194_v0 = vmul.f32 %v5193_v12, %v5193_v12  ;;  %7158 = vpow2.f32 %v4956_v21  ;;  %v8286_v13 = vmul.f32 %v5078_v46, %v5078_v46 }
 0xed2   :  { %9596 = vst [vmem:[#allocation58_spill] sm:$0xff] %v8280_v15  ;;  %v8284_v58 = vpop.eup %7134  ;;  %v8290_v47 = vmul.f32 %v8140_v16, %v8140_v16  ;;  %v5154_v8 = vmul.f32 1.442695, %v5153_v56  ;;  %7160 = vpow2.f32 %v4994_v33  ;;  %v5095_v52 = vmul.f32 1.442695, %v5094_v57 }
 0xed3   :  { %9597 = vst [vmem:[#allocation59_spill] sm:$0xff] %v8284_v58  ;;  %v5252_v4 = vsub.f32 %v8034_v61, %v8108_v43  ;;  %v8294_v14 = vpop.eup %7136  ;;  %7162 = vpow2.f32 %v5015_v36  ;;  %v5116_v49 = vmul.f32 1.442695, %v5115_v5  ;;  %v5174_v34 = vmul.f32 %v5173_v31, %v8158_v6 }
 0xed4   :  { %9598 = vst [vmem:[#allocation60_spill] sm:$0xff] %v8294_v14  ;;  %v5273_v19 = vsub.f32 %v8034_v61, %v8188_v26  ;;  %v8299_v55 = vpop.eup %7138  ;;  %7164 = vpow2.f32 %v5036_v51  ;;  %v8301_v16 = vmul.f32 %v5158_v48, %v5158_v48  ;;  %v5195_v50 = vmul.f32 %v5194_v0, %v8218_v3 }
 0xed5   :  { %9599 = vst [vmem:[#allocation61_spill] sm:$0xff] %v8299_v55  ;;  %v8306_v12 = vmul.f32 %v8149_v20, %v8149_v20  ;;  %v8308_v21 = vpop.eup %7140  ;;  %7166 = vpow2.f32 %v5074_v2  ;;  %v5233_v46 = vmul.f32 %v8086_v23, %v8060_v9  ;;  %v5332_v56 = vsub.f32 %v8036_v53, %v8108_v43 }
 0xed6   :  { %9600 = vst [vmem:[#allocation62_spill] sm:$0xff] %v8308_v21  ;;  %v8314_v33 = vpop.eup %7142  ;;  %7168 = vpow2.f32 %v5095_v52  ;;  %v5238_v57 = vsub.f32 %v8034_v61, %v8024_v45  ;;  %v5253_v36 = vmul.f32 %v5252_v4, %v5252_v4  ;;  %v5353_v20 = vsub.f32 %v8036_v53, %v8188_v26 }
 0xed7   :  { %9601 = vst [vmem:[#allocation63_spill] sm:$0xff] %v8314_v33  ;;  %v8320_v5 = vpop.eup %7144  ;;  %7170 = vpow2.f32 %v5116_v49  ;;  %v5175_v2 = vmul.f32 1.442695, %v5174_v34  ;;  %v5274_v31 = vmul.f32 %v5273_v19, %v5273_v19  ;;  %v5196_v23 = vmul.f32 1.442695, %v5195_v50 }
 0xed8   :  { %9602 = vst [vmem:[#allocation64_spill] sm:$0xff] %v8320_v5  ;;  %v8322_v51 = vpop.eup %7146  ;;  %7172 = vpow2.f32 %v5154_v8  ;;  %v5313_v48 = vmul.f32 %v8088_v24, %v8060_v9  ;;  %v5412_v0 = vsub.f32 %v8038_v54, %v8108_v43  ;;  %v5234_v52 = vmul.f32 1.442695, %v5233_v46 }
 0xed9   :  { %9603 = vst [vmem:[#allocation65_spill] sm:$0xff] %v8322_v51  ;;  %v8328_v61 = vpop.eup %7148  ;;  %v5305_v4 = vsub.f32 %v8036_v53, %v7998_v28  ;;  %v5333_v60 = vmul.f32 %v5332_v56, %v5332_v56  ;;  %v5433_v49 = vsub.f32 %v8038_v54, %v8188_v26  ;;  %v8336_v8 = vmul.f32 %v5238_v57, %v5238_v57 }
 0xeda   :  { %9604 = vst [vmem:[#allocation66_spill] sm:$0xff] %v8328_v61  ;;  %v8334_v34 = vpop.eup %7150  ;;  %v5254_v19 = vmul.f32 %v5253_v36, %v8158_v6  ;;  %v5354_v24 = vmul.f32 %v5353_v20, %v5353_v20  ;;  %7174 = vpow2.f32 %v5175_v2  ;;  %v5275_v61 = vmul.f32 %v5274_v31, %v8218_v3 }
 0xedb   :  { %9605 = vst [vmem:[#allocation67_spill] sm:$0xff] %v8334_v34  ;;  %v8339_v50 = vpop.eup %7152  ;;  %v5318_v46 = vsub.f32 %v8036_v53, %v8024_v45  ;;  %v5492_v56 = vsub.f32 %v8043_v59, %v8108_v43  ;;  %7176 = vpow2.f32 %v5196_v23  ;;  %v5314_v34 = vmul.f32 1.442695, %v5313_v48 }
 0xedc   :  { %9606 = vst [vmem:[#allocation68_spill] sm:$0xff] %v8339_v50  ;;  %v8346_v51 = vpop.eup %7154  ;;  %v5393_v57 = vmul.f32 %v8090_v25, %v8060_v9  ;;  %v5413_v36 = vmul.f32 %v5412_v0, %v5412_v0  ;;  %v8352_v50 = vmul.f32 %v5305_v4, %v5305_v4  ;;  %v5334_v2 = vmul.f32 %v5333_v60, %v8158_v6 }
 0xedd   :  { %9607 = vst [vmem:[#allocation69_spill] sm:$0xff] %v8346_v51  ;;  %v8350_v20 = vpop.eup %7156  ;;  %v5434_v31 = vmul.f32 %v5433_v49, %v5433_v49  ;;  %v5513_v53 = vsub.f32 %v8043_v59, %v8188_v26  ;;  %7178 = vpow2.f32 %v5234_v52  ;;  %v5255_v51 = vmul.f32 1.442695, %v5254_v19 }
 0xede   :  { %9608 = vst [vmem:[#allocation70_spill] sm:$0xff] %v8350_v20  ;;  %v8357_v5 = vpop.eup %7158  ;;  %v5355_v23 = vmul.f32 %v5354_v24, %v8218_v3  ;;  %v5276_v25 = vmul.f32 1.442695, %v5275_v61  ;;  %v5473_v0 = vmul.f32 %v8094_v27, %v8060_v9  ;;  %v5493_v4 = vmul.f32 %v5492_v56, %v5492_v56 }
 0xedf   :  { %9609 = vst [vmem:[#allocation71_spill] sm:$0xff] %v8357_v5  ;;  %v8360_v48 = vpop.eup %7160  ;;  %v5572_v60 = vsub.f32 %v8045_v62, %v8108_v43  ;;  %7180 = vpow2.f32 %v5314_v34  ;;  %v5394_v20 = vmul.f32 1.442695, %v5393_v57  ;;  %v5414_v5 = vmul.f32 %v5413_v36, %v8158_v6 }
 0xee0   :  { %9610 = vst [vmem:[#allocation72_spill] sm:$0xff] %v8360_v48  ;;  %v8366_v49 = vpop.eup %7162  ;;  %v5593_v52 = vsub.f32 %v8045_v62, %v8188_v26  ;;  %v5335_v24 = vmul.f32 1.442695, %v5334_v2  ;;  %v5435_v61 = vmul.f32 %v5434_v31, %v8218_v3  ;;  %v5514_v48 = vmul.f32 %v5513_v53, %v5513_v53 }
 0xee1   :  { %9611 = vst [vmem:[#allocation73_spill] sm:$0xff] %v8366_v49  ;;  %v8371_v19 = vpop.eup %7164  ;;  %v5652_v27 = vsub.f32 %v8047_v63, %v8108_v43  ;;  %7182 = vpow2.f32 %v5255_v51  ;;  %v5356_v49 = vmul.f32 1.442695, %v5355_v23  ;;  %v5553_v34 = vmul.f32 %v8096_v29, %v8060_v9 }
 0xee2   :  { %9612 = vst [vmem:[#allocation74_spill] sm:$0xff] %v8371_v19  ;;  %v8376_v56 = vpop.eup %7166  ;;  %v5673_v57 = vsub.f32 %v8047_v63, %v8188_v26  ;;  %7184 = vpow2.f32 %v5276_v25  ;;  %v5474_v2 = vmul.f32 1.442695, %v5473_v0  ;;  %v5494_v31 = vmul.f32 %v5493_v4, %v8158_v6 }
 0xee3   :  { %9613 = vst [vmem:[#allocation75_spill] sm:$0xff] %v8376_v56  ;;  %v8382_v36 = vpop.eup %7168  ;;  %v5573_v53 = vmul.f32 %v5572_v60, %v5572_v60  ;;  %v8387_v43 = vmul.f32 %v5318_v46, %v5318_v46  ;;  %7186 = vpow2.f32 %v5394_v20  ;;  %v5415_v51 = vmul.f32 1.442695, %v5414_v5 }
 0xee4   :  { %9614 = vst [vmem:[#allocation76_spill] sm:$0xff] %v8382_v36  ;;  %v8385_v19 = vpop.eup %7170  ;;  %v5594_v23 = vmul.f32 %v5593_v52, %v5593_v52  ;;  %7188 = vpow2.f32 %v5335_v24  ;;  %v5436_v29 = vmul.f32 1.442695, %v5435_v61  ;;  %v5515_v63 = vmul.f32 %v5514_v48, %v8218_v3 }
 0xee5   :  { %9615 = vst [vmem:[#allocation77_spill] sm:$0xff] %v8385_v19  ;;  %v8389_v56 = vpop.eup %7172  ;;  %v5653_v26 = vmul.f32 %v5652_v27, %v5652_v27  ;;  %7190 = vpow2.f32 %v5356_v49  ;;  %v5554_v25 = vmul.f32 1.442695, %v5553_v34  ;;  %v5633_v0 = vmul.f32 %v8098_v35, %v8060_v9 }
 0xee6   :  { %9616 = vst [vmem:[#allocation78_spill] sm:$0xff] %v8389_v56  ;;  %v5674_v4 = vmul.f32 %v5673_v57, %v5673_v57  ;;  %v5385_v46 = vsub.f32 %v8038_v54, %v7998_v28  ;;  %7192 = vpow2.f32 %v5474_v2  ;;  %v5495_v5 = vmul.f32 1.442695, %v5494_v31 }
 0xee7   :  { %v5574_v20 = vmul.f32 %v5573_v53, %v8158_v6  ;;  %v8397_v52 = vpop.eup %7174  ;;  %v5398_v48 = vsub.f32 %v8038_v54, %v8024_v45  ;;  %7194 = vpow2.f32 %v5415_v51  ;;  %v5595_v49 = vmul.f32 %v5594_v23, %v8218_v3 }
 0xee8   :  { %9617 = vst [vmem:[#allocation79_spill] sm:$0xff] %v8397_v52  ;;  %v8403_v9 = vpop.eup %7176  ;;  %7196 = vpow2.f32 %v5436_v29  ;;  %v5465_v35 = vsub.f32 %v8043_v59, %v7998_v28  ;;  %v5516_v61 = vmul.f32 1.442695, %v5515_v63  ;;  %v5654_v27 = vmul.f32 %v5653_v26, %v8158_v6  ;;  %v9639_v52 = vld [vmem:[#allocation39_spill] sm:$0xff] }
 0xee9   :  { %9618 = vst [vmem:[#allocation80_spill] sm:$0xff] %v8403_v9  ;;  %7198 = vpow2.f32 %v5554_v25  ;;  %v5634_v57 = vmul.f32 1.442695, %v5633_v0  ;;  %v8413_v31 = vmul.f32 %v5385_v46, %v5385_v46  ;;  %v5478_v53 = vsub.f32 %v8043_v59, %v8024_v45 }
 0xeea   :  { %v8409_v2 = vpop.eup %7178  ;;  %7200 = vpow2.f32 %v5495_v5  ;;  %v5575_v51 = vmul.f32 1.442695, %v5574_v20  ;;  %v8419_v23 = vmul.f32 %v5398_v48, %v5398_v48  ;;  %v5596_v29 = vmul.f32 1.442695, %v5595_v49 }
 0xeeb   :  { %9619 = vst [vmem:[#allocation81_spill] sm:$0xff] %v8409_v2  ;;  %v5655_v26 = vmul.f32 1.442695, %v5654_v27  ;;  %v8427_v59 = vmul.f32 %v5465_v35, %v5465_v35  ;;  %v8435_v46 = vmul.f32 %v5478_v53, %v5478_v53  ;;  %v8445_v20 = vsub.f32 %v8045_v62, %v8024_v45 }
 0xeec   :  { %v8421_v63 = vpop.eup %7180  ;;  %v9565_v7 = vmov 9  }
 0xeed   :  { %9620 = vst [vmem:[#allocation82_spill] sm:$0xff] %v8421_v63 }
 0xefa   :  { %v4208_v60 = vpop.xlane.xlu1 %4207 }
 0xefb   :  { %v4209_v24 = vsub.f32 %v7985_v17, %v4208_v60  ;;  %v5675_v17 = vmul.f32 %v5674_v4, %v8218_v3  ;;  %v8429_v4 = vpop.eup %7182 }
 0xefc   :  { %9621 = vst [vmem:[#allocation83_spill] sm:$0xff] %v8429_v4 }
 0xefd   :  { %v4210_v34 = vmul.f32 1.442695, %v4209_v24  ;;  %v5676_v0 = vmul.f32 1.442695, %v5675_v17  ;;  %v9628_v17 = vld [vmem:[#allocation28_spill] sm:$0xff] }
 0xefe   :  { %v8411_v54 = vpop.permute.xlu1 %4231 }
 0xeff   :  { %7202 = vpow2.f32 %v4210_v34  ;;  %v4427_v6 = vmul.f32 %v8100_v38, %v8411_v54  ;;  %v4234_v3 = vmul.f32 %v8411_v54, %v8102_v39  ;;  %v4507_v25 = vmul.f32 %v8104_v41, %v8411_v54  ;;  %v8437_v39 = vpop.eup %7184  ;;  %v9626_v34 = vld [vmem:[#allocation35_spill] sm:$0xff] }
 0xf00   :  { %7204 = vpow2.f32 %v5516_v61  ;;  %v4587_v60 = vmul.f32 %v8106_v42, %v8411_v54  ;;  %9622 = vst [vmem:[#allocation84_spill] sm:$0xff] %v8437_v39  ;;  %v8441_v41 = vsub.f32 %v8045_v62, %v7998_v28  ;;  %v8447_v24 = vpop.eup %7186  ;;  %v9624_v42 = vld [vmem:[#allocation34_spill] sm:$0xff]  ;;  %v9634_v39 = vld [vmem:[#allocation37_spill] sm:$0xff] }
 0xf01   :  { %7206 = vpow2.f32 %v5634_v57  ;;  %v4428_v5 = vmul.f32 1.442695, %v4427_v6  ;;  %9623 = vst [vmem:[#allocation85_spill] sm:$0xff] %v8447_v24  ;;  %v4235_v48 = vmul.f32 1.442695, %v4234_v3  ;;  %v4667_v49 = vmul.f32 %v9624_v42, %v8411_v54  ;;  %v8451_v35 = vpop.eup %7188  ;;  %v9630_v3 = vld [vmem:[#allocation36_spill] sm:$0xff] }
 0xf02   :  { %v8431_v38 = vpop.permute.xlu1 %4282  ;;  %7208 = vpow2.f32 %v5575_v51  ;;  %9625 = vst [vmem:[#allocation34_spill] sm:$0xff] %v8451_v35  ;;  %v4508_v27 = vmul.f32 1.442695, %v4507_v25  ;;  %v4747_v57 = vmul.f32 %v9626_v34, %v8411_v54  ;;  %v8457_v62 = vpop.eup %7190  ;;  %v9629_v51 = vld [vmem:[#allocation29_spill] sm:$0xff]  ;;  %v9632_v25 = vld [vmem:[#allocation30_spill] sm:$0xff]  ;;  %v9633_v34 = vld [vmem:[#allocation31_spill] sm:$0xff]  ;;  %v4907_v35 = vmul.f32 %v9634_v39, %v8411_v54 }
 0xf03   :  { %7210 = vpow2.f32 %v5596_v29  ;;  %v4445_v61 = vsub.f32 %v8000_v30, %v8431_v38  ;;  %9627 = vst [vmem:[#allocation35_spill] sm:$0xff] %v8457_v62  ;;  %v4285_v53 = vsub.f32 %v9628_v17, %v8431_v38  ;;  %v4525_v6 = vsub.f32 %v9629_v51, %v8431_v38  ;;  %v8465_v42 = vpop.eup %7192 }
 0xf04   :  { %7212 = vpow2.f32 %v5655_v26  ;;  %v4588_v29 = vmul.f32 1.442695, %v4587_v60  ;;  %v4827_v26 = vmul.f32 %v9630_v3, %v8411_v54  ;;  %9631 = vst [vmem:[#allocation28_spill] sm:$0xff] %v8465_v42  ;;  %v4685_v62 = vsub.f32 %v9633_v34, %v8431_v38  ;;  %v8475_v63 = vpop.eup %7194  ;;  %v9636_v60 = vld [vmem:[#allocation38_spill] sm:$0xff]  ;;  %v9637_v42 = vld [vmem:[#allocation32_spill] sm:$0xff] }
 0xf05   :  { %7214 = vpow2.f32 %v5676_v0  ;;  %v4605_v0 = vsub.f32 %v9632_v25, %v8431_v38  ;;  %9635 = vst [vmem:[#allocation29_spill] sm:$0xff] %v8475_v63  ;;  %v4668_v3 = vmul.f32 1.442695, %v4667_v49  ;;  %v4765_v9 = vsub.f32 %v9637_v42, %v8431_v38  ;;  %v9641_v63 = vld [vmem:[#allocation40_spill] sm:$0xff]  ;;  %v9643_v49 = vld [vmem:[#allocation41_spill] sm:$0xff] }
 0xf06   :  { %7216 = vpow2.f32 %v4428_v5  ;;  %v8481_v5 = vpop.eup %7196  ;;  %v4446_v2 = vmul.f32 %v4445_v61, %v4445_v61  ;;  %v4748_v56 = vmul.f32 1.442695, %v4747_v57  ;;  %v4286_v39 = vmul.f32 %v4285_v53, %v4285_v53  ;;  %v9644_v57 = vld [vmem:[#allocation42_spill] sm:$0xff] }
 0xf07   :  { %v8467_v24 = vpop.permute.xlu1 %4269  ;;  %7218 = vpow2.f32 %v4235_v48  ;;  %9638 = vst [vmem:[#allocation36_spill] sm:$0xff] %v8481_v5  ;;  %v8485_v36 = vpop.eup %7198  ;;  %v4606_v5 = vmul.f32 %v4605_v0, %v4605_v0  ;;  %v4686_v61 = vmul.f32 %v4685_v62, %v4685_v62  ;;  %v4828_v55 = vmul.f32 1.442695, %v4827_v26  ;;  %v9647_v0 = vld [vmem:[#allocation33_spill] sm:$0xff] }
 0xf08   :  { %v4440_v4 = vmul.f32 %v9636_v60, %v8467_v24  ;;  %v4272_v19 = vmul.f32 %v8467_v24, %v9639_v52  ;;  %7220 = vpow2.f32 %v4508_v27  ;;  %9640 = vst [vmem:[#allocation30_spill] sm:$0xff] %v8485_v36  ;;  %v4520_v33 = vmul.f32 %v9641_v63, %v8467_v24  ;;  %v8489_v48 = vpop.eup %7200  ;;  %v9645_v63 = vld [vmem:[#allocation43_spill] sm:$0xff] }
 0xf09   :  { %v4526_v60 = vmul.f32 %v4525_v6, %v4525_v6  ;;  %7222 = vpow2.f32 %v4588_v29  ;;  %9642 = vst [vmem:[#allocation31_spill] sm:$0xff] %v8489_v48  ;;  %v4600_v21 = vmul.f32 %v9643_v49, %v8467_v24  ;;  %v4680_v53 = vmul.f32 %v9644_v57, %v8467_v24 }
 0xf0a   :  { %v4441_v27 = vmul.f32 1.442695, %v4440_v4  ;;  %v4760_v6 = vmul.f32 %v9645_v63, %v8467_v24  ;;  %v4766_v29 = vmul.f32 %v4765_v9, %v4765_v9  ;;  %v4273_v26 = vmul.f32 1.442695, %v4272_v19 }
 0xf0b   :  { %7224 = vpow2.f32 %v4668_v3  ;;  %v4845_v4 = vsub.f32 %v9647_v0, %v8431_v38  ;;  %v4521_v48 = vmul.f32 1.442695, %v4520_v33  ;;  %v8511_v9 = vmul.f32 1.442695, %v4907_v35 }
 0xf0c   :  { %v8493_v14 = vpop.eup %7202  ;;  %v8495_v52 = vpop.permute.xlu1 %4288  ;;  %7226 = vpow2.f32 %v4748_v56  ;;  %v4601_v58 = vmul.f32 1.442695, %v4600_v21  ;;  %v4681_v3 = vmul.f32 1.442695, %v4680_v53  ;;  %v8519_v0 = vmul.f32 1.442695, %v4760_v6 }
 0xf0d   :  { %v8501_v36 = vpop.eup %7204  ;;  %4276 = vperm.xlu0 %6376, %v8493_v14   ;;  %4239 = vperm.xlu1 %6374, %v8493_v14   ;;  %v4447_v62 = vmul.f32 %v4446_v2, %v8495_v52  ;;  %v4291_v57 = vmul.f32 %v8495_v52, %v4286_v39  ;;  %v4607_v2 = vmul.f32 %v4606_v5, %v8495_v52  ;;  %7228 = vpow2.f32 %v4828_v55  ;;  %v9651_v39 = vld [vmem:[#allocation44_spill] sm:$0xff] }
 0xf0e   :  { %9646 = vst [vmem:[#allocation37_spill] sm:$0xff] %v8501_v36  ;;  %v8508_v49 = vpop.eup %7206  ;;  %v4527_v36 = vmul.f32 %v4526_v60, %v8495_v52  ;;  %7230 = vpow2.f32 %v4441_v27  ;;  %v4840_v33 = vmul.f32 %v9651_v39, %v8467_v24  ;;  %v7767_v35 = vmov 5   ;;  %v9654_v39 = vld [vmem:[#allocation47_spill] sm:$0xff] }
 0xf0f   :  { %9648 = vst [vmem:[#allocation38_spill] sm:$0xff] %v8508_v49  ;;  %v8513_v63 = vpop.eup %7208  ;;  %v7768_v49 = vmov 1   ;;  %v4448_v21 = vmul.f32 1.442695, %v4447_v62  ;;  %7232 = vpow2.f32 %v4273_v26  ;;  %v4687_v55 = vmul.f32 %v4686_v61, %v8495_v52 }
 0xf10   :  { %9649 = vst [vmem:[#allocation32_spill] sm:$0xff] %v8513_v63  ;;  %v8517_v19 = vpop.eup %7210  ;;  %v4846_v5 = vmul.f32 %v4845_v4, %v4845_v4  ;;  %v4292_v53 = vmul.f32 1.442695, %v4291_v57  ;;  %7234 = vpow2.f32 %v4521_v48  ;;  %v4767_v6 = vmul.f32 %v4766_v29, %v8495_v52 }
 0xf11   :  { %9650 = vst [vmem:[#allocation39_spill] sm:$0xff] %v8517_v19  ;;  %v8523_v56 = vpop.eup %7212  ;;  %6379 = vset.pattern.permute.xlu0 %v7767_v35  ;;  %6375 = vset.pattern.permute.xlu1 %v7768_v49  ;;  %v8525_v60 = vpop.permute.xlu1 %4320  ;;  %v4920_v49 = vmul.f32 %v9654_v39, %v8467_v24  ;;  %v4528_v35 = vmul.f32 1.442695, %v4527_v36  ;;  %7236 = vpow2.f32 %v4601_v58  ;;  %v4608_v62 = vmul.f32 1.442695, %v4607_v2 }
 0xf12   :  { %9652 = vst [vmem:[#allocation40_spill] sm:$0xff] %v8523_v56  ;;  %v8528_v27 = vpop.eup %7214  ;;  %4333 = vperm.xlu0 %6379, %v8493_v14   ;;  %4257 = vperm.xlu1 %6375, %v8493_v14   ;;  %v4925_v61 = vsub.f32 %v8017_v40, %v8431_v38  ;;  %v4459_v4 = vsub.f32 %v8000_v30, %v8525_v60  ;;  %7238 = vpow2.f32 %v4681_v3  ;;  %v4688_v36 = vmul.f32 1.442695, %v4687_v55 }
 0xf13   :  { %9653 = vst [vmem:[#allocation41_spill] sm:$0xff] %v8528_v27  ;;  %v8537_v26 = vpop.eup %7216  ;;  %v4323_v57 = vsub.f32 %v9628_v17, %v8525_v60  ;;  %v4539_v48 = vsub.f32 %v9629_v51, %v8525_v60  ;;  %7240 = vpow2.f32 %v4448_v21  ;;  %v4619_v58 = vsub.f32 %v9632_v25, %v8525_v60 }
 0xf14   :  { %v8545_v29 = vpop.eup %7218  ;;  %v4841_v40 = vmul.f32 1.442695, %v4840_v33  ;;  %v7769_v39 = vmov 8   ;;  %v7770_v30 = vmov 3   ;;  %7242 = vpow2.f32 %v4292_v53 }
 0xf15   :  { %9655 = vst [vmem:[#allocation42_spill] sm:$0xff] %v8545_v29  ;;  %v8549_v2 = vpop.eup %7220  ;;  %v4699_v17 = vsub.f32 %v9633_v34, %v8525_v60  ;;  %v4768_v51 = vmul.f32 1.442695, %v4767_v6  ;;  %v4847_v3 = vmul.f32 %v4846_v5, %v8495_v52  ;;  %7244 = vpow2.f32 %v4528_v35  ;;  %v8564_v34 = vld [vmem:[#allocation19 + $0x1] ss:$0 sm:$0xff] }
 0xf16   :  { %9656 = vst [vmem:[#allocation43_spill] sm:$0xff] %v8549_v2  ;;  %6382 = vset.pattern.permute.xlu0 %v7769_v39  ;;  %6377 = vset.pattern.permute.xlu1 %v7770_v30  ;;  %v8551_v27 = vpop.permute.xlu1 %4339  ;;  %v8556_v21 = vpop.eup %7222  ;;  %v4779_v25 = vsub.f32 %v9637_v42, %v8525_v60  ;;  %v8562_v33 = vmul.f32 1.442695, %v4920_v49  ;;  %v4926_v55 = vmul.f32 %v4925_v61, %v4925_v61  ;;  %7246 = vpow2.f32 %v4608_v62  ;;  %v8568_v6 = vld [vmem:[#allocation19] ss:$0 sm:$0xff] }
 0xf17   :  { %9657 = vst [vmem:[#allocation33_spill] sm:$0xff] %v8556_v21  ;;  %4390 = vperm.xlu0 %6382, %v8493_v14   ;;  %4295 = vperm.xlu1 %6377, %v8493_v14   ;;  %v4460_v53 = vmul.f32 %v4459_v4, %v4459_v4  ;;  %v4324_v39 = vmul.f32 %v4323_v57, %v4323_v57  ;;  %7248 = vpow2.f32 %v4688_v36  ;;  %v8574_v49 = vld [vmem:[#allocation19 + $0x2] ss:$0 sm:$0xff]  ;;  %v8578_v62 = vld [vmem:[#allocation19 + $0x3] ss:$0 sm:$0xff]  ;;  %v7771_v63 = vmov 4  }
 0xf18   :  { %v4540_v30 = vmul.f32 %v4539_v48, %v4539_v48  ;;  %v4466_v5 = vsub.f32 %v8564_v34, %v8551_v27  ;;  %v4342_v35 = vsub.f32 %v8568_v6, %v8551_v27  ;;  %v4620_v19 = vmul.f32 %v4619_v58, %v4619_v58  ;;  %v8572_v42 = vpop.eup %7224  ;;  %v8586_v36 = vld [vmem:[#allocation19 + $0x4] ss:$0 sm:$0xff] }
 0xf19   :  { %9658 = vst [vmem:[#allocation44_spill] sm:$0xff] %v8572_v42  ;;  %v4546_v61 = vsub.f32 %v8574_v49, %v8551_v27  ;;  %v4626_v4 = vsub.f32 %v8578_v62, %v8551_v27  ;;  %v4700_v57 = vmul.f32 %v4699_v17, %v4699_v17  ;;  %v4848_v48 = vmul.f32 1.442695, %v4847_v3  ;;  %v8582_v56 = vpop.eup %7226  ;;  %v8597_v3 = vld [vmem:[#allocation19 + $0x5] ss:$0 sm:$0xff] }
 0xf1a   :  { %9659 = vst [vmem:[#allocation47_spill] sm:$0xff] %v8582_v56  ;;  %v4706_v15 = vsub.f32 %v8586_v36, %v8551_v27  ;;  %7250 = vpow2.f32 %v8519_v0  ;;  %v4780_v44 = vmul.f32 %v4779_v25, %v4779_v25  ;;  %v4927_v22 = vmul.f32 %v4926_v55, %v8495_v52  ;;  %v8593_v17 = vpop.eup %7228 }
 0xf1b   :  { %6378 = vset.pattern.permute.xlu1 %v7771_v63  ;;  %v8584_v58 = vpop.permute.xlu1 %4326  ;;  %6384 = vset.pattern.permute.xlu0 %v9565_v7  ;;  %9660 = vst [vmem:[#allocation86_spill] sm:$0xff] %v8593_v17  ;;  %7252 = vpow2.f32 %v4768_v51  ;;  %v4786_v10 = vsub.f32 %v8597_v3, %v8551_v27  ;;  %v4859_v0 = vsub.f32 %v8601_v11, %v8525_v60  ;;  %v8605_v25 = vpop.eup %7230 }
 0xf1c   :  { %4314 = vperm.xlu1 %6378, %v8493_v14   ;;  %v4461_v63 = vmul.f32 %v4460_v53, %v8584_v58  ;;  %9661 = vst [vmem:[#allocation87_spill] sm:$0xff] %v8605_v25  ;;  %v4467_v55 = vmul.f32 %v4466_v5, %v4466_v5  ;;  %v4329_v7 = vmul.f32 %v8584_v58, %v4324_v39  ;;  %7254 = vpow2.f32 %v4841_v40  ;;  %v8608_v37 = vpop.eup %7232 }
 0xf1d   :  { %v4343_v1 = vmul.f32 %v4342_v35, %v4342_v35  ;;  %9662 = vst [vmem:[#allocation88_spill] sm:$0xff] %v8608_v37  ;;  %v4541_v51 = vmul.f32 %v4540_v30, %v8584_v58  ;;  %v4547_v53 = vmul.f32 %v4546_v61, %v4546_v61  ;;  %v4627_v32 = vmul.f32 %v4626_v4, %v4626_v4  ;;  %v8611_v17 = vpop.eup %7234 }
 0xf1e   :  { %7256 = vpow2.f32 %v4848_v48  ;;  %9663 = vst [vmem:[#allocation89_spill] sm:$0xff] %v8611_v17  ;;  %v4621_v56 = vmul.f32 %v4620_v19, %v8584_v58  ;;  %v4701_v42 = vmul.f32 %v4700_v57, %v8584_v58  ;;  %v4707_v21 = vmul.f32 %v4706_v15, %v4706_v15  ;;  %v8615_v5 = vpop.eup %7236 }
 0xf1f   :  { %v4928_v2 = vmul.f32 1.442695, %v4927_v22  ;;  %9664 = vst [vmem:[#allocation90_spill] sm:$0xff] %v8615_v5  ;;  %v7773_v39 = vmov 6   ;;  %v4462_v35 = vmul.f32 1.442695, %v4461_v63  ;;  %v4787_v37 = vmul.f32 %v4786_v10, %v4786_v10  ;;  %v8621_v4 = vpop.eup %7238 }
 0xf20   :  { %6380 = vset.pattern.permute.xlu1 %v7773_v39  ;;  %v8617_v40 = vpop.permute.xlu1 %4345  ;;  %v4860_v30 = vmul.f32 %v4859_v0, %v4859_v0  ;;  %v4866_v61 = vsub.f32 %v8601_v11, %v8551_v27  ;;  %9665 = vst [vmem:[#allocation91_spill] sm:$0xff] %v8621_v4  ;;  %v4330_v15 = vmul.f32 1.442695, %v4329_v7  ;;  %7258 = vpow2.f32 %v8511_v9  ;;  %v8626_v22 = vld [vmem:[#allocation19 + $0x7] ss:$0 sm:$0xff]  ;;  %v8630_v48 = vpop.eup %7240 }
 0xf21   :  { %4352 = vperm.xlu1 %6380, %v8493_v14   ;;  %v4468_v19 = vmul.f32 %v4467_v55, %v8617_v40  ;;  %v4939_v57 = vsub.f32 %v8626_v22, %v8525_v60  ;;  %9666 = vst [vmem:[#allocation92_spill] sm:$0xff] %v8630_v48  ;;  %v4348_v10 = vmul.f32 %v8617_v40, %v4343_v1  ;;  %v4542_v63 = vmul.f32 1.442695, %v4541_v51  ;;  %v8635_v39 = vpop.eup %7242 }
 0xf22   :  { %v4781_v0 = vmul.f32 %v4780_v44, %v8584_v58  ;;  %7260 = vpow2.f32 %v8562_v33  ;;  %9667 = vst [vmem:[#allocation93_spill] sm:$0xff] %v8635_v39  ;;  %v4622_v55 = vmul.f32 1.442695, %v4621_v56  ;;  %v4702_v7 = vmul.f32 1.442695, %v4701_v42  ;;  %v8638_v4 = vpop.eup %7244 }
 0xf23   :  { %v4861_v9 = vmul.f32 %v4860_v30, %v8584_v58  ;;  %7262 = vpow2.f32 %v4928_v2  ;;  %9668 = vst [vmem:[#allocation94_spill] sm:$0xff] %v8638_v4  ;;  %v4548_v5 = vmul.f32 %v4547_v53, %v8617_v40  ;;  %v4628_v48 = vmul.f32 %v4627_v32, %v8617_v40  ;;  %v8643_v51 = vpop.eup %7246  ;;  %v9670_v2 = vld [vmem:[#allocation45_spill] sm:$0xff] }
 0xf24   :  { %7264 = vpow2.f32 %v4462_v35  ;;  %v4708_v1 = vmul.f32 %v4707_v21, %v8617_v40  ;;  %9669 = vst [vmem:[#allocation95_spill] sm:$0xff] %v8643_v51  ;;  %v7774_v44 = vmov 7   ;;  %v4469_v56 = vmul.f32 1.442695, %v4468_v19  ;;  %v8652_v35 = vpop.eup %7248 }
 0xf25   :  { %6381 = vset.pattern.permute.xlu1 %v7774_v44  ;;  %v8645_v33 = vpop.permute.xlu1 %4377  ;;  %7266 = vpow2.f32 %v4330_v15  ;;  %v4788_v42 = vmul.f32 %v4787_v37, %v8617_v40  ;;  %v8650_v30 = vmul.f32 %v9670_v2, %v8411_v54  ;;  %9671 = vst [vmem:[#allocation45_spill] sm:$0xff] %v8652_v35  ;;  %v4349_v32 = vmul.f32 1.442695, %v4348_v10 }
 0xf26   :  { %4371 = vperm.xlu1 %6381, %v8493_v14   ;;  %7268 = vpow2.f32 %v4542_v63  ;;  %v4782_v21 = vmul.f32 1.442695, %v4781_v0  ;;  %v4867_v53 = vmul.f32 %v4866_v61, %v4866_v61  ;;  %v8655_v44 = vmul.f32 1.442695, %v4861_v9 }
 0xf27   :  { %7270 = vpow2.f32 %v4622_v55  ;;  %v4940_v51 = vmul.f32 %v4939_v57, %v4939_v57  ;;  %v4946_v19 = vsub.f32 %v8626_v22, %v8551_v27  ;;  %v8659_v37 = vpop.eup %7250  ;;  %v4549_v15 = vmul.f32 1.442695, %v4548_v5 }
 0xf28   :  { %9672 = vst [vmem:[#allocation96_spill] sm:$0xff] %v8659_v37  ;;  %v4629_v2 = vmul.f32 1.442695, %v4628_v48  ;;  %7272 = vpow2.f32 %v4702_v7  ;;  %v4709_v4 = vmul.f32 1.442695, %v4708_v1  ;;  %v8661_v35 = vpop.eup %7252  ;;  %v4480_v10 = vsub.f32 %v8564_v34, %v8645_v33 }
 0xf29   :  { %9673 = vst [vmem:[#allocation97_spill] sm:$0xff] %v8661_v35  ;;  %7274 = vpow2.f32 %v4469_v56  ;;  %v4380_v61 = vsub.f32 %v8568_v6, %v8645_v33  ;;  %v4789_v63 = vmul.f32 1.442695, %v4788_v42  ;;  %v8667_v57 = vpop.eup %7254  ;;  %v9675_v0 = vmov 9  }
 0xf2a   :  { %9674 = vst [vmem:[#allocation98_spill] sm:$0xff] %v8667_v57  ;;  %6383 = vset.pattern.permute.xlu1 %v9675_v0  ;;  %v8670_v55 = vpop.permute.xlu1 %4396  ;;  %7276 = vpow2.f32 %v4349_v32  ;;  %v4560_v5 = vsub.f32 %v8574_v49, %v8645_v33  ;;  %v4868_v48 = vmul.f32 %v4867_v53, %v8617_v40  ;;  %v4941_v7 = vmul.f32 %v4940_v51, %v8584_v58 }
 0xf2b   :  { %v8676_v9 = vpop.eup %7256  ;;  %4409 = vperm.xlu1 %6383, %v8493_v14   ;;  %v4487_v1 = vsub.f32 %v8564_v34, %v8670_v55  ;;  %v4399_v56 = vsub.f32 %v8568_v6, %v8670_v55  ;;  %v4567_v42 = vsub.f32 %v8574_v49, %v8670_v55  ;;  %v4640_v32 = vsub.f32 %v8578_v62, %v8645_v33  ;;  %v8697_v49 = vpop.permute.xlu0 %4402 }
 0xf2c   :  { %9676 = vst [vmem:[#allocation99_spill] sm:$0xff] %v8676_v9  ;;  %7278 = vpow2.f32 %v4549_v15  ;;  %v4720_v51 = vsub.f32 %v8586_v36, %v8645_v33  ;;  %v4800_v53 = vsub.f32 %v8597_v3, %v8645_v33  ;;  %v8691_v14 = vmul.f32 %v4946_v19, %v4946_v19 }
 0xf2d   :  { %v4481_v0 = vmul.f32 %v4480_v10, %v4480_v10  ;;  %v4488_v34 = vmul.f32 %v4487_v1, %v4487_v1  ;;  %v4381_v9 = vmul.f32 %v4380_v61, %v4380_v61  ;;  %v4647_v6 = vsub.f32 %v8578_v62, %v8670_v55  ;;  %v8695_v35 = vpop.eup %7258 }
 0xf2e   :  { %9677 = vst [vmem:[#allocation100_spill] sm:$0xff] %v8695_v35  ;;  %v4400_v39 = vmul.f32 %v4399_v56, %v4399_v56  ;;  %v4561_v15 = vmul.f32 %v4560_v5, %v4560_v5  ;;  %v4568_v57 = vmul.f32 %v4567_v42, %v4567_v42  ;;  %v4727_v37 = vsub.f32 %v8586_v36, %v8670_v55 }
 0xf2f   :  { %v8701_v17 = vpop.eup %7260  ;;  %v8703_v19 = vpop.permute.xlu1 %4383  ;;  %v4489_v10 = vmul.f32 %v4488_v34, %v8697_v49  ;;  %7280 = vpow2.f32 %v4629_v2  ;;  %v4641_v61 = vmul.f32 %v4640_v32, %v4640_v32  ;;  %v4807_v62 = vsub.f32 %v8597_v3, %v8670_v55 }
 0xf30   :  { %9678 = vst [vmem:[#allocation101_spill] sm:$0xff] %v8701_v17  ;;  %v8708_v1 = vpop.eup %7262  ;;  %v4482_v56 = vmul.f32 %v4481_v0, %v8703_v19  ;;  %7282 = vpow2.f32 %v4709_v4  ;;  %v4721_v5 = vmul.f32 %v4720_v51, %v4720_v51  ;;  %v4880_v36 = vsub.f32 %v8601_v11, %v8645_v33 }
 0xf31   :  { %9679 = vst [vmem:[#allocation102_spill] sm:$0xff] %v8708_v1  ;;  %v8713_v42 = vpop.eup %7264  ;;  %v4386_v17 = vmul.f32 %v8703_v19, %v4381_v9  ;;  %v4648_v35 = vmul.f32 %v4647_v6, %v4647_v6  ;;  %7284 = vpow2.f32 %v4782_v21  ;;  %v4801_v2 = vmul.f32 %v4800_v53, %v4800_v53 }
 0xf32   :  { %9680 = vst [vmem:[#allocation103_spill] sm:$0xff] %v8713_v42  ;;  %v8716_v32 = vpop.eup %7266  ;;  %v4405_v3 = vmul.f32 %v8697_v49, %v4400_v39  ;;  %v4569_v34 = vmul.f32 %v4568_v57, %v8697_v49  ;;  %v4728_v1 = vmul.f32 %v4727_v37, %v4727_v37  ;;  %v8720_v0 = vmul.f32 1.442695, %v4868_v48 }
 0xf33   :  { %v8722_v4 = vpop.eup %7268  ;;  %v4490_v51 = vmul.f32 1.442695, %v4489_v10  ;;  %v4562_v29 = vmul.f32 %v4561_v15, %v8703_v19  ;;  %v4808_v42 = vmul.f32 %v4807_v62, %v4807_v62  ;;  %v8725_v25 = vmul.f32 1.442695, %v4941_v7 }
 0xf34   :  { %v8727_v9 = vpop.eup %7270  ;;  %v4483_v21 = vmul.f32 1.442695, %v4482_v56  ;;  %7286 = vpow2.f32 %v4789_v63  ;;  %v4881_v53 = vmul.f32 %v4880_v36, %v4880_v36  ;;  %v4887_v39 = vsub.f32 %v8601_v11, %v8670_v55 }
 0xf35   :  { %v8731_v57 = vpop.eup %7272  ;;  %v4387_v37 = vmul.f32 1.442695, %v4386_v17  ;;  %v4642_v48 = vmul.f32 %v4641_v61, %v8703_v19  ;;  %v4649_v6 = vmul.f32 %v4648_v35, %v8697_v49  ;;  %v4722_v15 = vmul.f32 %v4721_v5, %v8703_v19 }
 0xf36   :  { %v8736_v10 = vpop.eup %7274  ;;  %v4406_v7 = vmul.f32 1.442695, %v4405_v3  ;;  %v4570_v62 = vmul.f32 1.442695, %v4569_v34  ;;  %v4729_v56 = vmul.f32 %v4728_v1, %v8697_v49  ;;  %7288 = vpow2.f32 %v8655_v44 }
 0xf37   :  { %9681 = vst [vmem:[#allocation104_spill] sm:$0xff] %v8736_v10  ;;  %v8740_v63 = vpop.eup %7276  ;;  %7290 = vpow2.f32 %v4490_v51  ;;  %v4563_v11 = vmul.f32 1.442695, %v4562_v29  ;;  %v4802_v17 = vmul.f32 %v4801_v2, %v8703_v19  ;;  %v4809_v61 = vmul.f32 %v4808_v42, %v8697_v49 }
 0xf38   :  { %9682 = vst [vmem:[#allocation105_spill] sm:$0xff] %v8740_v63  ;;  %7292 = vpow2.f32 %v4483_v21  ;;  %v4888_v35 = vmul.f32 %v4887_v39, %v4887_v39  ;;  %v4960_v5 = vsub.f32 %v8626_v22, %v8645_v33  ;;  %v4967_v36 = vsub.f32 %v8626_v22, %v8670_v55 }
 0xf39   :  { %v8748_v3 = vpop.eup %7278  ;;  %7294 = vpow2.f32 %v4387_v37  ;;  %v4643_v44 = vmul.f32 1.442695, %v4642_v48  ;;  %v4650_v1 = vmul.f32 1.442695, %v4649_v6  ;;  %v4723_v34 = vmul.f32 1.442695, %v4722_v15 }
 0xf3a   :  { %9683 = vst [vmem:[#allocation106_spill] sm:$0xff] %v8748_v3  ;;  %7296 = vpow2.f32 %v4406_v7  ;;  %v4730_v29 = vmul.f32 1.442695, %v4729_v56  ;;  %v4882_v2 = vmul.f32 %v4881_v53, %v8703_v19  ;;  %v4948_v42 = vmul.f32 %v8691_v14, %v8617_v40  ;;  %v7464_v48 = vld [vmem:[#allocation19 + $0x8] ss:$0 sm:$0xff] }
 0xf3b   :  { %7298 = vpow2.f32 %v4563_v11  ;;  %v4803_v51 = vmul.f32 1.442695, %v4802_v17  ;;  %v4810_v21 = vmul.f32 1.442695, %v4809_v61  ;;  %v4968_v39 = vmul.f32 %v4967_v36, %v4967_v36 }
 0xf3c   :  { %v8753_v63 = vpop.eup %7280  ;;  %7300 = vpow2.f32 %v4570_v62  ;;  %v4889_v22 = vmul.f32 %v4888_v35, %v8697_v49  ;;  %v4961_v37 = vmul.f32 %v4960_v5, %v4960_v5  ;;  %v5005_v6 = vsub.f32 %v7464_v48, %v8431_v38 }
 0xf3d   :  { %9684 = vst [vmem:[#allocation107_spill] sm:$0xff] %v8753_v63  ;;  %v8757_v15 = vpop.eup %7282  ;;  %7302 = vpow2.f32 %v4643_v44  ;;  %v5000_v53 = vmul.f32 %v8236_v18, %v8467_v24  ;;  %v5019_v14 = vsub.f32 %v7464_v48, %v8525_v60  ;;  %v5026_v7 = vsub.f32 %v7464_v48, %v8551_v27 }
 0xf3e   :  { %9685 = vst [vmem:[#allocation108_spill] sm:$0xff] %v8757_v15  ;;  %v8763_v56 = vpop.eup %7284  ;;  %7304 = vpow2.f32 %v4650_v1  ;;  %v4883_v62 = vmul.f32 1.442695, %v4882_v2  ;;  %v4962_v11 = vmul.f32 %v4961_v37, %v8703_v19  ;;  %v5040_v17 = vsub.f32 %v7464_v48, %v8645_v33 }
 0xf3f   :  { %7306 = vpow2.f32 %v4723_v34  ;;  %v4949_v61 = vmul.f32 1.442695, %v4948_v42  ;;  %v4969_v35 = vmul.f32 %v4968_v39, %v8697_v49  ;;  %v5047_v5 = vsub.f32 %v7464_v48, %v8670_v55 }
 0xf40   :  { %7308 = vpow2.f32 %v4730_v29  ;;  %v4890_v18 = vmul.f32 1.442695, %v4889_v22  ;;  %v4988_v36 = vmul.f32 1.442695, %v8650_v30  ;;  %v5006_v44 = vmul.f32 %v5005_v6, %v5005_v6 }
 0xf41   :  { %v8770_v15 = vpop.eup %7286  ;;  %7310 = vpow2.f32 %v4803_v51  ;;  %v5001_v1 = vmul.f32 1.442695, %v5000_v53  ;;  %v5020_v2 = vmul.f32 %v5019_v14, %v5019_v14  ;;  %v5027_v63 = vmul.f32 %v5026_v7, %v5026_v7  ;;  %v7465_v53 = vld [vmem:[#allocation19 + $0x9] ss:$0 sm:$0xff] }
 0xf42   :  { %9686 = vst [vmem:[#allocation109_spill] sm:$0xff] %v8770_v15  ;;  %7312 = vpow2.f32 %v4810_v21  ;;  %v4963_v37 = vmul.f32 1.442695, %v4962_v11  ;;  %v5007_v34 = vmul.f32 %v5006_v44, %v8495_v52  ;;  %v5041_v42 = vmul.f32 %v5040_v17, %v5040_v17  ;;  %v9689_v21 = vld [vmem:[#allocation46_spill] sm:$0xff] }
 0xf43   :  { %v8773_v3 = vpop.eup %7288  ;;  %v4970_v39 = vmul.f32 1.442695, %v4969_v35  ;;  %v5021_v29 = vmul.f32 %v5020_v2, %v8584_v58  ;;  %v5028_v22 = vmul.f32 %v5027_v63, %v8617_v40  ;;  %v5048_v30 = vmul.f32 %v5047_v5, %v5047_v5 }
 0xf44   :  { %9687 = vst [vmem:[#allocation110_spill] sm:$0xff] %v8773_v3  ;;  %v8777_v48 = vpop.eup %7290  ;;  %7314 = vpow2.f32 %v8720_v0  ;;  %v5042_v51 = vmul.f32 %v5041_v42, %v8703_v19  ;;  %v5067_v6 = vmul.f32 %v9689_v21, %v8411_v54  ;;  %v5085_v14 = vsub.f32 %v7465_v53, %v8431_v38 }
 0xf45   :  { %9688 = vst [vmem:[#allocation111_spill] sm:$0xff] %v8777_v48  ;;  %v8784_v7 = vpop.eup %7292  ;;  %7316 = vpow2.f32 %v4883_v62  ;;  %v5080_v11 = vmul.f32 %v8286_v13, %v8467_v24  ;;  %v5099_v63 = vsub.f32 %v7465_v53, %v8525_v60  ;;  %v5106_v17 = vsub.f32 %v7465_v53, %v8551_v27 }
 0xf46   :  { %v8790_v35 = vpop.eup %7294  ;;  %7318 = vpow2.f32 %v4890_v18  ;;  %v5008_v0 = vmul.f32 1.442695, %v5007_v34  ;;  %v5120_v5 = vsub.f32 %v7465_v53, %v8645_v33  ;;  %v5127_v44 = vsub.f32 %v7465_v53, %v8670_v55 }
 0xf47   :  { %9690 = vst [vmem:[#allocation46_spill] sm:$0xff] %v8790_v35  ;;  %v8794_v2 = vpop.eup %7296  ;;  %7320 = vpow2.f32 %v8725_v25  ;;  %v5022_v62 = vmul.f32 1.442695, %v5021_v29  ;;  %v5029_v42 = vmul.f32 1.442695, %v5028_v22  ;;  %v5049_v13 = vmul.f32 %v5048_v30, %v8697_v49 }
 0xf48   :  { %9691 = vst [vmem:[#allocation112_spill] sm:$0xff] %v8794_v2  ;;  %v8798_v21 = vpop.eup %7298  ;;  %7322 = vpow2.f32 %v4949_v61  ;;  %v5043_v48 = vmul.f32 1.442695, %v5042_v51  ;;  %v5068_v3 = vmul.f32 1.442695, %v5067_v6  ;;  %v5086_v15 = vmul.f32 %v5085_v14, %v5085_v14 }
 0xf49   :  { %v8800_v18 = vpop.eup %7300  ;;  %7324 = vpow2.f32 %v4963_v37  ;;  %v5081_v34 = vmul.f32 1.442695, %v5080_v11  ;;  %v5100_v35 = vmul.f32 %v5099_v63, %v5099_v63  ;;  %v5107_v53 = vmul.f32 %v5106_v17, %v5106_v17  ;;  %v7466_v11 = vld [vmem:[#allocation19 + $0xa] ss:$0 sm:$0xff] }
 0xf4a   :  { %9692 = vst [vmem:[#allocation113_spill] sm:$0xff] %v8800_v18  ;;  %v8802_v10 = vpop.eup %7302  ;;  %7326 = vpow2.f32 %v4970_v39  ;;  %v5087_v25 = vmul.f32 %v5086_v15, %v8495_v52  ;;  %v5121_v29 = vmul.f32 %v5120_v5, %v5120_v5  ;;  %v5128_v22 = vmul.f32 %v5127_v44, %v5127_v44 }
 0xf4b   :  { %v8805_v30 = vpop.eup %7304  ;;  %7328 = vpow2.f32 %v4988_v36  ;;  %v5101_v61 = vmul.f32 %v5100_v35, %v8584_v58  ;;  %v5108_v51 = vmul.f32 %v5107_v53, %v8617_v40  ;;  %v5147_v37 = vmul.f32 %v8290_v47, %v8411_v54 }
 0xf4c   :  { %9693 = vst [vmem:[#allocation114_spill] sm:$0xff] %v8805_v30  ;;  %v8811_v6 = vpop.eup %7306  ;;  %7330 = vpow2.f32 %v5001_v1  ;;  %v5050_v14 = vmul.f32 1.442695, %v5049_v13  ;;  %v5122_v39 = vmul.f32 %v5121_v29, %v8703_v19  ;;  %v5165_v15 = vsub.f32 %v7466_v11, %v8431_v38 }
 0xf4d   :  { %v8815_v63 = vpop.eup %7308  ;;  %7332 = vpow2.f32 %v5008_v0  ;;  %v5179_v36 = vsub.f32 %v7466_v11, %v8525_v60  ;;  %v5186_v17 = vsub.f32 %v7466_v11, %v8551_v27  ;;  %v5207_v35 = vsub.f32 %v7466_v11, %v8670_v55 }
 0xf4e   :  { %9694 = vst [vmem:[#allocation115_spill] sm:$0xff] %v8815_v63  ;;  %v8820_v5 = vpop.eup %7310  ;;  %7334 = vpow2.f32 %v5022_v62  ;;  %v5088_v47 = vmul.f32 1.442695, %v5087_v25  ;;  %v5129_v1 = vmul.f32 %v5128_v22, %v8697_v49  ;;  %v5200_v44 = vsub.f32 %v7466_v11, %v8645_v33 }
 0xf4f   :  { %9695 = vst [vmem:[#allocation116_spill] sm:$0xff] %v8820_v5  ;;  %v8824_v13 = vpop.eup %7312  ;;  %7336 = vpow2.f32 %v5029_v42  ;;  %v5102_v53 = vmul.f32 1.442695, %v5101_v61  ;;  %v5109_v29 = vmul.f32 1.442695, %v5108_v51  ;;  %v5160_v30 = vmul.f32 %v8301_v16, %v8467_v24 }
 0xf50   :  { %v5148_v0 = vmul.f32 1.442695, %v5147_v37  ;;  %7338 = vpow2.f32 %v5043_v48  ;;  %v5123_v63 = vmul.f32 1.442695, %v5122_v39  ;;  %v5166_v18 = vmul.f32 %v5165_v15, %v5165_v15  ;;  %v7467_v15 = vld [vmem:[#allocation19 + $0xb] ss:$0 sm:$0xff] }
 0xf51   :  { %v8828_v2 = vpop.eup %7314  ;;  %7340 = vpow2.f32 %v5050_v14  ;;  %v5180_v62 = vmul.f32 %v5179_v36, %v5179_v36  ;;  %v5187_v25 = vmul.f32 %v5186_v17, %v5186_v17  ;;  %v5208_v22 = vmul.f32 %v5207_v35, %v5207_v35 }
 0xf52   :  { %v8830_v5 = vpop.eup %7316  ;;  %7342 = vpow2.f32 %v5068_v3  ;;  %v5130_v11 = vmul.f32 1.442695, %v5129_v1  ;;  %v5167_v42 = vmul.f32 %v5166_v18, %v8495_v52  ;;  %v5201_v61 = vmul.f32 %v5200_v44, %v5200_v44 }
 0xf53   :  { %v8833_v51 = vpop.eup %7318  ;;  %7344 = vpow2.f32 %v5081_v34  ;;  %v5181_v48 = vmul.f32 %v5180_v62, %v8584_v58  ;;  %v5188_v16 = vmul.f32 %v5187_v25, %v8617_v40  ;;  %v5227_v37 = vmul.f32 %v8306_v12, %v8411_v54 }
 0xf54   :  { %9696 = vst [vmem:[#allocation117_spill] sm:$0xff] %v8833_v51  ;;  %v8839_v14 = vpop.eup %7320  ;;  %7346 = vpow2.f32 %v5088_v47  ;;  %v5161_v39 = vmul.f32 1.442695, %v5160_v30  ;;  %v5202_v3 = vmul.f32 %v5201_v61, %v8703_v19  ;;  %v5245_v18 = vsub.f32 %v7467_v15, %v8431_v38 }
 0xf55   :  { %9697 = vst [vmem:[#allocation118_spill] sm:$0xff] %v8839_v14  ;;  %v8843_v36 = vpop.eup %7322  ;;  %7348 = vpow2.f32 %v5102_v53  ;;  %v5209_v34 = vmul.f32 %v5208_v22, %v8697_v49  ;;  %v5259_v17 = vsub.f32 %v7467_v15, %v8525_v60  ;;  %v5266_v35 = vsub.f32 %v7467_v15, %v8551_v27 }
 0xf56   :  { %9698 = vst [vmem:[#allocation119_spill] sm:$0xff] %v8843_v36  ;;  %v8848_v1 = vpop.eup %7324  ;;  %7350 = vpow2.f32 %v5109_v29  ;;  %v5168_v12 = vmul.f32 1.442695, %v5167_v42  ;;  %v5280_v30 = vsub.f32 %v7467_v15, %v8645_v33  ;;  %v5287_v47 = vsub.f32 %v7467_v15, %v8670_v55 }
 0xf57   :  { %9699 = vst [vmem:[#allocation120_spill] sm:$0xff] %v8848_v1  ;;  %v8852_v44 = vpop.eup %7326  ;;  %7352 = vpow2.f32 %v5123_v63  ;;  %v5182_v62 = vmul.f32 1.442695, %v5181_v48  ;;  %v5189_v25 = vmul.f32 1.442695, %v5188_v16  ;;  %v5240_v36 = vmul.f32 %v8336_v8, %v8467_v24 }
 0xf58   :  { %9700 = vst [vmem:[#allocation121_spill] sm:$0xff] %v8852_v44  ;;  %v5228_v53 = vmul.f32 1.442695, %v5227_v37  ;;  %v8854_v61 = vpop.eup %7328  ;;  %7354 = vpow2.f32 %v5130_v11  ;;  %v5203_v22 = vmul.f32 1.442695, %v5202_v3  ;;  %v5246_v1 = vmul.f32 %v5245_v18, %v5245_v18 }
 0xf59   :  { %v8858_v29 = vpop.eup %7330  ;;  %7356 = vpow2.f32 %v5148_v0  ;;  %v5210_v42 = vmul.f32 1.442695, %v5209_v34  ;;  %v5260_v14 = vmul.f32 %v5259_v17, %v5259_v17  ;;  %v5267_v15 = vmul.f32 %v5266_v35, %v5266_v35  ;;  %v7468_v3 = vld [vmem:[#allocation19 + $0xc] ss:$0 sm:$0xff] }
 0xf5a   :  { %v8860_v51 = vpop.eup %7332  ;;  %7358 = vpow2.f32 %v5161_v39  ;;  %v5247_v63 = vmul.f32 %v5246_v1, %v8495_v52  ;;  %v5281_v48 = vmul.f32 %v5280_v30, %v5280_v30  ;;  %v5288_v16 = vmul.f32 %v5287_v47, %v5287_v47 }
 0xf5b   :  { %v8863_v37 = vpop.eup %7334  ;;  %7360 = vpow2.f32 %v5168_v12  ;;  %v5261_v11 = vmul.f32 %v5260_v14, %v8584_v58  ;;  %v5268_v8 = vmul.f32 %v5267_v15, %v8617_v40  ;;  %v5325_v0 = vsub.f32 %v7468_v3, %v8431_v38 }
 0xf5c   :  { %9701 = vst [vmem:[#allocation122_spill] sm:$0xff] %v8863_v37  ;;  %v8868_v18 = vpop.eup %7336  ;;  %7362 = vpow2.f32 %v5182_v62  ;;  %v5241_v34 = vmul.f32 1.442695, %v5240_v36  ;;  %v5282_v39 = vmul.f32 %v5281_v48, %v8703_v19  ;;  %v5339_v17 = vsub.f32 %v7468_v3, %v8525_v60 }
 0xf5d   :  { %9702 = vst [vmem:[#allocation123_spill] sm:$0xff] %v8868_v18  ;;  %v8872_v35 = vpop.eup %7338  ;;  %7364 = vpow2.f32 %v5189_v25  ;;  %v5307_v1 = vmul.f32 %v8352_v50, %v8411_v54  ;;  %v5346_v14 = vsub.f32 %v7468_v3, %v8551_v27  ;;  %v5367_v12 = vsub.f32 %v7468_v3, %v8670_v55 }
 0xf5e   :  { %9703 = vst [vmem:[#allocation124_spill] sm:$0xff] %v8872_v35  ;;  %v8878_v30 = vpop.eup %7340  ;;  %7366 = vpow2.f32 %v5203_v22  ;;  %v5248_v47 = vmul.f32 1.442695, %v5247_v63  ;;  %v5289_v36 = vmul.f32 %v5288_v16, %v8697_v49  ;;  %v5360_v62 = vsub.f32 %v7468_v3, %v8645_v33 }
 0xf5f   :  { %9704 = vst [vmem:[#allocation125_spill] sm:$0xff] %v8878_v30  ;;  %v8882_v15 = vpop.eup %7342  ;;  %7368 = vpow2.f32 %v5210_v42  ;;  %v5262_v48 = vmul.f32 1.442695, %v5261_v11  ;;  %v5269_v25 = vmul.f32 1.442695, %v5268_v8  ;;  %v5326_v35 = vmul.f32 %v5325_v0, %v5325_v0 }
 0xf60   :  { %v8884_v18 = vpop.eup %7344  ;;  %7370 = vpow2.f32 %v5228_v53  ;;  %v5283_v50 = vmul.f32 1.442695, %v5282_v39  ;;  %v5320_v37 = vmul.f32 %v8387_v43, %v8467_v24  ;;  %v5340_v30 = vmul.f32 %v5339_v17, %v5339_v17 }
 0xf61   :  { %v8888_v22 = vpop.eup %7346  ;;  %7372 = vpow2.f32 %v5241_v34  ;;  %v5327_v63 = vmul.f32 %v5326_v35, %v8495_v52  ;;  %v5347_v16 = vmul.f32 %v5346_v14, %v5346_v14  ;;  %v5368_v3 = vmul.f32 %v5367_v12, %v5367_v12  ;;  %v7469_v14 = vld [vmem:[#allocation19 + $0xd] ss:$0 sm:$0xff] }
 0xf62   :  { %v8891_v44 = vpop.eup %7348  ;;  %7374 = vpow2.f32 %v5248_v47  ;;  %v5290_v42 = vmul.f32 1.442695, %v5289_v36  ;;  %v5341_v11 = vmul.f32 %v5340_v30, %v8584_v58  ;;  %v5361_v8 = vmul.f32 %v5360_v62, %v5360_v62 }
 0xf63   :  { %9705 = vst [vmem:[#allocation126_spill] sm:$0xff] %v8891_v44  ;;  %v8894_v53 = vpop.eup %7350  ;;  %7376 = vpow2.f32 %v5262_v48  ;;  %v5308_v0 = vmul.f32 1.442695, %v5307_v1  ;;  %v5348_v43 = vmul.f32 %v5347_v16, %v8617_v40  ;;  %v8899_v34 = vmul.f32 %v8441_v41, %v8441_v41 }
 0xf64   :  { %9706 = vst [vmem:[#allocation127_spill] sm:$0xff] %v8894_v53  ;;  %v8901_v39 = vpop.eup %7352  ;;  %7378 = vpow2.f32 %v5269_v25  ;;  %v5321_v17 = vmul.f32 1.442695, %v5320_v37  ;;  %v5362_v35 = vmul.f32 %v5361_v8, %v8703_v19  ;;  %v5405_v12 = vsub.f32 %v7469_v14, %v8431_v38 }
 0xf65   :  { %9707 = vst [vmem:[#allocation128_spill] sm:$0xff] %v8901_v39  ;;  %v8905_v30 = vpop.eup %7354  ;;  %7380 = vpow2.f32 %v5283_v50  ;;  %v5328_v47 = vmul.f32 1.442695, %v5327_v63  ;;  %v5369_v1 = vmul.f32 %v5368_v3, %v8697_v49  ;;  %v5419_v36 = vsub.f32 %v7469_v14, %v8525_v60 }
 0xf66   :  { %9708 = vst [vmem:[#allocation129_spill] sm:$0xff] %v8905_v30  ;;  %v8909_v62 = vpop.eup %7356  ;;  %7382 = vpow2.f32 %v5290_v42  ;;  %v5342_v41 = vmul.f32 1.442695, %v5341_v11  ;;  %v5426_v48 = vsub.f32 %v7469_v14, %v8551_v27  ;;  %v5447_v37 = vsub.f32 %v7469_v14, %v8670_v55 }
 0xf67   :  { %v8913_v25 = vpop.eup %7358  ;;  %7384 = vpow2.f32 %v5308_v0  ;;  %v5349_v16 = vmul.f32 1.442695, %v5348_v43  ;;  %v5440_v8 = vsub.f32 %v7469_v14, %v8645_v33  ;;  %v8918_v50 = vmul.f32 %v8445_v20, %v8445_v20 }
 0xf68   :  { %v8920_v63 = vpop.eup %7360  ;;  %7386 = vpow2.f32 %v5321_v17  ;;  %v5363_v3 = vmul.f32 1.442695, %v5362_v35  ;;  %v5387_v42 = vmul.f32 %v8413_v31, %v8411_v54  ;;  %v5406_v11 = vmul.f32 %v5405_v12, %v5405_v12 }
 0xf69   :  { %9709 = vst [vmem:[#allocation130_spill] sm:$0xff] %v8920_v63  ;;  %v8924_v30 = vpop.eup %7362  ;;  %7388 = vpow2.f32 %v5328_v47  ;;  %v5370_v39 = vmul.f32 1.442695, %v5369_v1  ;;  %v5400_v0 = vmul.f32 %v8419_v23, %v8467_v24  ;;  %v5420_v43 = vmul.f32 %v5419_v36, %v5419_v36 }
 0xf6a   :  { %9710 = vst [vmem:[#allocation131_spill] sm:$0xff] %v8924_v30  ;;  %v8928_v14 = vpop.eup %7364  ;;  %7390 = vpow2.f32 %v5342_v41  ;;  %v5407_v20 = vmul.f32 %v5406_v11, %v8495_v52  ;;  %v5427_v53 = vmul.f32 %v5426_v48, %v5426_v48  ;;  %v5448_v17 = vmul.f32 %v5447_v37, %v5447_v37  ;;  %v7470_v30 = vld [vmem:[#allocation19 + $0xe] ss:$0 sm:$0xff] }
 0xf6b   :  { %9711 = vst [vmem:[#allocation132_spill] sm:$0xff] %v8928_v14  ;;  %v8931_v35 = vpop.eup %7366  ;;  %7392 = vpow2.f32 %v5349_v16  ;;  %v5421_v31 = vmul.f32 %v5420_v43, %v8584_v58  ;;  %v5441_v12 = vmul.f32 %v5440_v8, %v5440_v8  ;;  %v5485_v47 = vsub.f32 %v7470_v30, %v8431_v38 }
 0xf6c   :  { %9712 = vst [vmem:[#allocation133_spill] sm:$0xff] %v8931_v35  ;;  %v8935_v1 = vpop.eup %7368  ;;  %7394 = vpow2.f32 %v5363_v3  ;;  %v5388_v23 = vmul.f32 1.442695, %v5387_v42  ;;  %v5428_v36 = vmul.f32 %v5427_v53, %v8617_v40  ;;  %v5467_v41 = vmul.f32 %v8427_v59, %v8411_v54 }
 0xf6d   :  { %9713 = vst [vmem:[#allocation134_spill] sm:$0xff] %v8935_v1  ;;  %v8940_v48 = vpop.eup %7370  ;;  %7396 = vpow2.f32 %v5370_v39  ;;  %v5401_v37 = vmul.f32 1.442695, %v5400_v0  ;;  %v5442_v16 = vmul.f32 %v5441_v12, %v8703_v19  ;;  %v5499_v8 = vsub.f32 %v7470_v30, %v8525_v60 }
 0xf6e   :  { %9714 = vst [vmem:[#allocation135_spill] sm:$0xff] %v8940_v48  ;;  %v8944_v11 = vpop.eup %7372  ;;  %v5408_v43 = vmul.f32 1.442695, %v5407_v20  ;;  %v5449_v1 = vmul.f32 %v5448_v17, %v8697_v49  ;;  %v5506_v3 = vsub.f32 %v7470_v30, %v8551_v27  ;;  %v5527_v53 = vsub.f32 %v7470_v30, %v8670_v55 }
 0xf6f   :  { %9715 = vst [vmem:[#allocation136_spill] sm:$0xff] %v8944_v11  ;;  %v8949_v42 = vpop.eup %7374  ;;  %v5422_v59 = vmul.f32 1.442695, %v5421_v31  ;;  %v5480_v39 = vmul.f32 %v8435_v46, %v8467_v24  ;;  %v5486_v0 = vmul.f32 %v5485_v47, %v5485_v47  ;;  %v5520_v12 = vsub.f32 %v7470_v30, %v8645_v33  ;;  %v8956_v11 = vld [vmem:[#allocation19 + $0x10] ss:$0 sm:$0xff] }
 0xf70   :  { %9716 = vst [vmem:[#allocation137_spill] sm:$0xff] %v8949_v42  ;;  %v8954_v35 = vpop.eup %7376  ;;  %7398 = vpow2.f32 %v5388_v23  ;;  %v5429_v14 = vmul.f32 1.442695, %v5428_v36  ;;  %v5468_v20 = vmul.f32 1.442695, %v5467_v41  ;;  %v8960_v17 = vsub.f32 %v8956_v11, %v7998_v28 }
 0xf71   :  { %9717 = vst [vmem:[#allocation138_spill] sm:$0xff] %v8954_v35  ;;  %v8962_v48 = vpop.eup %7378  ;;  %7400 = vpow2.f32 %v5401_v37  ;;  %v5443_v31 = vmul.f32 1.442695, %v5442_v16  ;;  %v5487_v46 = vmul.f32 %v5486_v0, %v8495_v52  ;;  %v5500_v47 = vmul.f32 %v5499_v8, %v5499_v8  ;;  %v7472_v8 = vld [vmem:[#allocation19 + $0xf] ss:$0 sm:$0xff] }
 0xf72   :  { %9718 = vst [vmem:[#allocation139_spill] sm:$0xff] %v8962_v48  ;;  %v8965_v42 = vpop.eup %7380  ;;  %7402 = vpow2.f32 %v5408_v43  ;;  %v5450_v30 = vmul.f32 1.442695, %v5449_v1  ;;  %v5507_v23 = vmul.f32 %v5506_v3, %v5506_v3  ;;  %v5528_v36 = vmul.f32 %v5527_v53, %v5527_v53 }
 0xf73   :  { %9719 = vst [vmem:[#allocation140_spill] sm:$0xff] %v8965_v42  ;;  %v8967_v41 = vpop.eup %7382  ;;  %7404 = vpow2.f32 %v5422_v59  ;;  %v5481_v35 = vmul.f32 1.442695, %v5480_v39  ;;  %v5501_v28 = vmul.f32 %v5500_v47, %v8584_v58  ;;  %v5521_v44 = vmul.f32 %v5520_v12, %v5520_v12 }
 0xf74   :  { %9720 = vst [vmem:[#allocation141_spill] sm:$0xff] %v8967_v41  ;;  %v8970_v63 = vpop.eup %7384  ;;  %7406 = vpow2.f32 %v5429_v14  ;;  %v5508_v37 = vmul.f32 %v5507_v23, %v8617_v40  ;;  %v5547_v16 = vmul.f32 %v8899_v34, %v8411_v54  ;;  %v5565_v1 = vsub.f32 %v7472_v8, %v8431_v38 }
 0xf75   :  { %9721 = vst [vmem:[#allocation142_spill] sm:$0xff] %v8970_v63  ;;  %v8976_v43 = vpop.eup %7386  ;;  %7408 = vpow2.f32 %v5443_v31  ;;  %v5488_v3 = vmul.f32 1.442695, %v5487_v46  ;;  %v5522_v53 = vmul.f32 %v5521_v44, %v8703_v19  ;;  %v5579_v59 = vsub.f32 %v7472_v8, %v8525_v60 }
 0xf76   :  { %9722 = vst [vmem:[#allocation143_spill] sm:$0xff] %v8976_v43  ;;  %v8980_v39 = vpop.eup %7388  ;;  %7410 = vpow2.f32 %v5450_v30  ;;  %v5529_v14 = vmul.f32 %v5528_v36, %v8697_v49  ;;  %v5586_v0 = vsub.f32 %v7472_v8, %v8551_v27  ;;  %v5607_v34 = vsub.f32 %v7472_v8, %v8670_v55 }
 0xf77   :  { %9723 = vst [vmem:[#allocation144_spill] sm:$0xff] %v8980_v39  ;;  %v8985_v12 = vpop.eup %7390  ;;  %7412 = vpow2.f32 %v5468_v20  ;;  %v5502_v47 = vmul.f32 1.442695, %v5501_v28  ;;  %v5600_v31 = vsub.f32 %v7472_v8, %v8645_v33  ;;  %v5638_v44 = vsub.f32 %v8956_v11, %v8024_v45 }
 0xf78   :  { %9724 = vst [vmem:[#allocation145_spill] sm:$0xff] %v8985_v12  ;;  %v8990_v46 = vpop.eup %7392  ;;  %7414 = vpow2.f32 %v5481_v35  ;;  %v5509_v23 = vmul.f32 1.442695, %v5508_v37  ;;  %v5548_v30 = vmul.f32 1.442695, %v5547_v16  ;;  %v5566_v41 = vmul.f32 %v5565_v1, %v5565_v1 }
 0xf79   :  { %9725 = vst [vmem:[#allocation146_spill] sm:$0xff] %v8990_v46  ;;  %v8992_v36 = vpop.eup %7394  ;;  %7416 = vpow2.f32 %v5488_v3  ;;  %v5523_v42 = vmul.f32 1.442695, %v5522_v53  ;;  %v5560_v12 = vmul.f32 %v8918_v50, %v8467_v24  ;;  %v5580_v20 = vmul.f32 %v5579_v59, %v5579_v59 }
 0xf7a   :  { %9726 = vst [vmem:[#allocation147_spill] sm:$0xff] %v8992_v36  ;;  %v8996_v28 = vpop.eup %7396  ;;  %v5530_v8 = vmul.f32 1.442695, %v5529_v14  ;;  %v5567_v48 = vmul.f32 %v5566_v41, %v8495_v52  ;;  %v5587_v45 = vmul.f32 %v5586_v0, %v5586_v0  ;;  %v5608_v39 = vmul.f32 %v5607_v34, %v5607_v34 }
 0xf7b   :  { %9727 = vst [vmem:[#allocation148_spill] sm:$0xff] %v8996_v28  ;;  %7418 = vpow2.f32 %v5502_v47  ;;  %v5581_v35 = vmul.f32 %v5580_v20, %v8584_v58  ;;  %v5601_v37 = vmul.f32 %v5600_v31, %v5600_v31  ;;  %v5645_v16 = vsub.f32 %v8956_v11, %v8431_v38 }
 0xf7c   :  { %7420 = vpow2.f32 %v5509_v23  ;;  %v5588_v1 = vmul.f32 %v5587_v45, %v8617_v40  ;;  %v5659_v50 = vsub.f32 %v8956_v11, %v8525_v60  ;;  %v5561_v53 = vmul.f32 1.442695, %v5560_v12 }
 0xf7d   :  { %v9005_v3 = vpop.eup %7398  ;;  %7422 = vpow2.f32 %v5523_v42  ;;  %v5602_v41 = vmul.f32 %v5601_v37, %v8703_v19  ;;  %v5626_v59 = vmul.f32 %v8960_v17, %v8960_v17  ;;  %v5568_v0 = vmul.f32 1.442695, %v5567_v48 }
 0xf7e   :  { %9728 = vst [vmem:[#allocation149_spill] sm:$0xff] %v9005_v3  ;;  %v9010_v14 = vpop.eup %7400  ;;  %7424 = vpow2.f32 %v5530_v8  ;;  %v5609_v38 = vmul.f32 %v5608_v39, %v8697_v49  ;;  %v5639_v34 = vmul.f32 %v5638_v44, %v5638_v44  ;;  %v5582_v60 = vmul.f32 1.442695, %v5581_v35 }
 0xf7f   :  { %9729 = vst [vmem:[#allocation150_spill] sm:$0xff] %v9010_v14  ;;  %v9013_v47 = vpop.eup %7402  ;;  %7426 = vpow2.f32 %v5548_v30  ;;  %v5627_v31 = vmul.f32 %v5626_v59, %v8411_v54  ;;  %v5646_v42 = vmul.f32 %v5645_v16, %v5645_v16  ;;  %v5589_v23 = vmul.f32 1.442695, %v5588_v1 }
 0xf80   :  { %9730 = vst [vmem:[#allocation151_spill] sm:$0xff] %v9013_v47  ;;  %v9016_v12 = vpop.eup %7404  ;;  %v5640_v20 = vmul.f32 %v5639_v34, %v8467_v24  ;;  %v5660_v17 = vmul.f32 %v5659_v50, %v5659_v50  ;;  %v5666_v8 = vsub.f32 %v8956_v11, %v8551_v27  ;;  %7428 = vpow2.f32 %v5561_v53 }
 0xf81   :  { %9731 = vst [vmem:[#allocation152_spill] sm:$0xff] %v9016_v12  ;;  %v9021_v48 = vpop.eup %7406  ;;  %v5603_v39 = vmul.f32 1.442695, %v5602_v41  ;;  %v5647_v44 = vmul.f32 %v5646_v42, %v8495_v52  ;;  %7430 = vpow2.f32 %v5568_v0  ;;  %v5610_v54 = vmul.f32 1.442695, %v5609_v38 }
 0xf82   :  { %9732 = vst [vmem:[#allocation153_spill] sm:$0xff] %v9021_v48  ;;  %v9024_v30 = vpop.eup %7408  ;;  %v5661_v45 = vmul.f32 %v5660_v17, %v8584_v58  ;;  %v5687_v35 = vsub.f32 %v8956_v11, %v8670_v55  ;;  %7432 = vpow2.f32 %v5582_v60  ;;  %v5628_v37 = vmul.f32 1.442695, %v5627_v31  ;;  %v9742_v17 = vld [vmem:[#allocation87_spill] sm:$0xff] }
 0xf83   :  { %9733 = vst [vmem:[#allocation154_spill] sm:$0xff] %v9024_v30  ;;  %v9029_v24 = vpop.eup %7410  ;;  %v5680_v27 = vsub.f32 %v8956_v11, %v8645_v33  ;;  %7434 = vpow2.f32 %v5589_v23  ;;  %v5641_v52 = vmul.f32 1.442695, %v5640_v20  ;;  %v5667_v1 = vmul.f32 %v5666_v8, %v5666_v8  ;;  %v9762_v48 = vld [vmem:[#allocation51_spill] sm:$0xff] }
 0xf84   :  { %9734 = vst [vmem:[#allocation155_spill] sm:$0xff] %v9029_v24  ;;  %v9033_v16 = vpop.eup %7412  ;;  %7436 = vpow2.f32 %v5603_v39  ;;  %v5648_v53 = vmul.f32 1.442695, %v5647_v44  ;;  %v5662_v55 = vmul.f32 1.442695, %v5661_v45  ;;  %v5688_v59 = vmul.f32 %v5687_v35, %v5687_v35  ;;  %v9743_v39 = vld [vmem:[#allocation42_spill] sm:$0xff] }
 0xf85   :  { %9735 = vst [vmem:[#allocation156_spill] sm:$0xff] %v9033_v16  ;;  %v9035_v50 = vpop.eup %7414  ;;  %7438 = vpow2.f32 %v5610_v54  ;;  %v5668_v41 = vmul.f32 %v5667_v1, %v8617_v40  ;;  %v5681_v0 = vmul.f32 %v5680_v27, %v5680_v27  ;;  %v9744_v44 = vld [vmem:[#allocation88_spill] sm:$0xff]  ;;  %v9745_v45 = vld [vmem:[#allocation43_spill] sm:$0xff]  ;;  %v9748_v27 = vld [vmem:[#allocation33_spill] sm:$0xff] }
 0xf86   :  { %9736 = vst [vmem:[#allocation157_spill] sm:$0xff] %v9035_v50  ;;  %v9037_v58 = vpop.eup %7416  ;;  %7440 = vpow2.f32 %v5628_v37  ;;  %v9058_v23 = vmul.f32 %v5688_v59, %v8697_v49  ;;  %v9747_v37 = vld [vmem:[#allocation89_spill] sm:$0xff]  ;;  %v9749_v1 = vld [vmem:[#allocation90_spill] sm:$0xff] }
 0xf87   :  { %9737 = vst [vmem:[#allocation158_spill] sm:$0xff] %v9037_v58  ;;  %7442 = vpow2.f32 %v5641_v52  ;;  %v9049_v60 = vmul.f32 %v5681_v0, %v8703_v19  ;;  %v9055_v42 = vmul.f32 1.442695, %v5668_v41  ;;  %v9751_v0 = vld [vmem:[#allocation91_spill] sm:$0xff] }
 0xf88   :  { %v9040_v38 = vpop.eup %7418  ;;  %v9042_v33 = vpop.permute.xlu1 %4239  ;;  %7444 = vpow2.f32 %v5648_v53 }
 0xf89   :  { %9738 = vst [vmem:[#allocation159_spill] sm:$0xff] %v9040_v38  ;;  %v9044_v11 = vpop.permute.xlu0 %4276  ;;  %v9046_v34 = vpop.eup %7420  ;;  %v4430_v40 = vmul.f32 %v8537_v26, %v9042_v33  ;;  %7446 = vpow2.f32 %v5662_v55  ;;  %v4242_v19 = vmul.f32 %v9743_v39, %v9042_v33  ;;  %v4510_v26 = vmul.f32 %v9745_v45, %v9042_v33  ;;  %v9750_v55 = vld [vmem:[#allocation44_spill] sm:$0xff]  ;;  %v9752_v39 = vld [vmem:[#allocation47_spill] sm:$0xff]  ;;  %v9758_v38 = vld [vmem:[#allocation98_spill] sm:$0xff] }
 0xf8a   :  { %9739 = vst [vmem:[#allocation160_spill] sm:$0xff] %v9046_v34  ;;  %v9051_v31 = vpop.eup %7422  ;;  %v4443_v8 = vmul.f32 %v9742_v17, %v9044_v11  ;;  %v4279_v54 = vmul.f32 %v9744_v44, %v9044_v11  ;;  %v4523_v49 = vmul.f32 %v9747_v37, %v9044_v11  ;;  %v4590_v52 = vmul.f32 %v9748_v27, %v9042_v33  ;;  %v9753_v45 = vld [vmem:[#allocation96_spill] sm:$0xff]  ;;  %v9757_v34 = vld [vmem:[#allocation49_spill] sm:$0xff] }
 0xf8b   :  { %9740 = vst [vmem:[#allocation161_spill] sm:$0xff] %v9051_v31  ;;  %v9060_v20 = vpop.eup %7424  ;;  %v4603_v53 = vmul.f32 %v9749_v1, %v9044_v11  ;;  %v4670_v41 = vmul.f32 %v9750_v55, %v9042_v33  ;;  %v4683_v17 = vmul.f32 %v9751_v0, %v9044_v11  ;;  %v4750_v44 = vmul.f32 %v9752_v39, %v9042_v33  ;;  %v9756_v55 = vld [vmem:[#allocation48_spill] sm:$0xff] }
 0xf8c   :  { %9741 = vst [vmem:[#allocation162_spill] sm:$0xff] %v9060_v20  ;;  %v9070_v35 = vpop.eup %7426  ;;  %v4763_v37 = vmul.f32 %v9753_v45, %v9044_v11  ;;  %v9754_v20 = vld [vmem:[#allocation86_spill] sm:$0xff]  ;;  %v9102_v39 = vmul.f32 %v9758_v38, %v9044_v11  ;;  %v9759_v45 = vld [vmem:[#allocation100_spill] sm:$0xff]  ;;  %v9120_v38 = vmul.f32 %v8854_v61, %v9042_v33  ;;  %v9136_v61 = vmul.f32 %v8882_v15, %v9042_v33 }
 0xf8d   :  { %9746 = vst [vmem:[#allocation87_spill] sm:$0xff] %v9070_v35  ;;  %v9080_v59 = vpop.permute.xlu1 %4257  ;;  %v9090_v27 = vmul.f32 %v9754_v20, %v9042_v33  ;;  %v9092_v31 = vpop.eup %7428  ;;  %v9106_v30 = vmul.f32 %v9759_v45, %v9042_v33  ;;  %7448 = vpow2.f32 %v9055_v42 }
 0xf8e   :  { %9755 = vst [vmem:[#allocation42_spill] sm:$0xff] %v9092_v31  ;;  %v9094_v1 = vpop.permute.xlu0 %4333  ;;  %v4436_v24 = vmul.f32 %v9756_v55, %v9080_v59  ;;  %v4260_v0 = vmul.f32 %v9757_v34, %v9080_v59  ;;  %v9108_v20 = vpop.eup %7430  ;;  %v9761_v31 = vld [vmem:[#allocation50_spill] sm:$0xff]  ;;  %v4596_v58 = vmul.f32 %v9762_v48, %v9080_v59  ;;  %v9763_v55 = vld [vmem:[#allocation101_spill] sm:$0xff] }
 0xf8f   :  { %9760 = vst [vmem:[#allocation88_spill] sm:$0xff] %v9108_v20  ;;  %v4516_v35 = vmul.f32 %v9761_v31, %v9080_v59  ;;  %v9116_v50 = vmul.f32 %v9763_v55, %v9044_v11  ;;  %v9122_v34 = vpop.eup %7432  ;;  %v9765_v20 = vld [vmem:[#allocation52_spill] sm:$0xff]  ;;  %v9128_v31 = vmul.f32 %v8858_v29, %v9044_v11  ;;  %v9767_v55 = vld [vmem:[#allocation103_spill] sm:$0xff]  ;;  %v4336_v29 = vmul.f32 %v8716_v32, %v9094_v1  ;;  %v9774_v32 = vld [vmem:[#allocation94_spill] sm:$0xff] }
 0xf90   :  { %9764 = vst [vmem:[#allocation43_spill] sm:$0xff] %v9122_v34  ;;  %v4437_v45 = vadd.f32 %v4436_v24, %v4430_v40  ;;  %v4261_v12 = vadd.f32 %v4260_v0, %v4242_v19  ;;  %v4676_v28 = vmul.f32 %v9765_v20, %v9080_v59  ;;  %v9130_v48 = vpop.eup %7434  ;;  %v4464_v16 = vmul.f32 %v9767_v55, %v9094_v1  ;;  %v9770_v55 = vld [vmem:[#allocation92_spill] sm:$0xff] }
 0xf91   :  { %9766 = vst [vmem:[#allocation89_spill] sm:$0xff] %v9130_v48  ;;  %v4517_v36 = vadd.f32 %v4516_v35, %v4510_v26  ;;  %v4597_v46 = vadd.f32 %v4596_v58, %v4590_v52  ;;  %v9138_v24 = vpop.eup %7436  ;;  %v9771_v58 = vld [vmem:[#allocation93_spill] sm:$0xff]  ;;  %v4544_v15 = vmul.f32 %v8722_v4, %v9094_v1  ;;  %v4704_v4 = vmul.f32 %v8731_v57, %v9094_v1 }
 0xf92   :  { %9768 = vst [vmem:[#allocation33_spill] sm:$0xff] %v9138_v24  ;;  %v9140_v40 = vpop.permute.xlu1 %4295  ;;  %v4444_v19 = vadd.f32 %v4443_v8, %v4437_v45  ;;  %v4280_v0 = vadd.f32 %v4279_v54, %v4261_v12  ;;  %v4677_v20 = vadd.f32 %v4676_v28, %v4670_v41  ;;  %v9144_v48 = vpop.eup %7438  ;;  %v9772_v52 = vld [vmem:[#allocation53_spill] sm:$0xff]  ;;  %v4624_v41 = vmul.f32 %v8727_v9, %v9094_v1 }
 0xf93   :  { %9769 = vst [vmem:[#allocation90_spill] sm:$0xff] %v9144_v48  ;;  %v4450_v26 = vmul.f32 %v9770_v55, %v9140_v40  ;;  %v4298_v35 = vmul.f32 %v9771_v58, %v9140_v40  ;;  %v4756_v24 = vmul.f32 %v9772_v52, %v9080_v59  ;;  %v9154_v8 = vpop.eup %7440  ;;  %v4524_v12 = vadd.f32 %v4523_v49, %v4517_v36  ;;  %v9776_v55 = vld [vmem:[#allocation95_spill] sm:$0xff]  ;;  %v9777_v36 = vld [vmem:[#allocation54_spill] sm:$0xff]  ;;  %v9779_v9 = vld [vmem:[#allocation45_spill] sm:$0xff]  ;;  %v9180_v3 = vpop.permute.xlu0 %4390 }
 0xf94   :  { %9773 = vst [vmem:[#allocation44_spill] sm:$0xff] %v9154_v8  ;;  %v4530_v28 = vmul.f32 %v9774_v32, %v9140_v40  ;;  %v4604_v54 = vadd.f32 %v4603_v53, %v4597_v46  ;;  %v9160_v45 = vpop.eup %7442  ;;  %v4610_v58 = vmul.f32 %v9776_v55, %v9140_v40  ;;  %v4784_v52 = vmul.f32 %v8763_v56, %v9094_v1  ;;  %v9781_v56 = vld [vmem:[#allocation97_spill] sm:$0xff] }
 0xf95   :  { %9775 = vst [vmem:[#allocation91_spill] sm:$0xff] %v9160_v45  ;;  %v4836_v49 = vmul.f32 %v9777_v36, %v9080_v59  ;;  %v9170_v48 = vpop.eup %7444  ;;  %v4451_v46 = vadd.f32 %v4450_v26, %v4444_v19  ;;  %v4299_v53 = vadd.f32 %v4298_v35, %v4280_v0  ;;  %v4684_v32 = vadd.f32 %v4683_v17, %v4677_v20  ;;  %v9782_v36 = vld [vmem:[#allocation56_spill] sm:$0xff]  ;;  %v9783_v17 = vld [vmem:[#allocation57_spill] sm:$0xff]  ;;  %v9784_v20 = vld [vmem:[#allocation58_spill] sm:$0xff] }
 0xf96   :  { %9778 = vst [vmem:[#allocation47_spill] sm:$0xff] %v9170_v48  ;;  %v4690_v34 = vmul.f32 %v9779_v9, %v9140_v40  ;;  %v9174_v45 = vpop.eup %7446  ;;  %v4531_v8 = vadd.f32 %v4530_v28, %v4524_v12  ;;  %v4611_v57 = vadd.f32 %v4610_v58, %v4604_v54  ;;  %v4757_v47 = vadd.f32 %v4756_v24, %v4750_v44  ;;  %v9785_v35 = vld [vmem:[#allocation59_spill] sm:$0xff]  ;;  %v9786_v44 = vld [vmem:[#allocation60_spill] sm:$0xff]  ;;  %v9787_v54 = vld [vmem:[#allocation61_spill] sm:$0xff] }
 0xf97   :  { %9780 = vst [vmem:[#allocation96_spill] sm:$0xff] %v9174_v45  ;;  %v9176_v55 = vpop.permute.xlu1 %4314  ;;  %v4770_v14 = vmul.f32 %v9781_v56, %v9140_v40  ;;  %v4837_v63 = vadd.f32 %v4836_v49, %v9090_v27  ;;  %v9792_v27 = vld [vmem:[#allocation46_spill] sm:$0xff] }
 0xf98   :  { %v4457_v19 = vmul.f32 %v9782_v36, %v9176_v55  ;;  %v4317_v0 = vmul.f32 %v9783_v17, %v9176_v55  ;;  %v4537_v26 = vmul.f32 %v9784_v20, %v9176_v55  ;;  %v4617_v9 = vmul.f32 %v9785_v35, %v9176_v55 }
 0xf99   :  { %v4691_v12 = vadd.f32 %v4690_v34, %v4684_v32  ;;  %v4697_v24 = vmul.f32 %v9786_v44, %v9176_v55  ;;  %v4764_v28 = vadd.f32 %v4763_v37, %v4757_v47  ;;  %v4777_v58 = vmul.f32 %v9787_v54, %v9176_v55  ;;  %v9788_v37 = vld [vmem:[#allocation104_spill] sm:$0xff] }
 0xf9a   :  { %v4458_v56 = vadd.f32 %v4457_v19, %v4451_v46  ;;  %v4318_v45 = vadd.f32 %v4317_v0, %v4299_v53  ;;  %v4538_v36 = vadd.f32 %v4537_v26, %v4531_v8  ;;  %v4618_v48 = vadd.f32 %v4617_v9, %v4611_v57  ;;  %v9789_v46 = vld [vmem:[#allocation105_spill] sm:$0xff]  ;;  %v9790_v53 = vld [vmem:[#allocation106_spill] sm:$0xff]  ;;  %v9795_v26 = vld [vmem:[#allocation99_spill] sm:$0xff] }
 0xf9b   :  { %v4485_v17 = vmul.f32 %v8784_v7, %v9180_v3  ;;  %v4698_v43 = vadd.f32 %v4697_v24, %v4691_v12  ;;  %v4771_v20 = vadd.f32 %v4770_v14, %v4764_v28  ;;  %v9791_v7 = vld [vmem:[#allocation107_spill] sm:$0xff]  ;;  %v4393_v49 = vmul.f32 %v9792_v27, %v9180_v3 }
 0xf9c   :  { %v9197_v35 = vpop.permute.xlu1 %4352  ;;  %v4465_v34 = vadd.f32 %v4464_v16, %v4458_v56  ;;  %v4337_v32 = vadd.f32 %v4336_v29, %v4318_v45  ;;  %v4545_v44 = vadd.f32 %v4544_v15, %v4538_v36  ;;  %v4625_v47 = vadd.f32 %v4624_v41, %v4618_v48  ;;  %v9793_v16 = vld [vmem:[#allocation108_spill] sm:$0xff]  ;;  %v9794_v45 = vld [vmem:[#allocation109_spill] sm:$0xff] }
 0xf9d   :  { %v4471_v54 = vmul.f32 %v9788_v37, %v9197_v35  ;;  %v4355_v8 = vmul.f32 %v9789_v46, %v9197_v35  ;;  %v4551_v57 = vmul.f32 %v9790_v53, %v9197_v35  ;;  %v4631_v14 = vmul.f32 %v9791_v7, %v9197_v35  ;;  %v9798_v46 = vld [vmem:[#allocation64_spill] sm:$0xff] }
 0xf9e   :  { %v4705_v19 = vadd.f32 %v4704_v4, %v4698_v43  ;;  %v4711_v29 = vmul.f32 %v9793_v16, %v9197_v35  ;;  %v4778_v48 = vadd.f32 %v4777_v58, %v4771_v20  ;;  %v4565_v15 = vmul.f32 %v8798_v21, %v9180_v3  ;;  %v9796_v21 = vld [vmem:[#allocation62_spill] sm:$0xff] }
 0xf9f   :  { %v4645_v41 = vmul.f32 %v8802_v10, %v9180_v3  ;;  %v4791_v0 = vmul.f32 %v9794_v45, %v9197_v35  ;;  %v4850_v9 = vmul.f32 %v9795_v26, %v9140_v40  ;;  %v4472_v12 = vadd.f32 %v4471_v54, %v4465_v34  ;;  %v9797_v10 = vld [vmem:[#allocation63_spill] sm:$0xff]  ;;  %v9799_v34 = vld [vmem:[#allocation65_spill] sm:$0xff]  ;;  %v9802_v54 = vld [vmem:[#allocation68_spill] sm:$0xff] }
 0xfa0   :  { %v4356_v24 = vadd.f32 %v4355_v8, %v4337_v32  ;;  %v4785_v28 = vadd.f32 %v4784_v52, %v4778_v48  ;;  %v4844_v43 = vadd.f32 %v9102_v39, %v4837_v63  ;;  %v4552_v58 = vadd.f32 %v4551_v57, %v4545_v44  ;;  %v9800_v52 = vld [vmem:[#allocation66_spill] sm:$0xff]  ;;  %v9801_v39 = vld [vmem:[#allocation67_spill] sm:$0xff]  ;;  %v9803_v48 = vld [vmem:[#allocation116_spill] sm:$0xff] }
 0xfa1   :  { %v9220_v4 = vpop.permute.xlu1 %4371  ;;  %v4632_v56 = vadd.f32 %v4631_v14, %v4625_v47  ;;  %v4712_v36 = vadd.f32 %v4711_v29, %v4705_v19  ;;  %v4857_v20 = vmul.f32 %v9796_v21, %v9176_v55  ;;  %v4725_v29 = vmul.f32 %v8811_v6, %v9180_v3  ;;  %v9804_v26 = vld [vmem:[#allocation110_spill] sm:$0xff] }
 0xfa2   :  { %v4478_v37 = vmul.f32 %v9797_v10, %v9220_v4  ;;  %v4374_v53 = vmul.f32 %v9798_v46, %v9220_v4  ;;  %v4558_v32 = vmul.f32 %v9799_v34, %v9220_v4  ;;  %v4638_v63 = vmul.f32 %v9800_v52, %v9220_v4 }
 0xfa3   :  { %v4718_v44 = vmul.f32 %v9801_v39, %v9220_v4  ;;  %v4792_v47 = vadd.f32 %v4791_v0, %v4785_v28  ;;  %v4798_v8 = vmul.f32 %v9802_v54, %v9220_v4  ;;  %v4851_v57 = vadd.f32 %v4850_v9, %v4844_v43  ;;  %v9806_v43 = vld [vmem:[#allocation112_spill] sm:$0xff]  ;;  %v9810_v39 = vld [vmem:[#allocation115_spill] sm:$0xff]  ;;  %v9811_v54 = vld [vmem:[#allocation69_spill] sm:$0xff] }
 0xfa4   :  { %v4479_v7 = vadd.f32 %v4478_v37, %v4472_v12  ;;  %v4375_v14 = vadd.f32 %v4374_v53, %v4356_v24  ;;  %v4559_v27 = vadd.f32 %v4558_v32, %v4552_v58  ;;  %v4639_v19 = vadd.f32 %v4638_v63, %v4632_v56  ;;  %v9805_v12 = vld [vmem:[#allocation111_spill] sm:$0xff]  ;;  %v9808_v53 = vld [vmem:[#allocation113_spill] sm:$0xff] }
 0xfa5   :  { %v4719_v16 = vadd.f32 %v4718_v44, %v4712_v36  ;;  %v4805_v45 = vmul.f32 %v9803_v48, %v9180_v3  ;;  %v4864_v21 = vmul.f32 %v9804_v26, %v9094_v1  ;;  %v4799_v46 = vadd.f32 %v4798_v8, %v4792_v47  ;;  %v9807_v56 = vld [vmem:[#allocation55_spill] sm:$0xff] }
 0xfa6   :  { %v9242_v10 = vpop.permute.xlu1 %4409  ;;  %v4486_v0 = vadd.f32 %v4485_v17, %v4479_v7  ;;  %v4394_v28 = vadd.f32 %v4393_v49, %v4375_v14  ;;  %v4858_v9 = vadd.f32 %v4857_v20, %v4851_v57  ;;  %v4871_v6 = vmul.f32 %v8828_v2, %v9197_v35  ;;  %v9809_v49 = vld [vmem:[#allocation114_spill] sm:$0xff] }
 0xfa7   :  { %v4492_v24 = vmul.f32 %v9805_v12, %v9242_v10  ;;  %v4412_v58 = vmul.f32 %v9806_v43, %v9242_v10  ;;  %v4916_v36 = vmul.f32 %v9807_v56, %v9080_v59  ;;  %v4566_v37 = vadd.f32 %v4565_v15, %v4559_v27  ;;  %v9812_v57 = vld [vmem:[#allocation102_spill] sm:$0xff] }
 0xfa8   :  { %v4572_v34 = vmul.f32 %v9808_v53, %v9242_v10  ;;  %v4646_v17 = vadd.f32 %v4645_v41, %v4639_v19  ;;  %v4652_v20 = vmul.f32 %v9809_v49, %v9242_v10  ;;  %v4726_v63 = vadd.f32 %v4725_v29, %v4719_v16  ;;  %v9819_v53 = vld [vmem:[#allocation120_spill] sm:$0xff] }
 0xfa9   :  { %v9256_v32 = vadd.f32 %v4492_v24, %v4486_v0  ;;  %v9258_v52 = vadd.f32 %v4412_v58, %v4394_v28  ;;  %v4732_v44 = vmul.f32 %v9810_v39, %v9242_v10  ;;  %v4806_v2 = vadd.f32 %v4805_v45, %v4799_v46  ;;  %v9813_v45 = vld [vmem:[#allocation70_spill] sm:$0xff]  ;;  %v9815_v28 = vld [vmem:[#allocation117_spill] sm:$0xff] }
 0xfaa   :  { %v4812_v47 = vmul.f32 %v8824_v13, %v9242_v10  ;;  %v4865_v15 = vadd.f32 %v4864_v21, %v4858_v9  ;;  %v4878_v8 = vmul.f32 %v9811_v54, %v9220_v4  ;;  %v4917_v41 = vadd.f32 %v4916_v36, %v9106_v30  ;;  %v9816_v9 = vld [vmem:[#allocation118_spill] sm:$0xff]  ;;  %v9818_v36 = vld [vmem:[#allocation71_spill] sm:$0xff] }
 0xfab   :  { %4494 = vadd.xlane.f32.xlu0 %v9256_v32  ;;  %4414 = vadd.xlane.f32.xlu1 %v9258_v52  ;;  %v4930_v7 = vmul.f32 %v9812_v57, %v9140_v40  ;;  %v5083_v14 = vmul.f32 %v8884_v18, %v9044_v11  ;;  %v9274_v27 = vmul.f32 1.442695, %v9049_v60  ;;  %v9276_v13 = vadd.f32 %v4572_v34, %v4566_v37  ;;  %v9814_v18 = vld [vmem:[#allocation72_spill] sm:$0xff] }
 0xfac   :  { %v9278_v19 = vadd.f32 %v4652_v20, %v4646_v17  ;;  %v4872_v16 = vadd.f32 %v4871_v6, %v4865_v15  ;;  %v4885_v29 = vmul.f32 %v8830_v5, %v9180_v3  ;;  %v9282_v48 = vadd.f32 %v4732_v44, %v4726_v63  ;;  %v9817_v6 = vld [vmem:[#allocation119_spill] sm:$0xff]  ;;  %v9822_v63 = vld [vmem:[#allocation121_spill] sm:$0xff]  ;;  %v9823_v44 = vld [vmem:[#allocation122_spill] sm:$0xff] }
 0xfad   :  { %v4924_v30 = vadd.f32 %v9116_v50, %v4917_v41  ;;  %v4937_v26 = vmul.f32 %v9813_v45, %v9176_v55  ;;  %v4996_v21 = vmul.f32 %v9814_v18, %v9080_v59  ;;  %v9289_v60 = vadd.f32 %v4812_v47, %v4806_v2  ;;  %v9824_v47 = vld [vmem:[#allocation123_spill] sm:$0xff] }
 0xfae   :  { %v4879_v0 = vadd.f32 %v4878_v8, %v4872_v16  ;;  %v4892_v46 = vmul.f32 %v9815_v28, %v9242_v10  ;;  %v4944_v12 = vmul.f32 %v9816_v9, %v9094_v1  ;;  %v5010_v24 = vmul.f32 %v8860_v51, %v9140_v40  ;;  %v9821_v51 = vld [vmem:[#allocation75_spill] sm:$0xff]  ;;  %v9829_v28 = vld [vmem:[#allocation125_spill] sm:$0xff] }
 0xfaf   :  { %4574 = vadd.xlane.f32.xlu0 %v9276_v13  ;;  %4654 = vadd.xlane.f32.xlu1 %v9278_v19  ;;  %v4931_v5 = vadd.f32 %v4930_v7, %v4924_v30  ;;  %v4997_v50 = vadd.f32 %v4996_v21, %v9120_v38  ;;  %v9301_v43 = vmul.f32 1.442695, %v9058_v23  ;;  %v4951_v56 = vmul.f32 %v9817_v6, %v9197_v35  ;;  %v9820_v38 = vld [vmem:[#allocation73_spill] sm:$0xff]  ;;  %v9825_v7 = vld [vmem:[#allocation74_spill] sm:$0xff] }
 0xfb0   :  { %v4886_v58 = vadd.f32 %v4885_v29, %v4879_v0  ;;  %v4958_v37 = vmul.f32 %v9818_v36, %v9220_v4  ;;  %v4965_v34 = vmul.f32 %v9819_v53, %v9180_v3  ;;  %v5017_v20 = vmul.f32 %v9820_v38, %v9176_v55  ;;  %v9826_v29 = vld [vmem:[#allocation76_spill] sm:$0xff]  ;;  %v9827_v21 = vld [vmem:[#allocation78_spill] sm:$0xff]  ;;  %v9833_v53 = vld [vmem:[#allocation77_spill] sm:$0xff] }
 0xfb1   :  { %v4938_v17 = vadd.f32 %v4937_v26, %v4931_v5  ;;  %v5004_v49 = vadd.f32 %v9128_v31, %v4997_v50  ;;  %v5076_v23 = vmul.f32 %v9821_v51, %v9080_v59  ;;  %v4972_v39 = vmul.f32 %v9822_v63, %v9242_v10 }
 0xfb2   :  { %v5024_v2 = vmul.f32 %v9823_v44, %v9094_v1  ;;  %v5031_v15 = vmul.f32 %v9824_v47, %v9197_v35  ;;  %v5090_v54 = vmul.f32 %v8888_v22, %v9140_v40  ;;  %v9326_v57 = vadd.f32 %v4892_v46, %v4886_v58  ;;  %v9831_v58 = vld [vmem:[#allocation126_spill] sm:$0xff]  ;;  %v9836_v44 = vld [vmem:[#allocation129_spill] sm:$0xff]  ;;  %v9837_v47 = vld [vmem:[#allocation135_spill] sm:$0xff] }
 0xfb3   :  { %4734 = vadd.xlane.f32.xlu0 %v9282_v48  ;;  %4814 = vadd.xlane.f32.xlu1 %v9289_v60  ;;  %v4945_v31 = vadd.f32 %v4944_v12, %v4938_v17  ;;  %v5011_v8 = vadd.f32 %v5010_v24, %v5004_v49  ;;  %v5077_v41 = vadd.f32 %v5076_v23, %v9136_v61  ;;  %v9828_v61 = vld [vmem:[#allocation124_spill] sm:$0xff]  ;;  %v9830_v12 = vld [vmem:[#allocation130_spill] sm:$0xff]  ;;  %7450 = vpow2.f32 %v9274_v27 }
 0xfb4   :  { %v5038_v16 = vmul.f32 %v9825_v7, %v9220_v4  ;;  %v5097_v30 = vmul.f32 %v9826_v29, %v9176_v55  ;;  %v5150_v22 = vmul.f32 %v8909_v62, %v9042_v33  ;;  %v5156_v0 = vmul.f32 %v9827_v21, %v9080_v59 }
 0xfb5   :  { %v4952_v45 = vadd.f32 %v4951_v56, %v4945_v31  ;;  %v5018_v26 = vadd.f32 %v5017_v20, %v5011_v8  ;;  %v5084_v18 = vadd.f32 %v5083_v14, %v5077_v41  ;;  %v5045_v42 = vmul.f32 %v9828_v61, %v9180_v3  ;;  %v9832_v56 = vld [vmem:[#allocation127_spill] sm:$0xff]  ;;  %v9838_v31 = vld [vmem:[#allocation81_spill] sm:$0xff] }
 0xfb6   :  { %v5052_v46 = vmul.f32 %v9829_v28, %v9242_v10  ;;  %v5163_v9 = vmul.f32 %v8913_v25, %v9044_v11  ;;  %v5170_v5 = vmul.f32 %v9830_v12, %v9140_v40  ;;  %v5157_v24 = vadd.f32 %v5156_v0, %v5150_v22  ;;  %v9834_v25 = vld [vmem:[#allocation79_spill] sm:$0xff] }
 0xfb7   :  { %4894 = vadd.xlane.f32.xlu0 %v9326_v57  ;;  %v4959_v62 = vadd.f32 %v4958_v37, %v4952_v45  ;;  %v5025_v50 = vadd.f32 %v5024_v2, %v5018_v26  ;;  %v5091_v14 = vadd.f32 %v5090_v54, %v5084_v18  ;;  %v5104_v6 = vmul.f32 %v9831_v58, %v9094_v1  ;;  %v9835_v37 = vld [vmem:[#allocation128_spill] sm:$0xff]  ;;  %v9841_v18 = vld [vmem:[#allocation137_spill] sm:$0xff] }
 0xfb8   :  { %v5111_v36 = vmul.f32 %v9832_v56, %v9197_v35  ;;  %v5118_v17 = vmul.f32 %v9833_v53, %v9220_v4  ;;  %v5177_v49 = vmul.f32 %v9834_v25, %v9176_v55  ;;  %v5164_v23 = vadd.f32 %v5163_v9, %v5157_v24  ;;  %v9840_v45 = vld [vmem:[#allocation136_spill] sm:$0xff]  ;;  %v9382_v53 = vpop.eup %7448  ;;  %v9847_v25 = vld [vmem:[#allocation133_spill] sm:$0xff] }
 0xfb9   :  { %v4966_v38 = vadd.f32 %v4965_v34, %v4959_v62  ;;  %v5032_v20 = vadd.f32 %v5031_v15, %v5025_v50  ;;  %v5098_v51 = vadd.f32 %v5097_v30, %v5091_v14  ;;  %v5125_v63 = vmul.f32 %v9835_v37, %v9180_v3  ;;  %v9839_v15 = vld [vmem:[#allocation131_spill] sm:$0xff]  ;;  %v9843_v9 = vld [vmem:[#allocation80_spill] sm:$0xff]  ;;  %v9845_v14 = vld [vmem:[#allocation142_spill] sm:$0xff] }
 0xfba   :  { %v5132_v2 = vmul.f32 %v9836_v44, %v9242_v10  ;;  %v5230_v54 = vmul.f32 %v9837_v47, %v9042_v33  ;;  %v5236_v8 = vmul.f32 %v9838_v31, %v9080_v59  ;;  %v5171_v34 = vadd.f32 %v5170_v5, %v5164_v23  ;;  %v9844_v62 = vld [vmem:[#allocation83_spill] sm:$0xff]  ;;  %v9849_v37 = vld [vmem:[#allocation144_spill] sm:$0xff]  ;;  %v9850_v47 = vld [vmem:[#allocation134_spill] sm:$0xff] }
 0xfbb   :  { %v9361_v41 = vadd.f32 %v4972_v39, %v4966_v38  ;;  %v5039_v7 = vadd.f32 %v5038_v16, %v5032_v20  ;;  %v5105_v29 = vadd.f32 %v5104_v6, %v5098_v51  ;;  %v5184_v30 = vmul.f32 %v9839_v15, %v9094_v1  ;;  %v9842_v39 = vld [vmem:[#allocation132_spill] sm:$0xff]  ;;  %v9848_v20 = vld [vmem:[#allocation143_spill] sm:$0xff] }
 0xfbc   :  { %v5237_v22 = vadd.f32 %v5236_v8, %v5230_v54  ;;  %v5243_v26 = vmul.f32 %v9840_v45, %v9044_v11  ;;  %v5250_v21 = vmul.f32 %v9841_v18, %v9140_v40  ;;  %v5178_v28 = vadd.f32 %v5177_v49, %v5171_v34  ;;  %v9851_v8 = vld [vmem:[#allocation138_spill] sm:$0xff] }
 0xfbd   :  { %4974 = vadd.xlane.f32.xlu1 %v9361_v41  ;;  %v5046_v0 = vadd.f32 %v5045_v42, %v5039_v7  ;;  %v5112_v61 = vadd.f32 %v5111_v36, %v5105_v29  ;;  %v5191_v16 = vmul.f32 %v9842_v39, %v9197_v35  ;;  %v5198_v12 = vmul.f32 %v9843_v9, %v9220_v4  ;;  %v9846_v42 = vld [vmem:[#allocation82_spill] sm:$0xff]  ;;  %v9852_v29 = vld [vmem:[#allocation139_spill] sm:$0xff]  ;;  %v9858_v9 = vld [vmem:[#allocation141_spill] sm:$0xff] }
 0xfbe   :  { %v5244_v5 = vadd.f32 %v5243_v26, %v5237_v22  ;;  %v5257_v50 = vmul.f32 %v9844_v62, %v9176_v55  ;;  %v5310_v24 = vmul.f32 %v9845_v14, %v9042_v33  ;;  %v5185_v56 = vadd.f32 %v5184_v30, %v5178_v28  ;;  %v9854_v26 = vld [vmem:[#allocation84_spill] sm:$0xff]  ;;  %v9859_v14 = vld [vmem:[#allocation150_spill] sm:$0xff] }
 0xfbf   :  { %v9378_v58 = vadd.f32 %v5052_v46, %v5046_v0  ;;  %v5119_v6 = vadd.f32 %v5118_v17, %v5112_v61  ;;  %v5316_v36 = vmul.f32 %v9846_v42, %v9080_v59  ;;  %v5205_v49 = vmul.f32 %v9847_v25, %v9180_v3  ;;  %v9856_v61 = vld [vmem:[#allocation85_spill] sm:$0xff] }
 0xfc0   :  { %v5251_v38 = vadd.f32 %v5250_v21, %v5244_v5  ;;  %v5323_v51 = vmul.f32 %v9848_v20, %v9044_v11  ;;  %v5192_v23 = vadd.f32 %v5191_v16, %v5185_v56  ;;  %v5330_v44 = vmul.f32 %v9849_v37, %v9140_v40  ;;  %v9855_v21 = vld [vmem:[#allocation149_spill] sm:$0xff] }
 0xfc1   :  { %5054 = vadd.xlane.f32.xlu0 %v9378_v58  ;;  %v5126_v46 = vadd.f32 %v5125_v63, %v5119_v6  ;;  %v5317_v17 = vadd.f32 %v5316_v36, %v5310_v24  ;;  %v5212_v54 = vmul.f32 %v9850_v47, %v9242_v10  ;;  %v5264_v7 = vmul.f32 %v9851_v8, %v9094_v1  ;;  %v9853_v63 = vld [vmem:[#allocation34_spill] sm:$0xff]  ;;  %v9860_v6 = vld [vmem:[#allocation151_spill] sm:$0xff]  ;;  %v9861_v25 = vld [vmem:[#allocation145_spill] sm:$0xff] }
 0xfc2   :  { %v5258_v31 = vadd.f32 %v5257_v50, %v5251_v38  ;;  %v5271_v34 = vmul.f32 %v9852_v29, %v9197_v35  ;;  %v5199_v27 = vadd.f32 %v5198_v12, %v5192_v23  ;;  %v5337_v22 = vmul.f32 %v9853_v63, %v9176_v55  ;;  %v9862_v38 = vld [vmem:[#allocation146_spill] sm:$0xff]  ;;  %v9864_v37 = vld [vmem:[#allocation29_spill] sm:$0xff]  ;;  %v9866_v8 = vld [vmem:[#allocation156_spill] sm:$0xff] }
 0xfc3   :  { %v9398_v15 = vadd.f32 %v5132_v2, %v5126_v46  ;;  %v5324_v30 = vadd.f32 %v5323_v51, %v5317_v17  ;;  %v5278_v18 = vmul.f32 %v9854_v26, %v9220_v4  ;;  %v5390_v0 = vmul.f32 %v9855_v21, %v9042_v33  ;;  %v9857_v2 = vld [vmem:[#allocation140_spill] sm:$0xff]  ;;  %v9863_v46 = vld [vmem:[#allocation35_spill] sm:$0xff] }
 0xfc4   :  { %v5265_v45 = vadd.f32 %v5264_v7, %v5258_v31  ;;  %v5396_v28 = vmul.f32 %v9856_v61, %v9080_v59  ;;  %v5206_v39 = vadd.f32 %v5205_v49, %v5199_v27  ;;  %v5285_v16 = vmul.f32 %v9857_v2, %v9180_v3  ;;  %v9867_v29 = vld [vmem:[#allocation28_spill] sm:$0xff] }
 0xfc5   :  { %5134 = vadd.xlane.f32.xlu1 %v9398_v15  ;;  %v5292_v12 = vmul.f32 %v9858_v9, %v9242_v10  ;;  %v5331_v5 = vadd.f32 %v5330_v44, %v5324_v30  ;;  %v5403_v24 = vmul.f32 %v9859_v14, %v9044_v11  ;;  %v5410_v56 = vmul.f32 %v9860_v6, %v9140_v40  ;;  %v9868_v30 = vld [vmem:[#allocation148_spill] sm:$0xff]  ;;  %v9448_v14 = vpop.eup %7450 }
 0xfc6   :  { %v5272_v62 = vadd.f32 %v5271_v34, %v5265_v45  ;;  %v5397_v50 = vadd.f32 %v5396_v28, %v5390_v0  ;;  %v9417_v42 = vadd.f32 %v5212_v54, %v5206_v39  ;;  %v5344_v49 = vmul.f32 %v9861_v25, %v9094_v1  ;;  %v9865_v54 = vld [vmem:[#allocation147_spill] sm:$0xff]  ;;  %v9869_v45 = vld [vmem:[#allocation152_spill] sm:$0xff]  ;;  %v9870_v0 = vld [vmem:[#allocation157_spill] sm:$0xff] }
 0xfc7   :  { %v5338_v36 = vadd.f32 %v5337_v22, %v5331_v5  ;;  %v5351_v20 = vmul.f32 %v9862_v38, %v9197_v35  ;;  %v5358_v23 = vmul.f32 %v9863_v46, %v9220_v4  ;;  %v5417_v44 = vmul.f32 %v9864_v37, %v9176_v55  ;;  %v9871_v28 = vld [vmem:[#allocation158_spill] sm:$0xff]  ;;  %v9876_v38 = vld [vmem:[#allocation36_spill] sm:$0xff] }
 0xfc8   :  { %v5279_v51 = vadd.f32 %v5278_v18, %v5272_v62  ;;  %v5404_v17 = vadd.f32 %v5403_v24, %v5397_v50  ;;  %5214 = vadd.xlane.f32.xlu0 %v9417_v42  ;;  %v5365_v31 = vmul.f32 %v9865_v54, %v9180_v3  ;;  %v5470_v7 = vmul.f32 %v9866_v8, %v9042_v33  ;;  %v9873_v62 = vld [vmem:[#allocation31_spill] sm:$0xff]  ;;  %v9875_v25 = vld [vmem:[#allocation30_spill] sm:$0xff] }
 0xfc9   :  { %v5345_v47 = vadd.f32 %v5344_v49, %v5338_v36  ;;  %v5476_v34 = vmul.f32 %v9867_v29, %v9080_v59  ;;  %v5372_v63 = vmul.f32 %v9868_v30, %v9242_v10  ;;  %v5424_v26 = vmul.f32 %v9869_v45, %v9094_v1  ;;  %v9879_v8 = vld [vmem:[#allocation154_spill] sm:$0xff]  ;;  %v9880_v29 = vld [vmem:[#allocation159_spill] sm:$0xff] }
 0xfca   :  { %v5286_v27 = vadd.f32 %v5285_v16, %v5279_v51  ;;  %v5411_v22 = vadd.f32 %v5410_v56, %v5404_v17  ;;  %v5483_v61 = vmul.f32 %v9870_v0, %v9044_v11  ;;  %v5490_v39 = vmul.f32 %v9871_v28, %v9140_v40  ;;  %v9872_v16 = vld [vmem:[#allocation153_spill] sm:$0xff]  ;;  %v9874_v56 = vld [vmem:[#allocation87_spill] sm:$0xff]  ;;  %v9877_v51 = vld [vmem:[#allocation42_spill] sm:$0xff] }
 0xfcb   :  { %v5352_v18 = vadd.f32 %v5351_v20, %v5345_v47  ;;  %v5477_v21 = vadd.f32 %v5476_v34, %v5470_v7  ;;  %v5431_v5 = vmul.f32 %v9872_v16, %v9197_v35  ;;  %v5497_v50 = vmul.f32 %v9873_v62, %v9176_v55 }
 0xfcc   :  { %v9442_v2 = vadd.f32 %v5292_v12, %v5286_v27  ;;  %v5418_v9 = vadd.f32 %v5417_v44, %v5411_v22  ;;  %v5550_v36 = vmul.f32 %v9874_v56, %v9042_v33  ;;  %v5556_v49 = vmul.f32 %v9875_v25, %v9080_v59  ;;  %v9878_v44 = vld [vmem:[#allocation88_spill] sm:$0xff] }
 0xfcd   :  { %v5359_v24 = vadd.f32 %v5358_v23, %v5352_v18  ;;  %v5484_v6 = vadd.f32 %v5483_v61, %v5477_v21  ;;  %v5438_v20 = vmul.f32 %v9876_v38, %v9220_v4  ;;  %v5563_v46 = vmul.f32 %v9877_v51, %v9044_v11  ;;  %v9881_v27 = vld [vmem:[#allocation160_spill] sm:$0xff]  ;;  %v9883_v21 = vld [vmem:[#allocation155_spill] sm:$0xff]  ;;  %v9890_v38 = vld [vmem:[#allocation89_spill] sm:$0xff] }
 0xfce   :  { %5294 = vadd.xlane.f32.xlu1 %v9442_v2  ;;  %v5425_v12 = vadd.f32 %v5424_v26, %v5418_v9  ;;  %7452 = vpow2.f32 %v9301_v43  ;;  %v5557_v37 = vadd.f32 %v5556_v49, %v5550_v36  ;;  %v5570_v47 = vmul.f32 %v9878_v44, %v9140_v40  ;;  %v9884_v61 = vld [vmem:[#allocation44_spill] sm:$0xff]  ;;  %v9888_v36 = vld [vmem:[#allocation47_spill] sm:$0xff] }
 0xfcf   :  { %v5366_v17 = vadd.f32 %v5365_v31, %v5359_v24  ;;  %v5491_v23 = vadd.f32 %v5490_v39, %v5484_v6  ;;  %v5445_v7 = vmul.f32 %v9879_v8, %v9180_v3  ;;  %v5504_v34 = vmul.f32 %v9880_v29, %v9094_v1  ;;  %v9882_v31 = vld [vmem:[#allocation32_spill] sm:$0xff]  ;;  %v9885_v39 = vld [vmem:[#allocation38_spill] sm:$0xff]  ;;  %v9887_v6 = vld [vmem:[#allocation91_spill] sm:$0xff] }
 0xfd0   :  { %v5432_v54 = vadd.f32 %v5431_v5, %v5425_v12  ;;  %v5511_v30 = vmul.f32 %v9881_v27, %v9197_v35  ;;  %v5564_v43 = vadd.f32 %v5563_v46, %v5557_v37  ;;  %v5577_v26 = vmul.f32 %v9882_v31, %v9176_v55  ;;  %v9889_v12 = vld [vmem:[#allocation43_spill] sm:$0xff]  ;;  %v9891_v46 = vld [vmem:[#allocation161_spill] sm:$0xff]  ;;  %v9892_v37 = vld [vmem:[#allocation40_spill] sm:$0xff] }
 0xfd1   :  { %v9468_v22 = vadd.f32 %v5372_v63, %v5366_v17  ;;  %v5498_v45 = vadd.f32 %v5497_v50, %v5491_v23  ;;  %v5452_v0 = vmul.f32 %v9883_v21, %v9242_v10  ;;  %v5630_v28 = vmul.f32 %v9884_v61, %v9042_v33  ;;  %v9886_v63 = vld [vmem:[#allocation37_spill] sm:$0xff]  ;;  %v9894_v8 = vld [vmem:[#allocation39_spill] sm:$0xff]  ;;  %v9897_v61 = vld [vmem:[#allocation90_spill] sm:$0xff] }
 0xfd2   :  { %v5439_v18 = vadd.f32 %v5438_v20, %v5432_v54  ;;  %v5636_v9 = vmul.f32 %v9885_v39, %v9080_v59  ;;  %v5518_v5 = vmul.f32 %v9886_v63, %v9220_v4  ;;  %v5571_v62 = vadd.f32 %v5570_v47, %v5564_v43  ;;  %v9896_v21 = vld [vmem:[#allocation33_spill] sm:$0xff] }
 0xfd3   :  { %5374 = vadd.xlane.f32.xlu0 %v9468_v22  ;;  %v5505_v16 = vadd.f32 %v5504_v34, %v5498_v45  ;;  %v5643_v56 = vmul.f32 %v9887_v6, %v9044_v11  ;;  %v5650_v25 = vmul.f32 %v9888_v36, %v9140_v40  ;;  %v5584_v59 = vmul.f32 %v9889_v12, %v9094_v1  ;;  %v9893_v40 = vld [vmem:[#allocation162_spill] sm:$0xff]  ;;  %v9895_v45 = vld [vmem:[#allocation96_spill] sm:$0xff] }
 0xfd4   :  { %v5446_v50 = vadd.f32 %v5445_v7, %v5439_v18  ;;  %v5637_v24 = vadd.f32 %v5636_v9, %v5630_v28  ;;  %v5578_v33 = vadd.f32 %v5577_v26, %v5571_v62  ;;  %v5591_v20 = vmul.f32 %v9890_v38, %v9197_v35  ;;  %v9898_v9 = vld [vmem:[#allocation41_spill] sm:$0xff] }
 0xfd5   :  { %v5512_v49 = vadd.f32 %v5511_v30, %v5505_v16  ;;  %v5525_v17 = vmul.f32 %v9891_v46, %v9180_v3  ;;  %v5657_v11 = vmul.f32 %v9892_v37, %v9176_v55  ;;  %v5532_v47 = vmul.f32 %v9893_v40, %v9242_v10 }
 0xfd6   :  { %v9489_v51 = vadd.f32 %v5452_v0, %v5446_v50  ;;  %v5644_v23 = vadd.f32 %v5643_v56, %v5637_v24  ;;  %v5585_v54 = vadd.f32 %v5584_v59, %v5578_v33  ;;  %v5598_v7 = vmul.f32 %v9894_v8, %v9220_v4 }
 0xfd7   :  { %v5519_v44 = vadd.f32 %v5518_v5, %v5512_v49  ;;  %v5664_v43 = vmul.f32 %v9895_v45, %v9094_v1  ;;  %v5671_v55 = vmul.f32 %v9382_v53, %v9197_v35  ;;  %v5605_v0 = vmul.f32 %v9896_v21, %v9180_v3 }
 0xfd8   :  { %5454 = vadd.xlane.f32.xlu1 %v9489_v51  ;;  %v5651_v29 = vadd.f32 %v5650_v25, %v5644_v23  ;;  %v5592_v27 = vadd.f32 %v5591_v20, %v5585_v54  ;;  %v5612_v28 = vmul.f32 %v9897_v61, %v9242_v10  ;;  %v5678_v16 = vmul.f32 %v9898_v9, %v9220_v4 }
 0xfd9   :  { %v5526_v34 = vadd.f32 %v5525_v17, %v5519_v44  ;;  %v5685_v53 = vmul.f32 %v9448_v14, %v9180_v3 }
 0xfda   :  { %v5658_v30 = vadd.f32 %v5657_v11, %v5651_v29  ;;  %v5599_v18 = vadd.f32 %v5598_v7, %v5592_v27 }
 0xfdb   :  { %v7453_v31 = vpop.eup %7452  ;;  %v9504_v26 = vadd.f32 %v5532_v47, %v5526_v34 }
 0xfdc   :  { %v5665_v39 = vadd.f32 %v5664_v43, %v5658_v30  ;;  %v5606_v1 = vadd.f32 %v5605_v0, %v5599_v18  ;;  %v5692_v62 = vmul.f32 %v7453_v31, %v9242_v10 }
 0xfdd   :  { %5534 = vadd.xlane.f32.xlu0 %v9504_v26 }
 0xfde   :  { %v5672_v63 = vadd.f32 %v5671_v55, %v5665_v39  ;;  %v9513_v5 = vadd.f32 %v5612_v28, %v5606_v1 }
 0xfe0   :  { %v5679_v35 = vadd.f32 %v5678_v16, %v5672_v63  ;;  %5614 = vadd.xlane.f32.xlu1 %v9513_v5 }
 0xfe2   :  { %v5686_v50 = vadd.f32 %v5685_v53, %v5679_v35 }
 0xfe4   :  { %v5693_v24 = vadd.f32 %v5692_v62, %v5686_v50 }
 0xfe6   :  { %v5695_v6 = vsel %vm5694_vm2, %v5693_v24, 0.0  ;;  %5699 = vst.msk [vmem:[#allocation20 + $0x80] sm:$0xff] %vm5694_vm2, %v5693_v24 }
 0xfe7   :  { %5696 = vadd.xlane.f32.xlu0 %v5695_v6 }
0x1034   :  { %v4495_v4 = vpop.xlane.xlu0 %4494  ;;  %v4415_v56 = vpop.xlane.xlu1 %4414 }
0x1035   :  { %v4496_v36 = vadd.f32 %v4495_v4, %v4415_v56 }
0x1038   :  { %v4575_v25 = vpop.xlane.xlu0 %4574  ;;  %v4655_v33 = vpop.xlane.xlu1 %4654 }
0x1039   :  { %v4576_v49 = vadd.f32 %v4575_v25, %v4496_v36 }
0x103b   :  { %v4656_v12 = vadd.f32 %v4655_v33, %v4576_v49 }
0x103c   :  { %v4735_v3 = vpop.xlane.xlu0 %4734  ;;  %v4815_v10 = vpop.xlane.xlu1 %4814 }
0x103d   :  { %v4736_v14 = vadd.f32 %v4735_v3, %v4656_v12 }
0x103f   :  { %v4816_v59 = vadd.f32 %v4815_v10, %v4736_v14 }
0x1040   :  { %v4895_v38 = vpop.xlane.xlu0 %4894 }
0x1041   :  { %v4896_v20 = vadd.f32 %v4895_v38, %v4816_v59 }
0x1046   :  { %v4975_v46 = vpop.xlane.xlu1 %4974 }
0x1047   :  { %v4976_v17 = vadd.f32 %v4975_v46, %v4896_v20 }
0x104a   :  { %v5055_v23 = vpop.xlane.xlu0 %5054 }
0x104b   :  { %v5056_v37 = vadd.f32 %v5055_v23, %v4976_v17 }
0x104e   :  { %v5135_v11 = vpop.xlane.xlu1 %5134 }
0x104f   :  { %v5136_v44 = vadd.f32 %v5135_v11, %v5056_v37 }
0x1051   :  { %v5215_v40 = vpop.xlane.xlu0 %5214 }
0x1052   :  { %v5216_v47 = vadd.f32 %v5215_v40, %v5136_v44 }
0x1057   :  { %v5295_v54 = vpop.xlane.xlu1 %5294 }
0x1058   :  { %v5296_v8 = vadd.f32 %v5295_v54, %v5216_v47 }
0x105c   :  { %v5375_v7 = vpop.xlane.xlu0 %5374 }
0x105d   :  { %v5376_v29 = vadd.f32 %v5375_v7, %v5296_v8 }
0x1061   :  { %v5455_v34 = vpop.xlane.xlu1 %5454 }
0x1062   :  { %v5456_v27 = vadd.f32 %v5455_v34, %v5376_v29 }
0x1066   :  { %v5535_v30 = vpop.xlane.xlu0 %5534 }
0x1067   :  { %v5536_v45 = vadd.f32 %v5535_v30, %v5456_v27 }
0x1069   :  { %v5615_v43 = vpop.xlane.xlu1 %5614 }
0x106a   :  { %v5616_v55 = vadd.f32 %v5615_v43, %v5536_v45 }
0x1070   :  { %v5697_v31 = vpop.xlane.xlu0 %5696 }
0x1071   :  { %v5698_v18 = vadd.f32 %v5697_v31, %v5616_v55 }
0x1073   :  { %v5700_v21 = vadd.f32 1e-30, %v5698_v18 }
0x1075   :  { %7454 = vrcp.f32 %v5700_v21 }
0x1082   :  { %v7455_v0 = vpop.eup %7454 }
0x1083   :  { %v5702_v61 = vmul.f32 %v7455_v0, %v5700_v21 }
0x1085   :  { %v5703_v28 = vsub.f32 2.0, %v5702_v61 }
0x1087   :  { %v5704_v39 = vmul.f32 %v7455_v0, %v5703_v28 }
0x1089   :  { %v5706_v9 = vmul.f32 %v5704_v39, %v9258_v52  ;;  %v5709_v16 = vmul.f32 %v5704_v39, %v9256_v32  ;;  %v5712_v1 = vmul.f32 %v5704_v39, %v9276_v13  ;;  %v5715_v63 = vmul.f32 %v5704_v39, %v9278_v19 }
0x108a   :  { %v5718_v35 = vmul.f32 %v5704_v39, %v9282_v48  ;;  %v5721_v53 = vmul.f32 %v5704_v39, %v9289_v60  ;;  %v5724_v62 = vmul.f32 %v5704_v39, %v9326_v57  ;;  %v5727_v50 = vmul.f32 %v5704_v39, %v9361_v41  ;;  %v5753_v48 = vld [vmem:[#allocation20 + $0x80] sm:$0xff] }
0x108b   :  { %5707 = vst [vmem:[#allocation20] sm:$0xff] %v5706_v9  ;;  %5710 = vst [vmem:[#allocation20 + $0x8] sm:$0xff] %v5709_v16  ;;  %v5730_v32 = vmul.f32 %v5704_v39, %v9378_v58  ;;  %v5733_v52 = vmul.f32 %v5704_v39, %v9398_v15  ;;  %v5736_v13 = vmul.f32 %v5704_v39, %v9417_v42 }
0x108c   :  { %5713 = vst [vmem:[#allocation20 + $0x10] sm:$0xff] %v5712_v1  ;;  %5716 = vst [vmem:[#allocation20 + $0x18] sm:$0xff] %v5715_v63  ;;  %v5739_v19 = vmul.f32 %v5704_v39, %v9442_v2  ;;  %v5742_v60 = vmul.f32 %v5704_v39, %v9468_v22  ;;  %v5745_v57 = vmul.f32 %v5704_v39, %v9489_v51 }
0x108d   :  { %5719 = vst [vmem:[#allocation20 + $0x20] sm:$0xff] %v5718_v35  ;;  %5722 = vst [vmem:[#allocation20 + $0x28] sm:$0xff] %v5721_v53  ;;  %v5748_v41 = vmul.f32 %v5704_v39, %v9504_v26  ;;  %v5751_v24 = vmul.f32 %v5704_v39, %v9513_v5  ;;  %v5754_v58 = vmul.f32 %v5753_v48, %v5704_v39 }
0x108e   :  { %5725 = vst [vmem:[#allocation20 + $0x30] sm:$0xff] %v5724_v62  ;;  %5728 = vst [vmem:[#allocation20 + $0x38] sm:$0xff] %v5727_v50 }
0x108f   :  { %5731 = vst [vmem:[#allocation20 + $0x40] sm:$0xff] %v5730_v32  ;;  %5734 = vst [vmem:[#allocation20 + $0x48] sm:$0xff] %v5733_v52 }
0x1090   :  { %5737 = vst [vmem:[#allocation20 + $0x50] sm:$0xff] %v5736_v13  ;;  %5740 = vst [vmem:[#allocation20 + $0x58] sm:$0xff] %v5739_v19 }
0x1091   :  { %5743 = vst [vmem:[#allocation20 + $0x60] sm:$0xff] %v5742_v60  ;;  %5746 = vst [vmem:[#allocation20 + $0x68] sm:$0xff] %v5745_v57 }
0x1092   :  { %5749 = vst [vmem:[#allocation20 + $0x70] sm:$0xff] %v5748_v41  ;;  %5752 = vst [vmem:[#allocation20 + $0x78] sm:$0xff] %v5751_v24 }
0x1093   :  { %5755 = vst.msk [vmem:[#allocation20 + $0x80] sm:$0xff] %vm5694_vm2, %v5754_v58 }
0x1094   :  { %7704 = shalt.err (!%p7701_p3)
}
0x1095   :  { %5765 = dma.vmem_to_hbm [thread:$0]  %s5763_s19, 2176, %s9553_s12, [#allocation4]  }
0x1096   :  { %7725 = dma.done.wait [#allocation4], 2176  }
0x1097   :  { %7726 = vsyncadd [#allocation4], 4294965120 }
0x1098   :  { %5769 = vsyncpa [#allocation3], 1 }
0x1099   :  { %5770 = vsyncpa [#allocation6], 1 }
0x109a   :  { %5771 = vsyncpa [#allocation9], 1 }
0x109b   :  { %5772 = vsyncpa [#allocation12], 1 }
0x109c   :  { %5773 = vsyncpa [#allocation15], 1 }
0x109d   :  { %5774 = vsyncpa [#allocation18], 1 }
0x109e   :  { %5775 = vsyncpa [#allocation4], 1 }

</bundles_post_ra>
